<compile_context>
chip_gen: v7x
topology: tpu7x:2x2x1
jax: 0.10.0
libtpu: 0.0.40
codegen_flags: <defaults>
</compile_context>

<pallas_src>
import functools

import jax
import jax.numpy as jnp
from jax.experimental import pallas as pl
from jax.experimental.pallas import tpu as pltpu

CP = 128  # channel padding unit == TPU lane width


# ----------------------------------------------------------------------------
# Pallas kernel: fused  patches @ W  + bias  (+ SiLU)
#   bf16 operands, f32 accumulation on the MXU.
# ----------------------------------------------------------------------------
def _fused_matmul_kernel(x_ref, w_ref, b_ref, o_ref, *, act):
    acc = jnp.dot(x_ref[...], w_ref[...], preferred_element_type=jnp.float32)
    acc = acc + b_ref[...]                      # (1, N) broadcasts over rows
    if act == "silu":
        # SiLU = x * sigmoid(x); exp + reciprocal both go to the EUP slot.
        acc = acc * pl.reciprocal(1.0 + jnp.exp(-acc), approx=True)
    o_ref[...] = acc.astype(o_ref.dtype)


def _round_up(x, m):
    return ((x + m - 1) // m) * m


def matmul_bias_act(x, w, b, act):
    """x: (M, K) bf16, w: (K, N) bf16 (pre-padded, K/N multiples of 128),
    b: (1, N) f32.  Returns (M, N) bf16."""
    M, K = x.shape
    K2, N = w.shape
    assert K == K2 and K % CP == 0 and N % CP == 0

    if M > 256 and M % 256 == 0:
        TM, Mp = 256, M            # >=2 grid steps -> feeds both TCs on v7x
    else:
        Mp = M if M % 8 == 0 else _round_up(M, 8)
        if Mp != M:
            x = jnp.pad(x, ((0, Mp - M), (0, 0)))
        TM = Mp                    # single full block

    out = pl.pallas_call(
        functools.partial(_fused_matmul_kernel, act=act),
        out_shape=jax.ShapeDtypeStruct((Mp, N), jnp.bfloat16),
        grid=(Mp // TM,),
        in_specs=[
            pl.BlockSpec((TM, K), lambda i: (i, 0)),
            pl.BlockSpec((K, N), lambda i: (0, 0)),   # weight resident
            pl.BlockSpec((1, N), lambda i: (0, 0)),   # bias resident
        ],
        out_specs=pl.BlockSpec((TM, N), lambda i: (i, 0)),
        compiler_params=pltpu.CompilerParams(
            dimension_semantics=("parallel",)),
    )(x, w, b)
    return out[:M] if Mp != M else out


# ----------------------------------------------------------------------------
# Conv2d on channel-padded NHWC activations = im2col glue + fused Pallas matmul
# ----------------------------------------------------------------------------
def conv_pallas(x, w, b, *, ksize=1, stride=1, act="silu"):
    """x: (B, H, W, Cp) bf16 channel-padded; w: (ksize*ksize*Cp, Np) bf16 packed."""
    B, H, W, Cpx = x.shape
    K, N = w.shape
    assert K == ksize * ksize * Cpx
    pad = ksize // 2
    Ho = (H + 2 * pad - ksize) // stride + 1
    Wo = (W + 2 * pad - ksize) // stride + 1

    if ksize == 1:
        patches = x.reshape(B * H * W, Cpx)
    else:
        xp = jnp.pad(x, ((0, 0), (pad, pad), (pad, pad), (0, 0)))
        cols = [xp[:, dy:dy + stride * Ho:stride, dx:dx + stride * Wo:stride, :]
                for dy in range(ksize) for dx in range(ksize)]
        patches = jnp.concatenate(cols, axis=-1).reshape(
            B * Ho * Wo, ksize * ksize * Cpx)

    out = matmul_bias_act(patches, w, b, act)           # (M, N) bf16, padded N
    return out.reshape(B, Ho, Wo, N)


def upsample_nearest_2x(x):
    B, H, W, C = x.shape
    x = jnp.broadcast_to(x[:, :, None, :, None, :], (B, H, 2, W, 2, C))
    return x.reshape(B, 2 * H, 2 * W, C)


# ----------------------------------------------------------------------------
# Deterministic parameter init (Conv+BN folded => weight + bias), PyTorch layout
# ----------------------------------------------------------------------------
def init_conv(key, cin, cout, k):
    kw, kb = jax.random.split(key)
    fan_in = cin * k * k
    w = jax.random.normal(kw, (cout, cin, k, k), jnp.float32) / jnp.sqrt(float(fan_in))
    b = 0.01 * jax.random.normal(kb, (cout,), jnp.float32)
    return {"w": w, "b": b}


def build_params(num_classes=4, width=32, head_hidden=32):
    key = jax.random.PRNGKey(0)
    ks = iter(jax.random.split(key, 64))
    p = {}
    # backbone (CSPDarknet-lite): stem + dark3/4/5, each 3x3 s2 Conv+BN+SiLU
    p["stem"] = init_conv(next(ks), 3, 16, 3)
    p["dark3"] = init_conv(next(ks), 16, 32, 3)
    p["dark4"] = init_conv(next(ks), 32, 64, 3)
    p["dark5"] = init_conv(next(ks), 64, 128, 3)
    # neck (FPN-lite, top-down): 1x1 laterals + 1x1 fuse convs
    p["lat5"] = init_conv(next(ks), 128, width, 1)
    p["lat4"] = init_conv(next(ks), 64, width, 1)
    p["lat3"] = init_conv(next(ks), 32, width, 1)
    p["fuse4"] = init_conv(next(ks), 2 * width, width, 1)
    p["fuse3"] = init_conv(next(ks), 2 * width, width, 1)
    # decoupled YOLOX head (shared structure, separate weights per level)
    p["head"] = []
    for _ in range(3):
        lvl = {
            "stem": init_conv(next(ks), width, head_hidden, 1),
            "cls_conv": init_conv(next(ks), head_hidden, head_hidden, 3),
            "reg_conv": init_conv(next(ks), head_hidden, head_hidden, 3),
            "cls_pred": init_conv(next(ks), head_hidden, num_classes, 1),
            "reg_pred": init_conv(next(ks), head_hidden, 4, 1),
            "obj_pred": init_conv(next(ks), head_hidden, 1, 1),
        }
        p["head"].append(lvl)
    return p


# ----------------------------------------------------------------------------
# One-time weight packing: PyTorch (Cout,Cin,KH,KW) -> padded matmul (K, N) bf16
# matching the channel-padded im2col patch layout.  Done ONCE, outside jit.
# ----------------------------------------------------------------------------
def _pack_w(w_oihw, groups, cp, n_pad, n_off=0, base=None):
    """groups: list of (padded_offset, count) giving where each contiguous chunk
    of the conv's real input channels lives in the cp-wide padded channel axis."""
    Cout, Cin, KH, KW = w_oihw.shape
    wt = jnp.transpose(w_oihw, (2, 3, 1, 0)).astype(jnp.float32)   # (KH,KW,Cin,Cout)
    W = jnp.zeros((KH, KW, cp, n_pad), jnp.float32) if base is None else base
    s = 0
    for off, cnt in groups:
        W = W.at[:, :, off:off + cnt, n_off:n_off + Cout].set(wt[:, :, s:s + cnt, :])
        s += cnt
    assert s == Cin
    return W


def _pack_b(b, n_pad, n_off=0, base=None):
    B = jnp.zeros((1, n_pad), jnp.float32) if base is None else base
    return B.at[0, n_off:n_off + b.shape[0]].set(b.astype(jnp.float32))


def _fin(W):
    KH, KW, cp, n_pad = W.shape
    return W.reshape(KH * KW * cp, n_pad).astype(jnp.bfloat16)


def pack_params(p, num_classes, width=32, hidden=32):
    q = {}

    def simple(name, cin):
        q[name + "_w"] = _fin(_pack_w(p[name]["w"], [(0, cin)], CP, CP))
        q[name + "_b"] = _pack_b(p[name]["b"], CP)

    simple("stem", 3)
    simple("dark3", 16)
    simple("dark4", 32)
    simple("dark5", 64)
    simple("lat5", 128)
    simple("lat4", 64)
    simple("lat3", 32)
    # fuse convs: input = concat([upsampled top (real @0), lateral (real @CP)])
    for name in ("fuse4", "fuse3"):
        q[name + "_w"] = _fin(
            _pack_w(p[name]["w"], [(0, width), (CP, width)], 2 * CP, CP))
        q[name + "_b"] = _pack_b(p[name]["b"], CP)

    q["head"] = []
    for hp in p["head"]:
        lvl = {}
        lvl["stem_w"] = _fin(_pack_w(hp["stem"]["w"], [(0, width)], CP, CP))
        lvl["stem_b"] = _pack_b(hp["stem"]["b"], CP)
        # fused cls_conv + reg_conv (same input): cols [0:h]=cls_feat, [CP:CP+h]=reg_feat
        W = _pack_w(hp["cls_conv"]["w"], [(0, hidden)], CP, 2 * CP, n_off=0)
        W = _pack_w(hp["reg_conv"]["w"], [(0, hidden)], CP, 2 * CP, n_off=CP, base=W)
        lvl["convs_w"] = _fin(W)
        b = _pack_b(hp["cls_conv"]["b"], 2 * CP, n_off=0)
        b = _pack_b(hp["reg_conv"]["b"], 2 * CP, n_off=CP, base=b)
        lvl["convs_b"] = b
        # fused predictions: cols [0:4]=reg, [4]=obj, [5:5+nc]=cls
        W = _pack_w(hp["reg_pred"]["w"], [(CP, hidden)], 2 * CP, CP, n_off=0)
        W = _pack_w(hp["obj_pred"]["w"], [(CP, hidden)], 2 * CP, CP, n_off=4, base=W)
        W = _pack_w(hp["cls_pred"]["w"], [(0, hidden)], 2 * CP, CP, n_off=5, base=W)
        lvl["pred_w"] = _fin(W)
        b = _pack_b(hp["reg_pred"]["b"], CP, n_off=0)
        b = _pack_b(hp["obj_pred"]["b"], CP, n_off=4, base=b)
        b = _pack_b(hp["cls_pred"]["b"], CP, n_off=5, base=b)
        lvl["pred_b"] = b
        q["head"].append(lvl)
    return q


# ----------------------------------------------------------------------------
# YOLOX forward (eval mode, is_decode=False)
# ----------------------------------------------------------------------------
def yolox_forward(q, x_nchw, num_classes):
    x = jnp.transpose(x_nchw, (0, 2, 3, 1)).astype(jnp.bfloat16)  # NCHW -> NHWC
    B, H, W, C = x.shape
    x = jnp.pad(x, ((0, 0), (0, 0), (0, 0), (0, CP - C)))         # pad channels once

    # ---- backbone ----
    s = conv_pallas(x, q["stem_w"], q["stem_b"], ksize=3, stride=2)     # H/2
    c3 = conv_pallas(s, q["dark3_w"], q["dark3_b"], ksize=3, stride=2)  # H/4
    c4 = conv_pallas(c3, q["dark4_w"], q["dark4_b"], ksize=3, stride=2) # H/8
    c5 = conv_pallas(c4, q["dark5_w"], q["dark5_b"], ksize=3, stride=2) # H/16

    # ---- neck (FPN-lite top-down) ----
    p5 = conv_pallas(c5, q["lat5_w"], q["lat5_b"])
    l4 = conv_pallas(c4, q["lat4_w"], q["lat4_b"])
    p4 = conv_pallas(jnp.concatenate([upsample_nearest_2x(p5), l4], axis=-1),
                     q["fuse4_w"], q["fuse4_b"])
    l3 = conv_pallas(c3, q["lat3_w"], q["lat3_b"])
    p3 = conv_pallas(jnp.concatenate([upsample_nearest_2x(p4), l3], axis=-1),
                     q["fuse3_w"], q["fuse3_b"])
    fpn_outs = (p3, p4, p5)

    # ---- decoupled head, is_decode=False => raw outputs ----
    level_outs = []
    for feat, hp in zip(fpn_outs, q["head"]):
        t = conv_pallas(feat, hp["stem_w"], hp["stem_b"])                     # 1x1 SiLU
        cr = conv_pallas(t, hp["convs_w"], hp["convs_b"], ksize=3)            # cls+reg 3x3 SiLU
        pred = conv_pallas(cr, hp["pred_w"], hp["pred_b"], act="none")        # reg|obj|cls 1x1
        Bp, Hh, Ww, Np = pred.shape
        level_outs.append(pred.reshape(Bp, Hh * Ww, Np))

    out = jnp.concatenate(level_outs, axis=1)            # (B, n_anchors, 128) padded
    out = out[..., :5 + num_classes]                     # single slice at the very end
    return out.astype(jnp.float32)


# ----------------------------------------------------------------------------
if __name__ == "__main__":
    NUM_CLASSES = 4
    raw_params = build_params(num_classes=NUM_CLASSES)
    packed = pack_params(raw_params, NUM_CLASSES)        # one-time weight packing

    # small input consistent with a YOLOX forward: (B=2, C=3, H=32, W=32) NCHW
    x = jax.random.normal(jax.random.PRNGKey(0), (2, 3, 32, 32), jnp.float32)

    fwd = jax.jit(lambda p, xx: yolox_forward(p, xx, NUM_CLASSES))
    out = fwd(packed, x)
    out = jax.block_until_ready(out)

    # strides 4/8/16 on a 32x32 input -> 8*8 + 4*4 + 2*2 = 84 anchors
    expected = (2, 84, 5 + NUM_CLASSES)
    assert out.shape == expected, (out.shape, expected)
    assert bool(jnp.all(jnp.isfinite(out)))
    print("KERNEL_OK")
</pallas_src>

<mosaic_0001>
module attributes {stable_mosaic.version = 11 : i64} {
  func.func @_fused_matmul_kernel(%arg0: i32, %arg1: memref<256x1152xbf16, #tpu.memory_space<vmem>>, %arg2: memref<1152x128xbf16, #tpu.memory_space<vmem>>, %arg3: memref<1x128xf32, #tpu.memory_space<vmem>>, %arg4: memref<256x128xbf16, #tpu.memory_space<vmem>>) attributes {dimension_semantics = [#tpu.dimension_semantics<parallel>], iteration_bounds = array<i64: 2>, scalar_prefetch = 0 : i64, scratch_operands = 0 : i64, tpu.core_type = #tpu.core_type<tc>, window_params = [{transform_indices = @transform_0, window_bounds = array<i64: 256, 1152>}, {pipeline_mode = #tpu.pipeline_mode<synchronous>, transform_indices = @transform_1, window_bounds = array<i64: 1152, 128>}, {pipeline_mode = #tpu.pipeline_mode<synchronous>, transform_indices = @transform_2, window_bounds = array<i64: 1, 128>}, {transform_indices = @transform_3, window_bounds = array<i64: 256, 128>}]} {
    %c0 = arith.constant 0 : index
    %c0_0 = arith.constant 0 : index
    %0 = vector.load %arg1[%c0, %c0_0] : memref<256x1152xbf16, #tpu.memory_space<vmem>>, vector<256x1152xbf16>
    %c0_1 = arith.constant 0 : index
    %c0_2 = arith.constant 0 : index
    %1 = vector.load %arg2[%c0_1, %c0_2] : memref<1152x128xbf16, #tpu.memory_space<vmem>>, vector<1152x128xbf16>
    %cst = arith.constant dense<0.000000e+00> : vector<256x128xf32>
    %2 = tpu.matmul %0, %1, %cst {dimension_numbers = #tpu.dot_dimension_numbers<[1], [0], [0], [1], [0, 0, 1, 1], [], []>} : vector<256x1152xbf16>, vector<1152x128xbf16>, vector<256x128xf32> -> vector<256x128xf32>
    %c0_3 = arith.constant 0 : index
    %c0_4 = arith.constant 0 : index
    %3 = vector.load %arg3[%c0_3, %c0_4] : memref<1x128xf32, #tpu.memory_space<vmem>>, vector<1x128xf32>
    %4 = vector.broadcast %3 : vector<1x128xf32> to vector<256x128xf32>
    %5 = arith.addf %2, %4 : vector<256x128xf32>
    %cst_5 = arith.constant 0.000000e+00 : f32
    %6 = vector.broadcast %cst_5 : f32 to vector<256x128xf32>
    %7 = arith.subf %6, %5 : vector<256x128xf32>
    %8 = math.exp %7 : vector<256x128xf32>
    %cst_6 = arith.constant 1.000000e+00 : f32
    %9 = vector.broadcast %cst_6 : f32 to vector<256x128xf32>
    %10 = arith.addf %9, %8 : vector<256x128xf32>
    %11 = tpu.reciprocal %10 {approx = true} : vector<256x128xf32> -> vector<256x128xf32>
    %12 = arith.mulf %5, %11 : vector<256x128xf32>
    %13 = arith.truncf %12 : vector<256x128xf32> to vector<256x128xbf16>
    %c0_7 = arith.constant 0 : index
    %c0_8 = arith.constant 0 : index
    %14 = vector.load %arg4[%c0_7, %c0_8] : memref<256x128xbf16, #tpu.memory_space<vmem>>, vector<256x128xbf16>
    tpu.vector_store %arg4[%c0_7, %c0_8], %13 {strides = array<i32>} : memref<256x128xbf16, #tpu.memory_space<vmem>>, vector<256x128xbf16>,
    return
  }
  func.func @transform_0(%arg0: i32) -> (i32, i32) {
    %c0_i32 = arith.constant 0 : i32
    %c0_i32_0 = arith.constant 0 : i32
    return %arg0, %c0_i32 : i32, i32
  }
  func.func @transform_1(%arg0: i32) -> (i32, i32) {
    %c0_i32 = arith.constant 0 : i32
    %c0_i32_0 = arith.constant 0 : i32
    %c0_i32_1 = arith.constant 0 : i32
    return %c0_i32, %c0_i32_0 : i32, i32
  }
  func.func @transform_2(%arg0: i32) -> (i32, i32) {
    %c0_i32 = arith.constant 0 : i32
    %c0_i32_0 = arith.constant 0 : i32
    %c0_i32_1 = arith.constant 0 : i32
    return %c0_i32, %c0_i32_0 : i32, i32
  }
  func.func @transform_3(%arg0: i32) -> (i32, i32) {
    %c0_i32 = arith.constant 0 : i32
    %c0_i32_0 = arith.constant 0 : i32
    return %arg0, %c0_i32 : i32, i32
  }
}

module attributes {stable_mosaic.version = 11 : i64} {
  func.func @_fused_matmul_kernel(%arg0: i32, %arg1: memref<128x1152xbf16, #tpu.memory_space<vmem>>, %arg2: memref<1152x128xbf16, #tpu.memory_space<vmem>>, %arg3: memref<1x128xf32, #tpu.memory_space<vmem>>, %arg4: memref<128x128xbf16, #tpu.memory_space<vmem>>) attributes {dimension_semantics = [#tpu.dimension_semantics<parallel>], iteration_bounds = array<i64: 1>, scalar_prefetch = 0 : i64, scratch_operands = 0 : i64, tpu.core_type = #tpu.core_type<tc>, window_params = [{transform_indices = @transform_0, window_bounds = array<i64: 128, 1152>}, {pipeline_mode = #tpu.pipeline_mode<synchronous>, transform_indices = @transform_1, window_bounds = array<i64: 1152, 128>}, {pipeline_mode = #tpu.pipeline_mode<synchronous>, transform_indices = @transform_2, window_bounds = array<i64: 1, 128>}, {transform_indices = @transform_3, window_bounds = array<i64: 128, 128>}]} {
    %c0 = arith.constant 0 : index
    %c0_0 = arith.constant 0 : index
    %0 = vector.load %arg1[%c0, %c0_0] : memref<128x1152xbf16, #tpu.memory_space<vmem>>, vector<128x1152xbf16>
    %c0_1 = arith.constant 0 : index
    %c0_2 = arith.constant 0 : index
    %1 = vector.load %arg2[%c0_1, %c0_2] : memref<1152x128xbf16, #tpu.memory_space<vmem>>, vector<1152x128xbf16>
    %cst = arith.constant dense<0.000000e+00> : vector<128x128xf32>
    %2 = tpu.matmul %0, %1, %cst {dimension_numbers = #tpu.dot_dimension_numbers<[1], [0], [0], [1], [0, 0, 1, 1], [], []>} : vector<128x1152xbf16>, vector<1152x128xbf16>, vector<128x128xf32> -> vector<128x128xf32>
    %c0_3 = arith.constant 0 : index
    %c0_4 = arith.constant 0 : index
    %3 = vector.load %arg3[%c0_3, %c0_4] : memref<1x128xf32, #tpu.memory_space<vmem>>, vector<1x128xf32>
    %4 = vector.broadcast %3 : vector<1x128xf32> to vector<128x128xf32>
    %5 = arith.addf %2, %4 : vector<128x128xf32>
    %cst_5 = arith.constant 0.000000e+00 : f32
    %6 = vector.broadcast %cst_5 : f32 to vector<128x128xf32>
    %7 = arith.subf %6, %5 : vector<128x128xf32>
    %8 = math.exp %7 : vector<128x128xf32>
    %cst_6 = arith.constant 1.000000e+00 : f32
    %9 = vector.broadcast %cst_6 : f32 to vector<128x128xf32>
    %10 = arith.addf %9, %8 : vector<128x128xf32>
    %11 = tpu.reciprocal %10 {approx = true} : vector<128x128xf32> -> vector<128x128xf32>
    %12 = arith.mulf %5, %11 : vector<128x128xf32>
    %13 = arith.truncf %12 : vector<128x128xf32> to vector<128x128xbf16>
    %c0_7 = arith.constant 0 : index
    %c0_8 = arith.constant 0 : index
    %14 = vector.load %arg4[%c0_7, %c0_8] : memref<128x128xbf16, #tpu.memory_space<vmem>>, vector<128x128xbf16>
    tpu.vector_store %arg4[%c0_7, %c0_8], %13 {strides = array<i32>} : memref<128x128xbf16, #tpu.memory_space<vmem>>, vector<128x128xbf16>,
    return
  }
  func.func @transform_0(%arg0: i32) -> (i32, i32) {
    %c0_i32 = arith.constant 0 : i32
    %c0_i32_0 = arith.constant 0 : i32
    return %arg0, %c0_i32 : i32, i32
  }
  func.func @transform_1(%arg0: i32) -> (i32, i32) {
    %c0_i32 = arith.constant 0 : i32
    %c0_i32_0 = arith.constant 0 : i32
    %c0_i32_1 = arith.constant 0 : i32
    return %c0_i32, %c0_i32_0 : i32, i32
  }
  func.func @transform_2(%arg0: i32) -> (i32, i32) {
    %c0_i32 = arith.constant 0 : i32
    %c0_i32_0 = arith.constant 0 : i32
    %c0_i32_1 = arith.constant 0 : i32
    return %c0_i32, %c0_i32_0 : i32, i32
  }
  func.func @transform_3(%arg0: i32) -> (i32, i32) {
    %c0_i32 = arith.constant 0 : i32
    %c0_i32_0 = arith.constant 0 : i32
    return %arg0, %c0_i32 : i32, i32
  }
}

module attributes {stable_mosaic.version = 11 : i64} {
  func.func @_fused_matmul_kernel(%arg0: i32, %arg1: memref<32x1152xbf16, #tpu.memory_space<vmem>>, %arg2: memref<1152x128xbf16, #tpu.memory_space<vmem>>, %arg3: memref<1x128xf32, #tpu.memory_space<vmem>>, %arg4: memref<32x128xbf16, #tpu.memory_space<vmem>>) attributes {dimension_semantics = [#tpu.dimension_semantics<parallel>], iteration_bounds = array<i64: 1>, scalar_prefetch = 0 : i64, scratch_operands = 0 : i64, tpu.core_type = #tpu.core_type<tc>, window_params = [{transform_indices = @transform_0, window_bounds = array<i64: 32, 1152>}, {pipeline_mode = #tpu.pipeline_mode<synchronous>, transform_indices = @transform_1, window_bounds = array<i64: 1152, 128>}, {pipeline_mode = #tpu.pipeline_mode<synchronous>, transform_indices = @transform_2, window_bounds = array<i64: 1, 128>}, {transform_indices = @transform_3, window_bounds = array<i64: 32, 128>}]} {
    %c0 = arith.constant 0 : index
    %c0_0 = arith.constant 0 : index
    %0 = vector.load %arg1[%c0, %c0_0] : memref<32x1152xbf16, #tpu.memory_space<vmem>>, vector<32x1152xbf16>
    %c0_1 = arith.constant 0 : index
    %c0_2 = arith.constant 0 : index
    %1 = vector.load %arg2[%c0_1, %c0_2] : memref<1152x128xbf16, #tpu.memory_space<vmem>>, vector<1152x128xbf16>
    %cst = arith.constant dense<0.000000e+00> : vector<32x128xf32>
    %2 = tpu.matmul %0, %1, %cst {dimension_numbers = #tpu.dot_dimension_numbers<[1], [0], [0], [1], [0, 0, 1, 1], [], []>} : vector<32x1152xbf16>, vector<1152x128xbf16>, vector<32x128xf32> -> vector<32x128xf32>
    %c0_3 = arith.constant 0 : index
    %c0_4 = arith.constant 0 : index
    %3 = vector.load %arg3[%c0_3, %c0_4] : memref<1x128xf32, #tpu.memory_space<vmem>>, vector<1x128xf32>
    %4 = vector.broadcast %3 : vector<1x128xf32> to vector<32x128xf32>
    %5 = arith.addf %2, %4 : vector<32x128xf32>
    %cst_5 = arith.constant 0.000000e+00 : f32
    %6 = vector.broadcast %cst_5 : f32 to vector<32x128xf32>
    %7 = arith.subf %6, %5 : vector<32x128xf32>
    %8 = math.exp %7 : vector<32x128xf32>
    %cst_6 = arith.constant 1.000000e+00 : f32
    %9 = vector.broadcast %cst_6 : f32 to vector<32x128xf32>
    %10 = arith.addf %9, %8 : vector<32x128xf32>
    %11 = tpu.reciprocal %10 {approx = true} : vector<32x128xf32> -> vector<32x128xf32>
    %12 = arith.mulf %5, %11 : vector<32x128xf32>
    %13 = arith.truncf %12 : vector<32x128xf32> to vector<32x128xbf16>
    %c0_7 = arith.constant 0 : index
    %c0_8 = arith.constant 0 : index
    %14 = vector.load %arg4[%c0_7, %c0_8] : memref<32x128xbf16, #tpu.memory_space<vmem>>, vector<32x128xbf16>
    tpu.vector_store %arg4[%c0_7, %c0_8], %13 {strides = array<i32>} : memref<32x128xbf16, #tpu.memory_space<vmem>>, vector<32x128xbf16>,
    return
  }
  func.func @transform_0(%arg0: i32) -> (i32, i32) {
    %c0_i32 = arith.constant 0 : i32
    %c0_i32_0 = arith.constant 0 : i32
    return %arg0, %c0_i32 : i32, i32
  }
  func.func @transform_1(%arg0: i32) -> (i32, i32) {
    %c0_i32 = arith.constant 0 : i32
    %c0_i32_0 = arith.constant 0 : i32
    %c0_i32_1 = arith.constant 0 : i32
    return %c0_i32, %c0_i32_0 : i32, i32
  }
  func.func @transform_2(%arg0: i32) -> (i32, i32) {
    %c0_i32 = arith.constant 0 : i32
    %c0_i32_0 = arith.constant 0 : i32
    %c0_i32_1 = arith.constant 0 : i32
    return %c0_i32, %c0_i32_0 : i32, i32
  }
  func.func @transform_3(%arg0: i32) -> (i32, i32) {
    %c0_i32 = arith.constant 0 : i32
    %c0_i32_0 = arith.constant 0 : i32
    return %arg0, %c0_i32 : i32, i32
  }
}

module attributes {stable_mosaic.version = 11 : i64} {
  func.func @_fused_matmul_kernel(%arg0: i32, %arg1: memref<8x128xbf16, #tpu.memory_space<vmem>>, %arg2: memref<128x128xbf16, #tpu.memory_space<vmem>>, %arg3: memref<1x128xf32, #tpu.memory_space<vmem>>, %arg4: memref<8x128xbf16, #tpu.memory_space<vmem>>) attributes {dimension_semantics = [#tpu.dimension_semantics<parallel>], iteration_bounds = array<i64: 1>, scalar_prefetch = 0 : i64, scratch_operands = 0 : i64, tpu.core_type = #tpu.core_type<tc>, window_params = [{transform_indices = @transform_0, window_bounds = array<i64: 8, 128>}, {pipeline_mode = #tpu.pipeline_mode<synchronous>, transform_indices = @transform_1, window_bounds = array<i64: 128, 128>}, {pipeline_mode = #tpu.pipeline_mode<synchronous>, transform_indices = @transform_2, window_bounds = array<i64: 1, 128>}, {transform_indices = @transform_3, window_bounds = array<i64: 8, 128>}]} {
    %c0 = arith.constant 0 : index
    %c0_0 = arith.constant 0 : index
    %0 = vector.load %arg1[%c0, %c0_0] : memref<8x128xbf16, #tpu.memory_space<vmem>>, vector<8x128xbf16>
    %c0_1 = arith.constant 0 : index
    %c0_2 = arith.constant 0 : index
    %1 = vector.load %arg2[%c0_1, %c0_2] : memref<128x128xbf16, #tpu.memory_space<vmem>>, vector<128x128xbf16>
    %cst = arith.constant dense<0.000000e+00> : vector<8x128xf32>
    %2 = tpu.matmul %0, %1, %cst {dimension_numbers = #tpu.dot_dimension_numbers<[1], [0], [0], [1], [0, 0, 1, 1], [], []>} : vector<8x128xbf16>, vector<128x128xbf16>, vector<8x128xf32> -> vector<8x128xf32>
    %c0_3 = arith.constant 0 : index
    %c0_4 = arith.constant 0 : index
    %3 = vector.load %arg3[%c0_3, %c0_4] : memref<1x128xf32, #tpu.memory_space<vmem>>, vector<1x128xf32>
    %4 = vector.broadcast %3 : vector<1x128xf32> to vector<8x128xf32>
    %5 = arith.addf %2, %4 : vector<8x128xf32>
    %cst_5 = arith.constant 0.000000e+00 : f32
    %6 = vector.broadcast %cst_5 : f32 to vector<8x128xf32>
    %7 = arith.subf %6, %5 : vector<8x128xf32>
    %8 = math.exp %7 : vector<8x128xf32>
    %cst_6 = arith.constant 1.000000e+00 : f32
    %9 = vector.broadcast %cst_6 : f32 to vector<8x128xf32>
    %10 = arith.addf %9, %8 : vector<8x128xf32>
    %11 = tpu.reciprocal %10 {approx = true} : vector<8x128xf32> -> vector<8x128xf32>
    %12 = arith.mulf %5, %11 : vector<8x128xf32>
    %13 = arith.truncf %12 : vector<8x128xf32> to vector<8x128xbf16>
    %c0_7 = arith.constant 0 : index
    %c0_8 = arith.constant 0 : index
    %14 = vector.load %arg4[%c0_7, %c0_8] : memref<8x128xbf16, #tpu.memory_space<vmem>>, vector<8x128xbf16>
    tpu.vector_store %arg4[%c0_7, %c0_8], %13 {strides = array<i32>} : memref<8x128xbf16, #tpu.memory_space<vmem>>, vector<8x128xbf16>,
    return
  }
  func.func @transform_0(%arg0: i32) -> (i32, i32) {
    %c0_i32 = arith.constant 0 : i32
    %c0_i32_0 = arith.constant 0 : i32
    return %arg0, %c0_i32 : i32, i32
  }
  func.func @transform_1(%arg0: i32) -> (i32, i32) {
    %c0_i32 = arith.constant 0 : i32
    %c0_i32_0 = arith.constant 0 : i32
    %c0_i32_1 = arith.constant 0 : i32
    return %c0_i32, %c0_i32_0 : i32, i32
  }
  func.func @transform_2(%arg0: i32) -> (i32, i32) {
    %c0_i32 = arith.constant 0 : i32
    %c0_i32_0 = arith.constant 0 : i32
    %c0_i32_1 = arith.constant 0 : i32
    return %c0_i32, %c0_i32_0 : i32, i32
  }
  func.func @transform_3(%arg0: i32) -> (i32, i32) {
    %c0_i32 = arith.constant 0 : i32
    %c0_i32_0 = arith.constant 0 : i32
    return %arg0, %c0_i32 : i32, i32
  }
}

module attributes {stable_mosaic.version = 11 : i64} {
  func.func @_fused_matmul_kernel(%arg0: i32, %arg1: memref<32x128xbf16, #tpu.memory_space<vmem>>, %arg2: memref<128x128xbf16, #tpu.memory_space<vmem>>, %arg3: memref<1x128xf32, #tpu.memory_space<vmem>>, %arg4: memref<32x128xbf16, #tpu.memory_space<vmem>>) attributes {dimension_semantics = [#tpu.dimension_semantics<parallel>], iteration_bounds = array<i64: 1>, scalar_prefetch = 0 : i64, scratch_operands = 0 : i64, tpu.core_type = #tpu.core_type<tc>, window_params = [{transform_indices = @transform_0, window_bounds = array<i64: 32, 128>}, {pipeline_mode = #tpu.pipeline_mode<synchronous>, transform_indices = @transform_1, window_bounds = array<i64: 128, 128>}, {pipeline_mode = #tpu.pipeline_mode<synchronous>, transform_indices = @transform_2, window_bounds = array<i64: 1, 128>}, {transform_indices = @transform_3, window_bounds = array<i64: 32, 128>}]} {
    %c0 = arith.constant 0 : index
    %c0_0 = arith.constant 0 : index
    %0 = vector.load %arg1[%c0, %c0_0] : memref<32x128xbf16, #tpu.memory_space<vmem>>, vector<32x128xbf16>
    %c0_1 = arith.constant 0 : index
    %c0_2 = arith.constant 0 : index
    %1 = vector.load %arg2[%c0_1, %c0_2] : memref<128x128xbf16, #tpu.memory_space<vmem>>, vector<128x128xbf16>
    %cst = arith.constant dense<0.000000e+00> : vector<32x128xf32>
    %2 = tpu.matmul %0, %1, %cst {dimension_numbers = #tpu.dot_dimension_numbers<[1], [0], [0], [1], [0, 0, 1, 1], [], []>} : vector<32x128xbf16>, vector<128x128xbf16>, vector<32x128xf32> -> vector<32x128xf32>
    %c0_3 = arith.constant 0 : index
    %c0_4 = arith.constant 0 : index
    %3 = vector.load %arg3[%c0_3, %c0_4] : memref<1x128xf32, #tpu.memory_space<vmem>>, vector<1x128xf32>
    %4 = vector.broadcast %3 : vector<1x128xf32> to vector<32x128xf32>
    %5 = arith.addf %2, %4 : vector<32x128xf32>
    %cst_5 = arith.constant 0.000000e+00 : f32
    %6 = vector.broadcast %cst_5 : f32 to vector<32x128xf32>
    %7 = arith.subf %6, %5 : vector<32x128xf32>
    %8 = math.exp %7 : vector<32x128xf32>
    %cst_6 = arith.constant 1.000000e+00 : f32
    %9 = vector.broadcast %cst_6 : f32 to vector<32x128xf32>
    %10 = arith.addf %9, %8 : vector<32x128xf32>
    %11 = tpu.reciprocal %10 {approx = true} : vector<32x128xf32> -> vector<32x128xf32>
    %12 = arith.mulf %5, %11 : vector<32x128xf32>
    %13 = arith.truncf %12 : vector<32x128xf32> to vector<32x128xbf16>
    %c0_7 = arith.constant 0 : index
    %c0_8 = arith.constant 0 : index
    %14 = vector.load %arg4[%c0_7, %c0_8] : memref<32x128xbf16, #tpu.memory_space<vmem>>, vector<32x128xbf16>
    tpu.vector_store %arg4[%c0_7, %c0_8], %13 {strides = array<i32>} : memref<32x128xbf16, #tpu.memory_space<vmem>>, vector<32x128xbf16>,
    return
  }
  func.func @transform_0(%arg0: i32) -> (i32, i32) {
    %c0_i32 = arith.constant 0 : i32
    %c0_i32_0 = arith.constant 0 : i32
    return %arg0, %c0_i32 : i32, i32
  }
  func.func @transform_1(%arg0: i32) -> (i32, i32) {
    %c0_i32 = arith.constant 0 : i32
    %c0_i32_0 = arith.constant 0 : i32
    %c0_i32_1 = arith.constant 0 : i32
    return %c0_i32, %c0_i32_0 : i32, i32
  }
  func.func @transform_2(%arg0: i32) -> (i32, i32) {
    %c0_i32 = arith.constant 0 : i32
    %c0_i32_0 = arith.constant 0 : i32
    %c0_i32_1 = arith.constant 0 : i32
    return %c0_i32, %c0_i32_0 : i32, i32
  }
  func.func @transform_3(%arg0: i32) -> (i32, i32) {
    %c0_i32 = arith.constant 0 : i32
    %c0_i32_0 = arith.constant 0 : i32
    return %arg0, %c0_i32 : i32, i32
  }
}

module attributes {stable_mosaic.version = 11 : i64} {
  func.func @_fused_matmul_kernel(%arg0: i32, %arg1: memref<32x256xbf16, #tpu.memory_space<vmem>>, %arg2: memref<256x128xbf16, #tpu.memory_space<vmem>>, %arg3: memref<1x128xf32, #tpu.memory_space<vmem>>, %arg4: memref<32x128xbf16, #tpu.memory_space<vmem>>) attributes {dimension_semantics = [#tpu.dimension_semantics<parallel>], iteration_bounds = array<i64: 1>, scalar_prefetch = 0 : i64, scratch_operands = 0 : i64, tpu.core_type = #tpu.core_type<tc>, window_params = [{transform_indices = @transform_0, window_bounds = array<i64: 32, 256>}, {pipeline_mode = #tpu.pipeline_mode<synchronous>, transform_indices = @transform_1, window_bounds = array<i64: 256, 128>}, {pipeline_mode = #tpu.pipeline_mode<synchronous>, transform_indices = @transform_2, window_bounds = array<i64: 1, 128>}, {transform_indices = @transform_3, window_bounds = array<i64: 32, 128>}]} {
    %c0 = arith.constant 0 : index
    %c0_0 = arith.constant 0 : index
    %0 = vector.load %arg1[%c0, %c0_0] : memref<32x256xbf16, #tpu.memory_space<vmem>>, vector<32x256xbf16>
    %c0_1 = arith.constant 0 : index
    %c0_2 = arith.constant 0 : index
    %1 = vector.load %arg2[%c0_1, %c0_2] : memref<256x128xbf16, #tpu.memory_space<vmem>>, vector<256x128xbf16>
    %cst = arith.constant dense<0.000000e+00> : vector<32x128xf32>
    %2 = tpu.matmul %0, %1, %cst {dimension_numbers = #tpu.dot_dimension_numbers<[1], [0], [0], [1], [0, 0, 1, 1], [], []>} : vector<32x256xbf16>, vector<256x128xbf16>, vector<32x128xf32> -> vector<32x128xf32>
    %c0_3 = arith.constant 0 : index
    %c0_4 = arith.constant 0 : index
    %3 = vector.load %arg3[%c0_3, %c0_4] : memref<1x128xf32, #tpu.memory_space<vmem>>, vector<1x128xf32>
    %4 = vector.broadcast %3 : vector<1x128xf32> to vector<32x128xf32>
    %5 = arith.addf %2, %4 : vector<32x128xf32>
    %cst_5 = arith.constant 0.000000e+00 : f32
    %6 = vector.broadcast %cst_5 : f32 to vector<32x128xf32>
    %7 = arith.subf %6, %5 : vector<32x128xf32>
    %8 = math.exp %7 : vector<32x128xf32>
    %cst_6 = arith.constant 1.000000e+00 : f32
    %9 = vector.broadcast %cst_6 : f32 to vector<32x128xf32>
    %10 = arith.addf %9, %8 : vector<32x128xf32>
    %11 = tpu.reciprocal %10 {approx = true} : vector<32x128xf32> -> vector<32x128xf32>
    %12 = arith.mulf %5, %11 : vector<32x128xf32>
    %13 = arith.truncf %12 : vector<32x128xf32> to vector<32x128xbf16>
    %c0_7 = arith.constant 0 : index
    %c0_8 = arith.constant 0 : index
    %14 = vector.load %arg4[%c0_7, %c0_8] : memref<32x128xbf16, #tpu.memory_space<vmem>>, vector<32x128xbf16>
    tpu.vector_store %arg4[%c0_7, %c0_8], %13 {strides = array<i32>} : memref<32x128xbf16, #tpu.memory_space<vmem>>, vector<32x128xbf16>,
    return
  }
  func.func @transform_0(%arg0: i32) -> (i32, i32) {
    %c0_i32 = arith.constant 0 : i32
    %c0_i32_0 = arith.constant 0 : i32
    return %arg0, %c0_i32 : i32, i32
  }
  func.func @transform_1(%arg0: i32) -> (i32, i32) {
    %c0_i32 = arith.constant 0 : i32
    %c0_i32_0 = arith.constant 0 : i32
    %c0_i32_1 = arith.constant 0 : i32
    return %c0_i32, %c0_i32_0 : i32, i32
  }
  func.func @transform_2(%arg0: i32) -> (i32, i32) {
    %c0_i32 = arith.constant 0 : i32
    %c0_i32_0 = arith.constant 0 : i32
    %c0_i32_1 = arith.constant 0 : i32
    return %c0_i32, %c0_i32_0 : i32, i32
  }
  func.func @transform_3(%arg0: i32) -> (i32, i32) {
    %c0_i32 = arith.constant 0 : i32
    %c0_i32_0 = arith.constant 0 : i32
    return %arg0, %c0_i32 : i32, i32
  }
}

module attributes {stable_mosaic.version = 11 : i64} {
  func.func @_fused_matmul_kernel(%arg0: i32, %arg1: memref<8x1152xbf16, #tpu.memory_space<vmem>>, %arg2: memref<1152x128xbf16, #tpu.memory_space<vmem>>, %arg3: memref<1x128xf32, #tpu.memory_space<vmem>>, %arg4: memref<8x128xbf16, #tpu.memory_space<vmem>>) attributes {dimension_semantics = [#tpu.dimension_semantics<parallel>], iteration_bounds = array<i64: 1>, scalar_prefetch = 0 : i64, scratch_operands = 0 : i64, tpu.core_type = #tpu.core_type<tc>, window_params = [{transform_indices = @transform_0, window_bounds = array<i64: 8, 1152>}, {pipeline_mode = #tpu.pipeline_mode<synchronous>, transform_indices = @transform_1, window_bounds = array<i64: 1152, 128>}, {pipeline_mode = #tpu.pipeline_mode<synchronous>, transform_indices = @transform_2, window_bounds = array<i64: 1, 128>}, {transform_indices = @transform_3, window_bounds = array<i64: 8, 128>}]} {
    %c0 = arith.constant 0 : index
    %c0_0 = arith.constant 0 : index
    %0 = vector.load %arg1[%c0, %c0_0] : memref<8x1152xbf16, #tpu.memory_space<vmem>>, vector<8x1152xbf16>
    %c0_1 = arith.constant 0 : index
    %c0_2 = arith.constant 0 : index
    %1 = vector.load %arg2[%c0_1, %c0_2] : memref<1152x128xbf16, #tpu.memory_space<vmem>>, vector<1152x128xbf16>
    %cst = arith.constant dense<0.000000e+00> : vector<8x128xf32>
    %2 = tpu.matmul %0, %1, %cst {dimension_numbers = #tpu.dot_dimension_numbers<[1], [0], [0], [1], [0, 0, 1, 1], [], []>} : vector<8x1152xbf16>, vector<1152x128xbf16>, vector<8x128xf32> -> vector<8x128xf32>
    %c0_3 = arith.constant 0 : index
    %c0_4 = arith.constant 0 : index
    %3 = vector.load %arg3[%c0_3, %c0_4] : memref<1x128xf32, #tpu.memory_space<vmem>>, vector<1x128xf32>
    %4 = vector.broadcast %3 : vector<1x128xf32> to vector<8x128xf32>
    %5 = arith.addf %2, %4 : vector<8x128xf32>
    %cst_5 = arith.constant 0.000000e+00 : f32
    %6 = vector.broadcast %cst_5 : f32 to vector<8x128xf32>
    %7 = arith.subf %6, %5 : vector<8x128xf32>
    %8 = math.exp %7 : vector<8x128xf32>
    %cst_6 = arith.constant 1.000000e+00 : f32
    %9 = vector.broadcast %cst_6 : f32 to vector<8x128xf32>
    %10 = arith.addf %9, %8 : vector<8x128xf32>
    %11 = tpu.reciprocal %10 {approx = true} : vector<8x128xf32> -> vector<8x128xf32>
    %12 = arith.mulf %5, %11 : vector<8x128xf32>
    %13 = arith.truncf %12 : vector<8x128xf32> to vector<8x128xbf16>
    %c0_7 = arith.constant 0 : index
    %c0_8 = arith.constant 0 : index
    %14 = vector.load %arg4[%c0_7, %c0_8] : memref<8x128xbf16, #tpu.memory_space<vmem>>, vector<8x128xbf16>
    tpu.vector_store %arg4[%c0_7, %c0_8], %13 {strides = array<i32>} : memref<8x128xbf16, #tpu.memory_space<vmem>>, vector<8x128xbf16>,
    return
  }
  func.func @transform_0(%arg0: i32) -> (i32, i32) {
    %c0_i32 = arith.constant 0 : i32
    %c0_i32_0 = arith.constant 0 : i32
    return %arg0, %c0_i32 : i32, i32
  }
  func.func @transform_1(%arg0: i32) -> (i32, i32) {
    %c0_i32 = arith.constant 0 : i32
    %c0_i32_0 = arith.constant 0 : i32
    %c0_i32_1 = arith.constant 0 : i32
    return %c0_i32, %c0_i32_0 : i32, i32
  }
  func.func @transform_2(%arg0: i32) -> (i32, i32) {
    %c0_i32 = arith.constant 0 : i32
    %c0_i32_0 = arith.constant 0 : i32
    %c0_i32_1 = arith.constant 0 : i32
    return %c0_i32, %c0_i32_0 : i32, i32
  }
  func.func @transform_3(%arg0: i32) -> (i32, i32) {
    %c0_i32 = arith.constant 0 : i32
    %c0_i32_0 = arith.constant 0 : i32
    return %arg0, %c0_i32 : i32, i32
  }
}

module attributes {stable_mosaic.version = 11 : i64} {
  func.func @_fused_matmul_kernel(%arg0: i32, %arg1: memref<128x256xbf16, #tpu.memory_space<vmem>>, %arg2: memref<256x128xbf16, #tpu.memory_space<vmem>>, %arg3: memref<1x128xf32, #tpu.memory_space<vmem>>, %arg4: memref<128x128xbf16, #tpu.memory_space<vmem>>) attributes {dimension_semantics = [#tpu.dimension_semantics<parallel>], iteration_bounds = array<i64: 1>, scalar_prefetch = 0 : i64, scratch_operands = 0 : i64, tpu.core_type = #tpu.core_type<tc>, window_params = [{transform_indices = @transform_0, window_bounds = array<i64: 128, 256>}, {pipeline_mode = #tpu.pipeline_mode<synchronous>, transform_indices = @transform_1, window_bounds = array<i64: 256, 128>}, {pipeline_mode = #tpu.pipeline_mode<synchronous>, transform_indices = @transform_2, window_bounds = array<i64: 1, 128>}, {transform_indices = @transform_3, window_bounds = array<i64: 128, 128>}]} {
    %c0 = arith.constant 0 : index
    %c0_0 = arith.constant 0 : index
    %0 = vector.load %arg1[%c0, %c0_0] : memref<128x256xbf16, #tpu.memory_space<vmem>>, vector<128x256xbf16>
    %c0_1 = arith.constant 0 : index
    %c0_2 = arith.constant 0 : index
    %1 = vector.load %arg2[%c0_1, %c0_2] : memref<256x128xbf16, #tpu.memory_space<vmem>>, vector<256x128xbf16>
    %cst = arith.constant dense<0.000000e+00> : vector<128x128xf32>
    %2 = tpu.matmul %0, %1, %cst {dimension_numbers = #tpu.dot_dimension_numbers<[1], [0], [0], [1], [0, 0, 1, 1], [], []>} : vector<128x256xbf16>, vector<256x128xbf16>, vector<128x128xf32> -> vector<128x128xf32>
    %c0_3 = arith.constant 0 : index
    %c0_4 = arith.constant 0 : index
    %3 = vector.load %arg3[%c0_3, %c0_4] : memref<1x128xf32, #tpu.memory_space<vmem>>, vector<1x128xf32>
    %4 = vector.broadcast %3 : vector<1x128xf32> to vector<128x128xf32>
    %5 = arith.addf %2, %4 : vector<128x128xf32>
    %cst_5 = arith.constant 0.000000e+00 : f32
    %6 = vector.broadcast %cst_5 : f32 to vector<128x128xf32>
    %7 = arith.subf %6, %5 : vector<128x128xf32>
    %8 = math.exp %7 : vector<128x128xf32>
    %cst_6 = arith.constant 1.000000e+00 : f32
    %9 = vector.broadcast %cst_6 : f32 to vector<128x128xf32>
    %10 = arith.addf %9, %8 : vector<128x128xf32>
    %11 = tpu.reciprocal %10 {approx = true} : vector<128x128xf32> -> vector<128x128xf32>
    %12 = arith.mulf %5, %11 : vector<128x128xf32>
    %13 = arith.truncf %12 : vector<128x128xf32> to vector<128x128xbf16>
    %c0_7 = arith.constant 0 : index
    %c0_8 = arith.constant 0 : index
    %14 = vector.load %arg4[%c0_7, %c0_8] : memref<128x128xbf16, #tpu.memory_space<vmem>>, vector<128x128xbf16>
    tpu.vector_store %arg4[%c0_7, %c0_8], %13 {strides = array<i32>} : memref<128x128xbf16, #tpu.memory_space<vmem>>, vector<128x128xbf16>,
    return
  }
  func.func @transform_0(%arg0: i32) -> (i32, i32) {
    %c0_i32 = arith.constant 0 : i32
    %c0_i32_0 = arith.constant 0 : i32
    return %arg0, %c0_i32 : i32, i32
  }
  func.func @transform_1(%arg0: i32) -> (i32, i32) {
    %c0_i32 = arith.constant 0 : i32
    %c0_i32_0 = arith.constant 0 : i32
    %c0_i32_1 = arith.constant 0 : i32
    return %c0_i32, %c0_i32_0 : i32, i32
  }
  func.func @transform_2(%arg0: i32) -> (i32, i32) {
    %c0_i32 = arith.constant 0 : i32
    %c0_i32_0 = arith.constant 0 : i32
    %c0_i32_1 = arith.constant 0 : i32
    return %c0_i32, %c0_i32_0 : i32, i32
  }
  func.func @transform_3(%arg0: i32) -> (i32, i32) {
    %c0_i32 = arith.constant 0 : i32
    %c0_i32_0 = arith.constant 0 : i32
    return %arg0, %c0_i32 : i32, i32
  }
}

module attributes {stable_mosaic.version = 11 : i64} {
  func.func @_fused_matmul_kernel(%arg0: i32, %arg1: memref<128x128xbf16, #tpu.memory_space<vmem>>, %arg2: memref<128x128xbf16, #tpu.memory_space<vmem>>, %arg3: memref<1x128xf32, #tpu.memory_space<vmem>>, %arg4: memref<128x128xbf16, #tpu.memory_space<vmem>>) attributes {dimension_semantics = [#tpu.dimension_semantics<parallel>], iteration_bounds = array<i64: 1>, scalar_prefetch = 0 : i64, scratch_operands = 0 : i64, tpu.core_type = #tpu.core_type<tc>, window_params = [{transform_indices = @transform_0, window_bounds = array<i64: 128, 128>}, {pipeline_mode = #tpu.pipeline_mode<synchronous>, transform_indices = @transform_1, window_bounds = array<i64: 128, 128>}, {pipeline_mode = #tpu.pipeline_mode<synchronous>, transform_indices = @transform_2, window_bounds = array<i64: 1, 128>}, {transform_indices = @transform_3, window_bounds = array<i64: 128, 128>}]} {
    %c0 = arith.constant 0 : index
    %c0_0 = arith.constant 0 : index
    %0 = vector.load %arg1[%c0, %c0_0] : memref<128x128xbf16, #tpu.memory_space<vmem>>, vector<128x128xbf16>
    %c0_1 = arith.constant 0 : index
    %c0_2 = arith.constant 0 : index
    %1 = vector.load %arg2[%c0_1, %c0_2] : memref<128x128xbf16, #tpu.memory_space<vmem>>, vector<128x128xbf16>
    %cst = arith.constant dense<0.000000e+00> : vector<128x128xf32>
    %2 = tpu.matmul %0, %1, %cst {dimension_numbers = #tpu.dot_dimension_numbers<[1], [0], [0], [1], [0, 0, 1, 1], [], []>} : vector<128x128xbf16>, vector<128x128xbf16>, vector<128x128xf32> -> vector<128x128xf32>
    %c0_3 = arith.constant 0 : index
    %c0_4 = arith.constant 0 : index
    %3 = vector.load %arg3[%c0_3, %c0_4] : memref<1x128xf32, #tpu.memory_space<vmem>>, vector<1x128xf32>
    %4 = vector.broadcast %3 : vector<1x128xf32> to vector<128x128xf32>
    %5 = arith.addf %2, %4 : vector<128x128xf32>
    %cst_5 = arith.constant 0.000000e+00 : f32
    %6 = vector.broadcast %cst_5 : f32 to vector<128x128xf32>
    %7 = arith.subf %6, %5 : vector<128x128xf32>
    %8 = math.exp %7 : vector<128x128xf32>
    %cst_6 = arith.constant 1.000000e+00 : f32
    %9 = vector.broadcast %cst_6 : f32 to vector<128x128xf32>
    %10 = arith.addf %9, %8 : vector<128x128xf32>
    %11 = tpu.reciprocal %10 {approx = true} : vector<128x128xf32> -> vector<128x128xf32>
    %12 = arith.mulf %5, %11 : vector<128x128xf32>
    %13 = arith.truncf %12 : vector<128x128xf32> to vector<128x128xbf16>
    %c0_7 = arith.constant 0 : index
    %c0_8 = arith.constant 0 : index
    %14 = vector.load %arg4[%c0_7, %c0_8] : memref<128x128xbf16, #tpu.memory_space<vmem>>, vector<128x128xbf16>
    tpu.vector_store %arg4[%c0_7, %c0_8], %13 {strides = array<i32>} : memref<128x128xbf16, #tpu.memory_space<vmem>>, vector<128x128xbf16>,
    return
  }
  func.func @transform_0(%arg0: i32) -> (i32, i32) {
    %c0_i32 = arith.constant 0 : i32
    %c0_i32_0 = arith.constant 0 : i32
    return %arg0, %c0_i32 : i32, i32
  }
  func.func @transform_1(%arg0: i32) -> (i32, i32) {
    %c0_i32 = arith.constant 0 : i32
    %c0_i32_0 = arith.constant 0 : i32
    %c0_i32_1 = arith.constant 0 : i32
    return %c0_i32, %c0_i32_0 : i32, i32
  }
  func.func @transform_2(%arg0: i32) -> (i32, i32) {
    %c0_i32 = arith.constant 0 : i32
    %c0_i32_0 = arith.constant 0 : i32
    %c0_i32_1 = arith.constant 0 : i32
    return %c0_i32, %c0_i32_0 : i32, i32
  }
  func.func @transform_3(%arg0: i32) -> (i32, i32) {
    %c0_i32 = arith.constant 0 : i32
    %c0_i32_0 = arith.constant 0 : i32
    return %arg0, %c0_i32 : i32, i32
  }
}

module attributes {stable_mosaic.version = 11 : i64} {
  func.func @_fused_matmul_kernel(%arg0: i32, %arg1: memref<128x1152xbf16, #tpu.memory_space<vmem>>, %arg2: memref<1152x256xbf16, #tpu.memory_space<vmem>>, %arg3: memref<1x256xf32, #tpu.memory_space<vmem>>, %arg4: memref<128x256xbf16, #tpu.memory_space<vmem>>) attributes {dimension_semantics = [#tpu.dimension_semantics<parallel>], iteration_bounds = array<i64: 1>, scalar_prefetch = 0 : i64, scratch_operands = 0 : i64, tpu.core_type = #tpu.core_type<tc>, window_params = [{transform_indices = @transform_0, window_bounds = array<i64: 128, 1152>}, {pipeline_mode = #tpu.pipeline_mode<synchronous>, transform_indices = @transform_1, window_bounds = array<i64: 1152, 256>}, {pipeline_mode = #tpu.pipeline_mode<synchronous>, transform_indices = @transform_2, window_bounds = array<i64: 1, 256>}, {transform_indices = @transform_3, window_bounds = array<i64: 128, 256>}]} {
    %c0 = arith.constant 0 : index
    %c0_0 = arith.constant 0 : index
    %0 = vector.load %arg1[%c0, %c0_0] : memref<128x1152xbf16, #tpu.memory_space<vmem>>, vector<128x1152xbf16>
    %c0_1 = arith.constant 0 : index
    %c0_2 = arith.constant 0 : index
    %1 = vector.load %arg2[%c0_1, %c0_2] : memref<1152x256xbf16, #tpu.memory_space<vmem>>, vector<1152x256xbf16>
    %cst = arith.constant dense<0.000000e+00> : vector<128x256xf32>
    %2 = tpu.matmul %0, %1, %cst {dimension_numbers = #tpu.dot_dimension_numbers<[1], [0], [0], [1], [0, 0, 1, 1], [], []>} : vector<128x1152xbf16>, vector<1152x256xbf16>, vector<128x256xf32> -> vector<128x256xf32>
    %c0_3 = arith.constant 0 : index
    %c0_4 = arith.constant 0 : index
    %3 = vector.load %arg3[%c0_3, %c0_4] : memref<1x256xf32, #tpu.memory_space<vmem>>, vector<1x256xf32>
    %4 = vector.broadcast %3 : vector<1x256xf32> to vector<128x256xf32>
    %5 = arith.addf %2, %4 : vector<128x256xf32>
    %cst_5 = arith.constant 0.000000e+00 : f32
    %6 = vector.broadcast %cst_5 : f32 to vector<128x256xf32>
    %7 = arith.subf %6, %5 : vector<128x256xf32>
    %8 = math.exp %7 : vector<128x256xf32>
    %cst_6 = arith.constant 1.000000e+00 : f32
    %9 = vector.broadcast %cst_6 : f32 to vector<128x256xf32>
    %10 = arith.addf %9, %8 : vector<128x256xf32>
    %11 = tpu.reciprocal %10 {approx = true} : vector<128x256xf32> -> vector<128x256xf32>
    %12 = arith.mulf %5, %11 : vector<128x256xf32>
    %13 = arith.truncf %12 : vector<128x256xf32> to vector<128x256xbf16>
    %c0_7 = arith.constant 0 : index
    %c0_8 = arith.constant 0 : index
    %14 = vector.load %arg4[%c0_7, %c0_8] : memref<128x256xbf16, #tpu.memory_space<vmem>>, vector<128x256xbf16>
    tpu.vector_store %arg4[%c0_7, %c0_8], %13 {strides = array<i32>} : memref<128x256xbf16, #tpu.memory_space<vmem>>, vector<128x256xbf16>,
    return
  }
  func.func @transform_0(%arg0: i32) -> (i32, i32) {
    %c0_i32 = arith.constant 0 : i32
    %c0_i32_0 = arith.constant 0 : i32
    return %arg0, %c0_i32 : i32, i32
  }
  func.func @transform_1(%arg0: i32) -> (i32, i32) {
    %c0_i32 = arith.constant 0 : i32
    %c0_i32_0 = arith.constant 0 : i32
    %c0_i32_1 = arith.constant 0 : i32
    return %c0_i32, %c0_i32_0 : i32, i32
  }
  func.func @transform_2(%arg0: i32) -> (i32, i32) {
    %c0_i32 = arith.constant 0 : i32
    %c0_i32_0 = arith.constant 0 : i32
    %c0_i32_1 = arith.constant 0 : i32
    return %c0_i32, %c0_i32_0 : i32, i32
  }
  func.func @transform_3(%arg0: i32) -> (i32, i32) {
    %c0_i32 = arith.constant 0 : i32
    %c0_i32_0 = arith.constant 0 : i32
    return %arg0, %c0_i32 : i32, i32
  }
}

module attributes {stable_mosaic.version = 11 : i64} {
  func.func @_fused_matmul_kernel(%arg0: i32, %arg1: memref<128x256xbf16, #tpu.memory_space<vmem>>, %arg2: memref<256x128xbf16, #tpu.memory_space<vmem>>, %arg3: memref<1x128xf32, #tpu.memory_space<vmem>>, %arg4: memref<128x128xbf16, #tpu.memory_space<vmem>>) attributes {dimension_semantics = [#tpu.dimension_semantics<parallel>], iteration_bounds = array<i64: 1>, scalar_prefetch = 0 : i64, scratch_operands = 0 : i64, tpu.core_type = #tpu.core_type<tc>, window_params = [{transform_indices = @transform_0, window_bounds = array<i64: 128, 256>}, {pipeline_mode = #tpu.pipeline_mode<synchronous>, transform_indices = @transform_1, window_bounds = array<i64: 256, 128>}, {pipeline_mode = #tpu.pipeline_mode<synchronous>, transform_indices = @transform_2, window_bounds = array<i64: 1, 128>}, {transform_indices = @transform_3, window_bounds = array<i64: 128, 128>}]} {
    %c0 = arith.constant 0 : index
    %c0_0 = arith.constant 0 : index
    %0 = vector.load %arg1[%c0, %c0_0] : memref<128x256xbf16, #tpu.memory_space<vmem>>, vector<128x256xbf16>
    %c0_1 = arith.constant 0 : index
    %c0_2 = arith.constant 0 : index
    %1 = vector.load %arg2[%c0_1, %c0_2] : memref<256x128xbf16, #tpu.memory_space<vmem>>, vector<256x128xbf16>
    %cst = arith.constant dense<0.000000e+00> : vector<128x128xf32>
    %2 = tpu.matmul %0, %1, %cst {dimension_numbers = #tpu.dot_dimension_numbers<[1], [0], [0], [1], [0, 0, 1, 1], [], []>} : vector<128x256xbf16>, vector<256x128xbf16>, vector<128x128xf32> -> vector<128x128xf32>
    %c0_3 = arith.constant 0 : index
    %c0_4 = arith.constant 0 : index
    %3 = vector.load %arg3[%c0_3, %c0_4] : memref<1x128xf32, #tpu.memory_space<vmem>>, vector<1x128xf32>
    %4 = vector.broadcast %3 : vector<1x128xf32> to vector<128x128xf32>
    %5 = arith.addf %2, %4 : vector<128x128xf32>
    %6 = arith.truncf %5 : vector<128x128xf32> to vector<128x128xbf16>
    %c0_5 = arith.constant 0 : index
    %c0_6 = arith.constant 0 : index
    %7 = vector.load %arg4[%c0_5, %c0_6] : memref<128x128xbf16, #tpu.memory_space<vmem>>, vector<128x128xbf16>
    tpu.vector_store %arg4[%c0_5, %c0_6], %6 {strides = array<i32>} : memref<128x128xbf16, #tpu.memory_space<vmem>>, vector<128x128xbf16>,
    return
  }
  func.func @transform_0(%arg0: i32) -> (i32, i32) {
    %c0_i32 = arith.constant 0 : i32
    %c0_i32_0 = arith.constant 0 : i32
    return %arg0, %c0_i32 : i32, i32
  }
  func.func @transform_1(%arg0: i32) -> (i32, i32) {
    %c0_i32 = arith.constant 0 : i32
    %c0_i32_0 = arith.constant 0 : i32
    %c0_i32_1 = arith.constant 0 : i32
    return %c0_i32, %c0_i32_0 : i32, i32
  }
  func.func @transform_2(%arg0: i32) -> (i32, i32) {
    %c0_i32 = arith.constant 0 : i32
    %c0_i32_0 = arith.constant 0 : i32
    %c0_i32_1 = arith.constant 0 : i32
    return %c0_i32, %c0_i32_0 : i32, i32
  }
  func.func @transform_3(%arg0: i32) -> (i32, i32) {
    %c0_i32 = arith.constant 0 : i32
    %c0_i32_0 = arith.constant 0 : i32
    return %arg0, %c0_i32 : i32, i32
  }
}

module attributes {stable_mosaic.version = 11 : i64} {
  func.func @_fused_matmul_kernel(%arg0: i32, %arg1: memref<32x1152xbf16, #tpu.memory_space<vmem>>, %arg2: memref<1152x256xbf16, #tpu.memory_space<vmem>>, %arg3: memref<1x256xf32, #tpu.memory_space<vmem>>, %arg4: memref<32x256xbf16, #tpu.memory_space<vmem>>) attributes {dimension_semantics = [#tpu.dimension_semantics<parallel>], iteration_bounds = array<i64: 1>, scalar_prefetch = 0 : i64, scratch_operands = 0 : i64, tpu.core_type = #tpu.core_type<tc>, window_params = [{transform_indices = @transform_0, window_bounds = array<i64: 32, 1152>}, {pipeline_mode = #tpu.pipeline_mode<synchronous>, transform_indices = @transform_1, window_bounds = array<i64: 1152, 256>}, {pipeline_mode = #tpu.pipeline_mode<synchronous>, transform_indices = @transform_2, window_bounds = array<i64: 1, 256>}, {transform_indices = @transform_3, window_bounds = array<i64: 32, 256>}]} {
    %c0 = arith.constant 0 : index
    %c0_0 = arith.constant 0 : index
    %0 = vector.load %arg1[%c0, %c0_0] : memref<32x1152xbf16, #tpu.memory_space<vmem>>, vector<32x1152xbf16>
    %c0_1 = arith.constant 0 : index
    %c0_2 = arith.constant 0 : index
    %1 = vector.load %arg2[%c0_1, %c0_2] : memref<1152x256xbf16, #tpu.memory_space<vmem>>, vector<1152x256xbf16>
    %cst = arith.constant dense<0.000000e+00> : vector<32x256xf32>
    %2 = tpu.matmul %0, %1, %cst {dimension_numbers = #tpu.dot_dimension_numbers<[1], [0], [0], [1], [0, 0, 1, 1], [], []>} : vector<32x1152xbf16>, vector<1152x256xbf16>, vector<32x256xf32> -> vector<32x256xf32>
    %c0_3 = arith.constant 0 : index
    %c0_4 = arith.constant 0 : index
    %3 = vector.load %arg3[%c0_3, %c0_4] : memref<1x256xf32, #tpu.memory_space<vmem>>, vector<1x256xf32>
    %4 = vector.broadcast %3 : vector<1x256xf32> to vector<32x256xf32>
    %5 = arith.addf %2, %4 : vector<32x256xf32>
    %cst_5 = arith.constant 0.000000e+00 : f32
    %6 = vector.broadcast %cst_5 : f32 to vector<32x256xf32>
    %7 = arith.subf %6, %5 : vector<32x256xf32>
    %8 = math.exp %7 : vector<32x256xf32>
    %cst_6 = arith.constant 1.000000e+00 : f32
    %9 = vector.broadcast %cst_6 : f32 to vector<32x256xf32>
    %10 = arith.addf %9, %8 : vector<32x256xf32>
    %11 = tpu.reciprocal %10 {approx = true} : vector<32x256xf32> -> vector<32x256xf32>
    %12 = arith.mulf %5, %11 : vector<32x256xf32>
    %13 = arith.truncf %12 : vector<32x256xf32> to vector<32x256xbf16>
    %c0_7 = arith.constant 0 : index
    %c0_8 = arith.constant 0 : index
    %14 = vector.load %arg4[%c0_7, %c0_8] : memref<32x256xbf16, #tpu.memory_space<vmem>>, vector<32x256xbf16>
    tpu.vector_store %arg4[%c0_7, %c0_8], %13 {strides = array<i32>} : memref<32x256xbf16, #tpu.memory_space<vmem>>, vector<32x256xbf16>,
    return
  }
  func.func @transform_0(%arg0: i32) -> (i32, i32) {
    %c0_i32 = arith.constant 0 : i32
    %c0_i32_0 = arith.constant 0 : i32
    return %arg0, %c0_i32 : i32, i32
  }
  func.func @transform_1(%arg0: i32) -> (i32, i32) {
    %c0_i32 = arith.constant 0 : i32
    %c0_i32_0 = arith.constant 0 : i32
    %c0_i32_1 = arith.constant 0 : i32
    return %c0_i32, %c0_i32_0 : i32, i32
  }
  func.func @transform_2(%arg0: i32) -> (i32, i32) {
    %c0_i32 = arith.constant 0 : i32
    %c0_i32_0 = arith.constant 0 : i32
    %c0_i32_1 = arith.constant 0 : i32
    return %c0_i32, %c0_i32_0 : i32, i32
  }
  func.func @transform_3(%arg0: i32) -> (i32, i32) {
    %c0_i32 = arith.constant 0 : i32
    %c0_i32_0 = arith.constant 0 : i32
    return %arg0, %c0_i32 : i32, i32
  }
}

module attributes {stable_mosaic.version = 11 : i64} {
  func.func @_fused_matmul_kernel(%arg0: i32, %arg1: memref<32x256xbf16, #tpu.memory_space<vmem>>, %arg2: memref<256x128xbf16, #tpu.memory_space<vmem>>, %arg3: memref<1x128xf32, #tpu.memory_space<vmem>>, %arg4: memref<32x128xbf16, #tpu.memory_space<vmem>>) attributes {dimension_semantics = [#tpu.dimension_semantics<parallel>], iteration_bounds = array<i64: 1>, scalar_prefetch = 0 : i64, scratch_operands = 0 : i64, tpu.core_type = #tpu.core_type<tc>, window_params = [{transform_indices = @transform_0, window_bounds = array<i64: 32, 256>}, {pipeline_mode = #tpu.pipeline_mode<synchronous>, transform_indices = @transform_1, window_bounds = array<i64: 256, 128>}, {pipeline_mode = #tpu.pipeline_mode<synchronous>, transform_indices = @transform_2, window_bounds = array<i64: 1, 128>}, {transform_indices = @transform_3, window_bounds = array<i64: 32, 128>}]} {
    %c0 = arith.constant 0 : index
    %c0_0 = arith.constant 0 : index
    %0 = vector.load %arg1[%c0, %c0_0] : memref<32x256xbf16, #tpu.memory_space<vmem>>, vector<32x256xbf16>
    %c0_1 = arith.constant 0 : index
    %c0_2 = arith.constant 0 : index
    %1 = vector.load %arg2[%c0_1, %c0_2] : memref<256x128xbf16, #tpu.memory_space<vmem>>, vector<256x128xbf16>
    %cst = arith.constant dense<0.000000e+00> : vector<32x128xf32>
    %2 = tpu.matmul %0, %1, %cst {dimension_numbers = #tpu.dot_dimension_numbers<[1], [0], [0], [1], [0, 0, 1, 1], [], []>} : vector<32x256xbf16>, vector<256x128xbf16>, vector<32x128xf32> -> vector<32x128xf32>
    %c0_3 = arith.constant 0 : index
    %c0_4 = arith.constant 0 : index
    %3 = vector.load %arg3[%c0_3, %c0_4] : memref<1x128xf32, #tpu.memory_space<vmem>>, vector<1x128xf32>
    %4 = vector.broadcast %3 : vector<1x128xf32> to vector<32x128xf32>
    %5 = arith.addf %2, %4 : vector<32x128xf32>
    %6 = arith.truncf %5 : vector<32x128xf32> to vector<32x128xbf16>
    %c0_5 = arith.constant 0 : index
    %c0_6 = arith.constant 0 : index
    %7 = vector.load %arg4[%c0_5, %c0_6] : memref<32x128xbf16, #tpu.memory_space<vmem>>, vector<32x128xbf16>
    tpu.vector_store %arg4[%c0_5, %c0_6], %6 {strides = array<i32>} : memref<32x128xbf16, #tpu.memory_space<vmem>>, vector<32x128xbf16>,
    return
  }
  func.func @transform_0(%arg0: i32) -> (i32, i32) {
    %c0_i32 = arith.constant 0 : i32
    %c0_i32_0 = arith.constant 0 : i32
    return %arg0, %c0_i32 : i32, i32
  }
  func.func @transform_1(%arg0: i32) -> (i32, i32) {
    %c0_i32 = arith.constant 0 : i32
    %c0_i32_0 = arith.constant 0 : i32
    %c0_i32_1 = arith.constant 0 : i32
    return %c0_i32, %c0_i32_0 : i32, i32
  }
  func.func @transform_2(%arg0: i32) -> (i32, i32) {
    %c0_i32 = arith.constant 0 : i32
    %c0_i32_0 = arith.constant 0 : i32
    %c0_i32_1 = arith.constant 0 : i32
    return %c0_i32, %c0_i32_0 : i32, i32
  }
  func.func @transform_3(%arg0: i32) -> (i32, i32) {
    %c0_i32 = arith.constant 0 : i32
    %c0_i32_0 = arith.constant 0 : i32
    return %arg0, %c0_i32 : i32, i32
  }
}

module attributes {stable_mosaic.version = 11 : i64} {
  func.func @_fused_matmul_kernel(%arg0: i32, %arg1: memref<8x1152xbf16, #tpu.memory_space<vmem>>, %arg2: memref<1152x256xbf16, #tpu.memory_space<vmem>>, %arg3: memref<1x256xf32, #tpu.memory_space<vmem>>, %arg4: memref<8x256xbf16, #tpu.memory_space<vmem>>) attributes {dimension_semantics = [#tpu.dimension_semantics<parallel>], iteration_bounds = array<i64: 1>, scalar_prefetch = 0 : i64, scratch_operands = 0 : i64, tpu.core_type = #tpu.core_type<tc>, window_params = [{transform_indices = @transform_0, window_bounds = array<i64: 8, 1152>}, {pipeline_mode = #tpu.pipeline_mode<synchronous>, transform_indices = @transform_1, window_bounds = array<i64: 1152, 256>}, {pipeline_mode = #tpu.pipeline_mode<synchronous>, transform_indices = @transform_2, window_bounds = array<i64: 1, 256>}, {transform_indices = @transform_3, window_bounds = array<i64: 8, 256>}]} {
    %c0 = arith.constant 0 : index
    %c0_0 = arith.constant 0 : index
    %0 = vector.load %arg1[%c0, %c0_0] : memref<8x1152xbf16, #tpu.memory_space<vmem>>, vector<8x1152xbf16>
    %c0_1 = arith.constant 0 : index
    %c0_2 = arith.constant 0 : index
    %1 = vector.load %arg2[%c0_1, %c0_2] : memref<1152x256xbf16, #tpu.memory_space<vmem>>, vector<1152x256xbf16>
    %cst = arith.constant dense<0.000000e+00> : vector<8x256xf32>
    %2 = tpu.matmul %0, %1, %cst {dimension_numbers = #tpu.dot_dimension_numbers<[1], [0], [0], [1], [0, 0, 1, 1], [], []>} : vector<8x1152xbf16>, vector<1152x256xbf16>, vector<8x256xf32> -> vector<8x256xf32>
    %c0_3 = arith.constant 0 : index
    %c0_4 = arith.constant 0 : index
    %3 = vector.load %arg3[%c0_3, %c0_4] : memref<1x256xf32, #tpu.memory_space<vmem>>, vector<1x256xf32>
    %4 = vector.broadcast %3 : vector<1x256xf32> to vector<8x256xf32>
    %5 = arith.addf %2, %4 : vector<8x256xf32>
    %cst_5 = arith.constant 0.000000e+00 : f32
    %6 = vector.broadcast %cst_5 : f32 to vector<8x256xf32>
    %7 = arith.subf %6, %5 : vector<8x256xf32>
    %8 = math.exp %7 : vector<8x256xf32>
    %cst_6 = arith.constant 1.000000e+00 : f32
    %9 = vector.broadcast %cst_6 : f32 to vector<8x256xf32>
    %10 = arith.addf %9, %8 : vector<8x256xf32>
    %11 = tpu.reciprocal %10 {approx = true} : vector<8x256xf32> -> vector<8x256xf32>
    %12 = arith.mulf %5, %11 : vector<8x256xf32>
    %13 = arith.truncf %12 : vector<8x256xf32> to vector<8x256xbf16>
    %c0_7 = arith.constant 0 : index
    %c0_8 = arith.constant 0 : index
    %14 = vector.load %arg4[%c0_7, %c0_8] : memref<8x256xbf16, #tpu.memory_space<vmem>>, vector<8x256xbf16>
    tpu.vector_store %arg4[%c0_7, %c0_8], %13 {strides = array<i32>} : memref<8x256xbf16, #tpu.memory_space<vmem>>, vector<8x256xbf16>,
    return
  }
  func.func @transform_0(%arg0: i32) -> (i32, i32) {
    %c0_i32 = arith.constant 0 : i32
    %c0_i32_0 = arith.constant 0 : i32
    return %arg0, %c0_i32 : i32, i32
  }
  func.func @transform_1(%arg0: i32) -> (i32, i32) {
    %c0_i32 = arith.constant 0 : i32
    %c0_i32_0 = arith.constant 0 : i32
    %c0_i32_1 = arith.constant 0 : i32
    return %c0_i32, %c0_i32_0 : i32, i32
  }
  func.func @transform_2(%arg0: i32) -> (i32, i32) {
    %c0_i32 = arith.constant 0 : i32
    %c0_i32_0 = arith.constant 0 : i32
    %c0_i32_1 = arith.constant 0 : i32
    return %c0_i32, %c0_i32_0 : i32, i32
  }
  func.func @transform_3(%arg0: i32) -> (i32, i32) {
    %c0_i32 = arith.constant 0 : i32
    %c0_i32_0 = arith.constant 0 : i32
    return %arg0, %c0_i32 : i32, i32
  }
}

module attributes {stable_mosaic.version = 11 : i64} {
  func.func @_fused_matmul_kernel(%arg0: i32, %arg1: memref<8x256xbf16, #tpu.memory_space<vmem>>, %arg2: memref<256x128xbf16, #tpu.memory_space<vmem>>, %arg3: memref<1x128xf32, #tpu.memory_space<vmem>>, %arg4: memref<8x128xbf16, #tpu.memory_space<vmem>>) attributes {dimension_semantics = [#tpu.dimension_semantics<parallel>], iteration_bounds = array<i64: 1>, scalar_prefetch = 0 : i64, scratch_operands = 0 : i64, tpu.core_type = #tpu.core_type<tc>, window_params = [{transform_indices = @transform_0, window_bounds = array<i64: 8, 256>}, {pipeline_mode = #tpu.pipeline_mode<synchronous>, transform_indices = @transform_1, window_bounds = array<i64: 256, 128>}, {pipeline_mode = #tpu.pipeline_mode<synchronous>, transform_indices = @transform_2, window_bounds = array<i64: 1, 128>}, {transform_indices = @transform_3, window_bounds = array<i64: 8, 128>}]} {
    %c0 = arith.constant 0 : index
    %c0_0 = arith.constant 0 : index
    %0 = vector.load %arg1[%c0, %c0_0] : memref<8x256xbf16, #tpu.memory_space<vmem>>, vector<8x256xbf16>
    %c0_1 = arith.constant 0 : index
    %c0_2 = arith.constant 0 : index
    %1 = vector.load %arg2[%c0_1, %c0_2] : memref<256x128xbf16, #tpu.memory_space<vmem>>, vector<256x128xbf16>
    %cst = arith.constant dense<0.000000e+00> : vector<8x128xf32>
    %2 = tpu.matmul %0, %1, %cst {dimension_numbers = #tpu.dot_dimension_numbers<[1], [0], [0], [1], [0, 0, 1, 1], [], []>} : vector<8x256xbf16>, vector<256x128xbf16>, vector<8x128xf32> -> vector<8x128xf32>
    %c0_3 = arith.constant 0 : index
    %c0_4 = arith.constant 0 : index
    %3 = vector.load %arg3[%c0_3, %c0_4] : memref<1x128xf32, #tpu.memory_space<vmem>>, vector<1x128xf32>
    %4 = vector.broadcast %3 : vector<1x128xf32> to vector<8x128xf32>
    %5 = arith.addf %2, %4 : vector<8x128xf32>
    %6 = arith.truncf %5 : vector<8x128xf32> to vector<8x128xbf16>
    %c0_5 = arith.constant 0 : index
    %c0_6 = arith.constant 0 : index
    %7 = vector.load %arg4[%c0_5, %c0_6] : memref<8x128xbf16, #tpu.memory_space<vmem>>, vector<8x128xbf16>
    tpu.vector_store %arg4[%c0_5, %c0_6], %6 {strides = array<i32>} : memref<8x128xbf16, #tpu.memory_space<vmem>>, vector<8x128xbf16>,
    return
  }
  func.func @transform_0(%arg0: i32) -> (i32, i32) {
    %c0_i32 = arith.constant 0 : i32
    %c0_i32_0 = arith.constant 0 : i32
    return %arg0, %c0_i32 : i32, i32
  }
  func.func @transform_1(%arg0: i32) -> (i32, i32) {
    %c0_i32 = arith.constant 0 : i32
    %c0_i32_0 = arith.constant 0 : i32
    %c0_i32_1 = arith.constant 0 : i32
    return %c0_i32, %c0_i32_0 : i32, i32
  }
  func.func @transform_2(%arg0: i32) -> (i32, i32) {
    %c0_i32 = arith.constant 0 : i32
    %c0_i32_0 = arith.constant 0 : i32
    %c0_i32_1 = arith.constant 0 : i32
    return %c0_i32, %c0_i32_0 : i32, i32
  }
  func.func @transform_3(%arg0: i32) -> (i32, i32) {
    %c0_i32 = arith.constant 0 : i32
    %c0_i32_0 = arith.constant 0 : i32
    return %arg0, %c0_i32 : i32, i32
  }
}

</mosaic_0001>

<bundles_post_ra>
// kernel: _lambda_.18
= control target key start
LH: loop header
LB: loop body
LE: loop exit
PB: predicated region body
PF: predicated region fallthrough
CT: control target
= control target key end

     0   :  { %s4238_s12 = smov 0   ;;  %s5167_s0 = inlined_call_operand.vmem [shape: bf16[512,1152], index: 0, kind: input, shape index: {}]   ;;  %s5168_s1 = inlined_call_operand.vmem [shape: bf16[1152,128], index: 1, kind: input, shape index: {}]   ;;  %s5169_s2 = inlined_call_operand.vmem [shape: f32[1,128], index: 2, kind: input, shape index: {}]   ;;  %s5170_s3 = inlined_call_operand.vmem [shape: bf16[512,128], index: 3, kind: output, shape index: {}]  }
   0x1 LB: > { %s2870_s13 = sadd.s32 4294967295, %s4216_s12   ;;  %p2874_p0 = scmp.ge.s32.totalorder %s4216_s12, 1  ;;  %s4216_s12 = sphi %s4238_s12, %s13_s12  }
   0x2   : > { %p139_p1 = scmp.lt.s32.totalorder %s4216_s12, 3 }
   0x4   : > { %p140_p2 = pnand %p2874_p0, %p139_p1 }
   0x5   : > { %v3802_v0 = vld [vmem:[%s5168_s1 + $0x40] sm:$0xff] (!%p140_p2)   ;;  %s2875_s16 = sshll.u32 (!%p140_p2), %s2870_s13, 5  ;;  %v3804_v2 = vld [vmem:[%s5168_s1 + $0x48] sm:$0xff] (!%p140_p2)   ;;  %v3806_v4 = vld [vmem:[%s5168_s1 + $0x50] sm:$0xff] (!%p140_p2)  }
   0x6   : > { %143 = sbr.rel (%p140_p2) target bundleno = 575 (0x23f), region = 32  ;;  %v3803_v1 = vld [vmem:[%s5168_s1] sm:$0xff] (!%p140_p2)   ;;  %3257 = vmatprep.subr.bf16.mxu0 (!%p140_p2), %v3802_v0  ;;  %3777 = vmatprep.subr.bf16.mxu1 (!%p140_p2), %v3802_v0  ;;  %p165_p3 = scmp.lt.s32.totalorder (!%p140_p2), %s2875_s16, 63  ;;  %v3805_v3 = vld [vmem:[%s5168_s1 + $0x8] sm:$0xff] (!%p140_p2)   ;;  %v3807_v5 = vld [vmem:[%s5168_s1 + $0x10] sm:$0xff] (!%p140_p2)  }
   0x7   : > { %3258 = vmatpush3.bf16.msra.mxu0 (!%p140_p2), %v3803_v1  ;;  %3785 = vmatpush3.bf16.msra.mxu1 (!%p140_p2), %v3803_v1  ;;  %v3808_v6 = vld [vmem:[%s5168_s1 + $0x58] sm:$0xff] (!%p140_p2)   ;;  %v3810_v8 = vld [vmem:[%s5168_s1 + $0x60] sm:$0xff] (!%p140_p2)   ;;  %v3812_v10 = vld [vmem:[%s5168_s1 + $0x68] sm:$0xff] (!%p140_p2)  }
   0x8   : > { %3259 = vmatprep.subr.bf16.mxu0 (!%p140_p2), %v3804_v2  ;;  %3778 = vmatprep.subr.bf16.mxu1 (!%p140_p2), %v3804_v2  ;;  %v3809_v7 = vld [vmem:[%s5168_s1 + $0x18] sm:$0xff] (!%p140_p2)   ;;  %v3811_v9 = vld [vmem:[%s5168_s1 + $0x20] sm:$0xff] (!%p140_p2)   ;;  %v3813_v13 = vld [vmem:[%s5168_s1 + $0x28] sm:$0xff] (!%p140_p2)  }
   0x9   : > { %v3814_v14 = vld [vmem:[%s5168_s1 + $0x70] sm:$0xff] (!%p140_p2)   ;;  %v3816_v16 = vld [vmem:[%s5168_s1 + $0x78] sm:$0xff] (!%p140_p2)   ;;  %v3824_v18 = vld [vmem:[%s5168_s1 + $0xc0] sm:$0xff] (!%p140_p2)  }
   0xa   : > { %v3815_v15 = vld [vmem:[%s5168_s1 + $0x30] sm:$0xff] (!%p140_p2)   ;;  %v3817_v17 = vld [vmem:[%s5168_s1 + $0x38] sm:$0xff] (!%p140_p2)   ;;  %v3827_v21 = vld [vmem:[%s5168_s1 + $0x140] sm:$0xff] (!%p140_p2)  }
   0xb   : > { %3260 = vmatpush3.bf16.msra.mxu0 (!%p140_p2), %v3805_v3  ;;  %3786 = vmatpush3.bf16.msra.mxu1 (!%p140_p2), %v3805_v3  ;;  %v3825_v22 = vld [vmem:[%s5168_s1 + $0x80] sm:$0xff] (!%p140_p2)   ;;  %v3826_v23 = vld [vmem:[%s5168_s1 + $0xc8] sm:$0xff] (!%p140_p2)   ;;  %v3836_v31 = vld [vmem:[%s5168_s1 + $0xd0] sm:$0xff] (!%p140_p2)  }
   0xc   : > { %3261 = vmatprep.subr.bf16.mxu0 (!%p140_p2), %v3806_v4  ;;  %3779 = vmatprep.subr.bf16.mxu1 (!%p140_p2), %v3806_v4  ;;  %v3829_v24 = vld [vmem:[%s5168_s1 + $0x100] sm:$0xff] (!%p140_p2)   ;;  %v3828_v27 = vld [vmem:[%s5168_s1 + $0x88] sm:$0xff] (!%p140_p2)   ;;  %v3837_v32 = vld [vmem:[%s5168_s1 + $0x90] sm:$0xff] (!%p140_p2)  }
   0xd   : > { %s5172_s16 = smov (!%p165_p3, %s2875_s16), 63  ;;  %v3847_v28 = vld [vmem:[%s5168_s1 + $0x148] sm:$0xff]   ;;  %v3838_v34 = vld [vmem:[%s5168_s1 + $0xd8] sm:$0xff]   ;;  %v3846_v40 = vld [vmem:[%s5168_s1 + $0xe0] sm:$0xff]  }
   0xe   : > { %s3793_s29 = smul.u32 36, %s5172_s16  ;;  %v3849_v33 = vld [vmem:[%s5168_s1 + $0x108] sm:$0xff]   ;;  %v3839_v37 = vld [vmem:[%s5168_s1 + $0x98] sm:$0xff]   ;;  %v3848_v41 = vld [vmem:[%s5168_s1 + $0xa0] sm:$0xff]  }
   0xf   : > { %3262 = vmatpush3.bf16.msra.mxu0 %v3807_v5  ;;  %3787 = vmatpush3.bf16.msra.mxu1 %v3807_v5  ;;  %v3850_v42 = vld [vmem:[%s5168_s1 + $0xe8] sm:$0xff]   ;;  %v3861_v43 = vld [vmem:[%s5168_s1 + $0x150] sm:$0xff]   ;;  %v3860_v52 = vld [vmem:[%s5168_s1 + $0xf8] sm:$0xff]  }
  0x10   : > { %3263 = vmatprep.subr.bf16.mxu0 %v3808_v6  ;;  %3780 = vmatprep.subr.bf16.mxu1 %v3808_v6  ;;  %s4279_s9 = scalar_lea.vmem %s5167_s0, %s3793_s29  ;;  %v3863_v46 = vld [vmem:[%s5168_s1 + $0x110] sm:$0xff]   ;;  %v3851_v47 = vld [vmem:[%s5168_s1 + $0xa8] sm:$0xff]   ;;  %v3878_v55 = vld [vmem:[%s5168_s1 + $0x158] sm:$0xff]  }
  0x11   : > { %v3820_v11 = vld [vmem:[%s4279_s9 + $0x4] ss:$36 sps:$4 sm:$0xff]   ;;  %v3830_v25 = vld [vmem:[%s4279_s9 + $0x4c] ss:$36 sps:$4 sm:$0xff]   ;;  %v3840_v35 = vld [vmem:[%s4279_s9 + $0x94] ss:$36 sps:$4 sm:$0xff]  }
  0x12   : > { %v3823_v12 = vld [vmem:[%s4279_s9 + $0x364] ss:$36 sps:$4 sm:$0xff]   ;;  %1689 = vmatprep.mubr.bf16.mxu0 %v3820_v11  ;;  %v3832_v26 = vld [vmem:[%s4279_s9 + $0x3ac] ss:$36 sps:$4 sm:$0xff]   ;;  %v3842_v36 = vld [vmem:[%s4279_s9 + $0x3f4] ss:$36 sps:$4 sm:$0xff]  }
  0x13   : > { %3264 = vmatpush3.bf16.msra.mxu0 %v3809_v7  ;;  %3788 = vmatpush3.bf16.msra.mxu1 %v3809_v7  ;;  %v3818_v19 = vld [vmem:[%s4279_s9] ss:$36 sps:$4 sm:$0xff]   ;;  %v3834_v29 = vld [vmem:[%s4279_s9 + $0x48] ss:$36 sps:$4 sm:$0xff]   ;;  %v3844_v38 = vld [vmem:[%s4279_s9 + $0x90] ss:$36 sps:$4 sm:$0xff]  }
  0x14   : > { %3265 = vmatprep.subr.bf16.mxu0 %v3810_v8  ;;  %3781 = vmatprep.subr.bf16.mxu1 %v3810_v8  ;;  %v3821_v20 = vld [vmem:[%s4279_s9 + $0x360] ss:$36 sps:$4 sm:$0xff]   ;;  %v3835_v30 = vld [vmem:[%s4279_s9 + $0x3a8] ss:$36 sps:$4 sm:$0xff]   ;;  %v3845_v39 = vld [vmem:[%s4279_s9 + $0x3f0] ss:$36 sps:$4 sm:$0xff]  }
  0x15   : > { %1785 = vmatprep.mubr.bf16.mxu1 %v3823_v12  ;;  %v3852_v44 = vld [vmem:[%s4279_s9 + $0xdc] ss:$36 sps:$4 sm:$0xff]   ;;  %v3858_v48 = vld [vmem:[%s5168_s1 + $0xf0] sm:$0xff]   ;;  %v3864_v53 = vld [vmem:[%s4279_s9 + $0x124] ss:$36 sps:$4 sm:$0xff]  }
  0x16   : > { %v3854_v45 = vld [vmem:[%s4279_s9 + $0x43c] ss:$36 sps:$4 sm:$0xff]   ;;  %v3859_v51 = vld [vmem:[%s5168_s1 + $0xb0] sm:$0xff]   ;;  %v3866_v58 = vld [vmem:[%s4279_s9 + $0x8] ss:$36 sps:$4 sm:$0xff]  }
  0x17   : > { %3266 = vmatpush3.bf16.msra.mxu0 %v3811_v9  ;;  %3789 = vmatpush3.bf16.msra.mxu1 %v3811_v9  ;;  %v3856_v49 = vld [vmem:[%s4279_s9 + $0xd8] ss:$36 sps:$4 sm:$0xff]   ;;  %v3868_v54 = vld [vmem:[%s4279_s9 + $0xc] ss:$36 sps:$4 sm:$0xff]   ;;  %v3869_v59 = vld [vmem:[%s4279_s9 + $0x120] ss:$36 sps:$4 sm:$0xff]  }
  0x18   : > { %3267 = vmatprep.subr.bf16.mxu0 %v3812_v10  ;;  %3782 = vmatprep.subr.bf16.mxu1 %v3812_v10  ;;  %v3857_v50 = vld [vmem:[%s4279_s9 + $0x438] ss:$36 sps:$4 sm:$0xff]   ;;  %v3870_v60 = vld [vmem:[%s5168_s1 + $0x1c0] sm:$0xff]   ;;  %v3872_v62 = vld [vmem:[%s4279_s9 + $0x16c] ss:$36 sps:$4 sm:$0xff]  }
  0x19   : > { %v3879_v56 = vld [vmem:[%s5168_s1 + $0x118] sm:$0xff]   ;;  %v3871_v61 = vld [vmem:[%s5168_s1 + $0x180] sm:$0xff]   ;;  %v3886_v1 = vld [vmem:[%s5168_s1 + $0x1c8] sm:$0xff]  }
  0x1a   : > { %v3862_v57 = vld [vmem:[%s5168_s1 + $0xb8] sm:$0xff]   ;;  %v3888_v0 = vld [vmem:[%s5168_s1 + $0x160] sm:$0xff]   ;;  %v3887_v3 = vld [vmem:[%s5168_s1 + $0x188] sm:$0xff]  }
  0x1b   : > { %3268 = vmatpush3.bf16.msra.mxu0 %v3813_v13  ;;  %3790 = vmatpush3.bf16.msra.mxu1 %v3813_v13  ;;  %v3874_v63 = vld [vmem:[%s4279_s9 + $0x54] ss:$36 sps:$4 sm:$0xff]   ;;  %v3889_v2 = vld [vmem:[%s5168_s1 + $0x120] sm:$0xff]   ;;  %v3876_v4 = vld [vmem:[%s4279_s9 + $0x168] ss:$36 sps:$4 sm:$0xff]  }
  0x1c   : > { %3269 = vmatprep.subr.bf16.mxu0 %v3814_v14  ;;  %3783 = vmatprep.subr.bf16.mxu1 %v3814_v14  ;;  %v3877_v5 = vld [vmem:[%s4279_s9 + $0x50] ss:$36 sps:$4 sm:$0xff]   ;;  %v3882_v7 = vld [vmem:[%s4279_s9 + $0x9c] ss:$36 sps:$4 sm:$0xff]   ;;  %v3902_v8 = vld [vmem:[%s5168_s1 + $0x168] sm:$0xff]  }
  0x1d   : > { %v3880_v6 = vld [vmem:[%s4279_s9 + $0x1b4] ss:$36 sps:$4 sm:$0xff]   ;;  %v3904_v10 = vld [vmem:[%s5168_s1 + $0x128] sm:$0xff]   ;;  %v3890_v14 = vld [vmem:[%s4279_s9 + $0x1fc] ss:$36 sps:$4 sm:$0xff]  }
  0x1e   : > { %v3903_v9 = vld [vmem:[%s5168_s1 + $0x1d0] sm:$0xff]   ;;  %v3885_v13 = vld [vmem:[%s4279_s9 + $0x98] ss:$36 sps:$4 sm:$0xff]  }
  0x1f   : > { %3270 = vmatpush3.bf16.msra.mxu0 %v3815_v15  ;;  %3791 = vmatpush3.bf16.msra.mxu1 %v3815_v15  ;;  %v3905_v11 = vld [vmem:[%s5168_s1 + $0x190] sm:$0xff]  }
  0x20   : > { %3271 = vmatprep.subr.bf16.mxu0 %v3816_v16  ;;  %3784 = vmatprep.subr.bf16.mxu1 %v3816_v16  ;;  %v3884_v12 = vld [vmem:[%s4279_s9 + $0x1b0] ss:$36 sps:$4 sm:$0xff]  }
  0x21   : > { %v3912_v15 = vld [vmem:[%s5168_s1 + $0x170] sm:$0xff]  }
  0x22   : > { %v3913_v16 = vld [vmem:[%s5168_s1 + $0x130] sm:$0xff]  }
  0x23   : > { %3272 = vmatpush3.bf16.msra.mxu0 %v3817_v17  ;;  %3792 = vmatpush3.bf16.msra.mxu1 %v3817_v17  ;;  %v3892_v17 = vld [vmem:[%s4279_s9 + $0xe4] ss:$36 sps:$4 sm:$0xff]  }
  0x24   : > { %3369 = vmatprep.subr.bf16.mxu1 %v3824_v18  ;;  %3481 = vmatprep.subr.bf16.mxu0 %v3827_v21  ;;  %v3920_v18 = vld [vmem:[%s5168_s1 + $0x1d8] sm:$0xff]   ;;  %v3895_v21 = vld [vmem:[%s4279_s9 + $0xe0] ss:$36 sps:$4 sm:$0xff]  }
  0x26   : > { %1690 = vmatmul.mubr.bf16.vlgmr.msra.gmra.mrb[0].mxu0 %v3818_v19  ;;  %1786 = vmatmul.mubr.bf16.vlgmr.msra.gmra.mrb[0].mxu1 %v3821_v20  ;;  %v3921_v19 = vld [vmem:[%s5168_s1 + $0x198] sm:$0xff]  }
  0x27   : > { %3370 = vmatpush3.bf16.msra.mxu1 %v3825_v22  ;;  %3482 = vmatpush3.bf16.msra.mxu0 %v3829_v24  ;;  %v3894_v20 = vld [vmem:[%s4279_s9 + $0x1f8] ss:$36 sps:$4 sm:$0xff]   ;;  %v3896_v22 = vld [vmem:[%s4279_s9 + $0x244] ss:$36 sps:$4 sm:$0xff]  }
  0x28   : > { %3371 = vmatprep.subr.bf16.mxu1 %v3826_v23  ;;  %1697 = vmatprep.mubr.bf16.mxu0 %v3830_v25  ;;  %v3898_v23 = vld [vmem:[%s4279_s9 + $0x12c] ss:$36 sps:$4 sm:$0xff]   ;;  %v3928_v24 = vld [vmem:[%s5168_s1 + $0x178] sm:$0xff]  }
  0x29   : > { %1793 = vmatprep.mubr.bf16.mxu1 %v3832_v26  ;;  %3483 = vmatprep.subr.bf16.mxu0 %v3847_v28  ;;  %v3929_v25 = vld [vmem:[%s5168_s1 + $0x138] sm:$0xff]   ;;  %v3936_v26 = vld [vmem:[%s5168_s1 + $0x1e0] sm:$0xff]  }
  0x2a   : > { %v3937_v28 = vld [vmem:[%s5168_s1 + $0x1a0] sm:$0xff]  }
  0x2b   : > { %3372 = vmatpush3.bf16.msra.mxu1 %v3828_v27  ;;  %3484 = vmatpush3.bf16.msra.mxu0 %v3849_v33  ;;  %v3900_v27 = vld [vmem:[%s4279_s9 + $0x240] ss:$36 sps:$4 sm:$0xff]   ;;  %v3951_v33 = vld [vmem:[%s5168_s1 + $0x1e8] sm:$0xff]  }
  0x2c   : > { %3373 = vmatprep.subr.bf16.mxu1 %v3836_v31  ;;  %3485 = vmatprep.subr.bf16.mxu0 %v3861_v43  ;;  %v3906_v31 = vld [vmem:[%s4279_s9 + $0x28c] ss:$36 sps:$4 sm:$0xff]   ;;  %v3922_v43 = vld [vmem:[%s4279_s9 + $0x31c] ss:$36 sps:$4 sm:$0xff]  }
  0x2e   : > { %1698 = vmatmul.mubr.bf16.gmra.mrb[4].mxu0 %v3834_v29  ;;  %1794 = vmatmul.mubr.bf16.gmra.mrb[4].mxu1 %v3835_v30  ;;  %v3938_v29 = vld [vmem:[%s5168_s1 + $0x200] sm:$0xff]   ;;  %v3901_v30 = vld [vmem:[%s4279_s9 + $0x128] ss:$36 sps:$4 sm:$0xff]  }
  0x2f   : > { %3374 = vmatpush3.bf16.msra.mxu1 %v3837_v32  ;;  %1705 = vmatprep.mubr.bf16.mxu0 %v3840_v35  ;;  %v3908_v32 = vld [vmem:[%s4279_s9 + $0x174] ss:$36 sps:$4 sm:$0xff]   ;;  %v3952_v35 = vld [vmem:[%s5168_s1 + $0x1a8] sm:$0xff]  }
  0x30   : > { %3375 = vmatprep.subr.bf16.mxu1 %v3838_v34  ;;  %1801 = vmatprep.mubr.bf16.mxu1 %v3842_v36  ;;  %v3910_v34 = vld [vmem:[%s4279_s9 + $0x288] ss:$36 sps:$4 sm:$0xff]   ;;  %v3911_v36 = vld [vmem:[%s4279_s9 + $0x170] ss:$36 sps:$4 sm:$0xff]  }
  0x31   : > { %3486 = vmatpush3.bf16.msra.mxu0 %v3863_v46  ;;  %v3927_v46 = vld [vmem:[%s4279_s9 + $0x200] ss:$36 sps:$4 sm:$0xff]  }
  0x32   : > { %3487 = vmatprep.subr.bf16.mxu0 %v3878_v55  ;;  %v3953_v55 = vld [vmem:[%s5168_s1 + $0x208] sm:$0xff]  }
  0x33   : > { %3376 = vmatpush3.bf16.msra.mxu1 %v3839_v37  ;;  %v3914_v37 = vld [vmem:[%s4279_s9 + $0x2d4] ss:$36 sps:$4 sm:$0xff]  }
  0x34   : > { %3377 = vmatprep.subr.bf16.mxu1 %v3846_v40  ;;  %v3919_v40 = vld [vmem:[%s4279_s9 + $0x1b8] ss:$36 sps:$4 sm:$0xff]  }
  0x35   : > { %3488 = vmatpush3.bf16.msra.mxu0 %v3879_v56  ;;  %v3968_v56 = vld [vmem:[%s5168_s1 + $0x210] sm:$0xff]  }
  0x36   : > { %1706 = vmatmul.mubr.bf16.gmra.mrb[8].mxu0 %v3844_v38  ;;  %1802 = vmatmul.mubr.bf16.gmra.mrb[8].mxu1 %v3845_v39  ;;  %v3916_v38 = vld [vmem:[%s4279_s9 + $0x1bc] ss:$36 sps:$4 sm:$0xff]   ;;  %v3918_v39 = vld [vmem:[%s4279_s9 + $0x2d0] ss:$36 sps:$4 sm:$0xff]  }
  0x37   : > { %3378 = vmatpush3.bf16.msra.mxu1 %v3848_v41  ;;  %1713 = vmatprep.mubr.bf16.mxu0 %v3852_v44  ;;  %v3966_v41 = vld [vmem:[%s5168_s1 + $0x1f0] sm:$0xff]   ;;  %v3924_v44 = vld [vmem:[%s4279_s9 + $0x204] ss:$36 sps:$4 sm:$0xff]  }
  0x38   : > { %3379 = vmatprep.subr.bf16.mxu1 %v3850_v42  ;;  %1809 = vmatprep.mubr.bf16.mxu1 %v3854_v45  ;;  %v3967_v42 = vld [vmem:[%s5168_s1 + $0x1b0] sm:$0xff]   ;;  %v3926_v45 = vld [vmem:[%s4279_s9 + $0x318] ss:$36 sps:$4 sm:$0xff]  }
  0x39   : > { %3489 = vmatprep.subr.bf16.mxu0 %v3888_v0  ;;  %v3950_v0 = vld [vmem:[%s4279_s9 + $0xa0] ss:$36 sps:$4 sm:$0xff]  }
  0x3a   : > { %3490 = vmatpush3.bf16.msra.mxu0 %v3889_v2  ;;  %v3956_v2 = vld [vmem:[%s4279_s9 + $0xec] ss:$36 sps:$4 sm:$0xff]  }
  0x3b   : > { %3380 = vmatpush3.bf16.msra.mxu1 %v3851_v47  ;;  %3491 = vmatprep.subr.bf16.mxu0 %v3902_v8  ;;  %v3981_v47 = vld [vmem:[%s5168_s1 + $0x1f8] sm:$0xff]  }
  0x3c   : > { %3381 = vmatprep.subr.bf16.mxu1 %v3858_v48  ;;  %v3982_v48 = vld [vmem:[%s5168_s1 + $0x1b8] sm:$0xff]  }
  0x3d   : > { %v3962_v8 = vld [vmem:[%s4279_s9 + $0x134] ss:$36 sps:$4 sm:$0xff]  }
  0x3e   : > { %1714 = vmatmul.mubr.bf16.gmra.mrb[12].mxu0 %v3856_v49  ;;  %1810 = vmatmul.mubr.bf16.gmra.mrb[12].mxu1 %v3857_v50  ;;  %v3930_v49 = vld [vmem:[%s4279_s9 + $0x24c] ss:$36 sps:$4 sm:$0xff]   ;;  %v3934_v50 = vld [vmem:[%s4279_s9 + $0x14] ss:$36 sps:$4 sm:$0xff]  }
  0x3f   : > { %3382 = vmatpush3.bf16.msra.mxu1 %v3859_v51  ;;  %1721 = vmatprep.mubr.bf16.mxu0 %v3864_v53  ;;  %v3932_v51 = vld [vmem:[%s4279_s9 + $0x10] ss:$36 sps:$4 sm:$0xff]  }
  0x40   : > { %3383 = vmatprep.subr.bf16.mxu1 %v3860_v52  ;;  %1850 = vmatprep.mubr.bf16.mxu1 %v3868_v54  ;;  %v3935_v52 = vld [vmem:[%s4279_s9 + $0x248] ss:$36 sps:$4 sm:$0xff]   ;;  %v3939_v53 = vld [vmem:[%s4279_s9 + $0x294] ss:$36 sps:$4 sm:$0xff]   ;;  %v3941_v54 = vld [vmem:[%s4279_s9 + $0x5c] ss:$36 sps:$4 sm:$0xff]  }
  0x41   : > { %3492 = vmatpush3.bf16.msra.mxu0 %v3904_v10  ;;  %v3964_v10 = vld [vmem:[%s4279_s9 + $0x368] ss:$36 sps:$4 sm:$0xff]  }
  0x42   : > { %3493 = vmatprep.subr.bf16.mxu0 %v3912_v15  ;;  %v3974_v15 = vld [vmem:[%s4279_s9 + $0x178] ss:$36 sps:$4 sm:$0xff]  }
  0x43   : > { %3384 = vmatpush3.bf16.msra.mxu1 %v3862_v57  ;;  %v3943_v57 = vld [vmem:[%s4279_s9 + $0x290] ss:$36 sps:$4 sm:$0xff]  }
  0x44   : > { %3593 = vmatprep.subr.bf16.mxu1 %v3870_v60  ;;  %v3947_v60 = vld [vmem:[%s4279_s9 + $0xa4] ss:$36 sps:$4 sm:$0xff]  }
  0x45   : > { %3494 = vmatpush3.bf16.msra.mxu0 %v3913_v16  ;;  %v3975_v16 = vld [vmem:[%s4279_s9 + $0x3fc] ss:$36 sps:$4 sm:$0xff]  }
  0x46   : > { %1722 = vmatmul.mubr.bf16.gmra.mrb[16].mxu0 %v3869_v59  ;;  %1851 = vmatmul.mubr.bf16.vlgmr.msra.gmra.mrb[16].mxu1 %v3866_v58  ;;  %v3944_v58 = vld [vmem:[%s4279_s9 + $0x58] ss:$36 sps:$4 sm:$0xff]  }
  0x47   : > { %3594 = vmatpush3.bf16.msra.mxu1 %v3871_v61  ;;  %1729 = vmatprep.mubr.bf16.mxu0 %v3872_v62  ;;  %v3945_v59 = vld [vmem:[%s4279_s9 + $0x2dc] ss:$36 sps:$4 sm:$0xff]  }
  0x48   : > { %1858 = vmatprep.mubr.bf16.mxu1 %v3874_v63  ;;  %3595 = vmatprep.subr.bf16.mxu1 %v3886_v1  ;;  %v3983_v61 = vld [vmem:[%s5168_s1 + $0x218] sm:$0xff]   ;;  %v3996_v62 = vld [vmem:[%s5168_s1 + $0x220] sm:$0xff]  }
  0x49   : > { %3495 = vmatprep.subr.bf16.mxu0 %v3928_v24  ;;  %v3949_v63 = vld [vmem:[%s4279_s9 + $0x2d8] ss:$36 sps:$4 sm:$0xff]   ;;  %v3954_v1 = vld [vmem:[%s4279_s9 + $0x324] ss:$36 sps:$4 sm:$0xff]  }
  0x4a   : > { %3496 = vmatpush3.bf16.msra.mxu0 %v3929_v25  ;;  %v3990_v24 = vld [vmem:[%s4279_s9 + $0x254] ss:$36 sps:$4 sm:$0xff]   ;;  %v3994_v25 = vld [vmem:[%s4279_s9 + $0x1c] ss:$36 sps:$4 sm:$0xff]  }
  0x4b   : > { %3596 = vmatpush3.bf16.msra.mxu1 %v3887_v3  ;;  %3729 = vmatprep.subr.bf16.mxu0 %v3938_v29  ;;  %v4009_v3 = vld [vmem:[%s5168_s1 + $0x228] sm:$0xff]  }
  0x4c   : > { %3597 = vmatprep.subr.bf16.mxu1 %v3903_v9  ;;  %v4035_v9 = vld [vmem:[%s5168_s1 + $0x238] sm:$0xff]  }
  0x4e   : > { %1730 = vmatmul.mubr.bf16.gmra.mrb[20].mxu0 %v3876_v4  ;;  %1859 = vmatmul.mubr.bf16.gmra.mrb[20].mxu1 %v3877_v5  ;;  %v3958_v4 = vld [vmem:[%s4279_s9 + $0x320] ss:$36 sps:$4 sm:$0xff]   ;;  %v3959_v5 = vld [vmem:[%s4279_s9 + $0xe8] ss:$36 sps:$4 sm:$0xff]  }
  0x4f   : > { %1737 = vmatprep.mubr.bf16.mxu0 %v3880_v6  ;;  %1866 = vmatprep.mubr.bf16.mxu1 %v3882_v7  ;;  %v4022_v6 = vld [vmem:[%s5168_s1 + $0x230] sm:$0xff]  }
  0x50   : > { %3598 = vmatpush3.bf16.msra.mxu1 %v3905_v11  ;;  %v3960_v7 = vld [vmem:[%s4279_s9 + $0x36c] ss:$36 sps:$4 sm:$0xff]  }
  0x51   : > { %3599 = vmatprep.subr.bf16.mxu1 %v3920_v18  ;;  %v3965_v11 = vld [vmem:[%s4279_s9 + $0x130] ss:$36 sps:$4 sm:$0xff]   ;;  %v3979_v18 = vld [vmem:[%s4279_s9 + $0x3f8] ss:$36 sps:$4 sm:$0xff]  }
  0x54   : > { %3600 = vmatpush3.bf16.msra.mxu1 %v3921_v19  ;;  %v3980_v19 = vld [vmem:[%s4279_s9 + $0x1c0] ss:$36 sps:$4 sm:$0xff]  }
  0x55   : > { %3601 = vmatprep.subr.bf16.mxu1 %v3936_v26  ;;  %v3992_v26 = vld [vmem:[%s4279_s9 + $0x18] ss:$36 sps:$4 sm:$0xff]  }
  0x56   : > { %1738 = vmatmul.mubr.bf16.gmra.mrb[24].mxu0 %v3884_v12  ;;  %1867 = vmatmul.mubr.bf16.gmra.mrb[24].mxu1 %v3885_v13  ;;  %v3969_v12 = vld [vmem:[%s4279_s9 + $0x3b4] ss:$36 sps:$4 sm:$0xff]   ;;  %v3971_v13 = vld [vmem:[%s4279_s9 + $0x17c] ss:$36 sps:$4 sm:$0xff]  }
  0x57   : > { %1745 = vmatprep.mubr.bf16.mxu0 %v3890_v14  ;;  %1874 = vmatprep.mubr.bf16.mxu1 %v3892_v17  ;;  %v3973_v14 = vld [vmem:[%s4279_s9 + $0x3b0] ss:$36 sps:$4 sm:$0xff]   ;;  %v3977_v17 = vld [vmem:[%s4279_s9 + $0x1c4] ss:$36 sps:$4 sm:$0xff]  }
  0x58   : > { %3602 = vmatpush3.bf16.msra.mxu1 %v3937_v28  ;;  %v3997_v28 = vld [vmem:[%s4279_s9 + $0x29c] ss:$36 sps:$4 sm:$0xff]  }
  0x59   : > { %3603 = vmatprep.subr.bf16.mxu1 %v3951_v33  ;;  %v4005_v33 = vld [vmem:[%s4279_s9 + $0xac] ss:$36 sps:$4 sm:$0xff]  }
  0x5c   : > { %3604 = vmatpush3.bf16.msra.mxu1 %v3952_v35  ;;  %v4008_v35 = vld [vmem:[%s4279_s9 + $0xa8] ss:$36 sps:$4 sm:$0xff]  }
  0x5d   : > { %3605 = vmatprep.subr.bf16.mxu1 %v3966_v41  ;;  %v4018_v41 = vld [vmem:[%s4279_s9 + $0x13c] ss:$36 sps:$4 sm:$0xff]  }
  0x5e   : > { %1746 = vmatmul.mubr.bf16.gmra.mrb[28].mxu0 %v3894_v20  ;;  %1875 = vmatmul.mubr.bf16.gmra.mrb[28].mxu1 %v3895_v21  ;;  %v3984_v20 = vld [vmem:[%s4279_s9 + $0x444] ss:$36 sps:$4 sm:$0xff]   ;;  %v3986_v21 = vld [vmem:[%s4279_s9 + $0x20c] ss:$36 sps:$4 sm:$0xff]  }
  0x5f   : > { %1753 = vmatprep.mubr.bf16.mxu0 %v3896_v22  ;;  %1882 = vmatprep.mubr.bf16.mxu1 %v3898_v23  ;;  %v3988_v22 = vld [vmem:[%s4279_s9 + $0x440] ss:$36 sps:$4 sm:$0xff]   ;;  %v3989_v23 = vld [vmem:[%s4279_s9 + $0x208] ss:$36 sps:$4 sm:$0xff]  }
  0x60   : > { %3606 = vmatpush3.bf16.msra.mxu1 %v3967_v42  ;;  %v4020_v42 = vld [vmem:[%s4279_s9 + $0x370] ss:$36 sps:$4 sm:$0xff]  }
  0x61   : > { %3607 = vmatprep.subr.bf16.mxu1 %v3981_v47  ;;  %v4028_v47 = vld [vmem:[%s4279_s9 + $0x180] ss:$36 sps:$4 sm:$0xff]  }
  0x64   : > { %3608 = vmatpush3.bf16.msra.mxu1 %v3982_v48  ;;  %v4029_v48 = vld [vmem:[%s4279_s9 + $0x404] ss:$36 sps:$4 sm:$0xff]  }
  0x66   : > { %1754 = vmatmul.mubr.bf16.gmra.mrb[32].mxu0 %v3900_v27  ;;  %1883 = vmatmul.mubr.bf16.gmra.mrb[32].mxu1 %v3901_v30  ;;  %v3995_v27 = vld [vmem:[%s4279_s9 + $0x250] ss:$36 sps:$4 sm:$0xff]   ;;  %v4001_v30 = vld [vmem:[%s4279_s9 + $0x298] ss:$36 sps:$4 sm:$0xff]  }
  0x67   : > { %1761 = vmatprep.mubr.bf16.mxu0 %v3906_v31  ;;  %1890 = vmatprep.mubr.bf16.mxu1 %v3908_v32  ;;  %v4002_v31 = vld [vmem:[%s4279_s9 + $0x60] ss:$36 sps:$4 sm:$0xff]  }
  0x68   : > { %v4003_v32 = vld [vmem:[%s4279_s9 + $0x2e4] ss:$36 sps:$4 sm:$0xff]  }
  0x6e   : > { %1762 = vmatmul.mubr.bf16.gmra.mrb[36].mxu0 %v3910_v34  ;;  %1891 = vmatmul.mubr.bf16.gmra.mrb[36].mxu1 %v3911_v36  ;;  %v4007_v34 = vld [vmem:[%s4279_s9 + $0x2e0] ss:$36 sps:$4 sm:$0xff]   ;;  %v4010_v36 = vld [vmem:[%s4279_s9 + $0x32c] ss:$36 sps:$4 sm:$0xff]  }
  0x6f   : > { %1769 = vmatprep.mubr.bf16.mxu0 %v3914_v37  ;;  %1898 = vmatprep.mubr.bf16.mxu1 %v3916_v38  ;;  %v4012_v37 = vld [vmem:[%s4279_s9 + $0xf4] ss:$36 sps:$4 sm:$0xff]   ;;  %v4014_v38 = vld [vmem:[%s4279_s9 + $0x328] ss:$36 sps:$4 sm:$0xff]  }
  0x76   : > { %1770 = vmatmul.mubr.bf16.gmra.mrb[40].mxu0 %v3918_v39  ;;  %1899 = vmatmul.mubr.bf16.gmra.mrb[40].mxu1 %v3919_v40  ;;  %v4015_v39 = vld [vmem:[%s4279_s9 + $0xf0] ss:$36 sps:$4 sm:$0xff]  }
  0x77   : > { %1777 = vmatprep.mubr.bf16.mxu0 %v3922_v43  ;;  %1906 = vmatprep.mubr.bf16.mxu1 %v3924_v44  ;;  %v4016_v40 = vld [vmem:[%s4279_s9 + $0x374] ss:$36 sps:$4 sm:$0xff]   ;;  %v4023_v44 = vld [vmem:[%s4279_s9 + $0x3bc] ss:$36 sps:$4 sm:$0xff]  }
  0x78   : > { %v4021_v43 = vld [vmem:[%s4279_s9 + $0x138] ss:$36 sps:$4 sm:$0xff]  }
  0x7e   : > { %1778 = vmatmul.mubr.bf16.gmra.mrb[44].mxu0 %v3926_v45  ;;  %1907 = vmatmul.mubr.bf16.gmra.mrb[44].mxu1 %v3927_v46  ;;  %v4025_v45 = vld [vmem:[%s4279_s9 + $0x184] ss:$36 sps:$4 sm:$0xff]   ;;  %v4027_v46 = vld [vmem:[%s4279_s9 + $0x3b8] ss:$36 sps:$4 sm:$0xff]  }
  0x7f   : > { %1914 = vmatprep.mubr.bf16.mxu1 %v3930_v49  ;;  %2011 = vmatprep.mubr.bf16.mxu0 %v3934_v50  ;;  %v4031_v49 = vld [vmem:[%s4279_s9 + $0x1cc] ss:$36 sps:$4 sm:$0xff]   ;;  %v4033_v50 = vld [vmem:[%s4279_s9 + $0x400] ss:$36 sps:$4 sm:$0xff]  }
  0x86   : > { %1915 = vmatmul.mubr.bf16.gmra.mrb[48].mxu1 %v3935_v52  ;;  %2012 = vmatmul.mubr.bf16.vlgmr.msra.gmra.mrb[48].mxu0 %v3932_v51  ;;  %v4034_v51 = vld [vmem:[%s4279_s9 + $0x1c8] ss:$36 sps:$4 sm:$0xff]  }
  0x87   : > { %3730 = vmatpush3.bf16.msra.mxu0 %v3938_v29  ;;  %1922 = vmatprep.mubr.bf16.mxu1 %v3939_v53  ;;  %v3999_v29 = vld [vmem:[%s4279_s9 + $0x64] ss:$36 sps:$4 sm:$0xff]   ;;  %v4036_v52 = vld [vmem:[%s4279_s9 + $0x44c] ss:$36 sps:$4 sm:$0xff]   ;;  %v4038_v53 = vld [vmem:[%s4279_s9 + $0x214] ss:$36 sps:$4 sm:$0xff]  }
  0x88   : > { %2019 = vmatprep.mubr.bf16.mxu0 %v3941_v54  ;;  %3731 = vmatprep.subr.bf16.mxu0 %v3953_v55 }
  0x8b   : > { %3732 = vmatpush3.bf16.msra.mxu0 %v3953_v55 }
  0x8c   : > { %3733 = vmatprep.subr.bf16.mxu0 %v3968_v56 }
  0x8e   : > { %1923 = vmatmul.mubr.bf16.gmra.mrb[52].mxu1 %v3943_v57  ;;  %2020 = vmatmul.mubr.bf16.gmra.mrb[52].mxu0 %v3944_v58  ;;  %v4040_v58 = vld [vmem:[%s4279_s9 + $0x448] ss:$36 sps:$4 sm:$0xff]  }
  0x8f   : > { %1930 = vmatprep.mubr.bf16.mxu1 %v3945_v59  ;;  %2027 = vmatprep.mubr.bf16.mxu0 %v3947_v60  ;;  %v4041_v59 = vld [vmem:[%s4279_s9 + $0x210] ss:$36 sps:$4 sm:$0xff]  }
  0x90   : > { %3734 = vmatpush3.bf16.msra.mxu0 %v3968_v56 }
  0x91   : > { %3735 = vmatprep.subr.bf16.mxu0 %v3983_v61 }
  0x94   : > { %3736 = vmatpush3.bf16.msra.mxu0 %v3983_v61 }
  0x95   : > { %3737 = vmatprep.subr.bf16.mxu0 %v3996_v62 }
  0x96   : > { %1931 = vmatmul.mubr.bf16.gmra.mrb[56].mxu1 %v3949_v63  ;;  %2028 = vmatmul.mubr.bf16.gmra.mrb[56].mxu0 %v3950_v0  ;;  %v4042_v0 = vld [vmem:[%s4279_s9 + $0x25c] ss:$36 sps:$4 sm:$0xff]  }
  0x97   : > { %1938 = vmatprep.mubr.bf16.mxu1 %v3954_v1  ;;  %2035 = vmatprep.mubr.bf16.mxu0 %v3956_v2  ;;  %v4044_v1 = vld [vmem:[%s4279_s9 + $0x20] ss:$36 sps:$4 sm:$0xff]  }
  0x98   : > { %3738 = vmatpush3.bf16.msra.mxu0 %v3996_v62 }
  0x99   : > { %3739 = vmatprep.subr.bf16.mxu0 %v4009_v3 }
  0x9c   : > { %3740 = vmatpush3.bf16.msra.mxu0 %v4009_v3 }
  0x9d   : > { %3741 = vmatprep.subr.bf16.mxu0 %v4022_v6 }
  0x9e   : > { %1939 = vmatmul.mubr.bf16.gmra.mrb[60].mxu1 %v3958_v4  ;;  %2036 = vmatmul.mubr.bf16.gmra.mrb[60].mxu0 %v3959_v5 }
  0x9f   : > { %1946 = vmatprep.mubr.bf16.mxu1 %v3960_v7  ;;  %2043 = vmatprep.mubr.bf16.mxu0 %v3962_v8 }
  0xa0   : > { %3742 = vmatpush3.bf16.msra.mxu0 %v4022_v6 }
  0xa1   : > { %3743 = vmatprep.subr.bf16.mxu0 %v4035_v9 }
  0xa4   : > { %3744 = vmatpush3.bf16.msra.mxu0 %v4035_v9 }
  0xa6   : > { %1947 = vmatmul.mubr.bf16.gmra.mrb[64].mxu1 %v3964_v10  ;;  %2044 = vmatmul.mubr.bf16.gmra.mrb[64].mxu0 %v3965_v11  ;;  %v4045_v10 = vld [vmem:[%s4279_s9 + $0x258] ss:$36 sps:$4 sm:$0xff]   ;;  %v4046_v11 = vld [vmem:[%s4279_s9 + $0x68] ss:$36 sps:$4 sm:$0xff]  }
  0xa7   : > { %1954 = vmatprep.mubr.bf16.mxu1 %v3969_v12  ;;  %2051 = vmatprep.mubr.bf16.mxu0 %v3971_v13 }
  0xae   : > { %1955 = vmatmul.mubr.bf16.gmra.mrb[68].mxu1 %v3973_v14  ;;  %2052 = vmatmul.mubr.bf16.gmra.mrb[68].mxu0 %v3974_v15 }
  0xaf   : > { %1962 = vmatprep.mubr.bf16.mxu1 %v3975_v16  ;;  %2059 = vmatprep.mubr.bf16.mxu0 %v3977_v17  ;;  %v4047_v16 = vld [vmem:[%s4279_s9 + $0x2a4] ss:$36 sps:$4 sm:$0xff]   ;;  %v4049_v17 = vld [vmem:[%s4279_s9 + $0xb0] ss:$36 sps:$4 sm:$0xff]  }
  0xb6   : > { %1963 = vmatmul.mubr.bf16.gmra.mrb[72].mxu1 %v3979_v18  ;;  %2060 = vmatmul.mubr.bf16.gmra.mrb[72].mxu0 %v3980_v19 }
  0xb7   : > { %1970 = vmatprep.mubr.bf16.mxu1 %v3984_v20  ;;  %2067 = vmatprep.mubr.bf16.mxu0 %v3986_v21 }
  0xbe   : > { %1971 = vmatmul.mubr.bf16.gmra.mrb[76].mxu1 %v3988_v22  ;;  %2068 = vmatmul.mubr.bf16.gmra.mrb[76].mxu0 %v3989_v23 }
  0xbf   : > { %2075 = vmatprep.mubr.bf16.mxu0 %v3990_v24  ;;  %2172 = vmatprep.mubr.bf16.mxu1 %v3994_v25 }
  0xc6   : > { %2076 = vmatmul.mubr.bf16.gmra.mrb[80].mxu0 %v3995_v27  ;;  %2173 = vmatmul.mubr.bf16.vlgmr.msra.gmra.mrb[80].mxu1 %v3992_v26  ;;  %v4050_v26 = vld [vmem:[%s4279_s9 + $0x2a0] ss:$36 sps:$4 sm:$0xff]   ;;  %v4051_v27 = vld [vmem:[%s4279_s9 + $0xf8] ss:$36 sps:$4 sm:$0xff]  }
  0xc7   : > { %2083 = vmatprep.mubr.bf16.mxu0 %v3997_v28  ;;  %2180 = vmatprep.mubr.bf16.mxu1 %v3999_v29 }
  0xce   : > { %2084 = vmatmul.mubr.bf16.gmra.mrb[84].mxu0 %v4001_v30  ;;  %2181 = vmatmul.mubr.bf16.gmra.mrb[84].mxu1 %v4002_v31 }
  0xcf   : > { %2091 = vmatprep.mubr.bf16.mxu0 %v4003_v32  ;;  %2188 = vmatprep.mubr.bf16.mxu1 %v4005_v33  ;;  %v4052_v32 = vld [vmem:[%s4279_s9 + $0x2ec] ss:$36 sps:$4 sm:$0xff]   ;;  %v4054_v33 = vld [vmem:[%s4279_s9 + $0x140] ss:$36 sps:$4 sm:$0xff]  }
  0xd6   : > { %2092 = vmatmul.mubr.bf16.gmra.mrb[88].mxu0 %v4007_v34  ;;  %2189 = vmatmul.mubr.bf16.gmra.mrb[88].mxu1 %v4008_v35 }
  0xd7   : > { %2099 = vmatprep.mubr.bf16.mxu0 %v4010_v36  ;;  %2196 = vmatprep.mubr.bf16.mxu1 %v4012_v37 }
  0xde   : > { %2100 = vmatmul.mubr.bf16.gmra.mrb[92].mxu0 %v4014_v38  ;;  %2197 = vmatmul.mubr.bf16.gmra.mrb[92].mxu1 %v4015_v39 }
  0xdf   : > { %2107 = vmatprep.mubr.bf16.mxu0 %v4016_v40  ;;  %2204 = vmatprep.mubr.bf16.mxu1 %v4018_v41 }
  0xe6   : > { %2108 = vmatmul.mubr.bf16.gmra.mrb[96].mxu0 %v4020_v42  ;;  %2205 = vmatmul.mubr.bf16.gmra.mrb[96].mxu1 %v4021_v43  ;;  %v4055_v42 = vld [vmem:[%s4279_s9 + $0x2e8] ss:$36 sps:$4 sm:$0xff]  }
  0xe7   : > { %2115 = vmatprep.mubr.bf16.mxu0 %v4023_v44  ;;  %2212 = vmatprep.mubr.bf16.mxu1 %v4025_v45  ;;  %v4056_v43 = vld [vmem:[%s4279_s9 + $0x188] ss:$36 sps:$4 sm:$0xff]  }
  0xee   : > { %2116 = vmatmul.mubr.bf16.gmra.mrb[100].mxu0 %v4027_v46  ;;  %2213 = vmatmul.mubr.bf16.gmra.mrb[100].mxu1 %v4028_v47 }
  0xef   : > { %2123 = vmatprep.mubr.bf16.mxu0 %v4029_v48  ;;  %2220 = vmatprep.mubr.bf16.mxu1 %v4031_v49  ;;  %v4057_v48 = vld [vmem:[%s4279_s9 + $0x334] ss:$36 sps:$4 sm:$0xff]  }
  0xf0   : > { %v4059_v49 = vld [vmem:[%s4279_s9 + $0x1d0] ss:$36 sps:$4 sm:$0xff]  }
  0xf6   : > { %2124 = vmatmul.mubr.bf16.gmra.mrb[104].mxu0 %v4033_v50  ;;  %2221 = vmatmul.mubr.bf16.gmra.mrb[104].mxu1 %v4034_v51 }
  0xf7   : > { %2131 = vmatprep.mubr.bf16.mxu0 %v4036_v52  ;;  %2228 = vmatprep.mubr.bf16.mxu1 %v4038_v53 }
  0xf9   : > { %v3345_v54 = vpop.f32.mrb[0].mxu1  ;;  %v3273_v55 = vpop.f32.mrb[0].mxu0 }
  0xfa   : > { %v3346_v56 = vpop.f32.mrb[1].mxu1  ;;  %v3274_v57 = vpop.f32.mrb[1].mxu0 }
  0xfb   : > { %v4582_v60 = vadd.f32 %v3346_v56, %v3345_v54  ;;  %v3348_v61 = vpop.f32.mrb[2].mxu1  ;;  %v4584_v62 = vadd.f32 %v3274_v57, %v3273_v55  ;;  %v3276_v63 = vpop.f32.mrb[2].mxu0  ;;  %v4631_v54 = vld [vmem:[%s5169_s2] ss:$0 sm:$0xff] }
  0xfc   : > { %v3349_v2 = vpop.f32.mrb[3].mxu1  ;;  %v3277_v3 = vpop.f32.mrb[3].mxu0 }
  0xfd   : > { %v4588_v4 = vadd.f32 %v3349_v2, %v3348_v61  ;;  %v4590_v5 = vadd.f32 %v3277_v3, %v3276_v63  ;;  %v4061_v61 = vld [vmem:[%s4279_s9 + $0x218] ss:$36 sps:$4 sm:$0xff]   ;;  %v1692_v63 = vadd.f32 %v4584_v62, %v4631_v54 }
  0xfe   : > { %2132 = vmatmul.mubr.bf16.gmra.mrb[108].mxu0 %v4040_v58  ;;  %2229 = vmatmul.mubr.bf16.gmra.mrb[108].mxu1 %v4041_v59  ;;  %v4060_v59 = vld [vmem:[%s4279_s9 + $0x330] ss:$36 sps:$4 sm:$0xff]  }
  0xff   : > { %2236 = vmatprep.mubr.bf16.mxu1 %v4042_v0  ;;  %3745 = vmatprep.mubr.bf16.mxu0 %v4044_v1 }
 0x101   : > { %v3351_v6 = vpop.f32.mrb[4].mxu1  ;;  %v3279_v7 = vpop.f32.mrb[4].mxu0 }
 0x102   : > { %v3352_v8 = vpop.f32.mrb[5].mxu1  ;;  %v3280_v9 = vpop.f32.mrb[5].mxu0 }
 0x103   : > { %v4594_v12 = vadd.f32 %v3352_v8, %v3351_v6  ;;  %v3354_v13 = vpop.f32.mrb[6].mxu1  ;;  %v4596_v14 = vadd.f32 %v3280_v9, %v3279_v7  ;;  %v3282_v15 = vpop.f32.mrb[6].mxu0  ;;  %v4062_v6 = vld [vmem:[%s4279_s9 + $0x37c] ss:$36 sps:$4 sm:$0xff]  }
 0x104   : > { %v3355_v18 = vpop.f32.mrb[7].mxu1  ;;  %v3283_v19 = vpop.f32.mrb[7].mxu0  ;;  %v4064_v7 = vld [vmem:[%s4279_s9 + $0x260] ss:$36 sps:$4 sm:$0xff]  }
 0x105   : > { %v4600_v20 = vadd.f32 %v3355_v18, %v3354_v13  ;;  %v4602_v21 = vadd.f32 %v3283_v19, %v3282_v15 }
 0x106   : > { %2237 = vmatmul.mubr.bf16.gmra.mrb[112].mxu1 %v4045_v10  ;;  %3746 = vmatmul.mubr.bf16.vlgmr.msra.gmra.mrb[112].mxu0 %v4046_v11  ;;  %v1695_v10 = vadd.f32 %v4590_v5, %v4631_v54  ;;  %v1700_v5 = vadd.f32 %v4596_v14, %v4631_v54 }
 0x107   : > { %2244 = vmatprep.mubr.bf16.mxu1 %v4047_v16  ;;  %3749 = vmatprep.mubr.bf16.mxu0 %v4049_v17 }
 0x109   : > { %v3357_v22 = vpop.f32.mrb[8].mxu1  ;;  %v3285_v23 = vpop.f32.mrb[8].mxu0 }
 0x10a   : > { %v3358_v24 = vpop.f32.mrb[9].mxu1  ;;  %v3286_v25 = vpop.f32.mrb[9].mxu0 }
 0x10b   : > { %v4606_v28 = vadd.f32 %v3358_v24, %v3357_v22  ;;  %v3360_v29 = vpop.f32.mrb[10].mxu1  ;;  %v4608_v30 = vadd.f32 %v3286_v25, %v3285_v23  ;;  %v3288_v31 = vpop.f32.mrb[10].mxu0  ;;  %v4065_v22 = vld [vmem:[%s4279_s9 + $0x378] ss:$36 sps:$4 sm:$0xff]   ;;  %v4066_v23 = vld [vmem:[%s4279_s9 + $0x2a8] ss:$36 sps:$4 sm:$0xff]  }
 0x10c   : > { %v3361_v34 = vpop.f32.mrb[11].mxu1  ;;  %v3289_v35 = vpop.f32.mrb[11].mxu0 }
 0x10d   : > { %v4612_v36 = vadd.f32 %v3361_v34, %v3360_v29  ;;  %v4614_v37 = vadd.f32 %v3289_v35, %v3288_v31  ;;  %v4067_v29 = vld [vmem:[%s4279_s9 + $0x3c4] ss:$36 sps:$4 sm:$0xff]   ;;  %v4069_v31 = vld [vmem:[%s4279_s9 + $0x2f0] ss:$36 sps:$4 sm:$0xff]   ;;  %v1703_v34 = vadd.f32 %v4602_v21, %v4631_v54  ;;  %v1708_v21 = vadd.f32 %v4608_v30, %v4631_v54 }
 0x10e   : > { %2245 = vmatmul.mubr.bf16.gmra.mrb[116].mxu1 %v4050_v26  ;;  %3750 = vmatmul.mubr.bf16.gmra.mrb[116].mxu0 %v4051_v27 }
 0x10f   : > { %2252 = vmatprep.mubr.bf16.mxu1 %v4052_v32  ;;  %3753 = vmatprep.mubr.bf16.mxu0 %v4054_v33 }
 0x111   : > { %v3363_v38 = vpop.f32.mrb[12].mxu1  ;;  %v3291_v39 = vpop.f32.mrb[12].mxu0 }
 0x112   : > { %v3364_v40 = vpop.f32.mrb[13].mxu1  ;;  %v3292_v41 = vpop.f32.mrb[13].mxu0 }
 0x113   : > { %v4618_v44 = vadd.f32 %v3364_v40, %v3363_v38  ;;  %v3366_v45 = vpop.f32.mrb[14].mxu1  ;;  %v4620_v46 = vadd.f32 %v3292_v41, %v3291_v39  ;;  %v3294_v47 = vpop.f32.mrb[14].mxu0 }
 0x114   : > { %v3367_v50 = vpop.f32.mrb[15].mxu1  ;;  %v3295_v51 = vpop.f32.mrb[15].mxu0 }
 0x115   : > { %v4624_v52 = vadd.f32 %v3367_v50, %v3366_v45  ;;  %v4626_v53 = vadd.f32 %v3295_v51, %v3294_v47  ;;  %v4070_v45 = vld [vmem:[%s4279_s9 + $0x3c0] ss:$36 sps:$4 sm:$0xff]   ;;  %v4071_v47 = vld [vmem:[%s4279_s9 + $0x338] ss:$36 sps:$4 sm:$0xff]  }
 0x116   : > { %2253 = vmatmul.mubr.bf16.gmra.mrb[120].mxu1 %v4055_v42  ;;  %3754 = vmatmul.mubr.bf16.gmra.mrb[120].mxu0 %v4056_v43 }
 0x117   : > { %2260 = vmatprep.mubr.bf16.mxu1 %v4057_v48  ;;  %3757 = vmatprep.mubr.bf16.mxu0 %v4059_v49 }
 0x119   : > { %v3385_v55 = vpop.f32.mrb[16].mxu1  ;;  %v3297_v56 = vpop.f32.mrb[16].mxu0 }
 0x11a   : > { %v3386_v57 = vpop.f32.mrb[17].mxu1  ;;  %v3298_v58 = vpop.f32.mrb[17].mxu0 }
 0x11b   : > { %v3387_v0 = vadd.f32 %v3386_v57, %v3385_v55  ;;  %v3388_v1 = vpop.f32.mrb[18].mxu1  ;;  %v4637_v2 = vadd.f32 %v3298_v58, %v3297_v56  ;;  %v3300_v3 = vpop.f32.mrb[18].mxu0  ;;  %v4072_v55 = vld [vmem:[%s4279_s9 + $0x40c] ss:$36 sps:$4 sm:$0xff]   ;;  %v4074_v56 = vld [vmem:[%s4279_s9 + $0x380] ss:$36 sps:$4 sm:$0xff]  }
 0x11c   : > { %v3389_v8 = vpop.f32.mrb[19].mxu1  ;;  %v3301_v9 = vpop.f32.mrb[19].mxu0 }
 0x11d   : > { %v4643_v11 = vadd.f32 %v3387_v0, %v1692_v63  ;;  %v3390_v13 = vadd.f32 %v3389_v8, %v3388_v1  ;;  %v4645_v15 = vadd.f32 %v3301_v9, %v3300_v3  ;;  %v4075_v8 = vld [vmem:[%s4279_s9 + $0x408] ss:$36 sps:$4 sm:$0xff]  }
 0x11e   : > { %2261 = vmatmul.mubr.bf16.gmra.mrb[124].mxu1 %v4060_v59  ;;  %3758 = vmatmul.mubr.bf16.gmra.mrb[124].mxu0 %v4061_v61  ;;  %v1711_v59 = vadd.f32 %v4614_v37, %v4631_v54  ;;  %v4076_v9 = vld [vmem:[%s4279_s9 + $0x3c8] ss:$36 sps:$4 sm:$0xff]   ;;  %v1716_v37 = vadd.f32 %v4620_v46, %v4631_v54 }
 0x11f   : > { %v4647_v62 = vadd.f32 %v3390_v13, %v1695_v10  ;;  %2268 = vmatprep.mubr.bf16.mxu1 %v4062_v6  ;;  %3761 = vmatprep.mubr.bf16.mxu0 %v4064_v7 }
 0x121   : > { %v3391_v16 = vpop.f32.mrb[20].mxu1  ;;  %v3303_v17 = vpop.f32.mrb[20].mxu0 }
 0x122   : > { %v3392_v18 = vpop.f32.mrb[21].mxu1  ;;  %v3304_v19 = vpop.f32.mrb[21].mxu0 }
 0x123   : > { %v3393_v24 = vadd.f32 %v3392_v18, %v3391_v16  ;;  %v3394_v25 = vpop.f32.mrb[22].mxu1  ;;  %v4653_v26 = vadd.f32 %v3304_v19, %v3303_v17  ;;  %v3306_v27 = vpop.f32.mrb[22].mxu0  ;;  %v4077_v18 = vld [vmem:[%s4279_s9 + $0x454] ss:$36 sps:$4 sm:$0xff]  }
 0x124   : > { %v3395_v32 = vpop.f32.mrb[23].mxu1  ;;  %v3307_v33 = vpop.f32.mrb[23].mxu0  ;;  %v4079_v19 = vld [vmem:[%s4279_s9 + $0x410] ss:$36 sps:$4 sm:$0xff]  }
 0x125   : > { %v4659_v35 = vadd.f32 %v3393_v24, %v1700_v5  ;;  %v3396_v38 = vadd.f32 %v3395_v32, %v3394_v25  ;;  %v4661_v39 = vadd.f32 %v3307_v33, %v3306_v27  ;;  %v1719_v5 = vadd.f32 %v4626_v53, %v4631_v54 }
 0x126   : > { %2269 = vmatmul.mubr.bf16.gmra.mrb[128].mxu1 %v4065_v22  ;;  %3762 = vmatmul.mubr.bf16.gmra.mrb[128].mxu0 %v4066_v23  ;;  %v1724_v53 = vadd.f32 %v4637_v2, %v4631_v54 }
 0x127   : > { %v4663_v14 = vadd.f32 %v3396_v38, %v1703_v34  ;;  %2276 = vmatprep.mubr.bf16.mxu1 %v4067_v29  ;;  %3765 = vmatprep.mubr.bf16.mxu0 %v4069_v31  ;;  %v4080_v34 = vld [vmem:[%s4279_s9 + $0x450] ss:$36 sps:$4 sm:$0xff]   ;;  %v4081_v38 = vld [vmem:[%s4279_s9 + $0x458] ss:$36 sps:$4 sm:$0xff]   ;;  %s2878_s9 = sshll.u32 %s5172_s16, 2 }
 0x128   : > { %s5047_s21 = scalar_lea.vmem %s5170_s3, %s2878_s9 }
 0x129   : > { %v3397_v40 = vpop.f32.mrb[24].mxu1  ;;  %v3309_v41 = vpop.f32.mrb[24].mxu0 }
 0x12a   : > { %v3398_v42 = vpop.f32.mrb[25].mxu1  ;;  %v3310_v43 = vpop.f32.mrb[25].mxu0 }
 0x12b   : > { %v3399_v48 = vadd.f32 %v3398_v42, %v3397_v40  ;;  %v3400_v49 = vpop.f32.mrb[26].mxu1  ;;  %v4669_v50 = vadd.f32 %v3310_v43, %v3309_v41  ;;  %v3312_v51 = vpop.f32.mrb[26].mxu0 }
 0x12c   : > { %v3401_v57 = vpop.f32.mrb[27].mxu1  ;;  %v3313_v58 = vpop.f32.mrb[27].mxu0 }
 0x12d   : > { %v4675_v61 = vadd.f32 %v3399_v48, %v1708_v21  ;;  %v3402_v63 = vadd.f32 %v3401_v57, %v3400_v49  ;;  %v4677_v0 = vadd.f32 %v3313_v58, %v3312_v51  ;;  %v1727_v21 = vadd.f32 %v4645_v15, %v4631_v54 }
 0x12e   : > { %2277 = vmatmul.mubr.bf16.gmra.mrb[132].mxu1 %v4070_v45  ;;  %3766 = vmatmul.mubr.bf16.gmra.mrb[132].mxu0 %v4071_v47 }
 0x12f   : > { %v4679_v30 = vadd.f32 %v3402_v63, %v1711_v59  ;;  %2284 = vmatprep.mubr.bf16.mxu1 %v4072_v55  ;;  %3769 = vmatprep.mubr.bf16.mxu0 %v4074_v56  ;;  %v1732_v59 = vadd.f32 %v4653_v26, %v4631_v54 }
 0x131   : > { %v3403_v1 = vpop.f32.mrb[28].mxu1  ;;  %v3315_v3 = vpop.f32.mrb[28].mxu0 }
 0x132   : > { %v3404_v6 = vpop.f32.mrb[29].mxu1  ;;  %v3316_v7 = vpop.f32.mrb[29].mxu0 }
 0x133   : > { %v3405_v10 = vadd.f32 %v3404_v6, %v3403_v1  ;;  %v3406_v13 = vpop.f32.mrb[30].mxu1  ;;  %v4685_v16 = vadd.f32 %v3316_v7, %v3315_v3  ;;  %v3318_v17 = vpop.f32.mrb[30].mxu0 }
 0x134   : > { %v3407_v22 = vpop.f32.mrb[31].mxu1  ;;  %v3319_v23 = vpop.f32.mrb[31].mxu0 }
 0x135   : > { %v4691_v24 = vadd.f32 %v3405_v10, %v1716_v37  ;;  %v3408_v25 = vadd.f32 %v3407_v22, %v3406_v13  ;;  %v4693_v27 = vadd.f32 %v3319_v23, %v3318_v17  ;;  %v1740_v22 = vadd.f32 %v4669_v50, %v4631_v54 }
 0x136   : > { %2285 = vmatmul.mubr.bf16.gmra.mrb[136].mxu1 %v4075_v8  ;;  %3770 = vmatmul.mubr.bf16.gmra.mrb[136].mxu0 %v4076_v9  ;;  %v1735_v8 = vadd.f32 %v4661_v39, %v4631_v54 }
 0x137   : > { %v4695_v46 = vadd.f32 %v3408_v25, %v1719_v5  ;;  %2292 = vmatprep.mubr.bf16.mxu1 %v4077_v18  ;;  %3773 = vmatprep.mubr.bf16.mxu0 %v4079_v19 }
 0x139   : > { %v3409_v29 = vpop.f32.mrb[32].mxu1  ;;  %v3321_v31 = vpop.f32.mrb[32].mxu0 }
 0x13a   : > { %v3410_v32 = vpop.f32.mrb[33].mxu1  ;;  %v3322_v33 = vpop.f32.mrb[33].mxu0 }
 0x13b   : > { %v3411_v40 = vadd.f32 %v3410_v32, %v3409_v29  ;;  %v3412_v41 = vpop.f32.mrb[34].mxu1  ;;  %v4701_v42 = vadd.f32 %v3322_v33, %v3321_v31  ;;  %v3324_v43 = vpop.f32.mrb[34].mxu0  ;;  %v1743_v32 = vadd.f32 %v4677_v0, %v4631_v54 }
 0x13c   : > { %v3413_v45 = vpop.f32.mrb[35].mxu1  ;;  %v3325_v47 = vpop.f32.mrb[35].mxu0 }
 0x13d   : > { %v4705_v48 = vadd.f32 %v3411_v40, %v1724_v53  ;;  %v3414_v49 = vadd.f32 %v3413_v45, %v3412_v41  ;;  %v3326_v51 = vadd.f32 %v3325_v47, %v3324_v43  ;;  %v1748_v45 = vadd.f32 %v4685_v16, %v4631_v54 }
 0x13e   : > { %2293 = vmatmul.mubr.bf16.gmra.mrb[140].mxu1 %v4080_v34  ;;  %3774 = vmatmul.mubr.bf16.gmra.mrb[140].mxu0 %v4081_v38 }
 0x13f   : > { %v4707_v55 = vadd.f32 %v3414_v49, %v1727_v21 }
 0x141   : > { %v3415_v56 = vpop.f32.mrb[36].mxu1  ;;  %v3327_v2 = vpop.f32.mrb[36].mxu0 }
 0x142   : > { %v3416_v57 = vpop.f32.mrb[37].mxu1  ;;  %v3328_v58 = vpop.f32.mrb[37].mxu0 }
 0x143   : > { %v3417_v63 = vadd.f32 %v3416_v57, %v3415_v56  ;;  %v3418_v1 = vpop.f32.mrb[38].mxu1  ;;  %v4711_v3 = vadd.f32 %v3328_v58, %v3327_v2  ;;  %v3330_v15 = vpop.f32.mrb[38].mxu0  ;;  %v1751_v57 = vadd.f32 %v4693_v27, %v4631_v54  ;;  %v1759_v27 = vadd.f32 %v3326_v51, %v4631_v54 }
 0x144   : > { %v3419_v6 = vpop.f32.mrb[39].mxu1  ;;  %v3331_v7 = vpop.f32.mrb[39].mxu0 }
 0x145   : > { %v4715_v9 = vadd.f32 %v3417_v63, %v1732_v59  ;;  %v3420_v37 = vadd.f32 %v3419_v6, %v3418_v1  ;;  %v3332_v10 = vadd.f32 %v3331_v7, %v3330_v15  ;;  %v1764_v51 = vadd.f32 %v4711_v3, %v4631_v54 }
 0x147   : > { %v4717_v13 = vadd.f32 %v3420_v37, %v1735_v8  ;;  %v1756_v8 = vadd.f32 %v4701_v42, %v4631_v54 }
 0x149   : > { %v3421_v17 = vpop.f32.mrb[40].mxu1  ;;  %v3333_v18 = vpop.f32.mrb[40].mxu0 }
 0x14a   : > { %v3422_v19 = vpop.f32.mrb[41].mxu1  ;;  %v3334_v26 = vpop.f32.mrb[41].mxu0 }
 0x14b   : > { %v3423_v23 = vadd.f32 %v3422_v19, %v3421_v17  ;;  %v3424_v5 = vpop.f32.mrb[42].mxu1  ;;  %v4721_v25 = vadd.f32 %v3334_v26, %v3333_v18  ;;  %v3336_v29 = vpop.f32.mrb[42].mxu0 }
 0x14c   : > { %v3425_v31 = vpop.f32.mrb[43].mxu1  ;;  %v3337_v39 = vpop.f32.mrb[43].mxu0 }
 0x14d   : > { %v4725_v33 = vadd.f32 %v3423_v23, %v1740_v22  ;;  %v3426_v34 = vadd.f32 %v3425_v31, %v3424_v5  ;;  %v4727_v38 = vadd.f32 %v3337_v39, %v3336_v29 }
 0x14f   : > { %v4729_v53 = vadd.f32 %v3426_v34, %v1743_v32 }
 0x151   : > { %v3427_v40 = vpop.f32.mrb[44].mxu1  ;;  %v3339_v41 = vpop.f32.mrb[44].mxu0 }
 0x152   : > { %v3428_v50 = vpop.f32.mrb[45].mxu1  ;;  %v3340_v43 = vpop.f32.mrb[45].mxu0 }
 0x153   : > { %v3429_v47 = vadd.f32 %v3428_v50, %v3427_v40  ;;  %v3430_v21 = vpop.f32.mrb[46].mxu1  ;;  %v4733_v49 = vadd.f32 %v3340_v43, %v3339_v41  ;;  %v3342_v56 = vpop.f32.mrb[46].mxu0 }
 0x154   : > { %v3431_v0 = vpop.f32.mrb[47].mxu1  ;;  %v3343_v2 = vpop.f32.mrb[47].mxu0 }
 0x155   : > { %v4737_v58 = vadd.f32 %v3429_v47, %v1748_v45  ;;  %v3432_v59 = vadd.f32 %v3431_v0, %v3430_v21  ;;  %v4739_v63 = vadd.f32 %v3343_v2, %v3342_v56 }
 0x157   : > { %v4741_v1 = vadd.f32 %v3432_v59, %v1751_v57 }
 0x159   : > { %v3433_v15 = vpop.f32.mrb[48].mxu1  ;;  %v3497_v6 = vpop.f32.mrb[48].mxu0 }
 0x15a   : > { %v3434_v16 = vpop.f32.mrb[49].mxu1  ;;  %v3498_v7 = vpop.f32.mrb[49].mxu0 }
 0x15b   : > { %v3435_v37 = vadd.f32 %v3434_v16, %v3433_v15  ;;  %v3499_v17 = vadd.f32 %v3498_v7, %v3497_v6  ;;  %v3436_v18 = vpop.f32.mrb[50].mxu1  ;;  %v3500_v19 = vpop.f32.mrb[50].mxu0 }
 0x15c   : > { %v3437_v26 = vpop.f32.mrb[51].mxu1  ;;  %v3501_v22 = vpop.f32.mrb[51].mxu0 }
 0x15d   : > { %v4746_v23 = vadd.f32 %v3435_v37, %v1756_v8  ;;  %v4749_v5 = vadd.f32 %v3499_v17, %v4643_v11  ;;  %v3438_v29 = vadd.f32 %v3437_v26, %v3436_v18  ;;  %v3502_v31 = vadd.f32 %v3501_v22, %v3500_v19 }
 0x15e   : > { %v1767_v11 = vadd.f32 %v3332_v10, %v4631_v54  ;;  %v1772_v10 = vadd.f32 %v4721_v25, %v4631_v54 }
 0x15f   : > { %v4751_v39 = vadd.f32 %v3438_v29, %v1759_v27  ;;  %v4754_v32 = vadd.f32 %v3502_v31, %v4647_v62 }
 0x161   : > { %v3439_v42 = vpop.f32.mrb[52].mxu1  ;;  %v3503_v34 = vpop.f32.mrb[52].mxu0 }
 0x162   : > { %v3440_v40 = vpop.f32.mrb[53].mxu1  ;;  %v3504_v41 = vpop.f32.mrb[53].mxu0 }
 0x163   : > { %v3441_v50 = vadd.f32 %v3440_v40, %v3439_v42  ;;  %v3505_v43 = vadd.f32 %v3504_v41, %v3503_v34  ;;  %v3442_v45 = vpop.f32.mrb[54].mxu1  ;;  %v3506_v47 = vpop.f32.mrb[54].mxu0 }
 0x164   : > { %v3443_v21 = vpop.f32.mrb[55].mxu1  ;;  %v3507_v56 = vpop.f32.mrb[55].mxu0 }
 0x165   : > { %v4759_v0 = vadd.f32 %v3441_v50, %v1764_v51  ;;  %v4762_v62 = vadd.f32 %v3505_v43, %v4659_v35  ;;  %v3444_v2 = vadd.f32 %v3443_v21, %v3442_v45  ;;  %v3508_v57 = vadd.f32 %v3507_v56, %v3506_v47 }
 0x166   : > { %v1775_v35 = vadd.f32 %v4727_v38, %v4631_v54  ;;  %v1780_v38 = vadd.f32 %v4733_v49, %v4631_v54 }
 0x167   : > { %v4764_v59 = vadd.f32 %v3444_v2, %v1767_v11  ;;  %v4767_v15 = vadd.f32 %v3508_v57, %v4663_v14 }
 0x169   : > { %v3445_v3 = vpop.f32.mrb[56].mxu1  ;;  %v3509_v6 = vpop.f32.mrb[56].mxu0 }
 0x16a   : > { %v3446_v16 = vpop.f32.mrb[57].mxu1  ;;  %v3510_v7 = vpop.f32.mrb[57].mxu0 }
 0x16b   : > { %v3447_v8 = vadd.f32 %v3446_v16, %v3445_v3  ;;  %v3511_v37 = vadd.f32 %v3510_v7, %v3509_v6  ;;  %v3448_v17 = vpop.f32.mrb[58].mxu1  ;;  %v3512_v18 = vpop.f32.mrb[58].mxu0 }
 0x16c   : > { %v3449_v19 = vpop.f32.mrb[59].mxu1  ;;  %v3513_v27 = vpop.f32.mrb[59].mxu0 }
 0x16d   : > { %v4773_v26 = vadd.f32 %v3447_v8, %v1772_v10  ;;  %v4776_v14 = vadd.f32 %v3511_v37, %v4675_v61  ;;  %v3450_v22 = vadd.f32 %v3449_v19, %v3448_v17  ;;  %v3514_v29 = vadd.f32 %v3513_v27, %v3512_v18 }
 0x16e   : > { %v1783_v61 = vadd.f32 %v4739_v63, %v4631_v54  ;;  %v1788_v63 = vadd.f32 %v4582_v60, %v4631_v54 }
 0x16f   : > { %v4778_v31 = vadd.f32 %v3450_v22, %v1775_v35  ;;  %v4781_v25 = vadd.f32 %v3514_v29, %v4679_v30 }
 0x171   : > { %v3451_v42 = vpop.f32.mrb[60].mxu1  ;;  %v3515_v34 = vpop.f32.mrb[60].mxu0 }
 0x172   : > { %v3452_v40 = vpop.f32.mrb[61].mxu1  ;;  %v3516_v41 = vpop.f32.mrb[61].mxu0 }
 0x173   : > { %v3453_v51 = vadd.f32 %v3452_v40, %v3451_v42  ;;  %v3517_v50 = vadd.f32 %v3516_v41, %v3515_v34  ;;  %v3454_v43 = vpop.f32.mrb[62].mxu1  ;;  %v3518_v45 = vpop.f32.mrb[62].mxu0 }
 0x174   : > { %v3455_v47 = vpop.f32.mrb[63].mxu1  ;;  %v3519_v11 = vpop.f32.mrb[63].mxu0 }
 0x175   : > { %v4787_v21 = vadd.f32 %v3453_v51, %v1780_v38  ;;  %v4790_v30 = vadd.f32 %v3517_v50, %v4691_v24  ;;  %v3456_v56 = vadd.f32 %v3455_v47, %v3454_v43  ;;  %v3520_v2 = vadd.f32 %v3519_v11, %v3518_v45 }
 0x176   : > { %v1791_v24 = vadd.f32 %v4588_v4, %v4631_v54  ;;  %v1796_v4 = vadd.f32 %v4594_v12, %v4631_v54 }
 0x177   : > { %v4792_v57 = vadd.f32 %v3456_v56, %v1783_v61  ;;  %v4795_v49 = vadd.f32 %v3520_v2, %v4695_v46 }
 0x179   : > { %v3457_v3 = vpop.f32.mrb[64].mxu1  ;;  %v3521_v6 = vpop.f32.mrb[64].mxu0 }
 0x17a   : > { %v3458_v16 = vpop.f32.mrb[65].mxu1  ;;  %v3522_v7 = vpop.f32.mrb[65].mxu0 }
 0x17b   : > { %v3459_v10 = vadd.f32 %v3458_v16, %v3457_v3  ;;  %v3523_v8 = vadd.f32 %v3522_v7, %v3521_v6  ;;  %v3460_v37 = vpop.f32.mrb[66].mxu1  ;;  %v3524_v17 = vpop.f32.mrb[66].mxu0 }
 0x17c   : > { %v3461_v18 = vpop.f32.mrb[67].mxu1  ;;  %v3525_v35 = vpop.f32.mrb[67].mxu0 }
 0x17d   : > { %v4801_v19 = vadd.f32 %v3459_v10, %v1788_v63  ;;  %v4804_v46 = vadd.f32 %v3523_v8, %v4705_v48  ;;  %v3462_v27 = vadd.f32 %v3461_v18, %v3460_v37  ;;  %v3526_v22 = vadd.f32 %v3525_v35, %v3524_v17 }
 0x17e   : > { %v1799_v48 = vadd.f32 %v4600_v20, %v4631_v54  ;;  %v1804_v20 = vadd.f32 %v4606_v28, %v4631_v54 }
 0x17f   : > { %v4806_v29 = vadd.f32 %v3462_v27, %v1791_v24  ;;  %v4809_v60 = vadd.f32 %v3526_v22, %v4707_v55 }
 0x181   : > { %v3463_v42 = vpop.f32.mrb[68].mxu1  ;;  %v3527_v34 = vpop.f32.mrb[68].mxu0 }
 0x182   : > { %v3464_v40 = vpop.f32.mrb[69].mxu1  ;;  %v3528_v41 = vpop.f32.mrb[69].mxu0 }
 0x183   : > { %v3465_v38 = vadd.f32 %v3464_v40, %v3463_v42  ;;  %v3529_v51 = vadd.f32 %v3528_v41, %v3527_v34  ;;  %v3466_v50 = vpop.f32.mrb[70].mxu1  ;;  %v3530_v43 = vpop.f32.mrb[70].mxu0 }
 0x184   : > { %v3467_v45 = vpop.f32.mrb[71].mxu1  ;;  %v3531_v61 = vpop.f32.mrb[71].mxu0 }
 0x185   : > { %v4815_v47 = vadd.f32 %v3465_v38, %v1796_v4  ;;  %v4818_v55 = vadd.f32 %v3529_v51, %v4715_v9  ;;  %v3468_v11 = vadd.f32 %v3467_v45, %v3466_v50  ;;  %v3532_v56 = vadd.f32 %v3531_v61, %v3530_v43 }
 0x186   : > { %v1807_v9 = vadd.f32 %v4612_v36, %v4631_v54  ;;  %v1812_v36 = vadd.f32 %v4618_v44, %v4631_v54 }
 0x187   : > { %v4820_v2 = vadd.f32 %v3468_v11, %v1799_v48  ;;  %v4823_v12 = vadd.f32 %v3532_v56, %v4717_v13 }
 0x189   : > { %v3469_v3 = vpop.f32.mrb[72].mxu1  ;;  %v3533_v6 = vpop.f32.mrb[72].mxu0 }
 0x18a   : > { %v3470_v16 = vpop.f32.mrb[73].mxu1  ;;  %v3534_v7 = vpop.f32.mrb[73].mxu0 }
 0x18b   : > { %v3471_v63 = vadd.f32 %v3470_v16, %v3469_v3  ;;  %v3535_v10 = vadd.f32 %v3534_v7, %v3533_v6  ;;  %v3472_v8 = vpop.f32.mrb[74].mxu1  ;;  %v3536_v37 = vpop.f32.mrb[74].mxu0 }
 0x18c   : > { %v3473_v17 = vpop.f32.mrb[75].mxu1  ;;  %v3537_v24 = vpop.f32.mrb[75].mxu0 }
 0x18d   : > { %v4829_v18 = vadd.f32 %v3471_v63, %v1804_v20  ;;  %v4832_v13 = vadd.f32 %v3535_v10, %v4725_v33  ;;  %v3474_v35 = vadd.f32 %v3473_v17, %v3472_v8  ;;  %v3538_v27 = vadd.f32 %v3537_v24, %v3536_v37 }
 0x18e   : > { %v1815_v33 = vadd.f32 %v4624_v52, %v4631_v54 }
 0x18f   : > { %v4834_v22 = vadd.f32 %v3474_v35, %v1807_v9  ;;  %v4837_v28 = vadd.f32 %v3538_v27, %v4729_v53 }
 0x191   : > { %v3475_v42 = vpop.f32.mrb[76].mxu1  ;;  %v3539_v34 = vpop.f32.mrb[76].mxu0 }
 0x192   : > { %v3476_v40 = vpop.f32.mrb[77].mxu1  ;;  %v3540_v41 = vpop.f32.mrb[77].mxu0 }
 0x193   : > { %v3477_v4 = vadd.f32 %v3476_v40, %v3475_v42  ;;  %v3541_v38 = vadd.f32 %v3540_v41, %v3539_v34  ;;  %v3478_v51 = vpop.f32.mrb[78].mxu1  ;;  %v3542_v50 = vpop.f32.mrb[78].mxu0 }
 0x194   : > { %v3479_v43 = vpop.f32.mrb[79].mxu1  ;;  %v3543_v48 = vpop.f32.mrb[79].mxu0 }
 0x195   : > { %v4843_v45 = vadd.f32 %v3477_v4, %v1812_v36  ;;  %v4846_v53 = vadd.f32 %v3541_v38, %v4737_v58  ;;  %v3480_v61 = vadd.f32 %v3479_v43, %v3478_v51  ;;  %v3544_v11 = vadd.f32 %v3543_v48, %v3542_v50 }
 0x197   : > { %v4848_v56 = vadd.f32 %v3480_v61, %v1815_v33  ;;  %v4851_v44 = vadd.f32 %v3544_v11, %v4741_v1 }
 0x199   : > { %v3545_v3 = vpop.f32.mrb[80].mxu0  ;;  %v3609_v6 = vpop.f32.mrb[80].mxu1 }
 0x19a   : > { %v3546_v16 = vpop.f32.mrb[81].mxu0  ;;  %v3610_v7 = vpop.f32.mrb[81].mxu1 }
 0x19b   : > { %v3547_v20 = vadd.f32 %v3546_v16, %v3545_v3  ;;  %v3611_v52 = vadd.f32 %v3610_v7, %v3609_v6  ;;  %v3548_v54 = vpop.f32.mrb[82].mxu0  ;;  %v3612_v63 = vpop.f32.mrb[82].mxu1 }
 0x19c   : > { %v3549_v10 = vpop.f32.mrb[83].mxu0  ;;  %v3613_v8 = vpop.f32.mrb[83].mxu1 }
 0x19d   : > { %v4854_v58 = vadd.f32 %v3547_v20, %v4746_v23  ;;  %v3550_v37 = vadd.f32 %v3549_v10, %v3548_v54  ;;  %v3614_v9 = vadd.f32 %v3613_v8, %v3612_v63  ;;  %v4857_v17 = vadd.f32 %v3611_v52, %v4749_v5 }
 0x19f   : > { %v4860_v1 = vadd.f32 %v3550_v37, %v4751_v39  ;;  %v4863_v24 = vadd.f32 %v3614_v9, %v4754_v32 }
 0x1a1   : > { %v3551_v35 = vpop.f32.mrb[84].mxu0  ;;  %v3615_v27 = vpop.f32.mrb[84].mxu1 }
 0x1a2   : > { %v3552_v42 = vpop.f32.mrb[85].mxu0  ;;  %v3616_v34 = vpop.f32.mrb[85].mxu1 }
 0x1a3   : > { %v3553_v40 = vadd.f32 %v3552_v42, %v3551_v35  ;;  %v3617_v41 = vadd.f32 %v3616_v34, %v3615_v27  ;;  %v3554_v36 = vpop.f32.mrb[86].mxu0  ;;  %v3618_v23 = vpop.f32.mrb[86].mxu1 }
 0x1a4   : > { %v3555_v4 = vpop.f32.mrb[87].mxu0  ;;  %v3619_v38 = vpop.f32.mrb[87].mxu1 }
 0x1a5   : > { %v4866_v51 = vadd.f32 %v3553_v40, %v4759_v0  ;;  %v3556_v5 = vadd.f32 %v3555_v4, %v3554_v36  ;;  %v3620_v50 = vadd.f32 %v3619_v38, %v3618_v23  ;;  %v4869_v39 = vadd.f32 %v3617_v41, %v4762_v62 }
 0x1a7   : > { %v4872_v32 = vadd.f32 %v3556_v5, %v4764_v59  ;;  %v4875_v33 = vadd.f32 %v3620_v50, %v4767_v15 }
 0x1a9   : > { %v3557_v43 = vpop.f32.mrb[88].mxu0  ;;  %v3621_v48 = vpop.f32.mrb[88].mxu1 }
 0x1aa   : > { %v3558_v61 = vpop.f32.mrb[89].mxu0  ;;  %v3622_v11 = vpop.f32.mrb[89].mxu1 }
 0x1ab   : > { %v3559_v3 = vadd.f32 %v3558_v61, %v3557_v43  ;;  %v3623_v6 = vadd.f32 %v3622_v11, %v3621_v48  ;;  %v3560_v16 = vpop.f32.mrb[90].mxu0  ;;  %v3624_v0 = vpop.f32.mrb[90].mxu1 }
 0x1ac   : > { %v3561_v7 = vpop.f32.mrb[91].mxu0  ;;  %v3625_v20 = vpop.f32.mrb[91].mxu1 }
 0x1ad   : > { %v4878_v52 = vadd.f32 %v3559_v3, %v4773_v26  ;;  %v3562_v62 = vadd.f32 %v3561_v7, %v3560_v16  ;;  %v3626_v54 = vadd.f32 %v3625_v20, %v3624_v0  ;;  %v4881_v59 = vadd.f32 %v3623_v6, %v4776_v14 }
 0x1af   : > { %v4884_v15 = vadd.f32 %v3562_v62, %v4778_v31  ;;  %v4887_v63 = vadd.f32 %v3626_v54, %v4781_v25 }
 0x1b1   : > { %v3563_v10 = vpop.f32.mrb[92].mxu0  ;;  %v3627_v8 = vpop.f32.mrb[92].mxu1 }
 0x1b2   : > { %v3564_v37 = vpop.f32.mrb[93].mxu0  ;;  %v3628_v9 = vpop.f32.mrb[93].mxu1 }
 0x1b3   : > { %v3565_v35 = vadd.f32 %v3564_v37, %v3563_v10  ;;  %v3629_v27 = vadd.f32 %v3628_v9, %v3627_v8  ;;  %v3566_v42 = vpop.f32.mrb[94].mxu0  ;;  %v3630_v26 = vpop.f32.mrb[94].mxu1 }
 0x1b4   : > { %v3567_v34 = vpop.f32.mrb[95].mxu0  ;;  %v3631_v40 = vpop.f32.mrb[95].mxu1 }
 0x1b5   : > { %v4890_v41 = vadd.f32 %v3565_v35, %v4787_v21  ;;  %v3568_v14 = vadd.f32 %v3567_v34, %v3566_v42  ;;  %v3632_v36 = vadd.f32 %v3631_v40, %v3630_v26  ;;  %v4893_v31 = vadd.f32 %v3629_v27, %v4790_v30 }
 0x1b7   : > { %v4896_v25 = vadd.f32 %v3568_v14, %v4792_v57  ;;  %v4899_v23 = vadd.f32 %v3632_v36, %v4795_v49 }
 0x1b9   : > { %v3569_v4 = vpop.f32.mrb[96].mxu0  ;;  %v3633_v38 = vpop.f32.mrb[96].mxu1 }
 0x1ba   : > { %v3570_v5 = vpop.f32.mrb[97].mxu0  ;;  %v3634_v50 = vpop.f32.mrb[97].mxu1 }
 0x1bb   : > { %v3571_v43 = vadd.f32 %v3570_v5, %v3569_v4  ;;  %v3635_v48 = vadd.f32 %v3634_v50, %v3633_v38  ;;  %v3572_v61 = vpop.f32.mrb[98].mxu0  ;;  %v3636_v21 = vpop.f32.mrb[98].mxu1 }
 0x1bc   : > { %v3573_v11 = vpop.f32.mrb[99].mxu0  ;;  %v3637_v3 = vpop.f32.mrb[99].mxu1 }
 0x1bd   : > { %v4902_v6 = vadd.f32 %v3571_v43, %v4801_v19  ;;  %v3574_v30 = vadd.f32 %v3573_v11, %v3572_v61  ;;  %v3638_v16 = vadd.f32 %v3637_v3, %v3636_v21  ;;  %v4905_v57 = vadd.f32 %v3635_v48, %v4804_v46 }
 0x1bf   : > { %v4908_v49 = vadd.f32 %v3574_v30, %v4806_v29  ;;  %v4911_v0 = vadd.f32 %v3638_v16, %v4809_v60 }
 0x1c1   : > { %v3575_v7 = vpop.f32.mrb[100].mxu0  ;;  %v3639_v20 = vpop.f32.mrb[100].mxu1 }
 0x1c2   : > { %v3576_v62 = vpop.f32.mrb[101].mxu0  ;;  %v3640_v54 = vpop.f32.mrb[101].mxu1 }
 0x1c3   : > { %v3577_v10 = vadd.f32 %v3576_v62, %v3575_v7  ;;  %v3641_v8 = vadd.f32 %v3640_v54, %v3639_v20  ;;  %v3578_v37 = vpop.f32.mrb[102].mxu0  ;;  %v3642_v19 = vpop.f32.mrb[102].mxu1 }
 0x1c4   : > { %v3579_v9 = vpop.f32.mrb[103].mxu0  ;;  %v3643_v35 = vpop.f32.mrb[103].mxu1 }
 0x1c5   : > { %v4914_v27 = vadd.f32 %v3577_v10, %v4815_v47  ;;  %v3580_v46 = vadd.f32 %v3579_v9, %v3578_v37  ;;  %v3644_v42 = vadd.f32 %v3643_v35, %v3642_v19  ;;  %v4917_v29 = vadd.f32 %v3641_v8, %v4818_v55 }
 0x1c7   : > { %v4920_v60 = vadd.f32 %v3580_v46, %v4820_v2  ;;  %v4923_v26 = vadd.f32 %v3644_v42, %v4823_v12 }
 0x1c9   : > { %v3581_v34 = vpop.f32.mrb[104].mxu0  ;;  %v3645_v40 = vpop.f32.mrb[104].mxu1 }
 0x1ca   : > { %v3582_v14 = vpop.f32.mrb[105].mxu0  ;;  %v3646_v36 = vpop.f32.mrb[105].mxu1 }
 0x1cb   : > { %v3583_v4 = vadd.f32 %v3582_v14, %v3581_v34  ;;  %v3647_v38 = vadd.f32 %v3646_v36, %v3645_v40  ;;  %v3584_v5 = vpop.f32.mrb[106].mxu0  ;;  %v3648_v47 = vpop.f32.mrb[106].mxu1 }
 0x1cc   : > { %v3585_v50 = vpop.f32.mrb[107].mxu0  ;;  %v3649_v43 = vpop.f32.mrb[107].mxu1 }
 0x1cd   : > { %v4926_v48 = vadd.f32 %v3583_v4, %v4829_v18  ;;  %v3586_v55 = vadd.f32 %v3585_v50, %v3584_v5  ;;  %v3650_v61 = vadd.f32 %v3649_v43, %v3648_v47  ;;  %v4929_v2 = vadd.f32 %v3647_v38, %v4832_v13 }
 0x1cf   : > { %v4932_v12 = vadd.f32 %v3586_v55, %v4834_v22  ;;  %v4935_v21 = vadd.f32 %v3650_v61, %v4837_v28 }
 0x1d1   : > { %v3587_v11 = vpop.f32.mrb[108].mxu0  ;;  %v3651_v3 = vpop.f32.mrb[108].mxu1 }
 0x1d2   : > { %v3588_v30 = vpop.f32.mrb[109].mxu0  ;;  %v3652_v16 = vpop.f32.mrb[109].mxu1 }
 0x1d3   : > { %v3589_v7 = vadd.f32 %v3588_v30, %v3587_v11  ;;  %v3653_v20 = vadd.f32 %v3652_v16, %v3651_v3  ;;  %v3590_v62 = vpop.f32.mrb[110].mxu0  ;;  %v3654_v18 = vpop.f32.mrb[110].mxu1 }
 0x1d4   : > { %v3591_v54 = vpop.f32.mrb[111].mxu0  ;;  %v3655_v10 = vpop.f32.mrb[111].mxu1 }
 0x1d5   : > { %v4938_v8 = vadd.f32 %v3589_v7, %v4843_v45  ;;  %v3592_v13 = vadd.f32 %v3591_v54, %v3590_v62  ;;  %v3656_v37 = vadd.f32 %v3655_v10, %v3654_v18  ;;  %v4941_v22 = vadd.f32 %v3653_v20, %v4846_v53 }
 0x1d7   : > { %v4944_v28 = vadd.f32 %v3592_v13, %v4848_v56  ;;  %v4947_v19 = vadd.f32 %v3656_v37, %v4851_v44 }
 0x1d9   : > { %v3657_v9 = vpop.f32.mrb[112].mxu1  ;;  %v3747_v35 = vpop.f32.mrb[112].mxu0 }
 0x1da   : > { %v4950_v46 = vadd.f32 %v3747_v35, %v4869_v39  ;;  %v3658_v42 = vpop.f32.mrb[113].mxu1  ;;  %v2335_v34 = vpop.f32.mrb[113].mxu0 }
 0x1db   : > { %v3659_v45 = vadd.f32 %v3658_v42, %v3657_v9  ;;  %v4953_v40 = vadd.f32 %v2335_v34, %v4857_v17  ;;  %v3660_v14 = vpop.f32.mrb[114].mxu1  ;;  %v3748_v53 = vpop.f32.mrb[114].mxu0 }
 0x1dc   : > { %v2464_v36 = vsub.f32 0.0, %v4950_v46  ;;  %v4957_v56 = vadd.f32 %v3748_v53, %v4875_v33  ;;  %v3661_v44 = vpop.f32.mrb[115].mxu1  ;;  %v2338_v4 = vpop.f32.mrb[115].mxu0 }
 0x1dd   : > { %v2462_v38 = vsub.f32 0.0, %v4953_v40  ;;  %v3662_v5 = vadd.f32 %v3661_v44, %v3660_v14  ;;  %v4961_v39 = vadd.f32 %v2338_v4, %v4863_v24  ;;  %v4964_v47 = vadd.f32 %v3659_v45, %v4854_v58 }
 0x1de   : > { %v2498_v17 = vmul.f32 1.442695, %v2464_v36  ;;  %v2465_v50 = vsub.f32 0.0, %v4957_v56 }
 0x1df   : > { %v2494_v43 = vmul.f32 1.442695, %v2462_v38  ;;  %v2463_v55 = vsub.f32 0.0, %v4961_v39  ;;  %v4969_v33 = vadd.f32 %v3662_v5, %v4860_v1 }
 0x1e0   : > { %4082 = vpow2.f32 %v2498_v17  ;;  %v2500_v61 = vmul.f32 1.442695, %v2465_v50 }
 0x1e1   : > { %4084 = vpow2.f32 %v2494_v43  ;;  %v2496_v11 = vmul.f32 1.442695, %v2463_v55  ;;  %v3663_v3 = vpop.f32.mrb[116].mxu1  ;;  %v3751_v30 = vpop.f32.mrb[116].mxu0 }
 0x1e2   : > { %4086 = vpow2.f32 %v2500_v61  ;;  %v4972_v24 = vadd.f32 %v3751_v30, %v4893_v31  ;;  %v3664_v58 = vpop.f32.mrb[117].mxu1  ;;  %v2351_v16 = vpop.f32.mrb[117].mxu0 }
 0x1e3   : > { %4088 = vpow2.f32 %v2496_v11  ;;  %v3665_v7 = vadd.f32 %v3664_v58, %v3663_v3  ;;  %v4975_v20 = vadd.f32 %v2351_v16, %v4881_v59  ;;  %v3666_v62 = vpop.f32.mrb[118].mxu1  ;;  %v3752_v1 = vpop.f32.mrb[118].mxu0 }
 0x1e4   : > { %v2468_v18 = vsub.f32 0.0, %v4972_v24  ;;  %v4979_v54 = vadd.f32 %v3752_v1, %v4899_v23  ;;  %v3667_v10 = vpop.f32.mrb[119].mxu1  ;;  %v2354_v13 = vpop.f32.mrb[119].mxu0 }
 0x1e5   : > { %v2466_v37 = vsub.f32 0.0, %v4975_v20  ;;  %v3668_v31 = vadd.f32 %v3667_v10, %v3666_v62  ;;  %v4983_v9 = vadd.f32 %v2354_v13, %v4887_v63  ;;  %v4986_v35 = vadd.f32 %v3665_v7, %v4866_v51 }
 0x1e6   : > { %v2506_v59 = vmul.f32 1.442695, %v2468_v18  ;;  %v2469_v42 = vsub.f32 0.0, %v4979_v54 }
 0x1e7   : > { %v2502_v34 = vmul.f32 1.442695, %v2466_v37  ;;  %v2467_v45 = vsub.f32 0.0, %v4983_v9  ;;  %v4991_v23 = vadd.f32 %v3668_v31, %v4872_v32 }
 0x1e8   : > { %4090 = vpow2.f32 %v2506_v59  ;;  %v2508_v14 = vmul.f32 1.442695, %v2469_v42 }
 0x1e9   : > { %4092 = vpow2.f32 %v2502_v34  ;;  %v2504_v53 = vmul.f32 1.442695, %v2467_v45  ;;  %v3669_v36 = vpop.f32.mrb[120].mxu1  ;;  %v3755_v44 = vpop.f32.mrb[120].mxu0 }
 0x1ea   : > { %v4083_v63 = vpop.eup %4082  ;;  %4094 = vpow2.f32 %v2508_v14  ;;  %v4994_v51 = vadd.f32 %v3755_v44, %v4917_v29  ;;  %v3670_v4 = vpop.f32.mrb[121].mxu1 }
 0x1eb   : > { %v2367_v38 = vpop.f32.mrb[121].mxu0  ;;  %v4085_v5 = vpop.eup %4084  ;;  %v2560_v17 = vadd.f32 1.0, %v4083_v63  ;;  %4096 = vpow2.f32 %v2504_v53  ;;  %v3671_v50 = vadd.f32 %v3670_v4, %v3669_v36 }
 0x1ec   : > { %v4997_v32 = vadd.f32 %v2367_v38, %v4905_v57  ;;  %v3672_v43 = vpop.f32.mrb[122].mxu1  ;;  %v3756_v55 = vpop.f32.mrb[122].mxu0  ;;  %v2558_v11 = vadd.f32 1.0, %v4085_v5  ;;  %v2472_v3 = vsub.f32 0.0, %v4994_v51 }
 0x1ed   : > { %v4087_v61 = vpop.eup %4086  ;;  %v5001_v30 = vadd.f32 %v3756_v55, %v4923_v26  ;;  %v3673_v29 = vpop.f32.mrb[123].mxu1  ;;  %4098 = vrcp.f32 %v2560_v17  ;;  %v5009_v26 = vadd.f32 %v3671_v50, %v4878_v52 }
 0x1ee   : > { %v2370_v58 = vpop.f32.mrb[123].mxu0  ;;  %v4089_v16 = vpop.eup %4088  ;;  %v2561_v7 = vadd.f32 1.0, %v4087_v61  ;;  %v2470_v62 = vsub.f32 0.0, %v4997_v32  ;;  %v3674_v1 = vadd.f32 %v3673_v29, %v3672_v43  ;;  %4100 = vrcp.f32 %v2558_v11 }
 0x1ef   : > { %v2559_v57 = vadd.f32 1.0, %v4089_v16  ;;  %v2514_v18 = vmul.f32 1.442695, %v2472_v3  ;;  %v2473_v10 = vsub.f32 0.0, %v5001_v30  ;;  %v5006_v37 = vadd.f32 %v2370_v58, %v4911_v0 }
 0x1f0   : > { %4102 = vrcp.f32 %v2561_v7  ;;  %v2510_v13 = vmul.f32 1.442695, %v2470_v62  ;;  %v5012_v59 = vadd.f32 %v3674_v1, %v4884_v15 }
 0x1f1   : > { %4104 = vrcp.f32 %v2559_v57  ;;  %v2516_v31 = vmul.f32 1.442695, %v2473_v10  ;;  %v2471_v42 = vsub.f32 0.0, %v5006_v37  ;;  %v3675_v34 = vpop.f32.mrb[124].mxu1  ;;  %v3759_v45 = vpop.f32.mrb[124].mxu0 }
 0x1f2   : > { %4106 = vpow2.f32 %v2514_v18  ;;  %v4091_v14 = vpop.eup %4090  ;;  %v5016_v53 = vadd.f32 %v3759_v45, %v4941_v22  ;;  %v3676_v0 = vpop.f32.mrb[125].mxu1 }
 0x1f3   : > { %4108 = vpow2.f32 %v2510_v13  ;;  %v2383_v36 = vpop.f32.mrb[125].mxu0  ;;  %v4093_v44 = vpop.eup %4092  ;;  %v2564_v52 = vadd.f32 1.0, %v4091_v14  ;;  %v2512_v63 = vmul.f32 1.442695, %v2471_v42  ;;  %v3677_v4 = vadd.f32 %v3676_v0, %v3675_v34 }
 0x1f4   : > { %4110 = vpow2.f32 %v2516_v31  ;;  %v3678_v38 = vpop.f32.mrb[126].mxu1  ;;  %v3760_v15 = vpop.f32.mrb[126].mxu0  ;;  %v2562_v17 = vadd.f32 1.0, %v4093_v44  ;;  %v2476_v50 = vsub.f32 0.0, %v5016_v53  ;;  %v5020_v43 = vadd.f32 %v2383_v36, %v4929_v2 }
 0x1f5   : > { %v4095_v5 = vpop.eup %4094  ;;  %v5023_v55 = vadd.f32 %v3760_v15, %v4947_v19  ;;  %v3679_v22 = vpop.f32.mrb[127].mxu1  ;;  %4112 = vrcp.f32 %v2564_v52  ;;  %v5032_v57 = vadd.f32 %v3677_v4, %v4890_v41 }
 0x1f6   : > { %v2386_v61 = vpop.f32.mrb[127].mxu0  ;;  %v4097_v11 = vpop.eup %4096  ;;  %v2565_v3 = vadd.f32 1.0, %v4095_v5  ;;  %v3680_v29 = vadd.f32 %v3679_v22, %v3678_v38  ;;  %4114 = vrcp.f32 %v2562_v17  ;;  %v2522_v7 = vmul.f32 1.442695, %v2476_v50 }
 0x1f7   : > { %v5026_v58 = vadd.f32 %v2386_v61, %v4935_v21  ;;  %v2563_v16 = vadd.f32 1.0, %v4097_v11  ;;  %v2474_v62 = vsub.f32 0.0, %v5020_v43  ;;  %v4099_v2 = vpop.eup %4098  ;;  %v2477_v19 = vsub.f32 0.0, %v5023_v55 }
 0x1f8   : > { %4116 = vrcp.f32 %v2565_v3  ;;  %v4101_v18 = vpop.eup %4100  ;;  %v5036_v21 = vadd.f32 %v3680_v29, %v4896_v25  ;;  %v2624_v31 = vmul.f32 %v4099_v2, %v4950_v46 }
 0x1f9   : > { %v2475_v1 = vsub.f32 0.0, %v5026_v58  ;;  %4118 = vrcp.f32 %v2563_v16  ;;  %v2518_v10 = vmul.f32 1.442695, %v2474_v62  ;;  %v2524_v42 = vmul.f32 1.442695, %v2477_v19  ;;  %v3681_v45 = vpop.f32.mrb[128].mxu1 }
 0x1fa   : > { %v4103_v13 = vpop.eup %4102  ;;  %4120 = vpow2.f32 %v2512_v63  ;;  %v3763_v14 = vpop.f32.mrb[128].mxu0  ;;  %v2622_v36 = vmul.f32 %v4101_v18, %v4953_v40 }
 0x1fb   : > { %v2520_v34 = vmul.f32 1.442695, %v2475_v1  ;;  %v4105_v0 = vpop.eup %4104  ;;  %v2625_v41 = vmul.f32 %v4103_v13, %v4957_v56  ;;  %4122 = vpow2.f32 %v2522_v7  ;;  %v5042_v44 = vadd.f32 %v3763_v14, %v4986_v35  ;;  %v3682_v52 = vpop.f32.mrb[129].mxu1 }
 0x1fc   : > { %v2399_v25 = vpop.f32.mrb[129].mxu0  ;;  %v4107_v4 = vpop.eup %4106  ;;  %v2623_v46 = vmul.f32 %v4105_v0, %v4961_v39  ;;  %4124 = vpow2.f32 %v2518_v10  ;;  %v3683_v63 = vadd.f32 %v3682_v52, %v3681_v45 }
 0x1fd   : > { %v5051_v40 = vadd.f32 %v2399_v25, %v4964_v47  ;;  %v3684_v56 = vpop.f32.mrb[130].mxu1  ;;  %v3764_v38 = vpop.f32.mrb[130].mxu0  ;;  %v3170_v15 = vpack.c.bf16 %v2625_v41, %v2624_v31  ;;  %v2568_v5 = vadd.f32 1.0, %v4107_v4  ;;  %4126 = vpow2.f32 %v2524_v42 }
 0x1fe   : > { %v4109_v35 = vpop.eup %4108  ;;  %v2480_v17 = vsub.f32 0.0, %v5042_v44  ;;  %v3685_v50 = vpop.f32.mrb[131].mxu1  ;;  %v3165_v11 = vpack.c.bf16 %v2623_v46, %v2622_v36  ;;  %4128 = vpow2.f32 %v2520_v34  ;;  %v5057_v16 = vadd.f32 %v3764_v38, %v4991_v23 }
 0x1ff   : > { %v2402_v22 = vpop.f32.mrb[131].mxu0  ;;  %v4111_v61 = vpop.eup %4110  ;;  %v2566_v39 = vadd.f32 1.0, %v4109_v35  ;;  %v2478_v3 = vsub.f32 0.0, %v5051_v40  ;;  %3242 = vst [vmem:[%s5047_s21 + $0x8] sm:$0xff] %v3170_v15   ;;  %4130 = vrcp.f32 %v2568_v5  ;;  %v3686_v2 = vadd.f32 %v3685_v50, %v3684_v56 }
 0x200   : > { %v2569_v47 = vadd.f32 1.0, %v4111_v61  ;;  %v2530_v29 = vmul.f32 1.442695, %v2480_v17  ;;  %v4113_v7 = vpop.eup %4112  ;;  %3166 = vst [vmem:[%s5047_s21] sm:$0xff] %v3165_v11   ;;  %v5061_v19 = vadd.f32 %v2402_v22, %v4969_v33  ;;  %v2481_v10 = vsub.f32 0.0, %v5057_v16 }
 0x201   : > { %4132 = vrcp.f32 %v2566_v39  ;;  %v2526_v62 = vmul.f32 1.442695, %v2478_v3  ;;  %v4115_v1 = vpop.eup %4114  ;;  %v2628_v18 = vmul.f32 %v4113_v7, %v4972_v24  ;;  %v5066_v13 = vadd.f32 %v3683_v63, %v4902_v6  ;;  %v3687_v34 = vpop.f32.mrb[132].mxu1 }
 0x202   : > { %4134 = vrcp.f32 %v2569_v47  ;;  %v4117_v31 = vpop.eup %4116  ;;  %v2626_v23 = vmul.f32 %v4115_v1, %v4975_v20  ;;  %v2479_v42 = vsub.f32 0.0, %v5061_v19  ;;  %v3767_v45 = vpop.f32.mrb[132].mxu0  ;;  %v5071_v33 = vadd.f32 %v3686_v2, %v4908_v49 }
 0x203   : > { %4136 = vpow2.f32 %v2530_v29  ;;  %v4119_v14 = vpop.eup %4118  ;;  %v2629_v24 = vmul.f32 %v4117_v31, %v4979_v54  ;;  %v2532_v0 = vmul.f32 1.442695, %v2481_v10  ;;  %v5075_v36 = vadd.f32 %v3767_v45, %v5032_v57  ;;  %v3688_v6 = vpop.f32.mrb[133].mxu1 }
 0x204   : > { %4138 = vpow2.f32 %v2526_v62  ;;  %v2415_v41 = vpop.f32.mrb[133].mxu0  ;;  %v4121_v52 = vpop.eup %4120  ;;  %v2627_v20 = vmul.f32 %v4119_v14, %v4983_v9  ;;  %v2528_v25 = vmul.f32 1.442695, %v2479_v42  ;;  %v3689_v4 = vadd.f32 %v3688_v6, %v3687_v34 }
 0x205   : > { %v5079_v46 = vadd.f32 %v2415_v41, %v5009_v26  ;;  %v3690_v49 = vpop.f32.mrb[134].mxu1  ;;  %v3768_v63 = vpop.f32.mrb[134].mxu0  ;;  %v3180_v54 = vpack.c.bf16 %v2629_v24, %v2628_v18  ;;  %v2567_v38 = vadd.f32 1.0, %v4121_v52  ;;  %4140 = vpow2.f32 %v2532_v0 }
 0x206   : > { %v4123_v56 = vpop.eup %4122  ;;  %v2484_v57 = vsub.f32 0.0, %v5075_v36  ;;  %v3691_v35 = vpop.f32.mrb[135].mxu1  ;;  %v3175_v17 = vpack.c.bf16 %v2627_v20, %v2626_v23  ;;  %4142 = vpow2.f32 %v2528_v25  ;;  %v5085_v11 = vadd.f32 %v3768_v63, %v5036_v21 }
 0x207   : > { %v2418_v15 = vpop.f32.mrb[135].mxu0  ;;  %v4125_v5 = vpop.eup %4124  ;;  %v2572_v9 = vadd.f32 1.0, %v4123_v56  ;;  %v2482_v50 = vsub.f32 0.0, %v5079_v46  ;;  %3244 = vst [vmem:[%s5047_s21 + $0x18] sm:$0xff] %v3180_v54   ;;  %4144 = vrcp.f32 %v2567_v38  ;;  %v3692_v29 = vadd.f32 %v3691_v35, %v3690_v49 }
 0x208   : > { %v4127_v26 = vpop.eup %4126  ;;  %v2570_v22 = vadd.f32 1.0, %v4125_v5  ;;  %v2538_v61 = vmul.f32 1.442695, %v2484_v57  ;;  %3243 = vst [vmem:[%s5047_s21 + $0x10] sm:$0xff] %v3175_v17   ;;  %v2485_v2 = vsub.f32 0.0, %v5085_v11  ;;  %v5090_v1 = vadd.f32 %v2418_v15, %v5012_v59 }
 0x209   : > { %v4129_v39 = vpop.eup %4128  ;;  %4146 = vrcp.f32 %v2572_v9  ;;  %v2573_v3 = vadd.f32 1.0, %v4127_v26  ;;  %v2534_v47 = vmul.f32 1.442695, %v2482_v50  ;;  %v3693_v21 = vpop.f32.mrb[136].mxu1  ;;  %v2279_v31 = vadd.f32 %v3689_v4, %v4914_v27 }
 0x20a   : > { %v4131_v7 = vpop.eup %4130  ;;  %4148 = vrcp.f32 %v2570_v22  ;;  %v2571_v62 = vadd.f32 1.0, %v4129_v39  ;;  %v3771_v23 = vpop.f32.mrb[136].mxu0  ;;  %v2282_v42 = vadd.f32 %v3692_v29, %v4920_v60  ;;  %v2540_v14 = vmul.f32 1.442695, %v2485_v2 }
 0x20b   : > { %v4133_v18 = vpop.eup %4132  ;;  %v2632_v10 = vmul.f32 %v4131_v7, %v4994_v51  ;;  %4150 = vrcp.f32 %v2573_v3  ;;  %v2483_v24 = vsub.f32 0.0, %v5090_v1  ;;  %v3694_v59 = vpop.f32.mrb[137].mxu1  ;;  %v5100_v41 = vadd.f32 %v3771_v23, %v2279_v31 }
 0x20c   : > { %v4135_v34 = vpop.eup %4134  ;;  %v5096_v45 = vmul.f32 %v4133_v18, %v4997_v32  ;;  %4152 = vrcp.f32 %v2571_v62  ;;  %v2431_v0 = vpop.f32.mrb[137].mxu0  ;;  %v3695_v27 = vadd.f32 %v3694_v59, %v3693_v21 }
 0x20d   : > { %v4137_v6 = vpop.eup %4136  ;;  %v2633_v51 = vmul.f32 %v4135_v34, %v5001_v30  ;;  %4154 = vpow2.f32 %v2538_v61  ;;  %v3696_v52 = vpop.f32.mrb[138].mxu1  ;;  %v2536_v32 = vmul.f32 1.442695, %v2483_v24  ;;  %v5103_v4 = vadd.f32 %v2431_v0, %v5066_v13 }
 0x20e   : > { %v3772_v20 = vpop.f32.mrb[138].mxu0  ;;  %v4139_v60 = vpop.eup %4138  ;;  %v2576_v25 = vadd.f32 1.0, %v4137_v6  ;;  %4156 = vpow2.f32 %v2534_v47  ;;  %v2488_v30 = vsub.f32 0.0, %v5100_v41  ;;  %v2287_v62 = vadd.f32 %v3695_v27, %v4926_v48 }
 0x20f   : > { %v3697_v49 = vpop.f32.mrb[139].mxu1  ;;  %v2434_v63 = vpop.f32.mrb[139].mxu0  ;;  %v3190_v56 = vpack.c.bf16 %v2633_v51, %v2632_v10  ;;  %v2574_v54 = vadd.f32 1.0, %v4139_v60  ;;  %4158 = vpow2.f32 %v2540_v14  ;;  %v2486_v57 = vsub.f32 0.0, %v5103_v4 }
 0x210   : > { %v4141_v38 = vpop.eup %4140  ;;  %4160 = vrcp.f32 %v2576_v25  ;;  %v5107_v35 = vadd.f32 %v3772_v20, %v2282_v42  ;;  %v3698_v15 = vadd.f32 %v3697_v49, %v3696_v52  ;;  %v2546_v13 = vmul.f32 1.442695, %v2488_v30 }
 0x211   : > { %v4143_v5 = vpop.eup %4142  ;;  %3246 = vst [vmem:[%s5047_s21 + $0x28] sm:$0xff] %v3190_v56   ;;  %4162 = vrcp.f32 %v2574_v54  ;;  %v2577_v17 = vadd.f32 1.0, %v4141_v38  ;;  %v5111_v9 = vadd.f32 %v2434_v63, %v5071_v33  ;;  %v2542_v22 = vmul.f32 1.442695, %v2486_v57  ;;  %v3699_v29 = vpop.f32.mrb[140].mxu1 }
 0x212   : > { %v4145_v50 = vpop.eup %4144  ;;  %v2575_v26 = vadd.f32 1.0, %v4143_v5  ;;  %4164 = vpow2.f32 %v2536_v32  ;;  %v2489_v61 = vsub.f32 0.0, %v5107_v35  ;;  %v3775_v7 = vpop.f32.mrb[140].mxu0  ;;  %v2290_v31 = vadd.f32 %v3698_v15, %v4932_v12 }
 0x213   : > { %v4147_v39 = vpop.eup %4146  ;;  %v2631_v3 = vmul.f32 %v4145_v50, %v5006_v37  ;;  %4166 = vrcp.f32 %v2577_v17  ;;  %v2487_v47 = vsub.f32 0.0, %v5111_v9  ;;  %v3700_v10 = vpop.f32.mrb[141].mxu1 }
 0x214   : > { %v4149_v2 = vpop.eup %4148  ;;  %v2636_v33 = vmul.f32 %v4147_v39, %v5016_v53  ;;  %4168 = vrcp.f32 %v2575_v26  ;;  %v2548_v18 = vmul.f32 1.442695, %v2489_v61  ;;  %v2447_v21 = vpop.f32.mrb[141].mxu0  ;;  %v3701_v53 = vadd.f32 %v3700_v10, %v3699_v29 }
 0x215   : > { %v4151_v23 = vpop.eup %4150  ;;  %v3185_v37 = vpack.c.bf16 %v2631_v3, %v5096_v45  ;;  %v2634_v42 = vmul.f32 %v4149_v2, %v5020_v43  ;;  %4170 = vpow2.f32 %v2546_v13  ;;  %v2544_v34 = vmul.f32 1.442695, %v2487_v47  ;;  %v3702_v14 = vpop.f32.mrb[142].mxu1 }
 0x216   : > { %v3776_v24 = vpop.f32.mrb[142].mxu0  ;;  %v4153_v48 = vpop.eup %4152  ;;  %v2637_v59 = vmul.f32 %v4151_v23, %v5023_v55  ;;  %4172 = vpow2.f32 %v2542_v22  ;;  %v5122_v0 = vadd.f32 %v2447_v21, %v2287_v62  ;;  %v2295_v55 = vadd.f32 %v3701_v53, %v4938_v8 }
 0x217   : > { %v3703_v6 = vpop.f32.mrb[143].mxu1  ;;  %v2450_v51 = vpop.f32.mrb[143].mxu0  ;;  %3245 = vst [vmem:[%s5047_s21 + $0x20] sm:$0xff] %v3185_v37   ;;  %v2635_v45 = vmul.f32 %v4153_v48, %v5026_v58  ;;  %4174 = vpow2.f32 %v2548_v18 }
 0x218   : > { %v4155_v12 = vpop.eup %4154  ;;  %v3704_v43 = vadd.f32 %v3703_v6, %v3702_v14  ;;  %v5126_v27 = vadd.f32 %v2450_v51, %v2290_v31  ;;  %v3200_v20 = vpack.c.bf16 %v2637_v59, %v2636_v33  ;;  %4176 = vpow2.f32 %v2544_v34 }
 0x219   : > { %v4157_v52 = vpop.eup %4156  ;;  %v2580_v60 = vadd.f32 1.0, %v4155_v12  ;;  %v3195_v32 = vpack.c.bf16 %v2635_v45, %v2634_v42  ;;  %v2490_v63 = vsub.f32 0.0, %v5122_v0  ;;  %v5132_v30 = vadd.f32 %v3775_v7, %v2295_v55 }
 0x21a   : > { %v4159_v25 = vpop.eup %4158  ;;  %v2578_v49 = vadd.f32 1.0, %v4157_v52  ;;  %v2298_v56 = vadd.f32 %v3704_v43, %v4944_v28  ;;  %3248 = vst [vmem:[%s5047_s21 + $0x38] sm:$0xff] %v3200_v20   ;;  %v2491_v38 = vsub.f32 0.0, %v5126_v27 }
 0x21b   : > { %v4161_v54 = vpop.eup %4160  ;;  %4178 = vrcp.f32 %v2580_v60  ;;  %v2581_v58 = vadd.f32 1.0, %v4159_v25  ;;  %3247 = vst [vmem:[%s5047_s21 + $0x30] sm:$0xff] %v3195_v32   ;;  %v2550_v15 = vmul.f32 1.442695, %v2490_v63  ;;  %v2492_v17 = vsub.f32 0.0, %v5132_v30 }
 0x21c   : > { %v4163_v57 = vpop.eup %4162  ;;  %4180 = vrcp.f32 %v2578_v49  ;;  %v5136_v8 = vadd.f32 %v3776_v24, %v2298_v56  ;;  %v2552_v13 = vmul.f32 1.442695, %v2491_v38  ;;  %v2640_v61 = vmul.f32 %v4161_v54, %v5042_v44 }
 0x21d   : > { %v4165_v5 = vpop.eup %4164  ;;  %4182 = vrcp.f32 %v2581_v58  ;;  %v2554_v3 = vmul.f32 1.442695, %v2492_v17  ;;  %v2638_v29 = vmul.f32 %v4163_v57, %v5051_v40 }
 0x21e   : > { %v4167_v28 = vpop.eup %4166  ;;  %v2579_v50 = vadd.f32 1.0, %v4165_v5  ;;  %4184 = vpow2.f32 %v2550_v15  ;;  %v2493_v26 = vsub.f32 0.0, %v5136_v8 }
 0x21f   : > { %v4169_v22 = vpop.eup %4168  ;;  %v2641_v39 = vmul.f32 %v4167_v28, %v5057_v16  ;;  %4186 = vpow2.f32 %v2552_v13 }
 0x220   : > { %v4171_v47 = vpop.eup %4170  ;;  %v2639_v7 = vmul.f32 %v4169_v22, %v5061_v19  ;;  %4188 = vrcp.f32 %v2579_v50  ;;  %v2556_v62 = vmul.f32 1.442695, %v2493_v26 }
 0x221   : > { %v4173_v2 = vpop.eup %4172  ;;  %v3210_v33 = vpack.c.bf16 %v2641_v39, %v2640_v61  ;;  %v2584_v18 = vadd.f32 1.0, %v4171_v47  ;;  %4190 = vpow2.f32 %v2554_v3 }
 0x222   : > { %v4175_v10 = vpop.eup %4174  ;;  %v3205_v21 = vpack.c.bf16 %v2639_v7, %v2638_v29  ;;  %v2582_v44 = vadd.f32 1.0, %v4173_v2  ;;  %4192 = vpow2.f32 %v2556_v62 }
 0x223   : > { %v4177_v16 = vpop.eup %4176  ;;  %3250 = vst [vmem:[%s5047_s21 + $0x48] sm:$0xff] %v3210_v33   ;;  %4194 = vrcp.f32 %v2584_v18  ;;  %v2585_v31 = vadd.f32 1.0, %v4175_v10 }
 0x224   : > { %3249 = vst [vmem:[%s5047_s21 + $0x40] sm:$0xff] %v3205_v21   ;;  %4196 = vrcp.f32 %v2582_v44  ;;  %v2583_v40 = vadd.f32 1.0, %v4177_v16 }
 0x225   : > { %v4179_v23 = vpop.eup %4178  ;;  %4198 = vrcp.f32 %v2585_v31 }
 0x226   : > { %v4181_v19 = vpop.eup %4180  ;;  %4200 = vrcp.f32 %v2583_v40  ;;  %v2644_v34 = vmul.f32 %v4179_v23, %v5075_v36 }
 0x227   : > { %v4183_v37 = vpop.eup %4182  ;;  %v2642_v12 = vmul.f32 %v4181_v19, %v5079_v46 }
 0x228   : > { %v4185_v42 = vpop.eup %4184  ;;  %v2645_v14 = vmul.f32 %v4183_v37, %v5085_v11 }
 0x229   : > { %v4187_v24 = vpop.eup %4186  ;;  %v2586_v48 = vadd.f32 1.0, %v4185_v42 }
 0x22a   : > { %v4189_v59 = vpop.eup %4188  ;;  %v3220_v53 = vpack.c.bf16 %v2645_v14, %v2644_v34  ;;  %v2587_v6 = vadd.f32 1.0, %v4187_v24 }
 0x22b   : > { %v4191_v51 = vpop.eup %4190  ;;  %v2643_v45 = vmul.f32 %v4189_v59, %v5090_v1  ;;  %4202 = vrcp.f32 %v2586_v48 }
 0x22c   : > { %v4193_v43 = vpop.eup %4192  ;;  %3252 = vst [vmem:[%s5047_s21 + $0x58] sm:$0xff] %v3220_v53   ;;  %v2588_v52 = vadd.f32 1.0, %v4191_v51  ;;  %4204 = vrcp.f32 %v2587_v6 }
 0x22d   : > { %v4195_v36 = vpop.eup %4194  ;;  %v3215_v20 = vpack.c.bf16 %v2643_v45, %v2642_v12  ;;  %v2589_v11 = vadd.f32 1.0, %v4193_v43 }
 0x22e   : > { %v4197_v60 = vpop.eup %4196  ;;  %4206 = vrcp.f32 %v2588_v52  ;;  %v2648_v46 = vmul.f32 %v4195_v36, %v5100_v41 }
 0x22f   : > { %v4199_v55 = vpop.eup %4198  ;;  %3251 = vst [vmem:[%s5047_s21 + $0x50] sm:$0xff] %v3215_v20   ;;  %4208 = vrcp.f32 %v2589_v11  ;;  %v2646_v32 = vmul.f32 %v4197_v60, %v5103_v4 }
 0x230   : > { %v4201_v25 = vpop.eup %4200  ;;  %v2649_v1 = vmul.f32 %v4199_v55, %v5107_v35 }
 0x231   : > { %v2647_v49 = vmul.f32 %v4201_v25, %v5111_v9 }
 0x232   : > { %v3230_v63 = vpack.c.bf16 %v2649_v1, %v2648_v46 }
 0x233   : > { %v3225_v56 = vpack.c.bf16 %v2647_v49, %v2646_v32 }
 0x234   : > { %3254 = vst [vmem:[%s5047_s21 + $0x68] sm:$0xff] %v3230_v63  }
 0x235   : > { %v4203_v54 = vpop.eup %4202  ;;  %3253 = vst [vmem:[%s5047_s21 + $0x60] sm:$0xff] %v3225_v56  }
 0x236   : > { %v4205_v58 = vpop.eup %4204  ;;  %v2650_v38 = vmul.f32 %v4203_v54, %v5122_v0 }
 0x237   : > { %v2651_v57 = vmul.f32 %v4205_v58, %v5126_v27 }
 0x238   : > { %v4207_v15 = vpop.eup %4206 }
 0x239   : > { %v4209_v41 = vpop.eup %4208  ;;  %v3235_v5 = vpack.c.bf16 %v2651_v57, %v2650_v38  ;;  %v2652_v35 = vmul.f32 %v4207_v15, %v5132_v30 }
 0x23a   : > { %v2653_v4 = vmul.f32 %v4209_v41, %v5136_v8 }
 0x23b   : > { %3255 = vst [vmem:[%s5047_s21 + $0x70] sm:$0xff] %v3235_v5  }
 0x23c   : > { %v3240_v9 = vpack.c.bf16 %v2653_v4, %v2652_v35 }
 0x23e   : > { %3256 = vst [vmem:[%s5047_s21 + $0x78] sm:$0xff] %v3240_v9  }
 0x23f PF: > { %s13_s12 = sadd.s32 1, %s4216_s12  }
 0x240   : > { %p10_p4 = scmp.ge.s32.totalorder %s13_s12, 4  }
 0x242   :  { %12 = sbr.rel (!%p10_p4) target bundleno = 1 (0x1), region = 62 }

// kernel: _lambda_.19
= control target key start
LH: loop header
LB: loop body
LE: loop exit
PB: predicated region body
PF: predicated region fallthrough
CT: control target
= control target key end

     0   :  { %s3137_s1 = inlined_call_operand.vmem [shape: bf16[1152,128], index: 1, kind: input, shape index: {}]   ;;  %s3138_s0 = inlined_call_operand.vmem [shape: bf16[128,1152], index: 0, kind: input, shape index: {}]   ;;  %s3139_s2 = inlined_call_operand.vmem [shape: f32[1,128], index: 2, kind: input, shape index: {}]   ;;  %s3140_s3 = inlined_call_operand.vmem [shape: bf16[128,128], index: 3, kind: output, shape index: {}]  }
   0x1   :  { %v2255_v0 = vld [vmem:[%s3137_s1 + $0x40] sm:$0xff]   ;;  %v2259_v4 = vld [vmem:[%s3137_s1 + $0x48] sm:$0xff]   ;;  %v2263_v8 = vld [vmem:[%s3137_s1 + $0x50] sm:$0xff]  }
   0x2   :  { %v2256_v1 = vld [vmem:[%s3137_s1 + $0xc0] sm:$0xff]   ;;  %1935 = vmatprep.subr.bf16.mxu0 %v2255_v0  ;;  %v2260_v5 = vld [vmem:[%s3137_s1 + $0xc8] sm:$0xff]   ;;  %v2264_v9 = vld [vmem:[%s3137_s1 + $0xd0] sm:$0xff]  }
   0x3   :  { %v2257_v2 = vld [vmem:[%s3137_s1] sm:$0xff]   ;;  %1999 = vmatprep.subr.bf16.mxu1 %v2256_v1  ;;  %v2261_v6 = vld [vmem:[%s3137_s1 + $0x8] sm:$0xff]   ;;  %v2265_v10 = vld [vmem:[%s3137_s1 + $0x10] sm:$0xff]  }
   0x4   :  { %v2258_v3 = vld [vmem:[%s3137_s1 + $0x80] sm:$0xff]   ;;  %1936 = vmatpush3.bf16.msra.mxu0 %v2257_v2  ;;  %v2262_v7 = vld [vmem:[%s3137_s1 + $0x88] sm:$0xff]   ;;  %v2266_v11 = vld [vmem:[%s3137_s1 + $0x90] sm:$0xff]  }
   0x5   :  { %2000 = vmatpush3.bf16.msra.mxu1 %v2258_v3  ;;  %1937 = vmatprep.subr.bf16.mxu0 %v2259_v4  ;;  %v2267_v12 = vld [vmem:[%s3137_s1 + $0x58] sm:$0xff]   ;;  %v2271_v16 = vld [vmem:[%s3137_s1 + $0x60] sm:$0xff]   ;;  %v2275_v20 = vld [vmem:[%s3137_s1 + $0x68] sm:$0xff]  }
   0x6   :  { %2001 = vmatprep.subr.bf16.mxu1 %v2260_v5  ;;  %v2268_v13 = vld [vmem:[%s3137_s1 + $0xd8] sm:$0xff]   ;;  %v2272_v17 = vld [vmem:[%s3137_s1 + $0xe0] sm:$0xff]   ;;  %v2276_v21 = vld [vmem:[%s3137_s1 + $0xe8] sm:$0xff]  }
   0x7   :  { %v2269_v14 = vld [vmem:[%s3137_s1 + $0x18] sm:$0xff]   ;;  %v2273_v18 = vld [vmem:[%s3137_s1 + $0x20] sm:$0xff]   ;;  %v2277_v22 = vld [vmem:[%s3137_s1 + $0x28] sm:$0xff]  }
   0x8   :  { %1938 = vmatpush3.bf16.msra.mxu0 %v2261_v6  ;;  %v2270_v15 = vld [vmem:[%s3137_s1 + $0x98] sm:$0xff]   ;;  %v2274_v19 = vld [vmem:[%s3137_s1 + $0xa0] sm:$0xff]   ;;  %v2278_v23 = vld [vmem:[%s3137_s1 + $0xa8] sm:$0xff]  }
   0x9   :  { %2002 = vmatpush3.bf16.msra.mxu1 %v2262_v7  ;;  %1939 = vmatprep.subr.bf16.mxu0 %v2263_v8  ;;  %v2279_v24 = vld [vmem:[%s3137_s1 + $0x70] sm:$0xff]   ;;  %v2283_v28 = vld [vmem:[%s3137_s1 + $0x78] sm:$0xff]   ;;  %v2287_v32 = vld [vmem:[%s3138_s0] ss:$36 sps:$4 sm:$0xff]  }
   0xa   :  { %2003 = vmatprep.subr.bf16.mxu1 %v2264_v9  ;;  %v2280_v25 = vld [vmem:[%s3137_s1 + $0xf0] sm:$0xff]   ;;  %v2284_v29 = vld [vmem:[%s3137_s1 + $0xf8] sm:$0xff]   ;;  %v2289_v33 = vld [vmem:[%s3138_s0 + $0x4] ss:$36 sps:$4 sm:$0xff]  }
   0xb   :  { %v2281_v26 = vld [vmem:[%s3137_s1 + $0x30] sm:$0xff]   ;;  %v2285_v30 = vld [vmem:[%s3137_s1 + $0x38] sm:$0xff]   ;;  %v2290_v34 = vld [vmem:[%s3138_s0 + $0x8] ss:$36 sps:$4 sm:$0xff]   ;;  %1078 = vmatprep.mubr.bf16.mxu0 %v2289_v33 }
   0xc   :  { %1940 = vmatpush3.bf16.msra.mxu0 %v2265_v10  ;;  %v2282_v27 = vld [vmem:[%s3137_s1 + $0xb0] sm:$0xff]   ;;  %v2286_v31 = vld [vmem:[%s3137_s1 + $0xb8] sm:$0xff]   ;;  %v2293_v36 = vld [vmem:[%s3137_s1 + $0x140] sm:$0xff]  }
   0xd   :  { %2004 = vmatpush3.bf16.msra.mxu1 %v2266_v11  ;;  %1941 = vmatprep.subr.bf16.mxu0 %v2267_v12  ;;  %v2292_v35 = vld [vmem:[%s3138_s0 + $0xc] ss:$36 sps:$4 sm:$0xff]   ;;  %v2294_v37 = vld [vmem:[%s3137_s1 + $0x1c0] sm:$0xff]   ;;  %v2299_v41 = vld [vmem:[%s3138_s0 + $0x54] ss:$36 sps:$4 sm:$0xff]  }
   0xe   :  { %2005 = vmatprep.subr.bf16.mxu1 %v2268_v13  ;;  %1175 = vmatprep.mubr.bf16.mxu1 %v2292_v35  ;;  %v2295_v38 = vld [vmem:[%s3137_s1 + $0x100] sm:$0xff]   ;;  %v2297_v40 = vld [vmem:[%s3138_s0 + $0x4c] ss:$36 sps:$4 sm:$0xff]   ;;  %v2307_v48 = vld [vmem:[%s3138_s0 + $0x94] ss:$36 sps:$4 sm:$0xff]  }
   0xf   :  { %v2296_v39 = vld [vmem:[%s3137_s1 + $0x180] sm:$0xff]   ;;  %v2301_v42 = vld [vmem:[%s3138_s0 + $0x48] ss:$36 sps:$4 sm:$0xff]   ;;  %v2302_v43 = vld [vmem:[%s3138_s0 + $0x50] ss:$36 sps:$4 sm:$0xff]  }
  0x10   :  { %1942 = vmatpush3.bf16.msra.mxu0 %v2269_v14  ;;  %v2303_v44 = vld [vmem:[%s3137_s1 + $0x148] sm:$0xff]   ;;  %v2309_v49 = vld [vmem:[%s3138_s0 + $0x9c] ss:$36 sps:$4 sm:$0xff]   ;;  %v2311_v50 = vld [vmem:[%s3138_s0 + $0x90] ss:$36 sps:$4 sm:$0xff]  }
  0x11   :  { %2006 = vmatpush3.bf16.msra.mxu1 %v2270_v15  ;;  %1943 = vmatprep.subr.bf16.mxu0 %v2271_v16  ;;  %v2304_v45 = vld [vmem:[%s3137_s1 + $0x1c8] sm:$0xff]   ;;  %v2312_v51 = vld [vmem:[%s3138_s0 + $0x98] ss:$36 sps:$4 sm:$0xff]   ;;  %v2313_v52 = vld [vmem:[%s3137_s1 + $0x150] sm:$0xff]  }
  0x12   :  { %2007 = vmatprep.subr.bf16.mxu1 %v2272_v17  ;;  %v2305_v46 = vld [vmem:[%s3137_s1 + $0x108] sm:$0xff]   ;;  %v2314_v53 = vld [vmem:[%s3137_s1 + $0x1d0] sm:$0xff]   ;;  %v2317_v56 = vld [vmem:[%s3138_s0 + $0xdc] ss:$36 sps:$4 sm:$0xff]  }
  0x13   :  { %v2306_v47 = vld [vmem:[%s3137_s1 + $0x188] sm:$0xff]   ;;  %v2315_v54 = vld [vmem:[%s3137_s1 + $0x110] sm:$0xff]   ;;  %v2321_v58 = vld [vmem:[%s3138_s0 + $0xd8] ss:$36 sps:$4 sm:$0xff]  }
  0x14   :  { %1944 = vmatpush3.bf16.msra.mxu0 %v2273_v18  ;;  %v2316_v55 = vld [vmem:[%s3137_s1 + $0x190] sm:$0xff]   ;;  %v2319_v57 = vld [vmem:[%s3138_s0 + $0xe4] ss:$36 sps:$4 sm:$0xff]   ;;  %v2323_v60 = vld [vmem:[%s3137_s1 + $0x158] sm:$0xff]  }
  0x15   :  { %2008 = vmatpush3.bf16.msra.mxu1 %v2274_v19  ;;  %1945 = vmatprep.subr.bf16.mxu0 %v2275_v20  ;;  %v2322_v59 = vld [vmem:[%s3138_s0 + $0xe0] ss:$36 sps:$4 sm:$0xff]   ;;  %v2324_v61 = vld [vmem:[%s3137_s1 + $0x1d8] sm:$0xff]   ;;  %v2329_v1 = vld [vmem:[%s3138_s0 + $0x12c] ss:$36 sps:$4 sm:$0xff]  }
  0x16   :  { %2009 = vmatprep.subr.bf16.mxu1 %v2276_v21  ;;  %v2325_v62 = vld [vmem:[%s3137_s1 + $0x118] sm:$0xff]   ;;  %v2327_v0 = vld [vmem:[%s3138_s0 + $0x124] ss:$36 sps:$4 sm:$0xff]   ;;  %v2337_v8 = vld [vmem:[%s3138_s0 + $0x16c] ss:$36 sps:$4 sm:$0xff]  }
  0x17   :  { %v2326_v63 = vld [vmem:[%s3137_s1 + $0x198] sm:$0xff]   ;;  %v2331_v2 = vld [vmem:[%s3138_s0 + $0x120] ss:$36 sps:$4 sm:$0xff]   ;;  %v2332_v4 = vld [vmem:[%s3138_s0 + $0x128] ss:$36 sps:$4 sm:$0xff]  }
  0x18   :  { %1946 = vmatpush3.bf16.msra.mxu0 %v2277_v22  ;;  %v2333_v3 = vld [vmem:[%s3137_s1 + $0x160] sm:$0xff]   ;;  %v2339_v9 = vld [vmem:[%s3138_s0 + $0x174] ss:$36 sps:$4 sm:$0xff]   ;;  %v2343_v10 = vld [vmem:[%s3137_s1 + $0x168] sm:$0xff]  }
  0x19   :  { %2010 = vmatpush3.bf16.msra.mxu1 %v2278_v23  ;;  %1947 = vmatprep.subr.bf16.mxu0 %v2279_v24  ;;  %v2334_v5 = vld [vmem:[%s3137_s1 + $0x1e0] sm:$0xff]   ;;  %v2344_v11 = vld [vmem:[%s3137_s1 + $0x1e8] sm:$0xff]   ;;  %v2342_v15 = vld [vmem:[%s3138_s0 + $0x170] ss:$36 sps:$4 sm:$0xff]  }
  0x1a   :  { %2011 = vmatprep.subr.bf16.mxu1 %v2280_v25  ;;  %v2335_v6 = vld [vmem:[%s3137_s1 + $0x120] sm:$0xff]   ;;  %v2341_v12 = vld [vmem:[%s3138_s0 + $0x168] ss:$36 sps:$4 sm:$0xff]   ;;  %v2347_v16 = vld [vmem:[%s3138_s0 + $0x1b4] ss:$36 sps:$4 sm:$0xff]  }
  0x1b   :  { %v2336_v7 = vld [vmem:[%s3137_s1 + $0x1a0] sm:$0xff]   ;;  %v2345_v13 = vld [vmem:[%s3137_s1 + $0x128] sm:$0xff]   ;;  %v2353_v18 = vld [vmem:[%s3137_s1 + $0x170] sm:$0xff]  }
  0x1c   :  { %1948 = vmatpush3.bf16.msra.mxu0 %v2281_v26  ;;  %v2346_v14 = vld [vmem:[%s3137_s1 + $0x1a8] sm:$0xff]   ;;  %v2349_v17 = vld [vmem:[%s3138_s0 + $0x1bc] ss:$36 sps:$4 sm:$0xff]   ;;  %v2354_v19 = vld [vmem:[%s3137_s1 + $0x1f0] sm:$0xff]  }
  0x1d   :  { %2012 = vmatpush3.bf16.msra.mxu1 %v2282_v27  ;;  %1949 = vmatprep.subr.bf16.mxu0 %v2283_v28  ;;  %v2355_v20 = vld [vmem:[%s3137_s1 + $0x130] sm:$0xff]   ;;  %v2352_v23 = vld [vmem:[%s3138_s0 + $0x1b8] ss:$36 sps:$4 sm:$0xff]   ;;  %v2359_v25 = vld [vmem:[%s3138_s0 + $0x204] ss:$36 sps:$4 sm:$0xff]  }
  0x1e   :  { %2013 = vmatprep.subr.bf16.mxu1 %v2284_v29  ;;  %v2356_v21 = vld [vmem:[%s3137_s1 + $0x1b0] sm:$0xff]   ;;  %v2357_v24 = vld [vmem:[%s3138_s0 + $0x1fc] ss:$36 sps:$4 sm:$0xff]  }
  0x1f   :  { %v2351_v22 = vld [vmem:[%s3138_s0 + $0x1b0] ss:$36 sps:$4 sm:$0xff]   ;;  %v2363_v26 = vld [vmem:[%s3137_s1 + $0x178] sm:$0xff]  }
  0x20   :  { %1950 = vmatpush3.bf16.msra.mxu0 %v2285_v30  ;;  %v2364_v27 = vld [vmem:[%s3137_s1 + $0x1f8] sm:$0xff]   ;;  %v2367_v35 = vld [vmem:[%s3138_s0 + $0x10] ss:$36 sps:$4 sm:$0xff]  }
  0x21   :  { %2014 = vmatpush3.bf16.msra.mxu1 %v2286_v31  ;;  %2063 = vmatprep.subr.bf16.mxu0 %v2293_v36  ;;  %v2365_v28 = vld [vmem:[%s3137_s1 + $0x138] sm:$0xff]   ;;  %v2362_v31 = vld [vmem:[%s3138_s0 + $0x200] ss:$36 sps:$4 sm:$0xff]  }
  0x22   :  { %2127 = vmatprep.subr.bf16.mxu1 %v2294_v37  ;;  %v2366_v29 = vld [vmem:[%s3137_s1 + $0x1b8] sm:$0xff]  }
  0x23   :  { %1079 = vmatmul.mubr.bf16.vlgmr.msra.gmra.mrb[0].mxu0 %v2287_v32  ;;  %v2361_v30 = vld [vmem:[%s3138_s0 + $0x1f8] ss:$36 sps:$4 sm:$0xff]   ;;  %v2373_v32 = vld [vmem:[%s3137_s1 + $0x200] sm:$0xff]  }
  0x24   :  { %1176 = vmatmul.mubr.bf16.vlgmr.msra.gmra.mrb[0].mxu1 %v2290_v34  ;;  %2064 = vmatpush3.bf16.msra.mxu0 %v2295_v38  ;;  %v2369_v33 = vld [vmem:[%s3138_s0 + $0x14] ss:$36 sps:$4 sm:$0xff]   ;;  %v2372_v34 = vld [vmem:[%s3138_s0 + $0x1c] ss:$36 sps:$4 sm:$0xff]   ;;  %v2376_v38 = vld [vmem:[%s3138_s0 + $0x64] ss:$36 sps:$4 sm:$0xff]  }
  0x25   :  { %2128 = vmatpush3.bf16.msra.mxu1 %v2296_v39  ;;  %1086 = vmatprep.mubr.bf16.mxu0 %v2297_v40  ;;  %v2370_v36 = vld [vmem:[%s3138_s0 + $0x18] ss:$36 sps:$4 sm:$0xff]   ;;  %v2380_v39 = vld [vmem:[%s3137_s1 + $0x208] sm:$0xff]   ;;  %v2387_v40 = vld [vmem:[%s3137_s1 + $0x210] sm:$0xff]  }
  0x26   :  { %1183 = vmatprep.mubr.bf16.mxu1 %v2299_v41  ;;  %2065 = vmatprep.subr.bf16.mxu0 %v2303_v44  ;;  %v2374_v37 = vld [vmem:[%s3138_s0 + $0x5c] ss:$36 sps:$4 sm:$0xff]   ;;  %v2383_v44 = vld [vmem:[%s3138_s0 + $0xac] ss:$36 sps:$4 sm:$0xff]  }
  0x27   :  { %2129 = vmatprep.subr.bf16.mxu1 %v2304_v45  ;;  %v2378_v41 = vld [vmem:[%s3138_s0 + $0x58] ss:$36 sps:$4 sm:$0xff]  }
  0x28   :  { %2066 = vmatpush3.bf16.msra.mxu0 %v2305_v46  ;;  %v2394_v45 = vld [vmem:[%s3137_s1 + $0x218] sm:$0xff]   ;;  %v2401_v46 = vld [vmem:[%s3137_s1 + $0x220] sm:$0xff]  }
  0x29   :  { %2130 = vmatpush3.bf16.msra.mxu1 %v2306_v47  ;;  %2067 = vmatprep.subr.bf16.mxu0 %v2313_v52  ;;  %v2385_v47 = vld [vmem:[%s3138_s0 + $0xa0] ss:$36 sps:$4 sm:$0xff]   ;;  %v2392_v52 = vld [vmem:[%s3138_s0 + $0xe8] ss:$36 sps:$4 sm:$0xff]  }
  0x2a   :  { %2131 = vmatprep.subr.bf16.mxu1 %v2314_v53  ;;  %v2415_v53 = vld [vmem:[%s3137_s1 + $0x230] sm:$0xff]  }
  0x2b   :  { %1087 = vmatmul.mubr.bf16.gmra.mrb[4].mxu0 %v2301_v42  ;;  %v2379_v42 = vld [vmem:[%s3138_s0 + $0x60] ss:$36 sps:$4 sm:$0xff]  }
  0x2c   :  { %1184 = vmatmul.mubr.bf16.gmra.mrb[4].mxu1 %v2302_v43  ;;  %1094 = vmatprep.mubr.bf16.mxu0 %v2307_v48  ;;  %v2381_v43 = vld [vmem:[%s3138_s0 + $0xa4] ss:$36 sps:$4 sm:$0xff]  }
  0x2d   :  { %1191 = vmatprep.mubr.bf16.mxu1 %v2309_v49  ;;  %2068 = vmatpush3.bf16.msra.mxu0 %v2315_v54  ;;  %v2386_v48 = vld [vmem:[%s3138_s0 + $0xa8] ss:$36 sps:$4 sm:$0xff]   ;;  %v2393_v54 = vld [vmem:[%s3138_s0 + $0xf0] ss:$36 sps:$4 sm:$0xff]  }
  0x2e   :  { %2132 = vmatpush3.bf16.msra.mxu1 %v2316_v55  ;;  %2069 = vmatprep.subr.bf16.mxu0 %v2323_v60  ;;  %v2388_v49 = vld [vmem:[%s3138_s0 + $0xec] ss:$36 sps:$4 sm:$0xff]   ;;  %v2395_v55 = vld [vmem:[%s3138_s0 + $0x134] ss:$36 sps:$4 sm:$0xff]   ;;  %v2402_v60 = vld [vmem:[%s3138_s0 + $0x17c] ss:$36 sps:$4 sm:$0xff]  }
  0x2f   :  { %2133 = vmatprep.subr.bf16.mxu1 %v2324_v61  ;;  %v2404_v61 = vld [vmem:[%s3138_s0 + $0x184] ss:$36 sps:$4 sm:$0xff]  }
  0x31   :  { %2070 = vmatpush3.bf16.msra.mxu0 %v2325_v62  ;;  %v2406_v62 = vld [vmem:[%s3138_s0 + $0x178] ss:$36 sps:$4 sm:$0xff]  }
  0x32   :  { %2134 = vmatpush3.bf16.msra.mxu1 %v2326_v63  ;;  %2071 = vmatprep.subr.bf16.mxu0 %v2333_v3  ;;  %v2407_v63 = vld [vmem:[%s3138_s0 + $0x180] ss:$36 sps:$4 sm:$0xff]   ;;  %v2414_v3 = vld [vmem:[%s3138_s0 + $0x1c8] ss:$36 sps:$4 sm:$0xff]  }
  0x33   :  { %1095 = vmatmul.mubr.bf16.gmra.mrb[8].mxu0 %v2311_v50  ;;  %2135 = vmatprep.subr.bf16.mxu1 %v2334_v5  ;;  %v2390_v50 = vld [vmem:[%s3138_s0 + $0xf4] ss:$36 sps:$4 sm:$0xff]  }
  0x34   :  { %1192 = vmatmul.mubr.bf16.gmra.mrb[8].mxu1 %v2312_v51  ;;  %1102 = vmatprep.mubr.bf16.mxu0 %v2317_v56  ;;  %v2408_v51 = vld [vmem:[%s3137_s1 + $0x228] sm:$0xff]   ;;  %v2397_v56 = vld [vmem:[%s3138_s0 + $0x13c] ss:$36 sps:$4 sm:$0xff]   ;;  %v2418_v5 = vld [vmem:[%s3138_s0 + $0x214] ss:$36 sps:$4 sm:$0xff]  }
  0x35   :  { %1199 = vmatprep.mubr.bf16.mxu1 %v2319_v57  ;;  %2072 = vmatpush3.bf16.msra.mxu0 %v2335_v6  ;;  %v2422_v57 = vld [vmem:[%s3137_s1 + $0x238] sm:$0xff]   ;;  %v2420_v6 = vld [vmem:[%s3138_s0 + $0x208] ss:$36 sps:$4 sm:$0xff]  }
  0x36   :  { %2136 = vmatpush3.bf16.msra.mxu1 %v2336_v7  ;;  %2073 = vmatprep.subr.bf16.mxu0 %v2343_v10  ;;  %v2421_v7 = vld [vmem:[%s3138_s0 + $0x210] ss:$36 sps:$4 sm:$0xff]   ;;  %v2425_v10 = vld [vmem:[%s3138_s0 + $0x68] ss:$36 sps:$4 sm:$0xff]  }
  0x37   :  { %2137 = vmatprep.subr.bf16.mxu1 %v2344_v11  ;;  %v2426_v11 = vld [vmem:[%s3138_s0 + $0x188] ss:$36 sps:$4 sm:$0xff]  }
  0x39   :  { %2074 = vmatpush3.bf16.msra.mxu0 %v2345_v13  ;;  %v2428_v13 = vld [vmem:[%s3138_s0 + $0x1d0] ss:$36 sps:$4 sm:$0xff]  }
  0x3a   :  { %2138 = vmatpush3.bf16.msra.mxu1 %v2346_v14  ;;  %2075 = vmatprep.subr.bf16.mxu0 %v2353_v18  ;;  %v2429_v14 = vld [vmem:[%s3138_s0 + $0xf8] ss:$36 sps:$4 sm:$0xff]   ;;  %v2950_v18 = vld [vmem:[%s3139_s2] ss:$0 sm:$0xff] }
  0x3b   :  { %1103 = vmatmul.mubr.bf16.gmra.mrb[12].mxu0 %v2321_v58  ;;  %2139 = vmatprep.subr.bf16.mxu1 %v2354_v19  ;;  %v2399_v58 = vld [vmem:[%s3138_s0 + $0x130] ss:$36 sps:$4 sm:$0xff]  }
  0x3c   :  { %1200 = vmatmul.mubr.bf16.gmra.mrb[12].mxu1 %v2322_v59  ;;  %1110 = vmatprep.mubr.bf16.mxu0 %v2327_v0  ;;  %v2400_v59 = vld [vmem:[%s3138_s0 + $0x138] ss:$36 sps:$4 sm:$0xff]   ;;  %v2409_v0 = vld [vmem:[%s3138_s0 + $0x1c4] ss:$36 sps:$4 sm:$0xff]  }
  0x3d   :  { %1207 = vmatprep.mubr.bf16.mxu1 %v2329_v1  ;;  %2076 = vmatpush3.bf16.msra.mxu0 %v2355_v20  ;;  %v2411_v1 = vld [vmem:[%s3138_s0 + $0x1cc] ss:$36 sps:$4 sm:$0xff]  }
  0x3e   :  { %2140 = vmatpush3.bf16.msra.mxu1 %v2356_v21  ;;  %2077 = vmatprep.subr.bf16.mxu0 %v2363_v26 }
  0x3f   :  { %2141 = vmatprep.subr.bf16.mxu1 %v2364_v27 }
  0x41   :  { %2078 = vmatpush3.bf16.msra.mxu0 %v2365_v28 }
  0x42   :  { %2142 = vmatpush3.bf16.msra.mxu1 %v2366_v29  ;;  %2207 = vmatprep.subr.bf16.mxu0 %v2373_v32 }
  0x43   :  { %1111 = vmatmul.mubr.bf16.gmra.mrb[16].mxu0 %v2331_v2  ;;  %2239 = vmatprep.subr.bf16.mxu1 %v2373_v32  ;;  %v2413_v2 = vld [vmem:[%s3138_s0 + $0x1c0] ss:$36 sps:$4 sm:$0xff]  }
  0x44   :  { %1208 = vmatmul.mubr.bf16.gmra.mrb[16].mxu1 %v2332_v4  ;;  %1118 = vmatprep.mubr.bf16.mxu0 %v2337_v8  ;;  %v2416_v4 = vld [vmem:[%s3138_s0 + $0x20c] ss:$36 sps:$4 sm:$0xff]   ;;  %v2423_v8 = vld [vmem:[%s3138_s0 + $0x20] ss:$36 sps:$4 sm:$0xff]  }
  0x45   :  { %1215 = vmatprep.mubr.bf16.mxu1 %v2339_v9  ;;  %v2424_v9 = vld [vmem:[%s3138_s0 + $0x140] ss:$36 sps:$4 sm:$0xff]  }
  0x4b   :  { %1119 = vmatmul.mubr.bf16.gmra.mrb[20].mxu0 %v2341_v12  ;;  %v2427_v12 = vld [vmem:[%s3138_s0 + $0xb0] ss:$36 sps:$4 sm:$0xff]  }
  0x4c   :  { %1216 = vmatmul.mubr.bf16.gmra.mrb[20].mxu1 %v2342_v15  ;;  %1126 = vmatprep.mubr.bf16.mxu0 %v2347_v16  ;;  %v2430_v15 = vld [vmem:[%s3138_s0 + $0x218] ss:$36 sps:$4 sm:$0xff]  }
  0x4d   :  { %1223 = vmatprep.mubr.bf16.mxu1 %v2349_v17 }
  0x53   :  { %1127 = vmatmul.mubr.bf16.gmra.mrb[24].mxu0 %v2351_v22 }
  0x54   :  { %1224 = vmatmul.mubr.bf16.gmra.mrb[24].mxu1 %v2352_v23  ;;  %1134 = vmatprep.mubr.bf16.mxu0 %v2357_v24 }
  0x55   :  { %1231 = vmatprep.mubr.bf16.mxu1 %v2359_v25 }
  0x5b   :  { %1135 = vmatmul.mubr.bf16.gmra.mrb[28].mxu0 %v2361_v30 }
  0x5c   :  { %1232 = vmatmul.mubr.bf16.gmra.mrb[28].mxu1 %v2362_v31  ;;  %1272 = vmatprep.mubr.bf16.mxu0 %v2369_v33 }
  0x5d   :  { %1369 = vmatprep.mubr.bf16.mxu1 %v2372_v34 }
  0x63   :  { %1273 = vmatmul.mubr.bf16.vlgmr.msra.gmra.mrb[32].mxu0 %v2367_v35 }
  0x64   :  { %1370 = vmatmul.mubr.bf16.vlgmr.msra.gmra.mrb[32].mxu1 %v2370_v36  ;;  %2208 = vmatpush3.bf16.msra.mxu0 %v2373_v32 }
  0x65   :  { %2247 = vmatpush3.bf16.msra.mxu1 %v2373_v32  ;;  %1280 = vmatprep.mubr.bf16.mxu0 %v2374_v37 }
  0x66   :  { %1377 = vmatprep.mubr.bf16.mxu1 %v2376_v38  ;;  %2209 = vmatprep.subr.bf16.mxu0 %v2380_v39 }
  0x67   :  { %2240 = vmatprep.subr.bf16.mxu1 %v2380_v39 }
  0x68   :  { %2210 = vmatpush3.bf16.msra.mxu0 %v2380_v39 }
  0x69   :  { %2248 = vmatpush3.bf16.msra.mxu1 %v2380_v39  ;;  %2211 = vmatprep.subr.bf16.mxu0 %v2387_v40 }
  0x6a   :  { %2241 = vmatprep.subr.bf16.mxu1 %v2387_v40 }
  0x6b   :  { %1281 = vmatmul.mubr.bf16.gmra.mrb[36].mxu0 %v2378_v41 }
  0x6c   :  { %1378 = vmatmul.mubr.bf16.gmra.mrb[36].mxu1 %v2379_v42  ;;  %1288 = vmatprep.mubr.bf16.mxu0 %v2381_v43 }
  0x6d   :  { %1385 = vmatprep.mubr.bf16.mxu1 %v2383_v44  ;;  %2212 = vmatpush3.bf16.msra.mxu0 %v2387_v40 }
  0x6e   :  { %2249 = vmatpush3.bf16.msra.mxu1 %v2387_v40  ;;  %2213 = vmatprep.subr.bf16.mxu0 %v2394_v45 }
  0x6f   :  { %2242 = vmatprep.subr.bf16.mxu1 %v2394_v45 }
  0x71   :  { %2214 = vmatpush3.bf16.msra.mxu0 %v2394_v45 }
  0x72   :  { %2250 = vmatpush3.bf16.msra.mxu1 %v2394_v45  ;;  %2215 = vmatprep.subr.bf16.mxu0 %v2401_v46 }
  0x73   :  { %1289 = vmatmul.mubr.bf16.gmra.mrb[40].mxu0 %v2385_v47  ;;  %2243 = vmatprep.subr.bf16.mxu1 %v2401_v46 }
  0x74   :  { %1386 = vmatmul.mubr.bf16.gmra.mrb[40].mxu1 %v2386_v48  ;;  %1296 = vmatprep.mubr.bf16.mxu0 %v2388_v49 }
  0x75   :  { %1393 = vmatprep.mubr.bf16.mxu1 %v2390_v50  ;;  %2216 = vmatpush3.bf16.msra.mxu0 %v2401_v46 }
  0x76   :  { %2251 = vmatpush3.bf16.msra.mxu1 %v2401_v46  ;;  %2217 = vmatprep.subr.bf16.mxu0 %v2408_v51 }
  0x77   :  { %2244 = vmatprep.subr.bf16.mxu1 %v2408_v51 }
  0x79   :  { %2218 = vmatpush3.bf16.msra.mxu0 %v2408_v51 }
  0x7a   :  { %2252 = vmatpush3.bf16.msra.mxu1 %v2408_v51  ;;  %2219 = vmatprep.subr.bf16.mxu0 %v2415_v53 }
  0x7b   :  { %1297 = vmatmul.mubr.bf16.gmra.mrb[44].mxu0 %v2392_v52  ;;  %2245 = vmatprep.subr.bf16.mxu1 %v2415_v53 }
  0x7c   :  { %1394 = vmatmul.mubr.bf16.gmra.mrb[44].mxu1 %v2393_v54  ;;  %1304 = vmatprep.mubr.bf16.mxu0 %v2395_v55 }
  0x7d   :  { %1401 = vmatprep.mubr.bf16.mxu1 %v2397_v56  ;;  %2220 = vmatpush3.bf16.msra.mxu0 %v2415_v53 }
  0x7e   :  { %2253 = vmatpush3.bf16.msra.mxu1 %v2415_v53  ;;  %2221 = vmatprep.subr.bf16.mxu0 %v2422_v57 }
  0x7f   :  { %2246 = vmatprep.subr.bf16.mxu1 %v2422_v57 }
  0x81   :  { %2222 = vmatpush3.bf16.msra.mxu0 %v2422_v57 }
  0x82   :  { %2254 = vmatpush3.bf16.msra.mxu1 %v2422_v57 }
  0x83   :  { %1305 = vmatmul.mubr.bf16.gmra.mrb[48].mxu0 %v2399_v58 }
  0x84   :  { %1402 = vmatmul.mubr.bf16.gmra.mrb[48].mxu1 %v2400_v59  ;;  %1312 = vmatprep.mubr.bf16.mxu0 %v2402_v60 }
  0x85   :  { %1409 = vmatprep.mubr.bf16.mxu1 %v2404_v61 }
  0x8b   :  { %1313 = vmatmul.mubr.bf16.gmra.mrb[52].mxu0 %v2406_v62 }
  0x8c   :  { %1410 = vmatmul.mubr.bf16.gmra.mrb[52].mxu1 %v2407_v63  ;;  %1320 = vmatprep.mubr.bf16.mxu0 %v2409_v0 }
  0x8d   :  { %1417 = vmatprep.mubr.bf16.mxu1 %v2411_v1 }
  0x93   :  { %1321 = vmatmul.mubr.bf16.gmra.mrb[56].mxu0 %v2413_v2 }
  0x94   :  { %1418 = vmatmul.mubr.bf16.gmra.mrb[56].mxu1 %v2414_v3  ;;  %1328 = vmatprep.mubr.bf16.mxu0 %v2416_v4 }
  0x95   :  { %1425 = vmatprep.mubr.bf16.mxu1 %v2418_v5 }
  0x9b   :  { %1329 = vmatmul.mubr.bf16.gmra.mrb[60].mxu0 %v2420_v6 }
  0x9c   :  { %1426 = vmatmul.mubr.bf16.gmra.mrb[60].mxu1 %v2421_v7  ;;  %2223 = vmatprep.mubr.bf16.mxu0 %v2423_v8 }
  0x9d   :  { %2231 = vmatprep.mubr.bf16.mxu1 %v2424_v9 }
  0xa3   :  { %2224 = vmatmul.mubr.bf16.vlgmr.msra.gmra.mrb[64].mxu0 %v2425_v10 }
  0xa4   :  { %2232 = vmatmul.mubr.bf16.vlgmr.msra.gmra.mrb[64].mxu1 %v2426_v11  ;;  %2227 = vmatprep.mubr.bf16.mxu0 %v2427_v12 }
  0xa5   :  { %2235 = vmatprep.mubr.bf16.mxu1 %v2428_v13 }
  0xab   :  { %2228 = vmatmul.mubr.bf16.gmra.mrb[68].mxu0 %v2429_v14 }
  0xac   :  { %2236 = vmatmul.mubr.bf16.gmra.mrb[68].mxu1 %v2430_v15 }
  0xf6   :  { %v1951_v16 = vpop.f32.mrb[0].mxu0 }
  0xf7   :  { %v2015_v17 = vpop.f32.mrb[0].mxu1  ;;  %v1952_v19 = vpop.f32.mrb[1].mxu0 }
  0xf8   :  { %v1953_v20 = vadd.f32 %v1952_v19, %v1951_v16  ;;  %v2016_v21 = vpop.f32.mrb[1].mxu1  ;;  %v1954_v22 = vpop.f32.mrb[2].mxu0 }
  0xf9   :  { %v2017_v23 = vadd.f32 %v2016_v21, %v2015_v17  ;;  %v2018_v24 = vpop.f32.mrb[2].mxu1  ;;  %v1955_v25 = vpop.f32.mrb[3].mxu0 }
  0xfa   :  { %v1081_v26 = vadd.f32 %v1953_v20, %v2950_v18  ;;  %v1956_v27 = vadd.f32 %v1955_v25, %v1954_v22  ;;  %v2019_v28 = vpop.f32.mrb[3].mxu1 }
  0xfb   :  { %v2020_v29 = vadd.f32 %v2019_v28, %v2018_v24 }
  0xfc   :  { %v2953_v30 = vadd.f32 %v2017_v23, %v1081_v26  ;;  %v1084_v31 = vadd.f32 %v1956_v27, %v2950_v18 }
  0xfe   :  { %v2956_v32 = vadd.f32 %v2020_v29, %v1084_v31  ;;  %v1957_v33 = vpop.f32.mrb[4].mxu0 }
  0xff   :  { %v2021_v34 = vpop.f32.mrb[4].mxu1  ;;  %v1958_v35 = vpop.f32.mrb[5].mxu0 }
 0x100   :  { %v1959_v36 = vadd.f32 %v1958_v35, %v1957_v33  ;;  %v2022_v37 = vpop.f32.mrb[5].mxu1  ;;  %v1960_v38 = vpop.f32.mrb[6].mxu0 }
 0x101   :  { %v2023_v39 = vadd.f32 %v2022_v37, %v2021_v34  ;;  %v2024_v40 = vpop.f32.mrb[6].mxu1  ;;  %v1961_v41 = vpop.f32.mrb[7].mxu0 }
 0x102   :  { %v1089_v42 = vadd.f32 %v1959_v36, %v2950_v18  ;;  %v1962_v43 = vadd.f32 %v1961_v41, %v1960_v38  ;;  %v2025_v44 = vpop.f32.mrb[7].mxu1 }
 0x103   :  { %v2026_v45 = vadd.f32 %v2025_v44, %v2024_v40 }
 0x104   :  { %v2959_v46 = vadd.f32 %v2023_v39, %v1089_v42  ;;  %v1092_v47 = vadd.f32 %v1962_v43, %v2950_v18 }
 0x106   :  { %v2962_v48 = vadd.f32 %v2026_v45, %v1092_v47  ;;  %v1963_v49 = vpop.f32.mrb[8].mxu0 }
 0x107   :  { %v2027_v50 = vpop.f32.mrb[8].mxu1  ;;  %v1964_v51 = vpop.f32.mrb[9].mxu0 }
 0x108   :  { %v1965_v52 = vadd.f32 %v1964_v51, %v1963_v49  ;;  %v2028_v53 = vpop.f32.mrb[9].mxu1  ;;  %v1966_v54 = vpop.f32.mrb[10].mxu0 }
 0x109   :  { %v2029_v55 = vadd.f32 %v2028_v53, %v2027_v50  ;;  %v2030_v56 = vpop.f32.mrb[10].mxu1  ;;  %v1967_v57 = vpop.f32.mrb[11].mxu0 }
 0x10a   :  { %v1097_v58 = vadd.f32 %v1965_v52, %v2950_v18  ;;  %v1968_v59 = vadd.f32 %v1967_v57, %v1966_v54  ;;  %v2031_v60 = vpop.f32.mrb[11].mxu1 }
 0x10b   :  { %v2032_v61 = vadd.f32 %v2031_v60, %v2030_v56 }
 0x10c   :  { %v2965_v62 = vadd.f32 %v2029_v55, %v1097_v58  ;;  %v1100_v63 = vadd.f32 %v1968_v59, %v2950_v18 }
 0x10e   :  { %v2968_v0 = vadd.f32 %v2032_v61, %v1100_v63  ;;  %v1969_v1 = vpop.f32.mrb[12].mxu0 }
 0x10f   :  { %v2033_v2 = vpop.f32.mrb[12].mxu1  ;;  %v1970_v3 = vpop.f32.mrb[13].mxu0 }
 0x110   :  { %v1971_v4 = vadd.f32 %v1970_v3, %v1969_v1  ;;  %v2034_v5 = vpop.f32.mrb[13].mxu1  ;;  %v1972_v6 = vpop.f32.mrb[14].mxu0 }
 0x111   :  { %v2035_v7 = vadd.f32 %v2034_v5, %v2033_v2  ;;  %v2036_v8 = vpop.f32.mrb[14].mxu1  ;;  %v1973_v9 = vpop.f32.mrb[15].mxu0 }
 0x112   :  { %v1105_v10 = vadd.f32 %v1971_v4, %v2950_v18  ;;  %v1974_v11 = vadd.f32 %v1973_v9, %v1972_v6  ;;  %v2037_v12 = vpop.f32.mrb[15].mxu1 }
 0x113   :  { %v2038_v13 = vadd.f32 %v2037_v12, %v2036_v8 }
 0x114   :  { %v2971_v14 = vadd.f32 %v2035_v7, %v1105_v10  ;;  %v1108_v15 = vadd.f32 %v1974_v11, %v2950_v18 }
 0x116   :  { %v2974_v16 = vadd.f32 %v2038_v13, %v1108_v15  ;;  %v1975_v17 = vpop.f32.mrb[16].mxu0 }
 0x117   :  { %v2039_v19 = vpop.f32.mrb[16].mxu1  ;;  %v1976_v20 = vpop.f32.mrb[17].mxu0 }
 0x118   :  { %v1977_v21 = vadd.f32 %v1976_v20, %v1975_v17  ;;  %v2040_v22 = vpop.f32.mrb[17].mxu1  ;;  %v1978_v23 = vpop.f32.mrb[18].mxu0 }
 0x119   :  { %v2041_v24 = vadd.f32 %v2040_v22, %v2039_v19  ;;  %v2042_v25 = vpop.f32.mrb[18].mxu1  ;;  %v1979_v26 = vpop.f32.mrb[19].mxu0 }
 0x11a   :  { %v1113_v27 = vadd.f32 %v1977_v21, %v2950_v18  ;;  %v1980_v28 = vadd.f32 %v1979_v26, %v1978_v23  ;;  %v2043_v29 = vpop.f32.mrb[19].mxu1 }
 0x11b   :  { %v2044_v31 = vadd.f32 %v2043_v29, %v2042_v25 }
 0x11c   :  { %v2977_v33 = vadd.f32 %v2041_v24, %v1113_v27  ;;  %v1116_v34 = vadd.f32 %v1980_v28, %v2950_v18 }
 0x11e   :  { %v2980_v35 = vadd.f32 %v2044_v31, %v1116_v34  ;;  %v1981_v36 = vpop.f32.mrb[20].mxu0 }
 0x11f   :  { %v2045_v37 = vpop.f32.mrb[20].mxu1  ;;  %v1982_v38 = vpop.f32.mrb[21].mxu0 }
 0x120   :  { %v1983_v39 = vadd.f32 %v1982_v38, %v1981_v36  ;;  %v2046_v40 = vpop.f32.mrb[21].mxu1  ;;  %v1984_v41 = vpop.f32.mrb[22].mxu0 }
 0x121   :  { %v2047_v42 = vadd.f32 %v2046_v40, %v2045_v37  ;;  %v2048_v43 = vpop.f32.mrb[22].mxu1  ;;  %v1985_v44 = vpop.f32.mrb[23].mxu0 }
 0x122   :  { %v1121_v45 = vadd.f32 %v1983_v39, %v2950_v18  ;;  %v1986_v47 = vadd.f32 %v1985_v44, %v1984_v41  ;;  %v2049_v49 = vpop.f32.mrb[23].mxu1 }
 0x123   :  { %v2050_v50 = vadd.f32 %v2049_v49, %v2048_v43 }
 0x124   :  { %v2983_v51 = vadd.f32 %v2047_v42, %v1121_v45  ;;  %v1124_v52 = vadd.f32 %v1986_v47, %v2950_v18 }
 0x126   :  { %v2986_v53 = vadd.f32 %v2050_v50, %v1124_v52  ;;  %v1987_v54 = vpop.f32.mrb[24].mxu0 }
 0x127   :  { %v2051_v55 = vpop.f32.mrb[24].mxu1  ;;  %v1988_v56 = vpop.f32.mrb[25].mxu0 }
 0x128   :  { %v1989_v57 = vadd.f32 %v1988_v56, %v1987_v54  ;;  %v2052_v58 = vpop.f32.mrb[25].mxu1  ;;  %v1990_v59 = vpop.f32.mrb[26].mxu0 }
 0x129   :  { %v2053_v60 = vadd.f32 %v2052_v58, %v2051_v55  ;;  %v2054_v61 = vpop.f32.mrb[26].mxu1  ;;  %v1991_v63 = vpop.f32.mrb[27].mxu0 }
 0x12a   :  { %v1129_v1 = vadd.f32 %v1989_v57, %v2950_v18  ;;  %v1992_v2 = vadd.f32 %v1991_v63, %v1990_v59  ;;  %v2055_v3 = vpop.f32.mrb[27].mxu1 }
 0x12b   :  { %v2056_v4 = vadd.f32 %v2055_v3, %v2054_v61 }
 0x12c   :  { %v2989_v5 = vadd.f32 %v2053_v60, %v1129_v1  ;;  %v1132_v6 = vadd.f32 %v1992_v2, %v2950_v18 }
 0x12e   :  { %v2992_v7 = vadd.f32 %v2056_v4, %v1132_v6  ;;  %v1993_v8 = vpop.f32.mrb[28].mxu0 }
 0x12f   :  { %v2057_v9 = vpop.f32.mrb[28].mxu1  ;;  %v1994_v10 = vpop.f32.mrb[29].mxu0 }
 0x130   :  { %v1995_v11 = vadd.f32 %v1994_v10, %v1993_v8  ;;  %v2058_v12 = vpop.f32.mrb[29].mxu1  ;;  %v1996_v13 = vpop.f32.mrb[30].mxu0 }
 0x131   :  { %v2059_v15 = vadd.f32 %v2058_v12, %v2057_v9  ;;  %v2060_v17 = vpop.f32.mrb[30].mxu1  ;;  %v1997_v19 = vpop.f32.mrb[31].mxu0 }
 0x132   :  { %v1137_v20 = vadd.f32 %v1995_v11, %v2950_v18  ;;  %v1998_v21 = vadd.f32 %v1997_v19, %v1996_v13  ;;  %v2061_v22 = vpop.f32.mrb[31].mxu1 }
 0x133   :  { %v2062_v23 = vadd.f32 %v2061_v22, %v2060_v17 }
 0x134   :  { %v2995_v24 = vadd.f32 %v2059_v15, %v1137_v20  ;;  %v1140_v25 = vadd.f32 %v1998_v21, %v2950_v18 }
 0x136   :  { %v2998_v26 = vadd.f32 %v2062_v23, %v1140_v25  ;;  %v2079_v27 = vpop.f32.mrb[32].mxu0 }
 0x137   :  { %v2143_v28 = vpop.f32.mrb[32].mxu1  ;;  %v2080_v29 = vpop.f32.mrb[33].mxu0 }
 0x138   :  { %v2081_v31 = vadd.f32 %v2080_v29, %v2079_v27  ;;  %v2144_v34 = vpop.f32.mrb[33].mxu1  ;;  %v2082_v36 = vpop.f32.mrb[34].mxu0 }
 0x139   :  { %v2145_v37 = vadd.f32 %v2144_v34, %v2143_v28  ;;  %v2146_v38 = vpop.f32.mrb[34].mxu1  ;;  %v2083_v39 = vpop.f32.mrb[35].mxu0 }
 0x13a   :  { %v1275_v40 = vadd.f32 %v2081_v31, %v2953_v30  ;;  %v2084_v41 = vadd.f32 %v2083_v39, %v2082_v36  ;;  %v2147_v42 = vpop.f32.mrb[35].mxu1 }
 0x13b   :  { %v2148_v43 = vadd.f32 %v2147_v42, %v2146_v38 }
 0x13c   :  { %v1278_v44 = vadd.f32 %v2084_v41, %v2956_v32  ;;  %v3002_v45 = vadd.f32 %v2145_v37, %v1275_v40 }
 0x13e   :  { %v2085_v18 = vpop.f32.mrb[36].mxu0  ;;  %v3004_v47 = vadd.f32 %v2148_v43, %v1278_v44 }
 0x13f   :  { %v2149_v49 = vpop.f32.mrb[36].mxu1  ;;  %v2086_v50 = vpop.f32.mrb[37].mxu0 }
 0x140   :  { %v2087_v52 = vadd.f32 %v2086_v50, %v2085_v18  ;;  %v2150_v54 = vpop.f32.mrb[37].mxu1  ;;  %v2088_v55 = vpop.f32.mrb[38].mxu0 }
 0x141   :  { %v2151_v56 = vadd.f32 %v2150_v54, %v2149_v49  ;;  %v2152_v57 = vpop.f32.mrb[38].mxu1  ;;  %v2089_v58 = vpop.f32.mrb[39].mxu0 }
 0x142   :  { %v1283_v30 = vadd.f32 %v2087_v52, %v2959_v46  ;;  %v2090_v59 = vadd.f32 %v2089_v58, %v2088_v55  ;;  %v2153_v60 = vpop.f32.mrb[39].mxu1 }
 0x143   :  { %v2154_v61 = vadd.f32 %v2153_v60, %v2152_v57 }
 0x144   :  { %v1286_v32 = vadd.f32 %v2090_v59, %v2962_v48  ;;  %v3008_v63 = vadd.f32 %v2151_v56, %v1283_v30 }
 0x146   :  { %v2091_v1 = vpop.f32.mrb[40].mxu0  ;;  %v3010_v2 = vadd.f32 %v2154_v61, %v1286_v32 }
 0x147   :  { %v2155_v3 = vpop.f32.mrb[40].mxu1  ;;  %v2092_v4 = vpop.f32.mrb[41].mxu0 }
 0x148   :  { %v2093_v6 = vadd.f32 %v2092_v4, %v2091_v1  ;;  %v2156_v8 = vpop.f32.mrb[41].mxu1  ;;  %v2094_v9 = vpop.f32.mrb[42].mxu0 }
 0x149   :  { %v2157_v10 = vadd.f32 %v2156_v8, %v2155_v3  ;;  %v2158_v11 = vpop.f32.mrb[42].mxu1  ;;  %v2095_v12 = vpop.f32.mrb[43].mxu0 }
 0x14a   :  { %v1291_v46 = vadd.f32 %v2093_v6, %v2965_v62  ;;  %v2096_v13 = vadd.f32 %v2095_v12, %v2094_v9  ;;  %v2159_v15 = vpop.f32.mrb[43].mxu1 }
 0x14b   :  { %v2160_v17 = vadd.f32 %v2159_v15, %v2158_v11 }
 0x14c   :  { %v1294_v48 = vadd.f32 %v2096_v13, %v2968_v0  ;;  %v3014_v19 = vadd.f32 %v2157_v10, %v1291_v46 }
 0x14e   :  { %v2097_v20 = vpop.f32.mrb[44].mxu0  ;;  %v3016_v21 = vadd.f32 %v2160_v17, %v1294_v48 }
 0x14f   :  { %v2161_v22 = vpop.f32.mrb[44].mxu1  ;;  %v2098_v23 = vpop.f32.mrb[45].mxu0 }
 0x150   :  { %v2099_v25 = vadd.f32 %v2098_v23, %v2097_v20  ;;  %v2162_v27 = vpop.f32.mrb[45].mxu1  ;;  %v2100_v28 = vpop.f32.mrb[46].mxu0 }
 0x151   :  { %v2163_v29 = vadd.f32 %v2162_v27, %v2161_v22  ;;  %v2164_v31 = vpop.f32.mrb[46].mxu1  ;;  %v2101_v34 = vpop.f32.mrb[47].mxu0 }
 0x152   :  { %v1299_v62 = vadd.f32 %v2099_v25, %v2971_v14  ;;  %v2102_v36 = vadd.f32 %v2101_v34, %v2100_v28  ;;  %v2165_v37 = vpop.f32.mrb[47].mxu1 }
 0x153   :  { %v2166_v38 = vadd.f32 %v2165_v37, %v2164_v31 }
 0x154   :  { %v1302_v0 = vadd.f32 %v2102_v36, %v2974_v16  ;;  %v3020_v39 = vadd.f32 %v2163_v29, %v1299_v62 }
 0x156   :  { %v2103_v40 = vpop.f32.mrb[48].mxu0  ;;  %v3022_v41 = vadd.f32 %v2166_v38, %v1302_v0 }
 0x157   :  { %v2167_v42 = vpop.f32.mrb[48].mxu1  ;;  %v2104_v43 = vpop.f32.mrb[49].mxu0 }
 0x158   :  { %v2105_v44 = vadd.f32 %v2104_v43, %v2103_v40  ;;  %v2168_v18 = vpop.f32.mrb[49].mxu1  ;;  %v2106_v49 = vpop.f32.mrb[50].mxu0 }
 0x159   :  { %v2169_v50 = vadd.f32 %v2168_v18, %v2167_v42  ;;  %v2170_v52 = vpop.f32.mrb[50].mxu1  ;;  %v2107_v54 = vpop.f32.mrb[51].mxu0 }
 0x15a   :  { %v1307_v14 = vadd.f32 %v2105_v44, %v2977_v33  ;;  %v2108_v55 = vadd.f32 %v2107_v54, %v2106_v49  ;;  %v2171_v56 = vpop.f32.mrb[51].mxu1 }
 0x15b   :  { %v2172_v57 = vadd.f32 %v2171_v56, %v2170_v52 }
 0x15c   :  { %v1310_v16 = vadd.f32 %v2108_v55, %v2980_v35  ;;  %v1404_v58 = vadd.f32 %v2169_v50, %v1307_v14 }
 0x15e   :  { %v2109_v30 = vpop.f32.mrb[52].mxu0  ;;  %v3026_v59 = vadd.f32 %v2172_v57, %v1310_v16 }
 0x15f   :  { %v2173_v60 = vpop.f32.mrb[52].mxu1  ;;  %v2110_v61 = vpop.f32.mrb[53].mxu0 }
 0x160   :  { %v2111_v32 = vadd.f32 %v2110_v61, %v2109_v30  ;;  %v2174_v1 = vpop.f32.mrb[53].mxu1  ;;  %v2112_v3 = vpop.f32.mrb[54].mxu0 }
 0x161   :  { %v2175_v4 = vadd.f32 %v2174_v1, %v2173_v60  ;;  %v2176_v6 = vpop.f32.mrb[54].mxu1  ;;  %v2113_v8 = vpop.f32.mrb[55].mxu0 }
 0x162   :  { %v1315_v9 = vadd.f32 %v2111_v32, %v2983_v51  ;;  %v2114_v33 = vadd.f32 %v2113_v8, %v2112_v3  ;;  %v2177_v10 = vpop.f32.mrb[55].mxu1 }
 0x163   :  { %v2178_v11 = vadd.f32 %v2177_v10, %v2176_v6 }
 0x164   :  { %v1318_v12 = vadd.f32 %v2114_v33, %v2986_v53  ;;  %v1412_v35 = vadd.f32 %v2175_v4, %v1315_v9 }
 0x166   :  { %v2115_v46 = vpop.f32.mrb[56].mxu0  ;;  %v1415_v13 = vadd.f32 %v2178_v11, %v1318_v12 }
 0x167   :  { %v2179_v15 = vpop.f32.mrb[56].mxu1  ;;  %v2116_v17 = vpop.f32.mrb[57].mxu0 }
 0x168   :  { %v2117_v48 = vadd.f32 %v2116_v17, %v2115_v46  ;;  %v2180_v20 = vpop.f32.mrb[57].mxu1  ;;  %v2118_v22 = vpop.f32.mrb[58].mxu0 }
 0x169   :  { %v2181_v23 = vadd.f32 %v2180_v20, %v2179_v15  ;;  %v2182_v25 = vpop.f32.mrb[58].mxu1  ;;  %v2119_v27 = vpop.f32.mrb[59].mxu0 }
 0x16a   :  { %v1323_v28 = vadd.f32 %v2117_v48, %v2989_v5  ;;  %v2120_v29 = vadd.f32 %v2119_v27, %v2118_v22  ;;  %v2183_v51 = vpop.f32.mrb[59].mxu1 }
 0x16b   :  { %v2184_v31 = vadd.f32 %v2183_v51, %v2182_v25 }
 0x16c   :  { %v1326_v34 = vadd.f32 %v2120_v29, %v2992_v7  ;;  %v3032_v62 = vadd.f32 %v2181_v23, %v1323_v28 }
 0x16e   :  { %v2121_v53 = vpop.f32.mrb[60].mxu0  ;;  %v3034_v36 = vadd.f32 %v2184_v31, %v1326_v34 }
 0x16f   :  { %v2185_v37 = vpop.f32.mrb[60].mxu1  ;;  %v2122_v38 = vpop.f32.mrb[61].mxu0 }
 0x170   :  { %v2123_v0 = vadd.f32 %v2122_v38, %v2121_v53  ;;  %v2186_v40 = vpop.f32.mrb[61].mxu1  ;;  %v2124_v42 = vpop.f32.mrb[62].mxu0 }
 0x171   :  { %v2187_v43 = vadd.f32 %v2186_v40, %v2185_v37  ;;  %v2188_v44 = vpop.f32.mrb[62].mxu1  ;;  %v2125_v18 = vpop.f32.mrb[63].mxu0 }
 0x172   :  { %v1331_v5 = vadd.f32 %v2123_v0, %v2995_v24  ;;  %v2126_v49 = vadd.f32 %v2125_v18, %v2124_v42  ;;  %v2189_v50 = vpop.f32.mrb[63].mxu1 }
 0x173   :  { %v2190_v52 = vadd.f32 %v2189_v50, %v2188_v44 }
 0x174   :  { %v1334_v7 = vadd.f32 %v2126_v49, %v2998_v26  ;;  %v1428_v54 = vadd.f32 %v2187_v43, %v1331_v5 }
 0x176   :  { %v2225_v14 = vpop.f32.mrb[64].mxu0  ;;  %v1431_v55 = vadd.f32 %v2190_v52, %v1334_v7 }
 0x177   :  { %v3039_v56 = vadd.f32 %v2225_v14, %v3008_v63  ;;  %v2233_v57 = vpop.f32.mrb[64].mxu1  ;;  %v1468_v16 = vpop.f32.mrb[65].mxu0 }
 0x178   :  { %v3041_v30 = vadd.f32 %v2233_v57, %v1412_v35  ;;  %v3044_v60 = vadd.f32 %v1468_v16, %v3002_v45  ;;  %v1500_v61 = vpop.f32.mrb[65].mxu1  ;;  %v2226_v24 = vpop.f32.mrb[66].mxu0 }
 0x179   :  { %v1533_v32 = vsub.f32 0.0, %v3039_v56  ;;  %v3047_v1 = vadd.f32 %v1500_v61, %v1404_v58  ;;  %v3050_v26 = vadd.f32 %v2226_v24, %v3010_v2  ;;  %v2234_v3 = vpop.f32.mrb[66].mxu1  ;;  %v1471_v4 = vpop.f32.mrb[67].mxu0 }
 0x17a   :  { %v1541_v63 = vsub.f32 0.0, %v3041_v30  ;;  %v1531_v6 = vsub.f32 0.0, %v3044_v60  ;;  %v3054_v8 = vadd.f32 %v2234_v3, %v1415_v13  ;;  %v3057_v45 = vadd.f32 %v1471_v4, %v3004_v47  ;;  %v1503_v9 = vpop.f32.mrb[67].mxu1 }
 0x17b   :  { %v1551_v33 = vmul.f32 1.442695, %v1533_v32  ;;  %v1539_v10 = vsub.f32 0.0, %v3047_v1  ;;  %v1534_v58 = vsub.f32 0.0, %v3050_v26  ;;  %v3062_v2 = vadd.f32 %v1503_v9, %v3026_v59 }
 0x17c   :  { %v1567_v11 = vmul.f32 1.442695, %v1541_v63  ;;  %v1547_v12 = vmul.f32 1.442695, %v1531_v6  ;;  %v1542_v35 = vsub.f32 0.0, %v3054_v8  ;;  %v1532_v46 = vsub.f32 0.0, %v3057_v45 }
 0x17d   :  { %2431 = vpow2.f32 %v1551_v33  ;;  %v1563_v13 = vmul.f32 1.442695, %v1539_v10  ;;  %v1553_v15 = vmul.f32 1.442695, %v1534_v58  ;;  %v1540_v47 = vsub.f32 0.0, %v3062_v2 }
 0x17e   :  { %2433 = vpow2.f32 %v1567_v11  ;;  %v1569_v17 = vmul.f32 1.442695, %v1542_v35  ;;  %v2229_v48 = vpop.f32.mrb[68].mxu0  ;;  %v1549_v20 = vmul.f32 1.442695, %v1532_v46 }
 0x17f   :  { %2435 = vpow2.f32 %v1547_v12  ;;  %v3068_v22 = vadd.f32 %v2229_v48, %v3020_v39  ;;  %v2237_v59 = vpop.f32.mrb[68].mxu1  ;;  %v1484_v23 = vpop.f32.mrb[69].mxu0  ;;  %v1565_v25 = vmul.f32 1.442695, %v1540_v47 }
 0x180   :  { %2437 = vpow2.f32 %v1563_v13  ;;  %v3070_v27 = vadd.f32 %v2237_v59, %v1428_v54  ;;  %v3073_v28 = vadd.f32 %v1484_v23, %v3014_v19  ;;  %v1516_v29 = vpop.f32.mrb[69].mxu1  ;;  %v2230_v51 = vpop.f32.mrb[70].mxu0 }
 0x181   :  { %2439 = vpow2.f32 %v1553_v15  ;;  %v1537_v31 = vsub.f32 0.0, %v3068_v22  ;;  %v3077_v34 = vadd.f32 %v1516_v29, %v3032_v62  ;;  %v3080_v39 = vadd.f32 %v2230_v51, %v3022_v41  ;;  %v2238_v53 = vpop.f32.mrb[70].mxu1  ;;  %v1487_v37 = vpop.f32.mrb[71].mxu0 }
 0x182   :  { %2441 = vpow2.f32 %v1569_v17  ;;  %v1545_v38 = vsub.f32 0.0, %v3070_v27  ;;  %v1535_v0 = vsub.f32 0.0, %v3073_v28  ;;  %v3084_v19 = vadd.f32 %v2238_v53, %v1431_v55  ;;  %v1519_v40 = vpop.f32.mrb[71].mxu1 }
 0x183   :  { %2443 = vpow2.f32 %v1549_v20  ;;  %v1559_v42 = vmul.f32 1.442695, %v1537_v31  ;;  %v1538_v43 = vsub.f32 0.0, %v3080_v39  ;;  %v3088_v18 = vadd.f32 %v1487_v37, %v3016_v21 }
 0x184   :  { %2445 = vpow2.f32 %v1565_v25  ;;  %v1575_v62 = vmul.f32 1.442695, %v1545_v38  ;;  %v1555_v44 = vmul.f32 1.442695, %v1535_v0  ;;  %v3091_v5 = vadd.f32 %v1519_v40, %v3034_v36 }
 0x185   :  { %2447 = vpow2.f32 %v1559_v42  ;;  %v1561_v41 = vmul.f32 1.442695, %v1538_v43  ;;  %v1543_v57 = vsub.f32 0.0, %v3077_v34  ;;  %v1546_v33 = vsub.f32 0.0, %v3084_v19 }
 0x186   :  { %2449 = vpow2.f32 %v1575_v62  ;;  %v1536_v58 = vsub.f32 0.0, %v3088_v18  ;;  %v1544_v12 = vsub.f32 0.0, %v3091_v5 }
 0x187   :  { %v2432_v49 = vpop.eup %2431  ;;  %2451 = vpow2.f32 %v1555_v44  ;;  %v1571_v63 = vmul.f32 1.442695, %v1543_v57  ;;  %v1577_v13 = vmul.f32 1.442695, %v1546_v33 }
 0x188   :  { %v2434_v50 = vpop.eup %2433  ;;  %v1581_v52 = vadd.f32 1.0, %v2432_v49  ;;  %2453 = vpow2.f32 %v1561_v41  ;;  %v1557_v17 = vmul.f32 1.442695, %v1536_v58  ;;  %v1573_v20 = vmul.f32 1.442695, %v1544_v12 }
 0x189   :  { %v2436_v7 = vpop.eup %2435  ;;  %v1589_v54 = vadd.f32 1.0, %v2434_v50 }
 0x18a   :  { %v2438_v14 = vpop.eup %2437  ;;  %2455 = vrcp.f32 %v1581_v52  ;;  %v1579_v55 = vadd.f32 1.0, %v2436_v7 }
 0x18b   :  { %v2440_v16 = vpop.eup %2439  ;;  %2457 = vrcp.f32 %v1589_v54  ;;  %v1587_v21 = vadd.f32 1.0, %v2438_v14 }
 0x18c   :  { %v2442_v61 = vpop.eup %2441  ;;  %2459 = vrcp.f32 %v1579_v55  ;;  %v1582_v36 = vadd.f32 1.0, %v2440_v16 }
 0x18d   :  { %v2444_v24 = vpop.eup %2443  ;;  %2461 = vrcp.f32 %v1587_v21  ;;  %v1590_v32 = vadd.f32 1.0, %v2442_v61 }
 0x18e   :  { %v2446_v3 = vpop.eup %2445  ;;  %2463 = vrcp.f32 %v1582_v36  ;;  %v1580_v4 = vadd.f32 1.0, %v2444_v24 }
 0x18f   :  { %v2448_v6 = vpop.eup %2447  ;;  %2465 = vrcp.f32 %v1590_v32  ;;  %v1588_v9 = vadd.f32 1.0, %v2446_v3 }
 0x190   :  { %2467 = vrcp.f32 %v1580_v4  ;;  %v1585_v10 = vadd.f32 1.0, %v2448_v6  ;;  %v2450_v11 = vpop.eup %2449 }
 0x191   :  { %2469 = vrcp.f32 %v1588_v9  ;;  %v2452_v35 = vpop.eup %2451 }
 0x192   :  { %2471 = vpow2.f32 %v1571_v63  ;;  %v2454_v46 = vpop.eup %2453 }
 0x193   :  { %2473 = vrcp.f32 %v1585_v10  ;;  %v1586_v47 = vadd.f32 1.0, %v2454_v46 }
 0x194   :  { %v2456_v15 = vpop.eup %2455 }
 0x195   :  { %v2458_v48 = vpop.eup %2457  ;;  %2475 = vrcp.f32 %v1586_v47  ;;  %v1613_v51 = vmul.f32 %v2456_v15, %v3039_v56 }
 0x196   :  { %v2460_v59 = vpop.eup %2459  ;;  %2477 = vpow2.f32 %v1577_v13  ;;  %v1621_v37 = vmul.f32 %v2458_v48, %v3041_v30  ;;  %v1593_v30 = vadd.f32 1.0, %v2450_v11 }
 0x197   :  { %v2462_v23 = vpop.eup %2461  ;;  %2479 = vpow2.f32 %v1557_v17  ;;  %v1611_v40 = vmul.f32 %v2460_v59, %v3044_v60 }
 0x198   :  { %v2464_v25 = vpop.eup %2463  ;;  %2481 = vpow2.f32 %v1573_v20  ;;  %v1619_v44 = vmul.f32 %v2462_v23, %v3047_v1 }
 0x199   :  { %v2466_v29 = vpop.eup %2465  ;;  %v1614_v31 = vmul.f32 %v2464_v25, %v3050_v26  ;;  %2483 = vrcp.f32 %v1593_v30 }
 0x19a   :  { %v2468_v53 = vpop.eup %2467  ;;  %v1622_v38 = vmul.f32 %v2466_v29, %v3054_v8  ;;  %v1583_v8 = vadd.f32 1.0, %v2452_v35 }
 0x19b   :  { %v2470_v0 = vpop.eup %2469  ;;  %v1896_v42 = vpack.c.bf16 %v1614_v31, %v1613_v51  ;;  %v1612_v43 = vmul.f32 %v2468_v53, %v3057_v45 }
 0x19c   :  { %v2472_v62 = vpop.eup %2471  ;;  %v1916_v41 = vpack.c.bf16 %v1622_v38, %v1621_v37  ;;  %v1620_v56 = vmul.f32 %v2470_v0, %v3062_v2  ;;  %2485 = vrcp.f32 %v1583_v8 }
 0x19d   :  { %1928 = vst [vmem:[%s3140_s3 + $0x8] sm:$0xff] %v1896_v42   ;;  %v1891_v26 = vpack.c.bf16 %v1612_v43, %v1611_v40  ;;  %v2474_v49 = vpop.eup %2473  ;;  %v1591_v1 = vadd.f32 1.0, %v2472_v62 }
 0x19e   :  { %1932 = vst [vmem:[%s3140_s3 + $0x28] sm:$0xff] %v1916_v41   ;;  %v1911_v60 = vpack.c.bf16 %v1620_v56, %v1619_v44  ;;  %v1617_v50 = vmul.f32 %v2474_v49, %v3068_v22 }
 0x19f   :  { %1892 = vst [vmem:[%s3140_s3] sm:$0xff] %v1891_v26   ;;  %v2476_v45 = vpop.eup %2475  ;;  %2487 = vrcp.f32 %v1591_v1 }
 0x1a0   :  { %1931 = vst [vmem:[%s3140_s3 + $0x20] sm:$0xff] %v1911_v60   ;;  %v2478_v2 = vpop.eup %2477  ;;  %v1618_v52 = vmul.f32 %v2476_v45, %v3080_v39 }
 0x1a1   :  { %v2480_v7 = vpop.eup %2479  ;;  %v1594_v54 = vadd.f32 1.0, %v2478_v2 }
 0x1a2   :  { %v2482_v14 = vpop.eup %2481  ;;  %v1906_v55 = vpack.c.bf16 %v1618_v52, %v1617_v50  ;;  %v1584_v57 = vadd.f32 1.0, %v2480_v7 }
 0x1a3   :  { %2489 = vrcp.f32 %v1594_v54  ;;  %v1592_v16 = vadd.f32 1.0, %v2482_v14  ;;  %v2484_v21 = vpop.eup %2483 }
 0x1a4   :  { %1930 = vst [vmem:[%s3140_s3 + $0x18] sm:$0xff] %v1906_v55   ;;  %2491 = vrcp.f32 %v1584_v57  ;;  %v1625_v24 = vmul.f32 %v2484_v21, %v3070_v27 }
 0x1a5   :  { %2493 = vrcp.f32 %v1592_v16 }
 0x1a6   :  { %v2486_v22 = vpop.eup %2485 }
 0x1a7   :  { %v1615_v4 = vmul.f32 %v2486_v22, %v3073_v28 }
 0x1a9   :  { %v2488_v61 = vpop.eup %2487 }
 0x1aa   :  { %v1623_v6 = vmul.f32 %v2488_v61, %v3077_v34 }
 0x1ad   :  { %v2490_v36 = vpop.eup %2489 }
 0x1ae   :  { %v2492_v39 = vpop.eup %2491  ;;  %v1626_v32 = vmul.f32 %v2490_v36, %v3084_v19 }
 0x1af   :  { %v2494_v3 = vpop.eup %2493  ;;  %v1616_v63 = vmul.f32 %v2492_v39, %v3088_v18 }
 0x1b0   :  { %v1926_v9 = vpack.c.bf16 %v1626_v32, %v1625_v24  ;;  %v1624_v33 = vmul.f32 %v2494_v3, %v3091_v5 }
 0x1b1   :  { %v1901_v10 = vpack.c.bf16 %v1616_v63, %v1615_v4 }
 0x1b2   :  { %1934 = vst [vmem:[%s3140_s3 + $0x38] sm:$0xff] %v1926_v9   ;;  %v1921_v58 = vpack.c.bf16 %v1624_v33, %v1623_v6 }
 0x1b3   :  { %1929 = vst [vmem:[%s3140_s3 + $0x10] sm:$0xff] %v1901_v10  }
 0x1b4   :  { %1933 = vst [vmem:[%s3140_s3 + $0x30] sm:$0xff] %v1921_v58  }

// kernel: _lambda_.20
= control target key start
LH: loop header
LB: loop body
LE: loop exit
PB: predicated region body
PF: predicated region fallthrough
CT: control target
= control target key end

     0   :  { %s1668_s1 = inlined_call_operand.vmem [shape: bf16[1152,128], index: 1, kind: input, shape index: {}]   ;;  %s1669_s0 = inlined_call_operand.vmem [shape: bf16[32,1152], index: 0, kind: input, shape index: {}]   ;;  %s1670_s2 = inlined_call_operand.vmem [shape: f32[1,128], index: 2, kind: input, shape index: {}]   ;;  %s1671_s3 = inlined_call_operand.vmem [shape: bf16[32,128], index: 3, kind: output, shape index: {}]  }
   0x1   :  { %v1255_v0 = vld [vmem:[%s1668_s1 + $0x40] sm:$0xff]   ;;  %v1259_v4 = vld [vmem:[%s1668_s1 + $0x48] sm:$0xff]   ;;  %v1263_v8 = vld [vmem:[%s1668_s1 + $0x50] sm:$0xff]  }
   0x2   :  { %v1256_v1 = vld [vmem:[%s1668_s1] sm:$0xff]   ;;  %1113 = vmatprep.subr.bf16.mxu0 %v1255_v0  ;;  %v1260_v5 = vld [vmem:[%s1668_s1 + $0x8] sm:$0xff]   ;;  %v1264_v9 = vld [vmem:[%s1668_s1 + $0x10] sm:$0xff]  }
   0x3   :  { %v1257_v2 = vld [vmem:[%s1668_s1 + $0xc0] sm:$0xff]   ;;  %1114 = vmatpush3.bf16.msra.mxu0 %v1256_v1  ;;  %v1261_v6 = vld [vmem:[%s1668_s1 + $0xc8] sm:$0xff]   ;;  %v1265_v10 = vld [vmem:[%s1668_s1 + $0xd0] sm:$0xff]  }
   0x4   :  { %v1258_v3 = vld [vmem:[%s1668_s1 + $0x80] sm:$0xff]   ;;  %1141 = vmatprep.subr.bf16.mxu1 %v1257_v2  ;;  %1115 = vmatprep.subr.bf16.mxu0 %v1259_v4  ;;  %v1262_v7 = vld [vmem:[%s1668_s1 + $0x88] sm:$0xff]   ;;  %v1266_v11 = vld [vmem:[%s1668_s1 + $0x90] sm:$0xff]  }
   0x5   :  { %1142 = vmatpush3.bf16.msra.mxu1 %v1258_v3  ;;  %v1267_v12 = vld [vmem:[%s1668_s1 + $0x58] sm:$0xff]   ;;  %v1271_v16 = vld [vmem:[%s1668_s1 + $0x60] sm:$0xff]   ;;  %v1275_v20 = vld [vmem:[%s1668_s1 + $0x68] sm:$0xff]  }
   0x6   :  { %1143 = vmatprep.subr.bf16.mxu1 %v1261_v6  ;;  %v1268_v13 = vld [vmem:[%s1668_s1 + $0x18] sm:$0xff]   ;;  %v1272_v17 = vld [vmem:[%s1668_s1 + $0x20] sm:$0xff]   ;;  %v1276_v21 = vld [vmem:[%s1668_s1 + $0x28] sm:$0xff]  }
   0x7   :  { %1116 = vmatpush3.bf16.msra.mxu0 %v1260_v5  ;;  %v1269_v14 = vld [vmem:[%s1668_s1 + $0xd8] sm:$0xff]   ;;  %v1273_v18 = vld [vmem:[%s1668_s1 + $0xe0] sm:$0xff]   ;;  %v1277_v22 = vld [vmem:[%s1668_s1 + $0xe8] sm:$0xff]  }
   0x8   :  { %1117 = vmatprep.subr.bf16.mxu0 %v1263_v8  ;;  %v1270_v15 = vld [vmem:[%s1668_s1 + $0x98] sm:$0xff]   ;;  %v1274_v19 = vld [vmem:[%s1668_s1 + $0xa0] sm:$0xff]   ;;  %v1278_v23 = vld [vmem:[%s1668_s1 + $0xa8] sm:$0xff]  }
   0x9   :  { %1144 = vmatpush3.bf16.msra.mxu1 %v1262_v7  ;;  %v1279_v24 = vld [vmem:[%s1668_s1 + $0x70] sm:$0xff]   ;;  %v1283_v28 = vld [vmem:[%s1668_s1 + $0x78] sm:$0xff]   ;;  %v1286_v31 = vld [vmem:[%s1669_s0] ss:$36 sps:$4 sm:$0xff]  }
   0xa   :  { %1145 = vmatprep.subr.bf16.mxu1 %v1265_v10  ;;  %v1280_v25 = vld [vmem:[%s1668_s1 + $0x30] sm:$0xff]   ;;  %v1284_v29 = vld [vmem:[%s1668_s1 + $0x38] sm:$0xff]   ;;  %v1288_v32 = vld [vmem:[%s1669_s0 + $0x4] ss:$36 sps:$4 sm:$0xff]  }
   0xb   :  { %1118 = vmatpush3.bf16.msra.mxu0 %v1264_v9  ;;  %v1281_v26 = vld [vmem:[%s1668_s1 + $0xf0] sm:$0xff]   ;;  %v1285_v30 = vld [vmem:[%s1668_s1 + $0xf8] sm:$0xff]   ;;  %742 = vmatprep.mubr.bf16.mxu0 %v1288_v32  ;;  %v1290_v34 = vld [vmem:[%s1668_s1 + $0x140] sm:$0xff]  }
   0xc   :  { %1119 = vmatprep.subr.bf16.mxu0 %v1267_v12  ;;  %v1282_v27 = vld [vmem:[%s1668_s1 + $0xb0] sm:$0xff]   ;;  %v1289_v33 = vld [vmem:[%s1668_s1 + $0xb8] sm:$0xff]   ;;  %v1291_v35 = vld [vmem:[%s1669_s0 + $0x8] ss:$36 sps:$4 sm:$0xff]  }
   0xd   :  { %1146 = vmatpush3.bf16.msra.mxu1 %v1266_v11  ;;  %v1293_v36 = vld [vmem:[%s1669_s0 + $0xc] ss:$36 sps:$4 sm:$0xff]   ;;  %v1294_v37 = vld [vmem:[%s1668_s1 + $0x100] sm:$0xff]   ;;  %v1305_v48 = vld [vmem:[%s1668_s1 + $0x158] sm:$0xff]  }
   0xe   :  { %1147 = vmatprep.subr.bf16.mxu1 %v1269_v14  ;;  %791 = vmatprep.mubr.bf16.mxu1 %v1293_v36  ;;  %v1295_v38 = vld [vmem:[%s1668_s1 + $0x1c0] sm:$0xff]   ;;  %v1297_v40 = vld [vmem:[%s1668_s1 + $0x148] sm:$0xff]   ;;  %v1301_v44 = vld [vmem:[%s1668_s1 + $0x150] sm:$0xff]  }
   0xf   :  { %1120 = vmatpush3.bf16.msra.mxu0 %v1268_v13  ;;  %v1296_v39 = vld [vmem:[%s1668_s1 + $0x180] sm:$0xff]   ;;  %v1298_v41 = vld [vmem:[%s1668_s1 + $0x108] sm:$0xff]   ;;  %v1302_v45 = vld [vmem:[%s1668_s1 + $0x110] sm:$0xff]  }
  0x10   :  { %1121 = vmatprep.subr.bf16.mxu0 %v1271_v16  ;;  %v1299_v42 = vld [vmem:[%s1668_s1 + $0x1c8] sm:$0xff]   ;;  %v1303_v46 = vld [vmem:[%s1668_s1 + $0x1d0] sm:$0xff]   ;;  %v1306_v49 = vld [vmem:[%s1668_s1 + $0x118] sm:$0xff]  }
  0x11   :  { %1148 = vmatpush3.bf16.msra.mxu1 %v1270_v15  ;;  %v1300_v43 = vld [vmem:[%s1668_s1 + $0x188] sm:$0xff]   ;;  %v1304_v47 = vld [vmem:[%s1668_s1 + $0x190] sm:$0xff]   ;;  %v1307_v50 = vld [vmem:[%s1668_s1 + $0x1d8] sm:$0xff]  }
  0x12   :  { %1149 = vmatprep.subr.bf16.mxu1 %v1273_v18  ;;  %v1308_v51 = vld [vmem:[%s1668_s1 + $0x198] sm:$0xff]   ;;  %v1309_v52 = vld [vmem:[%s1668_s1 + $0x160] sm:$0xff]   ;;  %v1313_v56 = vld [vmem:[%s1668_s1 + $0x168] sm:$0xff]  }
  0x13   :  { %1122 = vmatpush3.bf16.msra.mxu0 %v1272_v17  ;;  %v1310_v53 = vld [vmem:[%s1668_s1 + $0x120] sm:$0xff]   ;;  %v1314_v57 = vld [vmem:[%s1669_s0 + $0x4c] ss:$36 sps:$4 sm:$0xff]   ;;  %v1319_v61 = vld [vmem:[%s1669_s0 + $0x54] ss:$36 sps:$4 sm:$0xff]  }
  0x14   :  { %1123 = vmatprep.subr.bf16.mxu0 %v1275_v20  ;;  %v1311_v54 = vld [vmem:[%s1668_s1 + $0x1e0] sm:$0xff]   ;;  %v1316_v58 = vld [vmem:[%s1668_s1 + $0x128] sm:$0xff]   ;;  %v1322_v63 = vld [vmem:[%s1669_s0 + $0x50] ss:$36 sps:$4 sm:$0xff]  }
  0x15   :  { %1150 = vmatpush3.bf16.msra.mxu1 %v1274_v19  ;;  %v1312_v55 = vld [vmem:[%s1668_s1 + $0x1a0] sm:$0xff]   ;;  %v1317_v59 = vld [vmem:[%s1669_s0 + $0x48] ss:$36 sps:$4 sm:$0xff]   ;;  %v1323_v0 = vld [vmem:[%s1668_s1 + $0x170] sm:$0xff]  }
  0x16   :  { %1151 = vmatprep.subr.bf16.mxu1 %v1277_v22  ;;  %v1318_v60 = vld [vmem:[%s1668_s1 + $0x1e8] sm:$0xff]   ;;  %v1324_v1 = vld [vmem:[%s1668_s1 + $0x130] sm:$0xff]   ;;  %v1327_v4 = vld [vmem:[%s1668_s1 + $0x178] sm:$0xff]  }
  0x17   :  { %1124 = vmatpush3.bf16.msra.mxu0 %v1276_v21  ;;  %v1321_v62 = vld [vmem:[%s1668_s1 + $0x1a8] sm:$0xff]   ;;  %v1325_v2 = vld [vmem:[%s1668_s1 + $0x1f0] sm:$0xff]   ;;  %v1328_v5 = vld [vmem:[%s1668_s1 + $0x138] sm:$0xff]  }
  0x18   :  { %1125 = vmatprep.subr.bf16.mxu0 %v1279_v24  ;;  %v1326_v3 = vld [vmem:[%s1668_s1 + $0x1b0] sm:$0xff]   ;;  %v1329_v6 = vld [vmem:[%s1668_s1 + $0x1f8] sm:$0xff]   ;;  %v1334_v10 = vld [vmem:[%s1668_s1 + $0x200] sm:$0xff]  }
  0x19   :  { %1152 = vmatpush3.bf16.msra.mxu1 %v1278_v23  ;;  %v1330_v7 = vld [vmem:[%s1669_s0 + $0x10] ss:$36 sps:$4 sm:$0xff]   ;;  %v1333_v9 = vld [vmem:[%s1668_s1 + $0x1b8] sm:$0xff]   ;;  %v1338_v13 = vld [vmem:[%s1668_s1 + $0x208] sm:$0xff]  }
  0x1a   :  { %1153 = vmatprep.subr.bf16.mxu1 %v1281_v26  ;;  %v1332_v8 = vld [vmem:[%s1669_s0 + $0x14] ss:$36 sps:$4 sm:$0xff]   ;;  %v1337_v12 = vld [vmem:[%s1669_s0 + $0x1c] ss:$36 sps:$4 sm:$0xff]   ;;  %v1343_v17 = vld [vmem:[%s1669_s0 + $0x64] ss:$36 sps:$4 sm:$0xff]  }
  0x1b   :  { %1126 = vmatpush3.bf16.msra.mxu0 %v1280_v25  ;;  %v1335_v11 = vld [vmem:[%s1669_s0 + $0x18] ss:$36 sps:$4 sm:$0xff]   ;;  %v1342_v16 = vld [vmem:[%s1668_s1 + $0x210] sm:$0xff]   ;;  %v1345_v18 = vld [vmem:[%s1669_s0 + $0x60] ss:$36 sps:$4 sm:$0xff]  }
  0x1c   :  { %1127 = vmatprep.subr.bf16.mxu0 %v1283_v28  ;;  %v1339_v14 = vld [vmem:[%s1669_s0 + $0x5c] ss:$36 sps:$4 sm:$0xff]   ;;  %v1348_v22 = vld [vmem:[%s1668_s1 + $0x228] sm:$0xff]   ;;  %v1349_v23 = vld [vmem:[%s1668_s1 + $0x230] sm:$0xff]  }
  0x1d   :  { %1154 = vmatpush3.bf16.msra.mxu1 %v1282_v27  ;;  %v1341_v15 = vld [vmem:[%s1669_s0 + $0x58] ss:$36 sps:$4 sm:$0xff]   ;;  %v1347_v20 = vld [vmem:[%s1668_s1 + $0x220] sm:$0xff]   ;;  %v1352_v25 = vld [vmem:[%s1669_s0 + $0x68] ss:$36 sps:$4 sm:$0xff]  }
  0x1e   :  { %1155 = vmatprep.subr.bf16.mxu1 %v1285_v30  ;;  %v1346_v19 = vld [vmem:[%s1668_s1 + $0x218] sm:$0xff]   ;;  %v1351_v21 = vld [vmem:[%s1669_s0 + $0x20] ss:$36 sps:$4 sm:$0xff]  }
  0x1f   :  { %1128 = vmatpush3.bf16.msra.mxu0 %v1284_v29  ;;  %v1350_v24 = vld [vmem:[%s1668_s1 + $0x238] sm:$0xff]   ;;  %v1003_v27 = vld [vmem:[%s1670_s2] ss:$0 sm:$0xff] }
  0x20   :  { %1169 = vmatprep.subr.bf16.mxu0 %v1290_v34 }
  0x21   :  { %1156 = vmatpush3.bf16.msra.mxu1 %v1289_v33 }
  0x22   :  { %743 = vmatmul.mubr.bf16.vlgmr.msra.gmra.mrb[0].mxu0 %v1286_v31  ;;  %1197 = vmatprep.subr.bf16.mxu1 %v1295_v38 }
  0x23   :  { %1170 = vmatpush3.bf16.msra.mxu0 %v1294_v37  ;;  %750 = vmatprep.mubr.bf16.mxu0 %v1314_v57 }
  0x24   :  { %792 = vmatmul.mubr.bf16.vlgmr.msra.gmra.mrb[0].mxu1 %v1291_v35  ;;  %1171 = vmatprep.subr.bf16.mxu0 %v1297_v40 }
  0x25   :  { %1198 = vmatpush3.bf16.msra.mxu1 %v1296_v39  ;;  %799 = vmatprep.mubr.bf16.mxu1 %v1319_v61 }
  0x26   :  { %1199 = vmatprep.subr.bf16.mxu1 %v1299_v42 }
  0x27   :  { %1172 = vmatpush3.bf16.msra.mxu0 %v1298_v41 }
  0x28   :  { %1173 = vmatprep.subr.bf16.mxu0 %v1301_v44 }
  0x29   :  { %1200 = vmatpush3.bf16.msra.mxu1 %v1300_v43 }
  0x2a   :  { %1201 = vmatprep.subr.bf16.mxu1 %v1303_v46  ;;  %751 = vmatmul.mubr.bf16.gmra.mrb[4].mxu0 %v1317_v59 }
  0x2b   :  { %1174 = vmatpush3.bf16.msra.mxu0 %v1302_v45  ;;  %840 = vmatprep.mubr.bf16.mxu0 %v1332_v8 }
  0x2c   :  { %1175 = vmatprep.subr.bf16.mxu0 %v1305_v48  ;;  %800 = vmatmul.mubr.bf16.gmra.mrb[4].mxu1 %v1322_v63 }
  0x2d   :  { %1202 = vmatpush3.bf16.msra.mxu1 %v1304_v47  ;;  %889 = vmatprep.mubr.bf16.mxu1 %v1337_v12 }
  0x2e   :  { %1203 = vmatprep.subr.bf16.mxu1 %v1307_v50 }
  0x2f   :  { %1176 = vmatpush3.bf16.msra.mxu0 %v1306_v49 }
  0x30   :  { %1177 = vmatprep.subr.bf16.mxu0 %v1309_v52 }
  0x31   :  { %1204 = vmatpush3.bf16.msra.mxu1 %v1308_v51 }
  0x32   :  { %1205 = vmatprep.subr.bf16.mxu1 %v1311_v54 }
  0x33   :  { %1178 = vmatpush3.bf16.msra.mxu0 %v1310_v53 }
  0x34   :  { %1179 = vmatprep.subr.bf16.mxu0 %v1313_v56 }
  0x35   :  { %1206 = vmatpush3.bf16.msra.mxu1 %v1312_v55 }
  0x36   :  { %1207 = vmatprep.subr.bf16.mxu1 %v1318_v60 }
  0x37   :  { %1180 = vmatpush3.bf16.msra.mxu0 %v1316_v58 }
  0x38   :  { %1181 = vmatprep.subr.bf16.mxu0 %v1323_v0 }
  0x39   :  { %1208 = vmatpush3.bf16.msra.mxu1 %v1321_v62 }
  0x3a   :  { %1209 = vmatprep.subr.bf16.mxu1 %v1325_v2 }
  0x3b   :  { %1182 = vmatpush3.bf16.msra.mxu0 %v1324_v1 }
  0x3c   :  { %1183 = vmatprep.subr.bf16.mxu0 %v1327_v4 }
  0x3d   :  { %1210 = vmatpush3.bf16.msra.mxu1 %v1326_v3 }
  0x3e   :  { %1211 = vmatprep.subr.bf16.mxu1 %v1329_v6 }
  0x3f   :  { %1184 = vmatpush3.bf16.msra.mxu0 %v1328_v5 }
  0x40   :  { %1235 = vmatprep.subr.bf16.mxu0 %v1334_v10 }
  0x41   :  { %1212 = vmatpush3.bf16.msra.mxu1 %v1333_v9 }
  0x42   :  { %841 = vmatmul.mubr.bf16.vlgmr.msra.gmra.mrb[8].mxu0 %v1330_v7 }
  0x43   :  { %1236 = vmatpush3.bf16.msra.mxu0 %v1334_v10  ;;  %848 = vmatprep.mubr.bf16.mxu0 %v1339_v14 }
  0x44   :  { %890 = vmatmul.mubr.bf16.vlgmr.msra.gmra.mrb[8].mxu1 %v1335_v11  ;;  %1237 = vmatprep.subr.bf16.mxu0 %v1338_v13 }
  0x45   :  { %897 = vmatprep.mubr.bf16.mxu1 %v1343_v17 }
  0x47   :  { %1238 = vmatpush3.bf16.msra.mxu0 %v1338_v13 }
  0x48   :  { %1239 = vmatprep.subr.bf16.mxu0 %v1342_v16 }
  0x4a   :  { %849 = vmatmul.mubr.bf16.gmra.mrb[12].mxu0 %v1341_v15 }
  0x4b   :  { %1240 = vmatpush3.bf16.msra.mxu0 %v1342_v16  ;;  %1251 = vmatprep.mubr.bf16.mxu0 %v1351_v21 }
  0x4c   :  { %898 = vmatmul.mubr.bf16.gmra.mrb[12].mxu1 %v1345_v18  ;;  %1241 = vmatprep.subr.bf16.mxu0 %v1346_v19 }
  0x4f   :  { %1242 = vmatpush3.bf16.msra.mxu0 %v1346_v19 }
  0x50   :  { %1243 = vmatprep.subr.bf16.mxu0 %v1347_v20 }
  0x53   :  { %1244 = vmatpush3.bf16.msra.mxu0 %v1347_v20 }
  0x54   :  { %1245 = vmatprep.subr.bf16.mxu0 %v1348_v22 }
  0x57   :  { %1246 = vmatpush3.bf16.msra.mxu0 %v1348_v22 }
  0x58   :  { %1247 = vmatprep.subr.bf16.mxu0 %v1349_v23 }
  0x5b   :  { %1248 = vmatpush3.bf16.msra.mxu0 %v1349_v23 }
  0x5c   :  { %1249 = vmatprep.subr.bf16.mxu0 %v1350_v24 }
  0x5f   :  { %1250 = vmatpush3.bf16.msra.mxu0 %v1350_v24 }
  0x62   :  { %1252 = vmatmul.mubr.bf16.vlgmr.msra.gmra.mrb[16].mxu0 %v1352_v25 }
  0xf5   :  { %v1129_v26 = vpop.f32.mrb[0].mxu0 }
  0xf6   :  { %v1130_v28 = vpop.f32.mrb[1].mxu0 }
  0xf7   :  { %v1131_v29 = vadd.f32 %v1130_v28, %v1129_v26  ;;  %v1132_v30 = vpop.f32.mrb[2].mxu0  ;;  %v1157_v31 = vpop.f32.mrb[0].mxu1 }
  0xf8   :  { %v1133_v32 = vpop.f32.mrb[3].mxu0  ;;  %v1158_v35 = vpop.f32.mrb[1].mxu1 }
  0xf9   :  { %v745_v33 = vadd.f32 %v1131_v29, %v1003_v27  ;;  %v1134_v34 = vadd.f32 %v1133_v32, %v1132_v30  ;;  %v1159_v36 = vadd.f32 %v1158_v35, %v1157_v31  ;;  %v1160_v37 = vpop.f32.mrb[2].mxu1 }
  0xfa   :  { %v1161_v39 = vpop.f32.mrb[3].mxu1 }
  0xfb   :  { %v748_v38 = vadd.f32 %v1134_v34, %v1003_v27  ;;  %v794_v40 = vadd.f32 %v1159_v36, %v745_v33  ;;  %v1162_v41 = vadd.f32 %v1161_v39, %v1160_v37 }
  0xfd   :  { %v797_v42 = vadd.f32 %v1162_v41, %v748_v38  ;;  %v1135_v43 = vpop.f32.mrb[4].mxu0 }
  0xfe   :  { %v1136_v44 = vpop.f32.mrb[5].mxu0 }
  0xff   :  { %v1137_v45 = vadd.f32 %v1136_v44, %v1135_v43  ;;  %v1138_v46 = vpop.f32.mrb[6].mxu0  ;;  %v1163_v47 = vpop.f32.mrb[4].mxu1 }
 0x100   :  { %v1139_v48 = vpop.f32.mrb[7].mxu0  ;;  %v1164_v51 = vpop.f32.mrb[5].mxu1 }
 0x101   :  { %v753_v49 = vadd.f32 %v1137_v45, %v1003_v27  ;;  %v1140_v50 = vadd.f32 %v1139_v48, %v1138_v46  ;;  %v1165_v52 = vadd.f32 %v1164_v51, %v1163_v47  ;;  %v1166_v53 = vpop.f32.mrb[6].mxu1 }
 0x102   :  { %v1167_v55 = vpop.f32.mrb[7].mxu1 }
 0x103   :  { %v756_v54 = vadd.f32 %v1140_v50, %v1003_v27  ;;  %v802_v56 = vadd.f32 %v1165_v52, %v753_v49  ;;  %v1168_v57 = vadd.f32 %v1167_v55, %v1166_v53 }
 0x105   :  { %v805_v58 = vadd.f32 %v1168_v57, %v756_v54 }
 0x115   :  { %v1185_v59 = vpop.f32.mrb[8].mxu0 }
 0x116   :  { %v1186_v60 = vpop.f32.mrb[9].mxu0 }
 0x117   :  { %v1187_v61 = vadd.f32 %v1186_v60, %v1185_v59  ;;  %v1188_v62 = vpop.f32.mrb[10].mxu0  ;;  %v1213_v63 = vpop.f32.mrb[8].mxu1 }
 0x118   :  { %v1189_v0 = vpop.f32.mrb[11].mxu0  ;;  %v1214_v3 = vpop.f32.mrb[9].mxu1 }
 0x119   :  { %v843_v1 = vadd.f32 %v1187_v61, %v794_v40  ;;  %v1190_v2 = vadd.f32 %v1189_v0, %v1188_v62  ;;  %v1215_v4 = vadd.f32 %v1214_v3, %v1213_v63  ;;  %v1216_v5 = vpop.f32.mrb[10].mxu1 }
 0x11a   :  { %v1217_v7 = vpop.f32.mrb[11].mxu1 }
 0x11b   :  { %v846_v6 = vadd.f32 %v1190_v2, %v797_v42  ;;  %v1218_v8 = vadd.f32 %v1217_v7, %v1216_v5  ;;  %v892_v9 = vadd.f32 %v1215_v4, %v843_v1 }
 0x11d   :  { %v1191_v10 = vpop.f32.mrb[12].mxu0  ;;  %v895_v12 = vadd.f32 %v1218_v8, %v846_v6 }
 0x11e   :  { %v1192_v11 = vpop.f32.mrb[13].mxu0 }
 0x11f   :  { %v1193_v13 = vadd.f32 %v1192_v11, %v1191_v10  ;;  %v1194_v14 = vpop.f32.mrb[14].mxu0  ;;  %v1219_v15 = vpop.f32.mrb[12].mxu1 }
 0x120   :  { %v1195_v16 = vpop.f32.mrb[15].mxu0  ;;  %v1220_v19 = vpop.f32.mrb[13].mxu1 }
 0x121   :  { %v851_v17 = vadd.f32 %v1193_v13, %v802_v56  ;;  %v1196_v18 = vadd.f32 %v1195_v16, %v1194_v14  ;;  %v1221_v20 = vadd.f32 %v1220_v19, %v1219_v15  ;;  %v1222_v21 = vpop.f32.mrb[14].mxu1 }
 0x122   :  { %v1223_v23 = vpop.f32.mrb[15].mxu1 }
 0x123   :  { %v854_v22 = vadd.f32 %v1196_v18, %v805_v58  ;;  %v1224_v24 = vadd.f32 %v1223_v23, %v1222_v21  ;;  %v900_v25 = vadd.f32 %v1221_v20, %v851_v17 }
 0x125   :  { %v903_v26 = vadd.f32 %v1224_v24, %v854_v22 }
 0x135   :  { %v1253_v27 = vpop.f32.mrb[16].mxu0 }
 0x136   :  { %v949_v28 = vadd.f32 %v1253_v27, %v900_v25  ;;  %v940_v29 = vpop.f32.mrb[17].mxu0 }
 0x137   :  { %v941_v30 = vadd.f32 %v940_v29, %v892_v9  ;;  %v1254_v31 = vpop.f32.mrb[18].mxu0 }
 0x138   :  { %v957_v32 = vsub.f32 0.0, %v949_v28  ;;  %v952_v33 = vadd.f32 %v1254_v31, %v903_v26  ;;  %v943_v34 = vpop.f32.mrb[19].mxu0 }
 0x139   :  { %v955_v35 = vsub.f32 0.0, %v941_v30  ;;  %v944_v36 = vadd.f32 %v943_v34, %v895_v12 }
 0x13a   :  { %v963_v37 = vmul.f32 1.442695, %v957_v32  ;;  %v958_v38 = vsub.f32 0.0, %v952_v33 }
 0x13b   :  { %v959_v39 = vmul.f32 1.442695, %v955_v35  ;;  %v956_v40 = vsub.f32 0.0, %v944_v36 }
 0x13c   :  { %1353 = vpow2.f32 %v963_v37  ;;  %v965_v41 = vmul.f32 1.442695, %v958_v38 }
 0x13d   :  { %1355 = vpow2.f32 %v959_v39  ;;  %v961_v42 = vmul.f32 1.442695, %v956_v40 }
 0x13e   :  { %1357 = vpow2.f32 %v965_v41 }
 0x13f   :  { %1359 = vpow2.f32 %v961_v42 }
 0x146   :  { %v1354_v43 = vpop.eup %1353 }
 0x147   :  { %v1356_v44 = vpop.eup %1355  ;;  %v969_v45 = vadd.f32 1.0, %v1354_v43 }
 0x148   :  { %v1358_v46 = vpop.eup %1357  ;;  %v967_v47 = vadd.f32 1.0, %v1356_v44 }
 0x149   :  { %v1360_v48 = vpop.eup %1359  ;;  %1361 = vrcp.f32 %v969_v45  ;;  %v970_v49 = vadd.f32 1.0, %v1358_v46 }
 0x14a   :  { %1363 = vrcp.f32 %v967_v47  ;;  %v968_v50 = vadd.f32 1.0, %v1360_v48 }
 0x14b   :  { %1365 = vrcp.f32 %v970_v49 }
 0x14c   :  { %1367 = vrcp.f32 %v968_v50 }
 0x153   :  { %v1362_v51 = vpop.eup %1361 }
 0x154   :  { %v1364_v52 = vpop.eup %1363  ;;  %v977_v55 = vmul.f32 %v1362_v51, %v949_v28 }
 0x155   :  { %v1366_v53 = vpop.eup %1365  ;;  %v975_v57 = vmul.f32 %v1364_v52, %v941_v30 }
 0x156   :  { %v1368_v54 = vpop.eup %1367  ;;  %v978_v56 = vmul.f32 %v1366_v53, %v952_v33 }
 0x157   :  { %v976_v58 = vmul.f32 %v1368_v54, %v944_v36 }
 0x158   :  { %v1110_v59 = vpack.c.bf16 %v978_v56, %v977_v55 }
 0x159   :  { %v1105_v60 = vpack.c.bf16 %v976_v58, %v975_v57 }
 0x15a   :  { %1112 = vst [vmem:[%s1671_s3 + $0x8] sm:$0xff] %v1110_v59  }
 0x15b   :  { %1106 = vst [vmem:[%s1671_s3] sm:$0xff] %v1105_v60  }

// kernel: _lambda_.22
= control target key start
LH: loop header
LB: loop body
LE: loop exit
PB: predicated region body
PF: predicated region fallthrough
CT: control target
= control target key end

     0   :  { %v191_v0 = vmov 0.0   ;;  %vm192_vm0 = vmmov 0   ;;  %s246_s1 = inlined_call_operand.vmem [shape: bf16[128,128], index: 1, kind: input, shape index: {}]   ;;  %s247_s0 = inlined_call_operand.vmem [shape: bf16[8,128], index: 0, kind: input, shape index: {}]   ;;  %s248_s2 = inlined_call_operand.vmem [shape: f32[1,128], index: 2, kind: input, shape index: {}]   ;;  %s249_s3 = inlined_call_operand.vmem [shape: bf16[8,128], index: 3, kind: output, shape index: {}]  }
   0x1   :  { %157 = vmatprep.subr.bf16.mxu0 %v191_v0  ;;  %v179_v1 = vld [vmem:[%s246_s1] sm:$0xff]   ;;  %173 = vmatprep.mubr.msk.bf16.mxu0 %vm192_vm0, %v191_v0  ;;  %v180_v2 = vld [vmem:[%s246_s1 + $0x8] sm:$0xff]   ;;  %v181_v3 = vld [vmem:[%s246_s1 + $0x10] sm:$0xff]  }
   0x2   :  { %158 = vmatpush3.bf16.msra.mxu0 %v179_v1  ;;  %v182_v4 = vld [vmem:[%s246_s1 + $0x18] sm:$0xff]   ;;  %v183_v5 = vld [vmem:[%s246_s1 + $0x20] sm:$0xff]   ;;  %v184_v6 = vld [vmem:[%s246_s1 + $0x28] sm:$0xff]  }
   0x3   :  { %159 = vmatprep.subr.bf16.mxu0 %v191_v0  ;;  %v185_v7 = vld [vmem:[%s246_s1 + $0x30] sm:$0xff]   ;;  %v186_v8 = vld [vmem:[%s246_s1 + $0x38] sm:$0xff]   ;;  %v15_v9 = vld [vmem:[%s247_s0] sm:$0xf] }
   0x4   :  { %v139_v10 = vld [vmem:[%s248_s2] ss:$0 sm:$0xff] }
   0x6   :  { %160 = vmatpush3.bf16.msra.mxu0 %v180_v2 }
   0x7   :  { %161 = vmatprep.subr.bf16.mxu0 %v191_v0 }
   0xa   :  { %162 = vmatpush3.bf16.msra.mxu0 %v181_v3 }
   0xb   :  { %163 = vmatprep.subr.bf16.mxu0 %v191_v0 }
   0xe   :  { %164 = vmatpush3.bf16.msra.mxu0 %v182_v4 }
   0xf   :  { %165 = vmatprep.subr.bf16.mxu0 %v191_v0 }
  0x12   :  { %166 = vmatpush3.bf16.msra.mxu0 %v183_v5 }
  0x13   :  { %167 = vmatprep.subr.bf16.mxu0 %v191_v0 }
  0x16   :  { %168 = vmatpush3.bf16.msra.mxu0 %v184_v6 }
  0x17   :  { %169 = vmatprep.subr.bf16.mxu0 %v191_v0 }
  0x1a   :  { %170 = vmatpush3.bf16.msra.mxu0 %v185_v7 }
  0x1b   :  { %171 = vmatprep.subr.bf16.mxu0 %v191_v0 }
  0x1e   :  { %172 = vmatpush3.bf16.msra.mxu0 %v186_v8 }
  0x21   :  { %174 = vmatmul.mubr.bf16.vlgmr.msra.gmra.mrb[0].mxu0 %v15_v9 }
  0xf4   :  { %v121_v11 = vpop.f32.mrb[0].mxu0 }
  0xf5   :  { %v122_v12 = vadd.f32 %v139_v10, %v121_v11  ;;  %v175_v13 = vpop.f32.mrb[1].mxu0 }
  0xf6   :  { %v124_v14 = vpop.f32.mrb[2].mxu0 }
  0xf7   :  { %v127_v15 = vsub.f32 0.0, %v122_v12  ;;  %v176_v16 = vpop.f32.mrb[3].mxu0 }
  0xf9   :  { %v128_v17 = vmul.f32 1.442695, %v127_v15 }
  0xfb   :  { %187 = vpow2.f32 %v128_v17 }
 0x105   :  { %v188_v18 = vpop.eup %187 }
 0x106   :  { %v130_v19 = vadd.f32 1.0, %v188_v18 }
 0x108   :  { %189 = vrcp.f32 %v130_v19 }
 0x112   :  { %v190_v20 = vpop.eup %189 }
 0x113   :  { %v132_v21 = vmul.f32 %v190_v20, %v122_v12 }
 0x115   :  { %v133_v22 = vpack.c.bf16 %v132_v21, %v132_v21 }
 0x117   :  { %134 = vst [vmem:[%s249_s3] sm:$0xf] %v133_v22 }

// kernel: _lambda_.23
= control target key start
LH: loop header
LB: loop body
LE: loop exit
PB: predicated region body
PF: predicated region fallthrough
CT: control target
= control target key end

     0   :  { %s344_s1 = inlined_call_operand.vmem [shape: bf16[128,128], index: 1, kind: input, shape index: {}]   ;;  %s345_s0 = inlined_call_operand.vmem [shape: bf16[32,128], index: 0, kind: input, shape index: {}]   ;;  %s346_s2 = inlined_call_operand.vmem [shape: f32[1,128], index: 2, kind: input, shape index: {}]   ;;  %s347_s3 = inlined_call_operand.vmem [shape: bf16[32,128], index: 3, kind: output, shape index: {}]  }
   0x1   :  { %v259_v0 = vld [vmem:[%s344_s1] sm:$0xff]   ;;  %v260_v1 = vld [vmem:[%s344_s1 + $0x8] sm:$0xff]   ;;  %v261_v2 = vld [vmem:[%s344_s1 + $0x10] sm:$0xff]  }
   0x2   :  { %239 = vmatprep.subr.bf16.mxu0 %v259_v0  ;;  %v262_v3 = vld [vmem:[%s344_s1 + $0x18] sm:$0xff]   ;;  %v267_v4 = vld [vmem:[%s345_s0] sm:$0xff]   ;;  %v264_v6 = vld [vmem:[%s344_s1 + $0x28] sm:$0xff]  }
   0x3   :  { %240 = vmatpush3.bf16.msra.mxu0 %v259_v0  ;;  %255 = vmatprep.mubr.bf16.mxu0 %v267_v4  ;;  %v263_v5 = vld [vmem:[%s344_s1 + $0x20] sm:$0xff]   ;;  %v265_v7 = vld [vmem:[%s344_s1 + $0x30] sm:$0xff]   ;;  %v266_v8 = vld [vmem:[%s344_s1 + $0x38] sm:$0xff]  }
   0x4   :  { %241 = vmatprep.subr.bf16.mxu0 %v260_v1  ;;  %v268_v9 = vld [vmem:[%s345_s0 + $0x8] sm:$0xff]   ;;  %v199_v10 = vld [vmem:[%s346_s2] ss:$0 sm:$0xff] }
   0x7   :  { %242 = vmatpush3.bf16.msra.mxu0 %v260_v1 }
   0x8   :  { %243 = vmatprep.subr.bf16.mxu0 %v261_v2 }
   0xb   :  { %244 = vmatpush3.bf16.msra.mxu0 %v261_v2 }
   0xc   :  { %245 = vmatprep.subr.bf16.mxu0 %v262_v3 }
   0xf   :  { %246 = vmatpush3.bf16.msra.mxu0 %v262_v3 }
  0x10   :  { %247 = vmatprep.subr.bf16.mxu0 %v263_v5 }
  0x13   :  { %248 = vmatpush3.bf16.msra.mxu0 %v263_v5 }
  0x14   :  { %249 = vmatprep.subr.bf16.mxu0 %v264_v6 }
  0x17   :  { %250 = vmatpush3.bf16.msra.mxu0 %v264_v6 }
  0x18   :  { %251 = vmatprep.subr.bf16.mxu0 %v265_v7 }
  0x1b   :  { %252 = vmatpush3.bf16.msra.mxu0 %v265_v7 }
  0x1c   :  { %253 = vmatprep.subr.bf16.mxu0 %v266_v8 }
  0x1f   :  { %254 = vmatpush3.bf16.msra.mxu0 %v266_v8 }
  0x22   :  { %256 = vmatmul.mubr.bf16.vlgmr.msra.gmra.mrb[0].mxu0 %v268_v9 }
  0xf5   :  { %v257_v11 = vpop.f32.mrb[0].mxu0 }
  0xf6   :  { %v145_v12 = vadd.f32 %v257_v11, %v199_v10  ;;  %v136_v13 = vpop.f32.mrb[1].mxu0 }
  0xf7   :  { %v137_v14 = vadd.f32 %v199_v10, %v136_v13  ;;  %v258_v15 = vpop.f32.mrb[2].mxu0 }
  0xf8   :  { %v153_v16 = vsub.f32 0.0, %v145_v12  ;;  %v148_v17 = vadd.f32 %v258_v15, %v199_v10  ;;  %v139_v18 = vpop.f32.mrb[3].mxu0 }
  0xf9   :  { %v151_v19 = vsub.f32 0.0, %v137_v14  ;;  %v140_v20 = vadd.f32 %v199_v10, %v139_v18 }
  0xfa   :  { %v159_v21 = vmul.f32 1.442695, %v153_v16  ;;  %v154_v22 = vsub.f32 0.0, %v148_v17 }
  0xfb   :  { %v155_v23 = vmul.f32 1.442695, %v151_v19  ;;  %v152_v24 = vsub.f32 0.0, %v140_v20 }
  0xfc   :  { %269 = vpow2.f32 %v159_v21  ;;  %v161_v25 = vmul.f32 1.442695, %v154_v22 }
  0xfd   :  { %271 = vpow2.f32 %v155_v23  ;;  %v157_v26 = vmul.f32 1.442695, %v152_v24 }
  0xfe   :  { %273 = vpow2.f32 %v161_v25 }
  0xff   :  { %275 = vpow2.f32 %v157_v26 }
 0x106   :  { %v270_v27 = vpop.eup %269 }
 0x107   :  { %v272_v28 = vpop.eup %271  ;;  %v165_v29 = vadd.f32 1.0, %v270_v27 }
 0x108   :  { %v274_v30 = vpop.eup %273  ;;  %v163_v31 = vadd.f32 1.0, %v272_v28 }
 0x109   :  { %v276_v32 = vpop.eup %275  ;;  %277 = vrcp.f32 %v165_v29  ;;  %v166_v33 = vadd.f32 1.0, %v274_v30 }
 0x10a   :  { %279 = vrcp.f32 %v163_v31  ;;  %v164_v34 = vadd.f32 1.0, %v276_v32 }
 0x10b   :  { %281 = vrcp.f32 %v166_v33 }
 0x10c   :  { %283 = vrcp.f32 %v164_v34 }
 0x113   :  { %v278_v35 = vpop.eup %277 }
 0x114   :  { %v280_v36 = vpop.eup %279  ;;  %v173_v39 = vmul.f32 %v278_v35, %v145_v12 }
 0x115   :  { %v282_v37 = vpop.eup %281  ;;  %v171_v41 = vmul.f32 %v280_v36, %v137_v14 }
 0x116   :  { %v284_v38 = vpop.eup %283  ;;  %v174_v40 = vmul.f32 %v282_v37, %v148_v17 }
 0x117   :  { %v172_v42 = vmul.f32 %v284_v38, %v140_v20 }
 0x118   :  { %v226_v43 = vpack.c.bf16 %v174_v40, %v173_v39 }
 0x119   :  { %v221_v44 = vpack.c.bf16 %v172_v42, %v171_v41 }
 0x11a   :  { %228 = vst [vmem:[%s347_s3 + $0x8] sm:$0xff] %v226_v43  }
 0x11b   :  { %222 = vst [vmem:[%s347_s3] sm:$0xff] %v221_v44  }

// kernel: _lambda_.24
= control target key start
LH: loop header
LB: loop body
LE: loop exit
PB: predicated region body
PF: predicated region fallthrough
CT: control target
= control target key end

     0   :  { %s482_s1 = inlined_call_operand.vmem [shape: bf16[256,128], index: 1, kind: input, shape index: {}]   ;;  %s483_s0 = inlined_call_operand.vmem [shape: bf16[32,256], index: 0, kind: input, shape index: {}]   ;;  %s484_s2 = inlined_call_operand.vmem [shape: f32[1,128], index: 2, kind: input, shape index: {}]   ;;  %s485_s3 = inlined_call_operand.vmem [shape: bf16[32,128], index: 3, kind: output, shape index: {}]  }
   0x1   :  { %v355_v0 = vld [vmem:[%s482_s1 + $0x40] sm:$0xff]   ;;  %v357_v2 = vld [vmem:[%s482_s1 + $0x48] sm:$0xff]   ;;  %v359_v4 = vld [vmem:[%s482_s1 + $0x50] sm:$0xff]  }
   0x2   :  { %v356_v1 = vld [vmem:[%s482_s1] sm:$0xff]   ;;  %311 = vmatprep.subr.bf16.mxu0 %v355_v0  ;;  %339 = vmatprep.subr.bf16.mxu1 %v355_v0  ;;  %v358_v3 = vld [vmem:[%s482_s1 + $0x8] sm:$0xff]   ;;  %v360_v5 = vld [vmem:[%s482_s1 + $0x10] sm:$0xff]  }
   0x3   :  { %312 = vmatpush3.bf16.msra.mxu0 %v356_v1  ;;  %347 = vmatpush3.bf16.msra.mxu1 %v356_v1  ;;  %v361_v6 = vld [vmem:[%s482_s1 + $0x58] sm:$0xff]   ;;  %v363_v8 = vld [vmem:[%s482_s1 + $0x60] sm:$0xff]   ;;  %v365_v10 = vld [vmem:[%s482_s1 + $0x68] sm:$0xff]  }
   0x4   :  { %313 = vmatprep.subr.bf16.mxu0 %v357_v2  ;;  %340 = vmatprep.subr.bf16.mxu1 %v357_v2  ;;  %v362_v7 = vld [vmem:[%s482_s1 + $0x18] sm:$0xff]   ;;  %v364_v9 = vld [vmem:[%s482_s1 + $0x20] sm:$0xff]   ;;  %v366_v13 = vld [vmem:[%s482_s1 + $0x28] sm:$0xff]  }
   0x5   :  { %v373_v11 = vld [vmem:[%s483_s0 + $0x4] ss:$8 sps:$4 sm:$0xff]   ;;  %v376_v12 = vld [vmem:[%s483_s0 + $0x14] ss:$8 sps:$4 sm:$0xff]   ;;  %v371_v18 = vld [vmem:[%s483_s0] ss:$8 sps:$4 sm:$0xff]  }
   0x6   :  { %v367_v14 = vld [vmem:[%s482_s1 + $0x70] sm:$0xff]   ;;  %206 = vmatprep.mubr.bf16.mxu0 %v373_v11  ;;  %214 = vmatprep.mubr.bf16.mxu1 %v376_v12  ;;  %v369_v16 = vld [vmem:[%s482_s1 + $0x78] sm:$0xff]   ;;  %v271_v22 = vld [vmem:[%s484_s2] ss:$0 sm:$0xff] }
   0x7   :  { %314 = vmatpush3.bf16.msra.mxu0 %v358_v3  ;;  %348 = vmatpush3.bf16.msra.mxu1 %v358_v3  ;;  %v368_v15 = vld [vmem:[%s482_s1 + $0x30] sm:$0xff]   ;;  %v370_v17 = vld [vmem:[%s482_s1 + $0x38] sm:$0xff]  }
   0x8   :  { %315 = vmatprep.subr.bf16.mxu0 %v359_v4  ;;  %341 = vmatprep.subr.bf16.mxu1 %v359_v4  ;;  %v374_v19 = vld [vmem:[%s483_s0 + $0x10] ss:$8 sps:$4 sm:$0xff]  }
   0xb   :  { %316 = vmatpush3.bf16.msra.mxu0 %v360_v5  ;;  %349 = vmatpush3.bf16.msra.mxu1 %v360_v5 }
   0xc   :  { %317 = vmatprep.subr.bf16.mxu0 %v361_v6  ;;  %342 = vmatprep.subr.bf16.mxu1 %v361_v6 }
   0xf   :  { %318 = vmatpush3.bf16.msra.mxu0 %v362_v7  ;;  %350 = vmatpush3.bf16.msra.mxu1 %v362_v7 }
  0x10   :  { %319 = vmatprep.subr.bf16.mxu0 %v363_v8  ;;  %343 = vmatprep.subr.bf16.mxu1 %v363_v8 }
  0x13   :  { %320 = vmatpush3.bf16.msra.mxu0 %v364_v9  ;;  %351 = vmatpush3.bf16.msra.mxu1 %v364_v9 }
  0x14   :  { %321 = vmatprep.subr.bf16.mxu0 %v365_v10  ;;  %344 = vmatprep.subr.bf16.mxu1 %v365_v10 }
  0x17   :  { %322 = vmatpush3.bf16.msra.mxu0 %v366_v13  ;;  %352 = vmatpush3.bf16.msra.mxu1 %v366_v13 }
  0x18   :  { %323 = vmatprep.subr.bf16.mxu0 %v367_v14  ;;  %345 = vmatprep.subr.bf16.mxu1 %v367_v14 }
  0x1b   :  { %324 = vmatpush3.bf16.msra.mxu0 %v368_v15  ;;  %353 = vmatpush3.bf16.msra.mxu1 %v368_v15 }
  0x1c   :  { %325 = vmatprep.subr.bf16.mxu0 %v369_v16  ;;  %346 = vmatprep.subr.bf16.mxu1 %v369_v16 }
  0x1f   :  { %326 = vmatpush3.bf16.msra.mxu0 %v370_v17  ;;  %354 = vmatpush3.bf16.msra.mxu1 %v370_v17 }
  0x22   :  { %207 = vmatmul.mubr.bf16.vlgmr.msra.gmra.mrb[0].mxu0 %v371_v18  ;;  %215 = vmatmul.mubr.bf16.vlgmr.msra.gmra.mrb[0].mxu1 %v374_v19 }
  0xf5   :  { %v327_v20 = vpop.f32.mrb[0].mxu0  ;;  %v333_v21 = vpop.f32.mrb[0].mxu1 }
  0xf6   :  { %v328_v23 = vpop.f32.mrb[1].mxu0  ;;  %v334_v24 = vpop.f32.mrb[1].mxu1 }
  0xf7   :  { %v329_v25 = vadd.f32 %v328_v23, %v327_v20  ;;  %v335_v26 = vadd.f32 %v334_v24, %v333_v21  ;;  %v330_v27 = vpop.f32.mrb[2].mxu0  ;;  %v336_v28 = vpop.f32.mrb[2].mxu1 }
  0xf8   :  { %v331_v29 = vpop.f32.mrb[3].mxu0  ;;  %v337_v30 = vpop.f32.mrb[3].mxu1 }
  0xf9   :  { %v209_v31 = vadd.f32 %v329_v25, %v271_v22  ;;  %v217_v32 = vadd.f32 %v335_v26, %v271_v22  ;;  %v332_v33 = vadd.f32 %v331_v29, %v330_v27  ;;  %v338_v34 = vadd.f32 %v337_v30, %v336_v28 }
  0xfb   :  { %v223_v35 = vsub.f32 0.0, %v209_v31  ;;  %v225_v36 = vsub.f32 0.0, %v217_v32  ;;  %v212_v37 = vadd.f32 %v332_v33, %v271_v22  ;;  %v220_v38 = vadd.f32 %v338_v34, %v271_v22 }
  0xfd   :  { %v227_v39 = vmul.f32 1.442695, %v223_v35  ;;  %v231_v40 = vmul.f32 1.442695, %v225_v36  ;;  %v224_v41 = vsub.f32 0.0, %v212_v37  ;;  %v226_v42 = vsub.f32 0.0, %v220_v38 }
  0xff   :  { %377 = vpow2.f32 %v227_v39  ;;  %v229_v43 = vmul.f32 1.442695, %v224_v41  ;;  %v233_v44 = vmul.f32 1.442695, %v226_v42 }
 0x100   :  { %379 = vpow2.f32 %v231_v40 }
 0x101   :  { %381 = vpow2.f32 %v229_v43 }
 0x102   :  { %383 = vpow2.f32 %v233_v44 }
 0x109   :  { %v378_v45 = vpop.eup %377 }
 0x10a   :  { %v380_v46 = vpop.eup %379  ;;  %v235_v47 = vadd.f32 1.0, %v378_v45 }
 0x10b   :  { %v382_v48 = vpop.eup %381  ;;  %v237_v49 = vadd.f32 1.0, %v380_v46 }
 0x10c   :  { %v384_v50 = vpop.eup %383  ;;  %385 = vrcp.f32 %v235_v47  ;;  %v236_v51 = vadd.f32 1.0, %v382_v48 }
 0x10d   :  { %387 = vrcp.f32 %v237_v49  ;;  %v238_v52 = vadd.f32 1.0, %v384_v50 }
 0x10e   :  { %389 = vrcp.f32 %v236_v51 }
 0x10f   :  { %391 = vrcp.f32 %v238_v52 }
 0x116   :  { %v386_v53 = vpop.eup %385 }
 0x117   :  { %v388_v54 = vpop.eup %387  ;;  %v243_v57 = vmul.f32 %v386_v53, %v209_v31 }
 0x118   :  { %v390_v55 = vpop.eup %389  ;;  %v245_v59 = vmul.f32 %v388_v54, %v217_v32 }
 0x119   :  { %v392_v56 = vpop.eup %391  ;;  %v244_v58 = vmul.f32 %v390_v55, %v212_v37 }
 0x11a   :  { %v246_v60 = vmul.f32 %v392_v56, %v220_v38 }
 0x11b   :  { %v303_v61 = vpack.c.bf16 %v244_v58, %v243_v57 }
 0x11c   :  { %v308_v62 = vpack.c.bf16 %v246_v60, %v245_v59 }
 0x11d   :  { %304 = vst [vmem:[%s485_s3] sm:$0xff] %v303_v61  }
 0x11e   :  { %310 = vst [vmem:[%s485_s3 + $0x8] sm:$0xff] %v308_v62  }

// kernel: _lambda_.26
= control target key start
LH: loop header
LB: loop body
LE: loop exit
PB: predicated region body
PF: predicated region fallthrough
CT: control target
= control target key end

     0   :  { %s1044_s1 = inlined_call_operand.vmem [shape: bf16[256,128], index: 1, kind: input, shape index: {}]   ;;  %s1045_s0 = inlined_call_operand.vmem [shape: bf16[128,256], index: 0, kind: input, shape index: {}]   ;;  %s1046_s2 = inlined_call_operand.vmem [shape: f32[1,128], index: 2, kind: input, shape index: {}]   ;;  %s1047_s3 = inlined_call_operand.vmem [shape: bf16[128,128], index: 3, kind: output, shape index: {}]  }
   0x1   :  { %v715_v0 = vld [vmem:[%s1044_s1 + $0x40] sm:$0xff]   ;;  %v717_v2 = vld [vmem:[%s1044_s1 + $0x48] sm:$0xff]   ;;  %v719_v4 = vld [vmem:[%s1044_s1 + $0x50] sm:$0xff]  }
   0x2   :  { %v716_v1 = vld [vmem:[%s1044_s1] sm:$0xff]   ;;  %635 = vmatprep.subr.bf16.mxu0 %v715_v0  ;;  %699 = vmatprep.subr.bf16.mxu1 %v715_v0  ;;  %v718_v3 = vld [vmem:[%s1044_s1 + $0x8] sm:$0xff]   ;;  %v720_v5 = vld [vmem:[%s1044_s1 + $0x10] sm:$0xff]  }
   0x3   :  { %636 = vmatpush3.bf16.msra.mxu0 %v716_v1  ;;  %707 = vmatpush3.bf16.msra.mxu1 %v716_v1  ;;  %v721_v6 = vld [vmem:[%s1044_s1 + $0x58] sm:$0xff]   ;;  %v723_v8 = vld [vmem:[%s1044_s1 + $0x60] sm:$0xff]   ;;  %v725_v10 = vld [vmem:[%s1044_s1 + $0x68] sm:$0xff]  }
   0x4   :  { %637 = vmatprep.subr.bf16.mxu0 %v717_v2  ;;  %700 = vmatprep.subr.bf16.mxu1 %v717_v2  ;;  %v722_v7 = vld [vmem:[%s1044_s1 + $0x18] sm:$0xff]   ;;  %v724_v9 = vld [vmem:[%s1044_s1 + $0x20] sm:$0xff]   ;;  %v726_v13 = vld [vmem:[%s1044_s1 + $0x28] sm:$0xff]  }
   0x5   :  { %v733_v11 = vld [vmem:[%s1045_s0 + $0x4] ss:$8 sps:$4 sm:$0xff]   ;;  %v727_v14 = vld [vmem:[%s1044_s1 + $0x70] sm:$0xff]   ;;  %v729_v16 = vld [vmem:[%s1044_s1 + $0x78] sm:$0xff]  }
   0x6   :  { %v736_v12 = vld [vmem:[%s1045_s0 + $0x44] ss:$8 sps:$4 sm:$0xff]   ;;  %278 = vmatprep.mubr.bf16.mxu0 %v733_v11  ;;  %v728_v15 = vld [vmem:[%s1044_s1 + $0x30] sm:$0xff]   ;;  %v730_v17 = vld [vmem:[%s1044_s1 + $0x38] sm:$0xff]  }
   0x7   :  { %638 = vmatpush3.bf16.msra.mxu0 %v718_v3  ;;  %708 = vmatpush3.bf16.msra.mxu1 %v718_v3  ;;  %v731_v18 = vld [vmem:[%s1045_s0] ss:$8 sps:$4 sm:$0xff]   ;;  %v737_v20 = vld [vmem:[%s1045_s0 + $0x14] ss:$8 sps:$4 sm:$0xff]   ;;  %v741_v22 = vld [vmem:[%s1045_s0 + $0x10] ss:$8 sps:$4 sm:$0xff]  }
   0x8   :  { %639 = vmatprep.subr.bf16.mxu0 %v719_v4  ;;  %701 = vmatprep.subr.bf16.mxu1 %v719_v4  ;;  %v734_v19 = vld [vmem:[%s1045_s0 + $0x40] ss:$8 sps:$4 sm:$0xff]   ;;  %v739_v21 = vld [vmem:[%s1045_s0 + $0x54] ss:$8 sps:$4 sm:$0xff]   ;;  %v742_v23 = vld [vmem:[%s1045_s0 + $0x50] ss:$8 sps:$4 sm:$0xff]  }
   0x9   :  { %310 = vmatprep.mubr.bf16.mxu1 %v736_v12  ;;  %v743_v24 = vld [vmem:[%s1045_s0 + $0x24] ss:$8 sps:$4 sm:$0xff]   ;;  %v747_v26 = vld [vmem:[%s1045_s0 + $0x20] ss:$8 sps:$4 sm:$0xff]   ;;  %v749_v28 = vld [vmem:[%s1045_s0 + $0x34] ss:$8 sps:$4 sm:$0xff]  }
   0xa   :  { %v745_v25 = vld [vmem:[%s1045_s0 + $0x64] ss:$8 sps:$4 sm:$0xff]   ;;  %v748_v27 = vld [vmem:[%s1045_s0 + $0x60] ss:$8 sps:$4 sm:$0xff]   ;;  %v751_v29 = vld [vmem:[%s1045_s0 + $0x74] ss:$8 sps:$4 sm:$0xff]  }
   0xb   :  { %640 = vmatpush3.bf16.msra.mxu0 %v720_v5  ;;  %709 = vmatpush3.bf16.msra.mxu1 %v720_v5  ;;  %v753_v30 = vld [vmem:[%s1045_s0 + $0x30] ss:$8 sps:$4 sm:$0xff]   ;;  %v938_v34 = vld [vmem:[%s1046_s2] ss:$0 sm:$0xff] }
   0xc   :  { %641 = vmatprep.subr.bf16.mxu0 %v721_v6  ;;  %702 = vmatprep.subr.bf16.mxu1 %v721_v6  ;;  %v754_v31 = vld [vmem:[%s1045_s0 + $0x70] ss:$8 sps:$4 sm:$0xff]  }
   0xf   :  { %642 = vmatpush3.bf16.msra.mxu0 %v722_v7  ;;  %710 = vmatpush3.bf16.msra.mxu1 %v722_v7 }
  0x10   :  { %643 = vmatprep.subr.bf16.mxu0 %v723_v8  ;;  %703 = vmatprep.subr.bf16.mxu1 %v723_v8 }
  0x13   :  { %644 = vmatpush3.bf16.msra.mxu0 %v724_v9  ;;  %711 = vmatpush3.bf16.msra.mxu1 %v724_v9 }
  0x14   :  { %645 = vmatprep.subr.bf16.mxu0 %v725_v10  ;;  %704 = vmatprep.subr.bf16.mxu1 %v725_v10 }
  0x17   :  { %646 = vmatpush3.bf16.msra.mxu0 %v726_v13  ;;  %712 = vmatpush3.bf16.msra.mxu1 %v726_v13 }
  0x18   :  { %647 = vmatprep.subr.bf16.mxu0 %v727_v14  ;;  %705 = vmatprep.subr.bf16.mxu1 %v727_v14 }
  0x1b   :  { %648 = vmatpush3.bf16.msra.mxu0 %v728_v15  ;;  %713 = vmatpush3.bf16.msra.mxu1 %v728_v15 }
  0x1c   :  { %649 = vmatprep.subr.bf16.mxu0 %v729_v16  ;;  %706 = vmatprep.subr.bf16.mxu1 %v729_v16 }
  0x1f   :  { %650 = vmatpush3.bf16.msra.mxu0 %v730_v17  ;;  %714 = vmatpush3.bf16.msra.mxu1 %v730_v17 }
  0x22   :  { %279 = vmatmul.mubr.bf16.vlgmr.msra.gmra.mrb[0].mxu0 %v731_v18  ;;  %311 = vmatmul.mubr.bf16.vlgmr.msra.gmra.mrb[0].mxu1 %v734_v19 }
  0x23   :  { %286 = vmatprep.mubr.bf16.mxu0 %v737_v20  ;;  %318 = vmatprep.mubr.bf16.mxu1 %v739_v21 }
  0x2a   :  { %287 = vmatmul.mubr.bf16.gmra.mrb[4].mxu0 %v741_v22  ;;  %319 = vmatmul.mubr.bf16.gmra.mrb[4].mxu1 %v742_v23 }
  0x2b   :  { %294 = vmatprep.mubr.bf16.mxu0 %v743_v24  ;;  %326 = vmatprep.mubr.bf16.mxu1 %v745_v25 }
  0x32   :  { %295 = vmatmul.mubr.bf16.gmra.mrb[8].mxu0 %v747_v26  ;;  %327 = vmatmul.mubr.bf16.gmra.mrb[8].mxu1 %v748_v27 }
  0x33   :  { %302 = vmatprep.mubr.bf16.mxu0 %v749_v28  ;;  %334 = vmatprep.mubr.bf16.mxu1 %v751_v29 }
  0x3a   :  { %303 = vmatmul.mubr.bf16.gmra.mrb[12].mxu0 %v753_v30  ;;  %335 = vmatmul.mubr.bf16.gmra.mrb[12].mxu1 %v754_v31 }
  0xf5   :  { %v651_v32 = vpop.f32.mrb[0].mxu0  ;;  %v675_v33 = vpop.f32.mrb[0].mxu1 }
  0xf6   :  { %v652_v35 = vpop.f32.mrb[1].mxu0  ;;  %v676_v36 = vpop.f32.mrb[1].mxu1 }
  0xf7   :  { %v653_v37 = vadd.f32 %v652_v35, %v651_v32  ;;  %v677_v38 = vadd.f32 %v676_v36, %v675_v33  ;;  %v654_v39 = vpop.f32.mrb[2].mxu0  ;;  %v678_v40 = vpop.f32.mrb[2].mxu1 }
  0xf8   :  { %v655_v41 = vpop.f32.mrb[3].mxu0  ;;  %v679_v42 = vpop.f32.mrb[3].mxu1 }
  0xf9   :  { %v941_v43 = vadd.f32 %v653_v37, %v938_v34  ;;  %v944_v44 = vadd.f32 %v677_v38, %v938_v34  ;;  %v656_v45 = vadd.f32 %v655_v41, %v654_v39  ;;  %v680_v46 = vadd.f32 %v679_v42, %v678_v40 }
  0xfb   :  { %v343_v47 = vsub.f32 0.0, %v941_v43  ;;  %v351_v48 = vsub.f32 0.0, %v944_v44  ;;  %v949_v49 = vadd.f32 %v656_v45, %v938_v34  ;;  %v952_v50 = vadd.f32 %v680_v46, %v938_v34 }
  0xfd   :  { %v359_v51 = vmul.f32 1.442695, %v343_v47  ;;  %v375_v52 = vmul.f32 1.442695, %v351_v48  ;;  %v344_v53 = vsub.f32 0.0, %v949_v49  ;;  %v352_v54 = vsub.f32 0.0, %v952_v50 }
  0xfe   :  { %v657_v55 = vpop.f32.mrb[4].mxu0  ;;  %v681_v56 = vpop.f32.mrb[4].mxu1 }
  0xff   :  { %755 = vpow2.f32 %v359_v51  ;;  %v361_v57 = vmul.f32 1.442695, %v344_v53  ;;  %v377_v58 = vmul.f32 1.442695, %v352_v54  ;;  %v658_v59 = vpop.f32.mrb[5].mxu0  ;;  %v682_v60 = vpop.f32.mrb[5].mxu1 }
 0x100   :  { %757 = vpow2.f32 %v375_v52  ;;  %v659_v61 = vadd.f32 %v658_v59, %v657_v55  ;;  %v683_v62 = vadd.f32 %v682_v60, %v681_v56  ;;  %v660_v63 = vpop.f32.mrb[6].mxu0  ;;  %v684_v0 = vpop.f32.mrb[6].mxu1 }
 0x101   :  { %759 = vpow2.f32 %v361_v57  ;;  %v661_v1 = vpop.f32.mrb[7].mxu0  ;;  %v685_v2 = vpop.f32.mrb[7].mxu1 }
 0x102   :  { %761 = vpow2.f32 %v377_v58  ;;  %v957_v3 = vadd.f32 %v659_v61, %v938_v34  ;;  %v960_v4 = vadd.f32 %v683_v62, %v938_v34  ;;  %v662_v5 = vadd.f32 %v661_v1, %v660_v63 }
 0x103   :  { %v686_v6 = vadd.f32 %v685_v2, %v684_v0 }
 0x104   :  { %v345_v7 = vsub.f32 0.0, %v957_v3  ;;  %v353_v8 = vsub.f32 0.0, %v960_v4  ;;  %v965_v9 = vadd.f32 %v662_v5, %v938_v34 }
 0x105   :  { %v968_v10 = vadd.f32 %v686_v6, %v938_v34  ;;  %v663_v11 = vpop.f32.mrb[8].mxu0  ;;  %v687_v12 = vpop.f32.mrb[8].mxu1 }
 0x106   :  { %v363_v13 = vmul.f32 1.442695, %v345_v7  ;;  %v379_v14 = vmul.f32 1.442695, %v353_v8  ;;  %v346_v15 = vsub.f32 0.0, %v965_v9  ;;  %v664_v16 = vpop.f32.mrb[9].mxu0 }
 0x107   :  { %v354_v17 = vsub.f32 0.0, %v968_v10  ;;  %v665_v18 = vadd.f32 %v664_v16, %v663_v11  ;;  %v688_v19 = vpop.f32.mrb[9].mxu1  ;;  %v666_v20 = vpop.f32.mrb[10].mxu0 }
 0x108   :  { %763 = vpow2.f32 %v363_v13  ;;  %v365_v21 = vmul.f32 1.442695, %v346_v15  ;;  %v689_v22 = vadd.f32 %v688_v19, %v687_v12  ;;  %v690_v23 = vpop.f32.mrb[10].mxu1  ;;  %v667_v24 = vpop.f32.mrb[11].mxu0 }
 0x109   :  { %v756_v25 = vpop.eup %755  ;;  %765 = vpow2.f32 %v379_v14  ;;  %v381_v26 = vmul.f32 1.442695, %v354_v17  ;;  %v973_v27 = vadd.f32 %v665_v18, %v938_v34  ;;  %v668_v28 = vadd.f32 %v667_v24, %v666_v20  ;;  %v691_v29 = vpop.f32.mrb[11].mxu1 }
 0x10a   :  { %v758_v30 = vpop.eup %757  ;;  %v391_v31 = vadd.f32 1.0, %v756_v25  ;;  %767 = vpow2.f32 %v365_v21  ;;  %v976_v32 = vadd.f32 %v689_v22, %v938_v34  ;;  %v692_v33 = vadd.f32 %v691_v29, %v690_v23 }
 0x10b   :  { %v760_v35 = vpop.eup %759  ;;  %v399_v36 = vadd.f32 1.0, %v758_v30  ;;  %769 = vpow2.f32 %v381_v26  ;;  %v347_v37 = vsub.f32 0.0, %v973_v27  ;;  %v980_v38 = vadd.f32 %v668_v28, %v938_v34 }
 0x10c   :  { %v762_v39 = vpop.eup %761  ;;  %771 = vrcp.f32 %v391_v31  ;;  %v392_v40 = vadd.f32 1.0, %v760_v35  ;;  %v355_v41 = vsub.f32 0.0, %v976_v32  ;;  %v984_v42 = vadd.f32 %v692_v33, %v938_v34 }
 0x10d   :  { %773 = vrcp.f32 %v399_v36  ;;  %v400_v45 = vadd.f32 1.0, %v762_v39  ;;  %v367_v46 = vmul.f32 1.442695, %v347_v37  ;;  %v348_v47 = vsub.f32 0.0, %v980_v38  ;;  %v669_v48 = vpop.f32.mrb[12].mxu0  ;;  %v693_v51 = vpop.f32.mrb[12].mxu1 }
 0x10e   :  { %775 = vrcp.f32 %v392_v40  ;;  %v383_v52 = vmul.f32 1.442695, %v355_v41  ;;  %v356_v53 = vsub.f32 0.0, %v984_v42  ;;  %v670_v54 = vpop.f32.mrb[13].mxu0  ;;  %v694_v55 = vpop.f32.mrb[13].mxu1 }
 0x10f   :  { %777 = vrcp.f32 %v400_v45  ;;  %v369_v56 = vmul.f32 1.442695, %v348_v47  ;;  %v671_v57 = vadd.f32 %v670_v54, %v669_v48  ;;  %v695_v58 = vadd.f32 %v694_v55, %v693_v51  ;;  %v672_v59 = vpop.f32.mrb[14].mxu0  ;;  %v696_v60 = vpop.f32.mrb[14].mxu1 }
 0x110   :  { %779 = vpow2.f32 %v367_v46  ;;  %v385_v61 = vmul.f32 1.442695, %v356_v53  ;;  %v673_v62 = vpop.f32.mrb[15].mxu0  ;;  %v697_v63 = vpop.f32.mrb[15].mxu1 }
 0x111   :  { %781 = vpow2.f32 %v383_v52  ;;  %v989_v0 = vadd.f32 %v671_v57, %v938_v34  ;;  %v992_v1 = vadd.f32 %v695_v58, %v938_v34  ;;  %v674_v2 = vadd.f32 %v673_v62, %v672_v59 }
 0x112   :  { %v764_v5 = vpop.eup %763  ;;  %783 = vpow2.f32 %v369_v56  ;;  %v698_v6 = vadd.f32 %v697_v63, %v696_v60 }
 0x113   :  { %v766_v7 = vpop.eup %765  ;;  %v393_v8 = vadd.f32 1.0, %v764_v5  ;;  %785 = vpow2.f32 %v385_v61  ;;  %v349_v11 = vsub.f32 0.0, %v989_v0  ;;  %v357_v12 = vsub.f32 0.0, %v992_v1 }
 0x114   :  { %v768_v13 = vpop.eup %767  ;;  %v401_v14 = vadd.f32 1.0, %v766_v7  ;;  %v997_v15 = vadd.f32 %v674_v2, %v938_v34  ;;  %v1000_v16 = vadd.f32 %v698_v6, %v938_v34 }
 0x115   :  { %v770_v17 = vpop.eup %769  ;;  %787 = vrcp.f32 %v393_v8  ;;  %v394_v18 = vadd.f32 1.0, %v768_v13  ;;  %v371_v19 = vmul.f32 1.442695, %v349_v11  ;;  %v387_v20 = vmul.f32 1.442695, %v357_v12 }
 0x116   :  { %v772_v21 = vpop.eup %771  ;;  %789 = vrcp.f32 %v401_v14  ;;  %v402_v22 = vadd.f32 1.0, %v770_v17  ;;  %v350_v23 = vsub.f32 0.0, %v997_v15  ;;  %v358_v24 = vsub.f32 0.0, %v1000_v16 }
 0x117   :  { %v774_v25 = vpop.eup %773  ;;  %791 = vrcp.f32 %v394_v18  ;;  %v423_v30 = vmul.f32 %v772_v21, %v941_v43 }
 0x118   :  { %v776_v26 = vpop.eup %775  ;;  %793 = vrcp.f32 %v402_v22  ;;  %v373_v28 = vmul.f32 1.442695, %v350_v23  ;;  %v389_v29 = vmul.f32 1.442695, %v358_v24  ;;  %v431_v35 = vmul.f32 %v774_v25, %v944_v44 }
 0x119   :  { %v778_v34 = vpop.eup %777  ;;  %v424_v31 = vmul.f32 %v776_v26, %v949_v49  ;;  %795 = vpow2.f32 %v371_v19 }
 0x11a   :  { %v780_v33 = vpop.eup %779  ;;  %v432_v36 = vmul.f32 %v778_v34, %v952_v50  ;;  %797 = vpow2.f32 %v387_v20 }
 0x11b   :  { %v782_v37 = vpop.eup %781  ;;  %v591_v39 = vpack.c.bf16 %v424_v31, %v423_v30  ;;  %v395_v40 = vadd.f32 1.0, %v780_v33  ;;  %799 = vpow2.f32 %v373_v28 }
 0x11c   :  { %v784_v41 = vpop.eup %783  ;;  %v611_v45 = vpack.c.bf16 %v432_v36, %v431_v35  ;;  %v403_v46 = vadd.f32 1.0, %v782_v37  ;;  %801 = vpow2.f32 %v389_v29 }
 0x11d   :  { %v786_v47 = vpop.eup %785  ;;  %592 = vst [vmem:[%s1047_s3] sm:$0xff] %v591_v39   ;;  %803 = vrcp.f32 %v395_v40  ;;  %v396_v43 = vadd.f32 1.0, %v784_v41 }
 0x11e   :  { %631 = vst [vmem:[%s1047_s3 + $0x20] sm:$0xff] %v611_v45   ;;  %805 = vrcp.f32 %v403_v46  ;;  %v404_v44 = vadd.f32 1.0, %v786_v47 }
 0x11f   :  { %v788_v49 = vpop.eup %787  ;;  %807 = vrcp.f32 %v396_v43 }
 0x120   :  { %v790_v50 = vpop.eup %789  ;;  %809 = vrcp.f32 %v404_v44  ;;  %v425_v52 = vmul.f32 %v788_v49, %v957_v3 }
 0x121   :  { %v792_v48 = vpop.eup %791  ;;  %v433_v55 = vmul.f32 %v790_v50, %v960_v4 }
 0x122   :  { %v794_v51 = vpop.eup %793  ;;  %v426_v53 = vmul.f32 %v792_v48, %v965_v9 }
 0x123   :  { %v796_v54 = vpop.eup %795  ;;  %v434_v56 = vmul.f32 %v794_v51, %v968_v10 }
 0x124   :  { %v798_v57 = vpop.eup %797  ;;  %v596_v58 = vpack.c.bf16 %v426_v53, %v425_v52  ;;  %v397_v59 = vadd.f32 1.0, %v796_v54 }
 0x125   :  { %v800_v60 = vpop.eup %799  ;;  %v616_v61 = vpack.c.bf16 %v434_v56, %v433_v55  ;;  %v405_v62 = vadd.f32 1.0, %v798_v57 }
 0x126   :  { %v802_v63 = vpop.eup %801  ;;  %628 = vst [vmem:[%s1047_s3 + $0x8] sm:$0xff] %v596_v58   ;;  %811 = vrcp.f32 %v397_v59  ;;  %v398_v3 = vadd.f32 1.0, %v800_v60 }
 0x127   :  { %v804_v2 = vpop.eup %803  ;;  %632 = vst [vmem:[%s1047_s3 + $0x28] sm:$0xff] %v616_v61   ;;  %813 = vrcp.f32 %v405_v62  ;;  %v406_v4 = vadd.f32 1.0, %v802_v63 }
 0x128   :  { %v806_v9 = vpop.eup %805  ;;  %815 = vrcp.f32 %v398_v3  ;;  %v427_v6 = vmul.f32 %v804_v2, %v973_v27 }
 0x129   :  { %v808_v10 = vpop.eup %807  ;;  %817 = vrcp.f32 %v406_v4  ;;  %v435_v8 = vmul.f32 %v806_v9, %v976_v32 }
 0x12a   :  { %v810_v5 = vpop.eup %809  ;;  %v428_v7 = vmul.f32 %v808_v10, %v980_v38 }
 0x12b   :  { %v436_v11 = vmul.f32 %v810_v5, %v984_v42 }
 0x12c   :  { %v601_v12 = vpack.c.bf16 %v428_v7, %v427_v6 }
 0x12d   :  { %v621_v13 = vpack.c.bf16 %v436_v11, %v435_v8 }
 0x12e   :  { %629 = vst [vmem:[%s1047_s3 + $0x10] sm:$0xff] %v601_v12  }
 0x12f   :  { %633 = vst [vmem:[%s1047_s3 + $0x30] sm:$0xff] %v621_v13  }
 0x130   :  { %v812_v14 = vpop.eup %811 }
 0x131   :  { %v814_v17 = vpop.eup %813  ;;  %v429_v38 = vmul.f32 %v812_v14, %v989_v0 }
 0x132   :  { %v816_v18 = vpop.eup %815  ;;  %v437_v42 = vmul.f32 %v814_v17, %v992_v1 }
 0x133   :  { %v818_v27 = vpop.eup %817  ;;  %v430_v32 = vmul.f32 %v816_v18, %v997_v15 }
 0x134   :  { %v438_v19 = vmul.f32 %v818_v27, %v1000_v16 }
 0x135   :  { %v606_v20 = vpack.c.bf16 %v430_v32, %v429_v38 }
 0x136   :  { %v626_v21 = vpack.c.bf16 %v438_v19, %v437_v42 }
 0x137   :  { %630 = vst [vmem:[%s1047_s3 + $0x18] sm:$0xff] %v606_v20  }
 0x138   :  { %634 = vst [vmem:[%s1047_s3 + $0x38] sm:$0xff] %v626_v21  }

// kernel: _lambda_.21
= control target key start
LH: loop header
LB: loop body
LE: loop exit
PB: predicated region body
PF: predicated region fallthrough
CT: control target
= control target key end

     0   :  { %vm1134_vm0 = vmmov 0   ;;  %s1392_s1 = inlined_call_operand.vmem [shape: bf16[1152,128], index: 1, kind: input, shape index: {}]   ;;  %s1393_s0 = inlined_call_operand.vmem [shape: bf16[8,1152], index: 0, kind: input, shape index: {}]   ;;  %s1394_s2 = inlined_call_operand.vmem [shape: f32[1,128], index: 2, kind: input, shape index: {}]   ;;  %s1395_s3 = inlined_call_operand.vmem [shape: bf16[8,128], index: 3, kind: output, shape index: {}]  }
   0x1   :  { %v1048_v0 = vld [vmem:[%s1392_s1 + $0x40] sm:$0xff]   ;;  %v1052_v4 = vld [vmem:[%s1392_s1 + $0x48] sm:$0xff]   ;;  %v1056_v8 = vld [vmem:[%s1392_s1 + $0x50] sm:$0xff]  }
   0x2   :  { %v1049_v1 = vld [vmem:[%s1392_s1] sm:$0xff]   ;;  %929 = vmatprep.subr.bf16.mxu0 %v1048_v0  ;;  %v1053_v5 = vld [vmem:[%s1392_s1 + $0x8] sm:$0xff]   ;;  %v1057_v9 = vld [vmem:[%s1392_s1 + $0x10] sm:$0xff]  }
   0x3   :  { %v1050_v2 = vld [vmem:[%s1392_s1 + $0xc0] sm:$0xff]   ;;  %930 = vmatpush3.bf16.msra.mxu0 %v1049_v1  ;;  %v1054_v6 = vld [vmem:[%s1392_s1 + $0xc8] sm:$0xff]   ;;  %v1058_v10 = vld [vmem:[%s1392_s1 + $0xd0] sm:$0xff]  }
   0x4   :  { %v1051_v3 = vld [vmem:[%s1392_s1 + $0x80] sm:$0xff]   ;;  %951 = vmatprep.subr.bf16.mxu1 %v1050_v2  ;;  %931 = vmatprep.subr.bf16.mxu0 %v1052_v4  ;;  %v1055_v7 = vld [vmem:[%s1392_s1 + $0x88] sm:$0xff]   ;;  %v1059_v11 = vld [vmem:[%s1392_s1 + $0x90] sm:$0xff]  }
   0x5   :  { %952 = vmatpush3.bf16.msra.mxu1 %v1051_v3  ;;  %v1060_v12 = vld [vmem:[%s1392_s1 + $0x58] sm:$0xff]   ;;  %v1064_v16 = vld [vmem:[%s1392_s1 + $0x60] sm:$0xff]   ;;  %v1068_v20 = vld [vmem:[%s1392_s1 + $0x68] sm:$0xff]  }
   0x6   :  { %953 = vmatprep.subr.bf16.mxu1 %v1054_v6  ;;  %v1061_v13 = vld [vmem:[%s1392_s1 + $0x18] sm:$0xff]   ;;  %v1065_v17 = vld [vmem:[%s1392_s1 + $0x20] sm:$0xff]   ;;  %v1069_v21 = vld [vmem:[%s1392_s1 + $0x28] sm:$0xff]  }
   0x7   :  { %932 = vmatpush3.bf16.msra.mxu0 %v1053_v5  ;;  %v1062_v14 = vld [vmem:[%s1392_s1 + $0xd8] sm:$0xff]   ;;  %v1066_v18 = vld [vmem:[%s1392_s1 + $0xe0] sm:$0xff]   ;;  %v1070_v22 = vld [vmem:[%s1392_s1 + $0xe8] sm:$0xff]  }
   0x8   :  { %933 = vmatprep.subr.bf16.mxu0 %v1056_v8  ;;  %v1063_v15 = vld [vmem:[%s1392_s1 + $0x98] sm:$0xff]   ;;  %v1067_v19 = vld [vmem:[%s1392_s1 + $0xa0] sm:$0xff]   ;;  %v1071_v23 = vld [vmem:[%s1392_s1 + $0xa8] sm:$0xff]  }
   0x9   :  { %954 = vmatpush3.bf16.msra.mxu1 %v1055_v7  ;;  %v1072_v24 = vld [vmem:[%s1392_s1 + $0x70] sm:$0xff]   ;;  %v1076_v28 = vld [vmem:[%s1392_s1 + $0x78] sm:$0xff]   ;;  %v15_v31 = vld [vmem:[%s1393_s0] sm:$0xff] }
   0xa   :  { %955 = vmatprep.subr.bf16.mxu1 %v1058_v10  ;;  %v1073_v25 = vld [vmem:[%s1392_s1 + $0x30] sm:$0xff]   ;;  %v1077_v29 = vld [vmem:[%s1392_s1 + $0x38] sm:$0xff]   ;;  %v848_v32 = vcombine.low %v15_v31, %v15_v31  ;;  %v849_v33 = vcombine.high %v15_v31, %v15_v31  ;;  %v1082_v35 = vld [vmem:[%s1392_s1 + $0x140] sm:$0xff]  }
   0xb   :  { %934 = vmatpush3.bf16.msra.mxu0 %v1057_v9  ;;  %v1074_v26 = vld [vmem:[%s1392_s1 + $0xf0] sm:$0xff]   ;;  %v1078_v30 = vld [vmem:[%s1392_s1 + $0xf8] sm:$0xff]   ;;  %v16_v36 = vld [vmem:[%s1393_s0 + $0x8] sm:$0xff]  ;;  %v1133_v9 = vmov 0.0  }
   0xc   :  { %935 = vmatprep.subr.bf16.mxu0 %v1060_v12  ;;  %v1075_v27 = vld [vmem:[%s1392_s1 + $0xb0] sm:$0xff]   ;;  %v1081_v34 = vld [vmem:[%s1392_s1 + $0xb8] sm:$0xff]   ;;  %667 = vmatprep.mubr.bf16.mxu0 %v849_v33  ;;  %v850_v37 = vcombine.low %v16_v36, %v16_v36  ;;  %v851_v38 = vcombine.high %v16_v36, %v16_v36  ;;  %v1085_v39 = vld [vmem:[%s1392_s1 + $0x100] sm:$0xff]  }
   0xd   :  { %956 = vmatpush3.bf16.msra.mxu1 %v1059_v11  ;;  %v1086_v40 = vld [vmem:[%s1392_s1 + $0x1c0] sm:$0xff]   ;;  %v1088_v42 = vld [vmem:[%s1392_s1 + $0x148] sm:$0xff]   ;;  %v1092_v46 = vld [vmem:[%s1392_s1 + $0x150] sm:$0xff]  }
   0xe   :  { %957 = vmatprep.subr.bf16.mxu1 %v1062_v14  ;;  %707 = vmatprep.mubr.bf16.mxu1 %v851_v38  ;;  %v1087_v41 = vld [vmem:[%s1392_s1 + $0x180] sm:$0xff]   ;;  %v1089_v43 = vld [vmem:[%s1392_s1 + $0x108] sm:$0xff]   ;;  %v1093_v47 = vld [vmem:[%s1392_s1 + $0x110] sm:$0xff]  }
   0xf   :  { %936 = vmatpush3.bf16.msra.mxu0 %v1061_v13  ;;  %v1090_v44 = vld [vmem:[%s1392_s1 + $0x1c8] sm:$0xff]   ;;  %v1094_v48 = vld [vmem:[%s1392_s1 + $0x1d0] sm:$0xff]   ;;  %v1096_v50 = vld [vmem:[%s1392_s1 + $0x158] sm:$0xff]  }
  0x10   :  { %937 = vmatprep.subr.bf16.mxu0 %v1064_v16  ;;  %v1091_v45 = vld [vmem:[%s1392_s1 + $0x188] sm:$0xff]   ;;  %v1095_v49 = vld [vmem:[%s1392_s1 + $0x190] sm:$0xff]   ;;  %v1097_v51 = vld [vmem:[%s1392_s1 + $0x118] sm:$0xff]  }
  0x11   :  { %958 = vmatpush3.bf16.msra.mxu1 %v1063_v15  ;;  %v1098_v52 = vld [vmem:[%s1392_s1 + $0x1d8] sm:$0xff]   ;;  %v1100_v54 = vld [vmem:[%s1392_s1 + $0x160] sm:$0xff]   ;;  %v1104_v58 = vld [vmem:[%s1392_s1 + $0x168] sm:$0xff]  }
  0x12   :  { %959 = vmatprep.subr.bf16.mxu1 %v1066_v18  ;;  %v1099_v53 = vld [vmem:[%s1392_s1 + $0x198] sm:$0xff]   ;;  %v1101_v55 = vld [vmem:[%s1392_s1 + $0x120] sm:$0xff]   ;;  %v1105_v59 = vld [vmem:[%s1392_s1 + $0x128] sm:$0xff]  }
  0x13   :  { %938 = vmatpush3.bf16.msra.mxu0 %v1065_v17  ;;  %v1102_v56 = vld [vmem:[%s1392_s1 + $0x1e0] sm:$0xff]   ;;  %v1106_v60 = vld [vmem:[%s1392_s1 + $0x1e8] sm:$0xff]   ;;  %v1108_v62 = vld [vmem:[%s1392_s1 + $0x170] sm:$0xff]  }
  0x14   :  { %939 = vmatprep.subr.bf16.mxu0 %v1068_v20  ;;  %v1103_v57 = vld [vmem:[%s1392_s1 + $0x1a0] sm:$0xff]   ;;  %v1107_v61 = vld [vmem:[%s1392_s1 + $0x1a8] sm:$0xff]   ;;  %v1109_v63 = vld [vmem:[%s1392_s1 + $0x130] sm:$0xff]  }
  0x15   :  { %960 = vmatpush3.bf16.msra.mxu1 %v1067_v19  ;;  %v1110_v0 = vld [vmem:[%s1392_s1 + $0x1f0] sm:$0xff]   ;;  %v1112_v2 = vld [vmem:[%s1392_s1 + $0x178] sm:$0xff]   ;;  %v1120_v13 = vld [vmem:[%s1392_s1 + $0x200] sm:$0xff]  }
  0x16   :  { %961 = vmatprep.subr.bf16.mxu1 %v1070_v22  ;;  %v1111_v1 = vld [vmem:[%s1392_s1 + $0x1b0] sm:$0xff]   ;;  %v1113_v3 = vld [vmem:[%s1392_s1 + $0x138] sm:$0xff]   ;;  %v1121_v14 = vld [vmem:[%s1392_s1 + $0x208] sm:$0xff]  }
  0x17   :  { %940 = vmatpush3.bf16.msra.mxu0 %v1069_v21  ;;  %v1114_v4 = vld [vmem:[%s1392_s1 + $0x1f8] sm:$0xff]   ;;  %v17_v5 = vld [vmem:[%s1393_s0 + $0x10] sm:$0xff]  ;;  %v1124_v17 = vld [vmem:[%s1392_s1 + $0x220] sm:$0xff]  }
  0x18   :  { %941 = vmatprep.subr.bf16.mxu0 %v1072_v24  ;;  %v852_v6 = vcombine.low %v17_v5, %v17_v5  ;;  %v853_v7 = vcombine.high %v17_v5, %v17_v5  ;;  %v1117_v8 = vld [vmem:[%s1392_s1 + $0x1b8] sm:$0xff]   ;;  %v1122_v15 = vld [vmem:[%s1392_s1 + $0x210] sm:$0xff]   ;;  %v1125_v18 = vld [vmem:[%s1392_s1 + $0x228] sm:$0xff]  }
  0x19   :  { %962 = vmatpush3.bf16.msra.mxu1 %v1071_v23  ;;  %v18_v10 = vld [vmem:[%s1393_s0 + $0x18] sm:$0xff]  ;;  %v1126_v19 = vld [vmem:[%s1392_s1 + $0x230] sm:$0xff]   ;;  %v1128_v21 = vld [vmem:[%s1393_s0 + $0x20] ss:$0 sps:$4 sm:$0xff]  }
  0x1a   :  { %963 = vmatprep.subr.bf16.mxu1 %v1074_v26  ;;  %v854_v11 = vcombine.low %v18_v10, %v18_v10  ;;  %v855_v12 = vcombine.high %v18_v10, %v18_v10  ;;  %v1123_v16 = vld [vmem:[%s1392_s1 + $0x218] sm:$0xff]   ;;  %v847_v23 = vld [vmem:[%s1394_s2] ss:$0 sm:$0xff] }
  0x1b   :  { %942 = vmatpush3.bf16.msra.mxu0 %v1073_v25  ;;  %v1127_v20 = vld [vmem:[%s1392_s1 + $0x238] sm:$0xff]  }
  0x1c   :  { %943 = vmatprep.subr.bf16.mxu0 %v1076_v28 }
  0x1d   :  { %964 = vmatpush3.bf16.msra.mxu1 %v1075_v27 }
  0x1e   :  { %965 = vmatprep.subr.bf16.mxu1 %v1078_v30 }
  0x1f   :  { %944 = vmatpush3.bf16.msra.mxu0 %v1077_v29 }
  0x20   :  { %973 = vmatprep.subr.bf16.mxu0 %v1082_v35 }
  0x21   :  { %966 = vmatpush3.bf16.msra.mxu1 %v1081_v34 }
  0x22   :  { %668 = vmatmul.mubr.bf16.vlgmr.msra.gmra.mrb[0].mxu0 %v848_v32  ;;  %995 = vmatprep.subr.bf16.mxu1 %v1086_v40 }
  0x23   :  { %974 = vmatpush3.bf16.msra.mxu0 %v1085_v39  ;;  %747 = vmatprep.mubr.bf16.mxu0 %v853_v7 }
  0x24   :  { %708 = vmatmul.mubr.bf16.vlgmr.msra.gmra.mrb[0].mxu1 %v850_v37  ;;  %975 = vmatprep.subr.bf16.mxu0 %v1088_v42 }
  0x25   :  { %996 = vmatpush3.bf16.msra.mxu1 %v1087_v41  ;;  %787 = vmatprep.mubr.bf16.mxu1 %v855_v12 }
  0x26   :  { %997 = vmatprep.subr.bf16.mxu1 %v1090_v44 }
  0x27   :  { %976 = vmatpush3.bf16.msra.mxu0 %v1089_v43 }
  0x28   :  { %977 = vmatprep.subr.bf16.mxu0 %v1092_v46 }
  0x29   :  { %998 = vmatpush3.bf16.msra.mxu1 %v1091_v45 }
  0x2a   :  { %999 = vmatprep.subr.bf16.mxu1 %v1094_v48 }
  0x2b   :  { %978 = vmatpush3.bf16.msra.mxu0 %v1093_v47 }
  0x2c   :  { %979 = vmatprep.subr.bf16.mxu0 %v1096_v50 }
  0x2d   :  { %1000 = vmatpush3.bf16.msra.mxu1 %v1095_v49 }
  0x2e   :  { %1001 = vmatprep.subr.bf16.mxu1 %v1098_v52 }
  0x2f   :  { %980 = vmatpush3.bf16.msra.mxu0 %v1097_v51 }
  0x30   :  { %981 = vmatprep.subr.bf16.mxu0 %v1100_v54 }
  0x31   :  { %1002 = vmatpush3.bf16.msra.mxu1 %v1099_v53 }
  0x32   :  { %1003 = vmatprep.subr.bf16.mxu1 %v1102_v56 }
  0x33   :  { %982 = vmatpush3.bf16.msra.mxu0 %v1101_v55 }
  0x34   :  { %983 = vmatprep.subr.bf16.mxu0 %v1104_v58 }
  0x35   :  { %1004 = vmatpush3.bf16.msra.mxu1 %v1103_v57 }
  0x36   :  { %1005 = vmatprep.subr.bf16.mxu1 %v1106_v60 }
  0x37   :  { %984 = vmatpush3.bf16.msra.mxu0 %v1105_v59 }
  0x38   :  { %985 = vmatprep.subr.bf16.mxu0 %v1108_v62 }
  0x39   :  { %1006 = vmatpush3.bf16.msra.mxu1 %v1107_v61 }
  0x3a   :  { %1007 = vmatprep.subr.bf16.mxu1 %v1110_v0 }
  0x3b   :  { %986 = vmatpush3.bf16.msra.mxu0 %v1109_v63 }
  0x3c   :  { %987 = vmatprep.subr.bf16.mxu0 %v1112_v2 }
  0x3d   :  { %1008 = vmatpush3.bf16.msra.mxu1 %v1111_v1 }
  0x3e   :  { %1009 = vmatprep.subr.bf16.mxu1 %v1114_v4 }
  0x3f   :  { %988 = vmatpush3.bf16.msra.mxu0 %v1113_v3 }
  0x40   :  { %1026 = vmatprep.subr.bf16.mxu0 %v1133_v9 }
  0x41   :  { %1010 = vmatpush3.bf16.msra.mxu1 %v1117_v8 }
  0x42   :  { %748 = vmatmul.mubr.bf16.vlgmr.msra.gmra.mrb[4].mxu0 %v852_v6 }
  0x43   :  { %1027 = vmatpush3.bf16.msra.mxu0 %v1120_v13  ;;  %1042 = vmatprep.mubr.msk.bf16.mxu0 %vm1134_vm0, %v1133_v9 }
  0x44   :  { %788 = vmatmul.mubr.bf16.vlgmr.msra.gmra.mrb[4].mxu1 %v854_v11  ;;  %1028 = vmatprep.subr.bf16.mxu0 %v1133_v9 }
  0x47   :  { %1029 = vmatpush3.bf16.msra.mxu0 %v1121_v14 }
  0x48   :  { %1030 = vmatprep.subr.bf16.mxu0 %v1133_v9 }
  0x4b   :  { %1031 = vmatpush3.bf16.msra.mxu0 %v1122_v15 }
  0x4c   :  { %1032 = vmatprep.subr.bf16.mxu0 %v1133_v9 }
  0x4f   :  { %1033 = vmatpush3.bf16.msra.mxu0 %v1123_v16 }
  0x50   :  { %1034 = vmatprep.subr.bf16.mxu0 %v1133_v9 }
  0x53   :  { %1035 = vmatpush3.bf16.msra.mxu0 %v1124_v17 }
  0x54   :  { %1036 = vmatprep.subr.bf16.mxu0 %v1133_v9 }
  0x57   :  { %1037 = vmatpush3.bf16.msra.mxu0 %v1125_v18 }
  0x58   :  { %1038 = vmatprep.subr.bf16.mxu0 %v1133_v9 }
  0x5b   :  { %1039 = vmatpush3.bf16.msra.mxu0 %v1126_v19 }
  0x5c   :  { %1040 = vmatprep.subr.bf16.mxu0 %v1133_v9 }
  0x5f   :  { %1041 = vmatpush3.bf16.msra.mxu0 %v1127_v20 }
  0x62   :  { %1043 = vmatmul.mubr.bf16.vlgmr.msra.gmra.mrb[8].mxu0 %v1128_v21 }
  0xf5   :  { %v945_v22 = vpop.f32.mrb[0].mxu0 }
  0xf6   :  { %v946_v24 = vpop.f32.mrb[1].mxu0 }
  0xf7   :  { %v947_v25 = vadd.f32 %v946_v24, %v945_v22  ;;  %v948_v26 = vpop.f32.mrb[2].mxu0  ;;  %v967_v27 = vpop.f32.mrb[0].mxu1 }
  0xf8   :  { %v949_v28 = vpop.f32.mrb[3].mxu0  ;;  %v968_v29 = vpop.f32.mrb[1].mxu1 }
  0xf9   :  { %v670_v30 = vadd.f32 %v947_v25, %v847_v23  ;;  %v969_v31 = vadd.f32 %v968_v29, %v967_v27  ;;  %v970_v32 = vpop.f32.mrb[2].mxu1 }
  0xfa   :  { %v971_v33 = vpop.f32.mrb[3].mxu1 }
  0xfb   :  { %v710_v34 = vadd.f32 %v969_v31, %v670_v30 }
 0x115   :  { %v989_v35 = vpop.f32.mrb[4].mxu0 }
 0x116   :  { %v990_v36 = vpop.f32.mrb[5].mxu0 }
 0x117   :  { %v991_v37 = vadd.f32 %v990_v36, %v989_v35  ;;  %v992_v38 = vpop.f32.mrb[6].mxu0  ;;  %v1011_v39 = vpop.f32.mrb[4].mxu1 }
 0x118   :  { %v993_v40 = vpop.f32.mrb[7].mxu0  ;;  %v1012_v41 = vpop.f32.mrb[5].mxu1 }
 0x119   :  { %v750_v42 = vadd.f32 %v991_v37, %v710_v34  ;;  %v1013_v43 = vadd.f32 %v1012_v41, %v1011_v39  ;;  %v1014_v44 = vpop.f32.mrb[6].mxu1 }
 0x11a   :  { %v1015_v45 = vpop.f32.mrb[7].mxu1 }
 0x11b   :  { %v790_v46 = vadd.f32 %v1013_v43, %v750_v42 }
 0x135   :  { %v829_v47 = vpop.f32.mrb[8].mxu0 }
 0x136   :  { %v830_v48 = vadd.f32 %v829_v47, %v790_v46  ;;  %v1044_v49 = vpop.f32.mrb[9].mxu0 }
 0x137   :  { %v832_v50 = vpop.f32.mrb[10].mxu0 }
 0x138   :  { %v835_v51 = vsub.f32 0.0, %v830_v48  ;;  %v1045_v52 = vpop.f32.mrb[11].mxu0 }
 0x13a   :  { %v836_v53 = vmul.f32 1.442695, %v835_v51 }
 0x13c   :  { %1129 = vpow2.f32 %v836_v53 }
 0x146   :  { %v1130_v54 = vpop.eup %1129 }
 0x147   :  { %v838_v55 = vadd.f32 1.0, %v1130_v54 }
 0x149   :  { %1131 = vrcp.f32 %v838_v55 }
 0x153   :  { %v1132_v56 = vpop.eup %1131 }
 0x154   :  { %v840_v57 = vmul.f32 %v1132_v56, %v830_v48 }
 0x156   :  { %v841_v58 = vpack.c.bf16 %v840_v57, %v840_v57 }
 0x158   :  { %842 = vst [vmem:[%s1395_s3] sm:$0xf] %v841_v58 }

// kernel: _lambda_.25
= control target key start
LH: loop header
LB: loop body
LE: loop exit
PB: predicated region body
PF: predicated region fallthrough
CT: control target
= control target key end

     0   :  { %s844_s1 = inlined_call_operand.vmem [shape: bf16[128,128], index: 1, kind: input, shape index: {}]   ;;  %s845_s0 = inlined_call_operand.vmem [shape: bf16[128,128], index: 0, kind: input, shape index: {}]   ;;  %s846_s2 = inlined_call_operand.vmem [shape: f32[1,128], index: 2, kind: input, shape index: {}]   ;;  %s847_s3 = inlined_call_operand.vmem [shape: bf16[128,128], index: 3, kind: output, shape index: {}]  }
   0x1   :  { %v587_v0 = vld [vmem:[%s844_s1] sm:$0xff]   ;;  %v588_v1 = vld [vmem:[%s844_s1 + $0x8] sm:$0xff]   ;;  %v589_v2 = vld [vmem:[%s844_s1 + $0x10] sm:$0xff]  }
   0x2   :  { %539 = vmatprep.subr.bf16.mxu0 %v587_v0  ;;  %571 = vmatprep.subr.bf16.mxu1 %v587_v0  ;;  %v590_v3 = vld [vmem:[%s844_s1 + $0x18] sm:$0xff]   ;;  %v595_v4 = vld [vmem:[%s845_s0] sm:$0xff]   ;;  %v592_v7 = vld [vmem:[%s844_s1 + $0x28] sm:$0xff]  }
   0x3   :  { %540 = vmatpush3.bf16.msra.mxu0 %v587_v0  ;;  %579 = vmatpush3.bf16.msra.mxu1 %v587_v0  ;;  %v596_v5 = vld [vmem:[%s845_s0 + $0x20] sm:$0xff]   ;;  %v593_v8 = vld [vmem:[%s844_s1 + $0x30] sm:$0xff]   ;;  %v594_v9 = vld [vmem:[%s844_s1 + $0x38] sm:$0xff]  }
   0x4   :  { %541 = vmatprep.subr.bf16.mxu0 %v588_v1  ;;  %572 = vmatprep.subr.bf16.mxu1 %v588_v1  ;;  %v591_v6 = vld [vmem:[%s844_s1 + $0x20] sm:$0xff]   ;;  %v597_v10 = vld [vmem:[%s845_s0 + $0x8] sm:$0xff]   ;;  %v599_v12 = vld [vmem:[%s845_s0 + $0x10] sm:$0xff]  }
   0x5   :  { %555 = vmatprep.mubr.bf16.mxu0 %v595_v4  ;;  %563 = vmatprep.mubr.bf16.mxu1 %v596_v5  ;;  %v598_v11 = vld [vmem:[%s845_s0 + $0x28] sm:$0xff]   ;;  %v600_v13 = vld [vmem:[%s845_s0 + $0x30] sm:$0xff]   ;;  %v601_v14 = vld [vmem:[%s845_s0 + $0x18] sm:$0xff]  }
   0x6   :  { %v602_v15 = vld [vmem:[%s845_s0 + $0x38] sm:$0xff]   ;;  %v738_v16 = vld [vmem:[%s846_s2] ss:$0 sm:$0xff] }
   0x7   :  { %542 = vmatpush3.bf16.msra.mxu0 %v588_v1  ;;  %580 = vmatpush3.bf16.msra.mxu1 %v588_v1 }
   0x8   :  { %543 = vmatprep.subr.bf16.mxu0 %v589_v2  ;;  %573 = vmatprep.subr.bf16.mxu1 %v589_v2 }
   0xb   :  { %544 = vmatpush3.bf16.msra.mxu0 %v589_v2  ;;  %581 = vmatpush3.bf16.msra.mxu1 %v589_v2 }
   0xc   :  { %545 = vmatprep.subr.bf16.mxu0 %v590_v3  ;;  %574 = vmatprep.subr.bf16.mxu1 %v590_v3 }
   0xf   :  { %546 = vmatpush3.bf16.msra.mxu0 %v590_v3  ;;  %582 = vmatpush3.bf16.msra.mxu1 %v590_v3 }
  0x10   :  { %547 = vmatprep.subr.bf16.mxu0 %v591_v6  ;;  %575 = vmatprep.subr.bf16.mxu1 %v591_v6 }
  0x13   :  { %548 = vmatpush3.bf16.msra.mxu0 %v591_v6  ;;  %583 = vmatpush3.bf16.msra.mxu1 %v591_v6 }
  0x14   :  { %549 = vmatprep.subr.bf16.mxu0 %v592_v7  ;;  %576 = vmatprep.subr.bf16.mxu1 %v592_v7 }
  0x17   :  { %550 = vmatpush3.bf16.msra.mxu0 %v592_v7  ;;  %584 = vmatpush3.bf16.msra.mxu1 %v592_v7 }
  0x18   :  { %551 = vmatprep.subr.bf16.mxu0 %v593_v8  ;;  %577 = vmatprep.subr.bf16.mxu1 %v593_v8 }
  0x1b   :  { %552 = vmatpush3.bf16.msra.mxu0 %v593_v8  ;;  %585 = vmatpush3.bf16.msra.mxu1 %v593_v8 }
  0x1c   :  { %553 = vmatprep.subr.bf16.mxu0 %v594_v9  ;;  %578 = vmatprep.subr.bf16.mxu1 %v594_v9 }
  0x1f   :  { %554 = vmatpush3.bf16.msra.mxu0 %v594_v9  ;;  %586 = vmatpush3.bf16.msra.mxu1 %v594_v9 }
  0x22   :  { %556 = vmatmul.mubr.bf16.vlgmr.msra.gmra.mrb[0].mxu0 %v597_v10  ;;  %564 = vmatmul.mubr.bf16.vlgmr.msra.gmra.mrb[0].mxu1 %v598_v11 }
  0x23   :  { %559 = vmatprep.mubr.bf16.mxu0 %v599_v12  ;;  %567 = vmatprep.mubr.bf16.mxu1 %v600_v13 }
  0x2a   :  { %560 = vmatmul.mubr.bf16.gmra.mrb[4].mxu0 %v601_v14  ;;  %568 = vmatmul.mubr.bf16.gmra.mrb[4].mxu1 %v602_v15 }
  0xf5   :  { %v557_v17 = vpop.f32.mrb[0].mxu0  ;;  %v565_v18 = vpop.f32.mrb[0].mxu1 }
  0xf6   :  { %v741_v19 = vadd.f32 %v557_v17, %v738_v16  ;;  %v744_v20 = vadd.f32 %v565_v18, %v738_v16  ;;  %v184_v21 = vpop.f32.mrb[1].mxu0  ;;  %v216_v22 = vpop.f32.mrb[1].mxu1 }
  0xf7   :  { %v747_v23 = vadd.f32 %v738_v16, %v184_v21  ;;  %v750_v24 = vadd.f32 %v738_v16, %v216_v22  ;;  %v558_v25 = vpop.f32.mrb[2].mxu0  ;;  %v566_v26 = vpop.f32.mrb[2].mxu1 }
  0xf8   :  { %v249_v27 = vsub.f32 0.0, %v741_v19  ;;  %v257_v28 = vsub.f32 0.0, %v744_v20  ;;  %v755_v29 = vadd.f32 %v558_v25, %v738_v16  ;;  %v758_v30 = vadd.f32 %v566_v26, %v738_v16  ;;  %v187_v31 = vpop.f32.mrb[3].mxu0  ;;  %v219_v32 = vpop.f32.mrb[3].mxu1 }
  0xf9   :  { %v247_v33 = vsub.f32 0.0, %v747_v23  ;;  %v255_v34 = vsub.f32 0.0, %v750_v24  ;;  %v763_v35 = vadd.f32 %v738_v16, %v187_v31  ;;  %v766_v36 = vadd.f32 %v738_v16, %v219_v32 }
  0xfa   :  { %v267_v37 = vmul.f32 1.442695, %v249_v27  ;;  %v283_v38 = vmul.f32 1.442695, %v257_v28  ;;  %v250_v39 = vsub.f32 0.0, %v755_v29  ;;  %v258_v40 = vsub.f32 0.0, %v758_v30 }
  0xfb   :  { %v263_v41 = vmul.f32 1.442695, %v247_v33  ;;  %v279_v42 = vmul.f32 1.442695, %v255_v34  ;;  %v248_v43 = vsub.f32 0.0, %v763_v35  ;;  %v256_v44 = vsub.f32 0.0, %v766_v36 }
  0xfc   :  { %603 = vpow2.f32 %v267_v37  ;;  %v269_v45 = vmul.f32 1.442695, %v250_v39  ;;  %v285_v46 = vmul.f32 1.442695, %v258_v40 }
  0xfd   :  { %605 = vpow2.f32 %v283_v38  ;;  %v561_v47 = vpop.f32.mrb[4].mxu0  ;;  %v569_v48 = vpop.f32.mrb[4].mxu1  ;;  %v265_v49 = vmul.f32 1.442695, %v248_v43  ;;  %v281_v54 = vmul.f32 1.442695, %v256_v44 }
  0xfe   :  { %607 = vpow2.f32 %v263_v41  ;;  %v773_v50 = vadd.f32 %v561_v47, %v738_v16  ;;  %v776_v51 = vadd.f32 %v569_v48, %v738_v16  ;;  %v200_v52 = vpop.f32.mrb[5].mxu0  ;;  %v232_v53 = vpop.f32.mrb[5].mxu1 }
  0xff   :  { %609 = vpow2.f32 %v279_v42  ;;  %v779_v55 = vadd.f32 %v738_v16, %v200_v52  ;;  %v562_v56 = vpop.f32.mrb[6].mxu0  ;;  %v570_v57 = vpop.f32.mrb[6].mxu1  ;;  %v789_v5 = vadd.f32 %v738_v16, %v232_v53 }
 0x100   :  { %611 = vpow2.f32 %v269_v45  ;;  %v253_v58 = vsub.f32 0.0, %v773_v50  ;;  %v261_v59 = vsub.f32 0.0, %v776_v51  ;;  %v784_v60 = vadd.f32 %v562_v56, %v738_v16  ;;  %v203_v61 = vpop.f32.mrb[7].mxu0  ;;  %v235_v62 = vpop.f32.mrb[7].mxu1 }
 0x101   :  { %613 = vpow2.f32 %v285_v46  ;;  %v251_v63 = vsub.f32 0.0, %v779_v55  ;;  %v259_v13 = vsub.f32 0.0, %v789_v5  ;;  %v793_v17 = vadd.f32 %v570_v57, %v738_v16 }
 0x102   :  { %615 = vpow2.f32 %v265_v49  ;;  %v275_v0 = vmul.f32 1.442695, %v253_v58  ;;  %v291_v1 = vmul.f32 1.442695, %v261_v59  ;;  %v254_v2 = vsub.f32 0.0, %v784_v60 }
 0x103   :  { %617 = vpow2.f32 %v281_v54  ;;  %v271_v3 = vmul.f32 1.442695, %v251_v63  ;;  %v796_v22 = vadd.f32 %v738_v16, %v203_v61  ;;  %v799_v27 = vadd.f32 %v738_v16, %v235_v62 }
 0x104   :  { %619 = vpow2.f32 %v275_v0  ;;  %v277_v4 = vmul.f32 1.442695, %v254_v2  ;;  %v287_v32 = vmul.f32 1.442695, %v259_v13  ;;  %v262_v37 = vsub.f32 0.0, %v793_v17 }
 0x105   :  { %621 = vpow2.f32 %v291_v1  ;;  %v252_v39 = vsub.f32 0.0, %v796_v22  ;;  %v260_v41 = vsub.f32 0.0, %v799_v27 }
 0x106   :  { %v604_v6 = vpop.eup %603  ;;  %623 = vpow2.f32 %v271_v3  ;;  %v293_v43 = vmul.f32 1.442695, %v262_v37 }
 0x107   :  { %v606_v7 = vpop.eup %605  ;;  %v297_v8 = vadd.f32 1.0, %v604_v6  ;;  %625 = vpow2.f32 %v277_v4  ;;  %v273_v46 = vmul.f32 1.442695, %v252_v39  ;;  %v289_v48 = vmul.f32 1.442695, %v260_v41 }
 0x108   :  { %v608_v9 = vpop.eup %607  ;;  %v305_v10 = vadd.f32 1.0, %v606_v7 }
 0x109   :  { %v610_v11 = vpop.eup %609  ;;  %627 = vrcp.f32 %v297_v8  ;;  %v295_v12 = vadd.f32 1.0, %v608_v9 }
 0x10a   :  { %v612_v14 = vpop.eup %611  ;;  %629 = vrcp.f32 %v305_v10  ;;  %v303_v15 = vadd.f32 1.0, %v610_v11 }
 0x10b   :  { %v614_v18 = vpop.eup %613  ;;  %631 = vrcp.f32 %v295_v12  ;;  %v298_v21 = vadd.f32 1.0, %v612_v14 }
 0x10c   :  { %v616_v25 = vpop.eup %615  ;;  %633 = vrcp.f32 %v303_v15  ;;  %v306_v26 = vadd.f32 1.0, %v614_v18 }
 0x10d   :  { %v618_v28 = vpop.eup %617  ;;  %635 = vrcp.f32 %v298_v21  ;;  %v296_v31 = vadd.f32 1.0, %v616_v25 }
 0x10e   :  { %v620_v33 = vpop.eup %619  ;;  %637 = vrcp.f32 %v306_v26  ;;  %v304_v34 = vadd.f32 1.0, %v618_v28 }
 0x10f   :  { %639 = vrcp.f32 %v296_v31  ;;  %v301_v38 = vadd.f32 1.0, %v620_v33  ;;  %v622_v40 = vpop.eup %621 }
 0x110   :  { %641 = vrcp.f32 %v304_v34  ;;  %v624_v42 = vpop.eup %623 }
 0x111   :  { %643 = vpow2.f32 %v287_v32  ;;  %v626_v16 = vpop.eup %625 }
 0x112   :  { %645 = vrcp.f32 %v301_v38  ;;  %v302_v45 = vadd.f32 1.0, %v626_v16 }
 0x113   :  { %v628_v44 = vpop.eup %627 }
 0x114   :  { %v630_v47 = vpop.eup %629  ;;  %647 = vrcp.f32 %v302_v45  ;;  %v329_v56 = vmul.f32 %v628_v44, %v741_v19 }
 0x115   :  { %v632_v49 = vpop.eup %631  ;;  %649 = vpow2.f32 %v293_v43  ;;  %v337_v59 = vmul.f32 %v630_v47, %v744_v20  ;;  %v309_v20 = vadd.f32 1.0, %v622_v40 }
 0x116   :  { %v634_v52 = vpop.eup %633  ;;  %651 = vpow2.f32 %v273_v46  ;;  %v327_v63 = vmul.f32 %v632_v49, %v747_v23 }
 0x117   :  { %v636_v53 = vpop.eup %635  ;;  %653 = vpow2.f32 %v289_v48  ;;  %v335_v3 = vmul.f32 %v634_v52, %v750_v24 }
 0x118   :  { %v638_v54 = vpop.eup %637  ;;  %v330_v57 = vmul.f32 %v636_v53, %v755_v29  ;;  %655 = vrcp.f32 %v309_v20 }
 0x119   :  { %v640_v58 = vpop.eup %639  ;;  %v338_v61 = vmul.f32 %v638_v54, %v758_v30  ;;  %v299_v30 = vadd.f32 1.0, %v624_v42 }
 0x11a   :  { %v642_v62 = vpop.eup %641  ;;  %v484_v0 = vpack.c.bf16 %v330_v57, %v329_v56  ;;  %v328_v1 = vmul.f32 %v640_v58, %v763_v35 }
 0x11b   :  { %v644_v2 = vpop.eup %643  ;;  %v504_v4 = vpack.c.bf16 %v338_v61, %v337_v59  ;;  %v336_v19 = vmul.f32 %v642_v62, %v766_v36  ;;  %657 = vrcp.f32 %v299_v30 }
 0x11c   :  { %516 = vst [vmem:[%s847_s3 + $0x8] sm:$0xff] %v484_v0   ;;  %v479_v29 = vpack.c.bf16 %v328_v1, %v327_v63  ;;  %v646_v6 = vpop.eup %645  ;;  %v307_v24 = vadd.f32 1.0, %v644_v2 }
 0x11d   :  { %520 = vst [vmem:[%s847_s3 + $0x28] sm:$0xff] %v504_v4   ;;  %v499_v23 = vpack.c.bf16 %v336_v19, %v335_v3  ;;  %v333_v7 = vmul.f32 %v646_v6, %v773_v50 }
 0x11e   :  { %480 = vst [vmem:[%s847_s3] sm:$0xff] %v479_v29   ;;  %v648_v35 = vpop.eup %647  ;;  %659 = vrcp.f32 %v307_v24 }
 0x11f   :  { %519 = vst [vmem:[%s847_s3 + $0x20] sm:$0xff] %v499_v23   ;;  %v650_v36 = vpop.eup %649  ;;  %v334_v8 = vmul.f32 %v648_v35, %v784_v60 }
 0x120   :  { %v652_v9 = vpop.eup %651  ;;  %v310_v10 = vadd.f32 1.0, %v650_v36 }
 0x121   :  { %v654_v11 = vpop.eup %653  ;;  %v494_v12 = vpack.c.bf16 %v334_v8, %v333_v7  ;;  %v300_v13 = vadd.f32 1.0, %v652_v9 }
 0x122   :  { %661 = vrcp.f32 %v310_v10  ;;  %v308_v14 = vadd.f32 1.0, %v654_v11  ;;  %v656_v15 = vpop.eup %655 }
 0x123   :  { %518 = vst [vmem:[%s847_s3 + $0x18] sm:$0xff] %v494_v12   ;;  %663 = vrcp.f32 %v300_v13  ;;  %v341_v25 = vmul.f32 %v656_v15, %v776_v51 }
 0x124   :  { %665 = vrcp.f32 %v308_v14 }
 0x125   :  { %v658_v50 = vpop.eup %657 }
 0x126   :  { %v331_v31 = vmul.f32 %v658_v50, %v779_v55 }
 0x128   :  { %v660_v18 = vpop.eup %659 }
 0x129   :  { %v339_v33 = vmul.f32 %v660_v18, %v789_v5 }
 0x12c   :  { %v662_v21 = vpop.eup %661 }
 0x12d   :  { %v664_v60 = vpop.eup %663  ;;  %v342_v26 = vmul.f32 %v662_v21, %v793_v17 }
 0x12e   :  { %v666_v28 = vpop.eup %665  ;;  %v332_v32 = vmul.f32 %v664_v60, %v796_v22 }
 0x12f   :  { %v514_v34 = vpack.c.bf16 %v342_v26, %v341_v25  ;;  %v340_v37 = vmul.f32 %v666_v28, %v799_v27 }
 0x130   :  { %v489_v38 = vpack.c.bf16 %v332_v32, %v331_v31 }
 0x131   :  { %522 = vst [vmem:[%s847_s3 + $0x38] sm:$0xff] %v514_v34   ;;  %v509_v39 = vpack.c.bf16 %v340_v37, %v339_v33 }
 0x132   :  { %517 = vst [vmem:[%s847_s3 + $0x10] sm:$0xff] %v489_v38  }
 0x133   :  { %521 = vst [vmem:[%s847_s3 + $0x30] sm:$0xff] %v509_v39  }

// kernel: _lambda_.29
= control target key start
LH: loop header
LB: loop body
LE: loop exit
PB: predicated region body
PF: predicated region fallthrough
CT: control target
= control target key end

     0   :  { %s820_s1 = inlined_call_operand.vmem [shape: bf16[256,128], index: 1, kind: input, shape index: {}]   ;;  %s821_s0 = inlined_call_operand.vmem [shape: bf16[128,256], index: 0, kind: input, shape index: {}]   ;;  %s822_s2 = inlined_call_operand.vmem [shape: f32[1,128], index: 2, kind: input, shape index: {}]   ;;  %s823_s3 = inlined_call_operand.vmem [shape: bf16[128,128], index: 3, kind: output, shape index: {}]  }
   0x1   :  { %v619_v0 = vld [vmem:[%s820_s1 + $0x40] sm:$0xff]   ;;  %v621_v2 = vld [vmem:[%s820_s1 + $0x48] sm:$0xff]   ;;  %v623_v4 = vld [vmem:[%s820_s1 + $0x50] sm:$0xff]  }
   0x2   :  { %v620_v1 = vld [vmem:[%s820_s1] sm:$0xff]   ;;  %539 = vmatprep.subr.bf16.mxu0 %v619_v0  ;;  %603 = vmatprep.subr.bf16.mxu1 %v619_v0  ;;  %v622_v3 = vld [vmem:[%s820_s1 + $0x8] sm:$0xff]   ;;  %v624_v5 = vld [vmem:[%s820_s1 + $0x10] sm:$0xff]  }
   0x3   :  { %540 = vmatpush3.bf16.msra.mxu0 %v620_v1  ;;  %611 = vmatpush3.bf16.msra.mxu1 %v620_v1  ;;  %v625_v6 = vld [vmem:[%s820_s1 + $0x58] sm:$0xff]   ;;  %v627_v8 = vld [vmem:[%s820_s1 + $0x60] sm:$0xff]   ;;  %v629_v10 = vld [vmem:[%s820_s1 + $0x68] sm:$0xff]  }
   0x4   :  { %541 = vmatprep.subr.bf16.mxu0 %v621_v2  ;;  %604 = vmatprep.subr.bf16.mxu1 %v621_v2  ;;  %v626_v7 = vld [vmem:[%s820_s1 + $0x18] sm:$0xff]   ;;  %v628_v9 = vld [vmem:[%s820_s1 + $0x20] sm:$0xff]   ;;  %v630_v13 = vld [vmem:[%s820_s1 + $0x28] sm:$0xff]  }
   0x5   :  { %v637_v11 = vld [vmem:[%s821_s0 + $0x4] ss:$8 sps:$4 sm:$0xff]   ;;  %v631_v14 = vld [vmem:[%s820_s1 + $0x70] sm:$0xff]   ;;  %v633_v16 = vld [vmem:[%s820_s1 + $0x78] sm:$0xff]  }
   0x6   :  { %v640_v12 = vld [vmem:[%s821_s0 + $0x44] ss:$8 sps:$4 sm:$0xff]   ;;  %278 = vmatprep.mubr.bf16.mxu0 %v637_v11  ;;  %v632_v15 = vld [vmem:[%s820_s1 + $0x30] sm:$0xff]   ;;  %v634_v17 = vld [vmem:[%s820_s1 + $0x38] sm:$0xff]  }
   0x7   :  { %542 = vmatpush3.bf16.msra.mxu0 %v622_v3  ;;  %612 = vmatpush3.bf16.msra.mxu1 %v622_v3  ;;  %v635_v18 = vld [vmem:[%s821_s0] ss:$8 sps:$4 sm:$0xff]   ;;  %v641_v20 = vld [vmem:[%s821_s0 + $0x14] ss:$8 sps:$4 sm:$0xff]   ;;  %v645_v22 = vld [vmem:[%s821_s0 + $0x10] ss:$8 sps:$4 sm:$0xff]  }
   0x8   :  { %543 = vmatprep.subr.bf16.mxu0 %v623_v4  ;;  %605 = vmatprep.subr.bf16.mxu1 %v623_v4  ;;  %v638_v19 = vld [vmem:[%s821_s0 + $0x40] ss:$8 sps:$4 sm:$0xff]   ;;  %v643_v21 = vld [vmem:[%s821_s0 + $0x54] ss:$8 sps:$4 sm:$0xff]   ;;  %v646_v23 = vld [vmem:[%s821_s0 + $0x50] ss:$8 sps:$4 sm:$0xff]  }
   0x9   :  { %310 = vmatprep.mubr.bf16.mxu1 %v640_v12  ;;  %v647_v24 = vld [vmem:[%s821_s0 + $0x24] ss:$8 sps:$4 sm:$0xff]   ;;  %v651_v26 = vld [vmem:[%s821_s0 + $0x20] ss:$8 sps:$4 sm:$0xff]   ;;  %v653_v28 = vld [vmem:[%s821_s0 + $0x34] ss:$8 sps:$4 sm:$0xff]  }
   0xa   :  { %v649_v25 = vld [vmem:[%s821_s0 + $0x64] ss:$8 sps:$4 sm:$0xff]   ;;  %v652_v27 = vld [vmem:[%s821_s0 + $0x60] ss:$8 sps:$4 sm:$0xff]   ;;  %v655_v29 = vld [vmem:[%s821_s0 + $0x74] ss:$8 sps:$4 sm:$0xff]  }
   0xb   :  { %544 = vmatpush3.bf16.msra.mxu0 %v624_v5  ;;  %613 = vmatpush3.bf16.msra.mxu1 %v624_v5  ;;  %v657_v30 = vld [vmem:[%s821_s0 + $0x30] ss:$8 sps:$4 sm:$0xff]   ;;  %v778_v40 = vld [vmem:[%s822_s2] ss:$0 sm:$0xff] }
   0xc   :  { %545 = vmatprep.subr.bf16.mxu0 %v625_v6  ;;  %606 = vmatprep.subr.bf16.mxu1 %v625_v6  ;;  %v658_v31 = vld [vmem:[%s821_s0 + $0x70] ss:$8 sps:$4 sm:$0xff]  }
   0xf   :  { %546 = vmatpush3.bf16.msra.mxu0 %v626_v7  ;;  %614 = vmatpush3.bf16.msra.mxu1 %v626_v7 }
  0x10   :  { %547 = vmatprep.subr.bf16.mxu0 %v627_v8  ;;  %607 = vmatprep.subr.bf16.mxu1 %v627_v8 }
  0x13   :  { %548 = vmatpush3.bf16.msra.mxu0 %v628_v9  ;;  %615 = vmatpush3.bf16.msra.mxu1 %v628_v9 }
  0x14   :  { %549 = vmatprep.subr.bf16.mxu0 %v629_v10  ;;  %608 = vmatprep.subr.bf16.mxu1 %v629_v10 }
  0x17   :  { %550 = vmatpush3.bf16.msra.mxu0 %v630_v13  ;;  %616 = vmatpush3.bf16.msra.mxu1 %v630_v13 }
  0x18   :  { %551 = vmatprep.subr.bf16.mxu0 %v631_v14  ;;  %609 = vmatprep.subr.bf16.mxu1 %v631_v14 }
  0x1b   :  { %552 = vmatpush3.bf16.msra.mxu0 %v632_v15  ;;  %617 = vmatpush3.bf16.msra.mxu1 %v632_v15 }
  0x1c   :  { %553 = vmatprep.subr.bf16.mxu0 %v633_v16  ;;  %610 = vmatprep.subr.bf16.mxu1 %v633_v16 }
  0x1f   :  { %554 = vmatpush3.bf16.msra.mxu0 %v634_v17  ;;  %618 = vmatpush3.bf16.msra.mxu1 %v634_v17 }
  0x22   :  { %279 = vmatmul.mubr.bf16.vlgmr.msra.gmra.mrb[0].mxu0 %v635_v18  ;;  %311 = vmatmul.mubr.bf16.vlgmr.msra.gmra.mrb[0].mxu1 %v638_v19 }
  0x23   :  { %286 = vmatprep.mubr.bf16.mxu0 %v641_v20  ;;  %318 = vmatprep.mubr.bf16.mxu1 %v643_v21 }
  0x2a   :  { %287 = vmatmul.mubr.bf16.gmra.mrb[4].mxu0 %v645_v22  ;;  %319 = vmatmul.mubr.bf16.gmra.mrb[4].mxu1 %v646_v23 }
  0x2b   :  { %294 = vmatprep.mubr.bf16.mxu0 %v647_v24  ;;  %326 = vmatprep.mubr.bf16.mxu1 %v649_v25 }
  0x32   :  { %295 = vmatmul.mubr.bf16.gmra.mrb[8].mxu0 %v651_v26  ;;  %327 = vmatmul.mubr.bf16.gmra.mrb[8].mxu1 %v652_v27 }
  0x33   :  { %302 = vmatprep.mubr.bf16.mxu0 %v653_v28  ;;  %334 = vmatprep.mubr.bf16.mxu1 %v655_v29 }
  0x3a   :  { %303 = vmatmul.mubr.bf16.gmra.mrb[12].mxu0 %v657_v30  ;;  %335 = vmatmul.mubr.bf16.gmra.mrb[12].mxu1 %v658_v31 }
  0xf5   :  { %v555_v32 = vpop.f32.mrb[0].mxu0  ;;  %v579_v33 = vpop.f32.mrb[0].mxu1 }
  0xf6   :  { %v556_v34 = vpop.f32.mrb[1].mxu0  ;;  %v580_v35 = vpop.f32.mrb[1].mxu1 }
  0xf7   :  { %v557_v36 = vadd.f32 %v556_v34, %v555_v32  ;;  %v581_v37 = vadd.f32 %v580_v35, %v579_v33  ;;  %v558_v38 = vpop.f32.mrb[2].mxu0  ;;  %v582_v39 = vpop.f32.mrb[2].mxu1 }
  0xf8   :  { %v559_v41 = vpop.f32.mrb[3].mxu0  ;;  %v583_v42 = vpop.f32.mrb[3].mxu1 }
  0xf9   :  { %v560_v43 = vadd.f32 %v559_v41, %v558_v38  ;;  %v584_v44 = vadd.f32 %v583_v42, %v582_v39  ;;  %v281_v45 = vadd.f32 %v557_v36, %v778_v40  ;;  %v313_v46 = vadd.f32 %v581_v37, %v778_v40 }
  0xfb   :  { %v284_v47 = vadd.f32 %v560_v43, %v778_v40  ;;  %v316_v48 = vadd.f32 %v584_v44, %v778_v40 }
  0xfd   :  { %v495_v49 = vpack.c.bf16 %v284_v47, %v281_v45  ;;  %v515_v50 = vpack.c.bf16 %v316_v48, %v313_v46  ;;  %v561_v51 = vpop.f32.mrb[4].mxu0  ;;  %v585_v52 = vpop.f32.mrb[4].mxu1 }
  0xfe   :  { %v562_v53 = vpop.f32.mrb[5].mxu0  ;;  %v586_v54 = vpop.f32.mrb[5].mxu1 }
  0xff   :  { %496 = vst [vmem:[%s823_s3] sm:$0xff] %v495_v49   ;;  %535 = vst [vmem:[%s823_s3 + $0x20] sm:$0xff] %v515_v50   ;;  %v563_v55 = vadd.f32 %v562_v53, %v561_v51  ;;  %v587_v56 = vadd.f32 %v586_v54, %v585_v52  ;;  %v564_v57 = vpop.f32.mrb[6].mxu0  ;;  %v588_v58 = vpop.f32.mrb[6].mxu1 }
 0x100   :  { %v565_v59 = vpop.f32.mrb[7].mxu0  ;;  %v589_v60 = vpop.f32.mrb[7].mxu1 }
 0x101   :  { %v566_v61 = vadd.f32 %v565_v59, %v564_v57  ;;  %v590_v62 = vadd.f32 %v589_v60, %v588_v58  ;;  %v289_v63 = vadd.f32 %v563_v55, %v778_v40  ;;  %v321_v0 = vadd.f32 %v587_v56, %v778_v40 }
 0x103   :  { %v292_v1 = vadd.f32 %v566_v61, %v778_v40  ;;  %v324_v2 = vadd.f32 %v590_v62, %v778_v40 }
 0x105   :  { %v500_v3 = vpack.c.bf16 %v292_v1, %v289_v63  ;;  %v520_v4 = vpack.c.bf16 %v324_v2, %v321_v0  ;;  %v567_v5 = vpop.f32.mrb[8].mxu0  ;;  %v591_v6 = vpop.f32.mrb[8].mxu1 }
 0x106   :  { %v568_v7 = vpop.f32.mrb[9].mxu0  ;;  %v592_v8 = vpop.f32.mrb[9].mxu1 }
 0x107   :  { %532 = vst [vmem:[%s823_s3 + $0x8] sm:$0xff] %v500_v3   ;;  %536 = vst [vmem:[%s823_s3 + $0x28] sm:$0xff] %v520_v4   ;;  %v569_v9 = vadd.f32 %v568_v7, %v567_v5  ;;  %v593_v10 = vadd.f32 %v592_v8, %v591_v6  ;;  %v570_v11 = vpop.f32.mrb[10].mxu0  ;;  %v594_v12 = vpop.f32.mrb[10].mxu1 }
 0x108   :  { %v571_v13 = vpop.f32.mrb[11].mxu0  ;;  %v595_v14 = vpop.f32.mrb[11].mxu1 }
 0x109   :  { %v572_v15 = vadd.f32 %v571_v13, %v570_v11  ;;  %v596_v16 = vadd.f32 %v595_v14, %v594_v12  ;;  %v297_v17 = vadd.f32 %v569_v9, %v778_v40  ;;  %v329_v18 = vadd.f32 %v593_v10, %v778_v40 }
 0x10b   :  { %v300_v19 = vadd.f32 %v572_v15, %v778_v40  ;;  %v332_v20 = vadd.f32 %v596_v16, %v778_v40 }
 0x10d   :  { %v505_v21 = vpack.c.bf16 %v300_v19, %v297_v17  ;;  %v525_v22 = vpack.c.bf16 %v332_v20, %v329_v18  ;;  %v573_v23 = vpop.f32.mrb[12].mxu0  ;;  %v597_v24 = vpop.f32.mrb[12].mxu1 }
 0x10e   :  { %v574_v25 = vpop.f32.mrb[13].mxu0  ;;  %v598_v26 = vpop.f32.mrb[13].mxu1 }
 0x10f   :  { %533 = vst [vmem:[%s823_s3 + $0x10] sm:$0xff] %v505_v21   ;;  %537 = vst [vmem:[%s823_s3 + $0x30] sm:$0xff] %v525_v22   ;;  %v575_v27 = vadd.f32 %v574_v25, %v573_v23  ;;  %v599_v28 = vadd.f32 %v598_v26, %v597_v24  ;;  %v576_v29 = vpop.f32.mrb[14].mxu0  ;;  %v600_v30 = vpop.f32.mrb[14].mxu1 }
 0x110   :  { %v577_v31 = vpop.f32.mrb[15].mxu0  ;;  %v601_v32 = vpop.f32.mrb[15].mxu1 }
 0x111   :  { %v578_v33 = vadd.f32 %v577_v31, %v576_v29  ;;  %v602_v34 = vadd.f32 %v601_v32, %v600_v30  ;;  %v305_v35 = vadd.f32 %v575_v27, %v778_v40  ;;  %v337_v36 = vadd.f32 %v599_v28, %v778_v40 }
 0x113   :  { %v308_v37 = vadd.f32 %v578_v33, %v778_v40  ;;  %v340_v38 = vadd.f32 %v602_v34, %v778_v40 }
 0x115   :  { %v510_v39 = vpack.c.bf16 %v308_v37, %v305_v35  ;;  %v530_v41 = vpack.c.bf16 %v340_v38, %v337_v36 }
 0x117   :  { %534 = vst [vmem:[%s823_s3 + $0x18] sm:$0xff] %v510_v39   ;;  %538 = vst [vmem:[%s823_s3 + $0x38] sm:$0xff] %v530_v41  }

// kernel: _lambda_.32
= control target key start
LH: loop header
LB: loop body
LE: loop exit
PB: predicated region body
PF: predicated region fallthrough
CT: control target
= control target key end

     0   :  { %s442_s1 = inlined_call_operand.vmem [shape: bf16[256,128], index: 1, kind: input, shape index: {}]   ;;  %s443_s0 = inlined_call_operand.vmem [shape: bf16[32,256], index: 0, kind: input, shape index: {}]   ;;  %s444_s2 = inlined_call_operand.vmem [shape: f32[1,128], index: 2, kind: input, shape index: {}]   ;;  %s445_s3 = inlined_call_operand.vmem [shape: bf16[32,128], index: 3, kind: output, shape index: {}]  }
   0x1   :  { %v331_v0 = vld [vmem:[%s442_s1 + $0x40] sm:$0xff]   ;;  %v333_v2 = vld [vmem:[%s442_s1 + $0x48] sm:$0xff]   ;;  %v335_v4 = vld [vmem:[%s442_s1 + $0x50] sm:$0xff]  }
   0x2   :  { %v332_v1 = vld [vmem:[%s442_s1] sm:$0xff]   ;;  %287 = vmatprep.subr.bf16.mxu0 %v331_v0  ;;  %315 = vmatprep.subr.bf16.mxu1 %v331_v0  ;;  %v334_v3 = vld [vmem:[%s442_s1 + $0x8] sm:$0xff]   ;;  %v336_v5 = vld [vmem:[%s442_s1 + $0x10] sm:$0xff]  }
   0x3   :  { %288 = vmatpush3.bf16.msra.mxu0 %v332_v1  ;;  %323 = vmatpush3.bf16.msra.mxu1 %v332_v1  ;;  %v337_v6 = vld [vmem:[%s442_s1 + $0x58] sm:$0xff]   ;;  %v339_v8 = vld [vmem:[%s442_s1 + $0x60] sm:$0xff]   ;;  %v341_v10 = vld [vmem:[%s442_s1 + $0x68] sm:$0xff]  }
   0x4   :  { %289 = vmatprep.subr.bf16.mxu0 %v333_v2  ;;  %316 = vmatprep.subr.bf16.mxu1 %v333_v2  ;;  %v338_v7 = vld [vmem:[%s442_s1 + $0x18] sm:$0xff]   ;;  %v340_v9 = vld [vmem:[%s442_s1 + $0x20] sm:$0xff]   ;;  %v342_v13 = vld [vmem:[%s442_s1 + $0x28] sm:$0xff]  }
   0x5   :  { %v349_v11 = vld [vmem:[%s443_s0 + $0x4] ss:$8 sps:$4 sm:$0xff]   ;;  %v352_v12 = vld [vmem:[%s443_s0 + $0x14] ss:$8 sps:$4 sm:$0xff]   ;;  %v347_v18 = vld [vmem:[%s443_s0] ss:$8 sps:$4 sm:$0xff]  }
   0x6   :  { %v343_v14 = vld [vmem:[%s442_s1 + $0x70] sm:$0xff]   ;;  %206 = vmatprep.mubr.bf16.mxu0 %v349_v11  ;;  %214 = vmatprep.mubr.bf16.mxu1 %v352_v12  ;;  %v345_v16 = vld [vmem:[%s442_s1 + $0x78] sm:$0xff]   ;;  %v247_v28 = vld [vmem:[%s444_s2] ss:$0 sm:$0xff] }
   0x7   :  { %290 = vmatpush3.bf16.msra.mxu0 %v334_v3  ;;  %324 = vmatpush3.bf16.msra.mxu1 %v334_v3  ;;  %v344_v15 = vld [vmem:[%s442_s1 + $0x30] sm:$0xff]   ;;  %v346_v17 = vld [vmem:[%s442_s1 + $0x38] sm:$0xff]  }
   0x8   :  { %291 = vmatprep.subr.bf16.mxu0 %v335_v4  ;;  %317 = vmatprep.subr.bf16.mxu1 %v335_v4  ;;  %v350_v19 = vld [vmem:[%s443_s0 + $0x10] ss:$8 sps:$4 sm:$0xff]  }
   0xb   :  { %292 = vmatpush3.bf16.msra.mxu0 %v336_v5  ;;  %325 = vmatpush3.bf16.msra.mxu1 %v336_v5 }
   0xc   :  { %293 = vmatprep.subr.bf16.mxu0 %v337_v6  ;;  %318 = vmatprep.subr.bf16.mxu1 %v337_v6 }
   0xf   :  { %294 = vmatpush3.bf16.msra.mxu0 %v338_v7  ;;  %326 = vmatpush3.bf16.msra.mxu1 %v338_v7 }
  0x10   :  { %295 = vmatprep.subr.bf16.mxu0 %v339_v8  ;;  %319 = vmatprep.subr.bf16.mxu1 %v339_v8 }
  0x13   :  { %296 = vmatpush3.bf16.msra.mxu0 %v340_v9  ;;  %327 = vmatpush3.bf16.msra.mxu1 %v340_v9 }
  0x14   :  { %297 = vmatprep.subr.bf16.mxu0 %v341_v10  ;;  %320 = vmatprep.subr.bf16.mxu1 %v341_v10 }
  0x17   :  { %298 = vmatpush3.bf16.msra.mxu0 %v342_v13  ;;  %328 = vmatpush3.bf16.msra.mxu1 %v342_v13 }
  0x18   :  { %299 = vmatprep.subr.bf16.mxu0 %v343_v14  ;;  %321 = vmatprep.subr.bf16.mxu1 %v343_v14 }
  0x1b   :  { %300 = vmatpush3.bf16.msra.mxu0 %v344_v15  ;;  %329 = vmatpush3.bf16.msra.mxu1 %v344_v15 }
  0x1c   :  { %301 = vmatprep.subr.bf16.mxu0 %v345_v16  ;;  %322 = vmatprep.subr.bf16.mxu1 %v345_v16 }
  0x1f   :  { %302 = vmatpush3.bf16.msra.mxu0 %v346_v17  ;;  %330 = vmatpush3.bf16.msra.mxu1 %v346_v17 }
  0x22   :  { %207 = vmatmul.mubr.bf16.vlgmr.msra.gmra.mrb[0].mxu0 %v347_v18  ;;  %215 = vmatmul.mubr.bf16.vlgmr.msra.gmra.mrb[0].mxu1 %v350_v19 }
  0xf5   :  { %v303_v20 = vpop.f32.mrb[0].mxu0  ;;  %v309_v21 = vpop.f32.mrb[0].mxu1 }
  0xf6   :  { %v304_v22 = vpop.f32.mrb[1].mxu0  ;;  %v310_v23 = vpop.f32.mrb[1].mxu1 }
  0xf7   :  { %v305_v24 = vadd.f32 %v304_v22, %v303_v20  ;;  %v311_v25 = vadd.f32 %v310_v23, %v309_v21  ;;  %v306_v26 = vpop.f32.mrb[2].mxu0  ;;  %v312_v27 = vpop.f32.mrb[2].mxu1 }
  0xf8   :  { %v307_v29 = vpop.f32.mrb[3].mxu0  ;;  %v313_v30 = vpop.f32.mrb[3].mxu1 }
  0xf9   :  { %v308_v31 = vadd.f32 %v307_v29, %v306_v26  ;;  %v314_v32 = vadd.f32 %v313_v30, %v312_v27  ;;  %v209_v33 = vadd.f32 %v305_v24, %v247_v28  ;;  %v217_v34 = vadd.f32 %v311_v25, %v247_v28 }
  0xfb   :  { %v212_v35 = vadd.f32 %v308_v31, %v247_v28  ;;  %v220_v36 = vadd.f32 %v314_v32, %v247_v28 }
  0xfd   :  { %v279_v37 = vpack.c.bf16 %v212_v35, %v209_v33  ;;  %v284_v38 = vpack.c.bf16 %v220_v36, %v217_v34 }
  0xff   :  { %280 = vst [vmem:[%s445_s3] sm:$0xff] %v279_v37   ;;  %286 = vst [vmem:[%s445_s3 + $0x8] sm:$0xff] %v284_v38  }

// kernel: _lambda_.31
= control target key start
LH: loop header
LB: loop body
LE: loop exit
PB: predicated region body
PF: predicated region fallthrough
CT: control target
= control target key end

     0   :  { %s2403_s1 = inlined_call_operand.vmem [shape: bf16[1152,256], index: 1, kind: input, shape index: {}]   ;;  %s2404_s0 = inlined_call_operand.vmem [shape: bf16[32,1152], index: 0, kind: input, shape index: {}]   ;;  %s2405_s2 = inlined_call_operand.vmem [shape: f32[1,256], index: 2, kind: input, shape index: {}]   ;;  %s2406_s3 = inlined_call_operand.vmem [shape: bf16[32,256], index: 3, kind: output, shape index: {}]  }
   0x1   :  { %v1575_v0 = vld [vmem:[%s2403_s1 + $0x4] ss:$8 sps:$4 sm:$0xff]   ;;  %v1579_v2 = vld [vmem:[%s2403_s1] ss:$8 sps:$4 sm:$0xff]   ;;  %v1581_v4 = vld [vmem:[%s2403_s1 + $0x14] ss:$8 sps:$4 sm:$0xff]  }
   0x2   :  { %v1577_v1 = vld [vmem:[%s2403_s1 + $0x204] ss:$8 sps:$4 sm:$0xff]   ;;  %1003 = vmatprep.subr.bf16.mxu1 %v1575_v0  ;;  %v1580_v3 = vld [vmem:[%s2403_s1 + $0x200] ss:$8 sps:$4 sm:$0xff]   ;;  %v1583_v5 = vld [vmem:[%s2403_s1 + $0x214] ss:$8 sps:$4 sm:$0xff]  }
   0x3   :  { %1109 = vmatprep.subr.bf16.mxu0 %v1577_v1  ;;  %1004 = vmatpush1.bf16.msra.mxu1 %v1579_v2  ;;  %v1585_v6 = vld [vmem:[%s2403_s1 + $0x10] ss:$8 sps:$4 sm:$0xff]   ;;  %v1587_v8 = vld [vmem:[%s2403_s1 + $0x24] ss:$8 sps:$4 sm:$0xff]   ;;  %v1591_v10 = vld [vmem:[%s2403_s1 + $0x20] ss:$8 sps:$4 sm:$0xff]  }
   0x4   :  { %1110 = vmatpush1.bf16.msra.mxu0 %v1580_v3  ;;  %1005 = vmatprep.subr.bf16.mxu1 %v1581_v4  ;;  %v1586_v7 = vld [vmem:[%s2403_s1 + $0x210] ss:$8 sps:$4 sm:$0xff]   ;;  %v1589_v9 = vld [vmem:[%s2403_s1 + $0x224] ss:$8 sps:$4 sm:$0xff]   ;;  %v1592_v11 = vld [vmem:[%s2403_s1 + $0x220] ss:$8 sps:$4 sm:$0xff]  }
   0x5   :  { %1111 = vmatprep.subr.bf16.mxu0 %v1583_v5  ;;  %v1593_v12 = vld [vmem:[%s2403_s1 + $0x34] ss:$8 sps:$4 sm:$0xff]   ;;  %v1597_v14 = vld [vmem:[%s2403_s1 + $0x30] ss:$8 sps:$4 sm:$0xff]   ;;  %v1599_v16 = vld [vmem:[%s2403_s1 + $0x44] ss:$8 sps:$4 sm:$0xff]  }
   0x6   :  { %v1595_v13 = vld [vmem:[%s2403_s1 + $0x234] ss:$8 sps:$4 sm:$0xff]   ;;  %v1598_v15 = vld [vmem:[%s2403_s1 + $0x230] ss:$8 sps:$4 sm:$0xff]   ;;  %v1601_v17 = vld [vmem:[%s2403_s1 + $0x244] ss:$8 sps:$4 sm:$0xff]  }
   0x7   :  { %1006 = vmatpush1.bf16.msra.mxu1 %v1585_v6  ;;  %v1603_v18 = vld [vmem:[%s2403_s1 + $0x40] ss:$8 sps:$4 sm:$0xff]   ;;  %v1605_v20 = vld [vmem:[%s2403_s1 + $0x54] ss:$8 sps:$4 sm:$0xff]   ;;  %v1609_v22 = vld [vmem:[%s2403_s1 + $0x50] ss:$8 sps:$4 sm:$0xff]  }
   0x8   :  { %1112 = vmatpush1.bf16.msra.mxu0 %v1586_v7  ;;  %1007 = vmatprep.subr.bf16.mxu1 %v1587_v8  ;;  %v1604_v19 = vld [vmem:[%s2403_s1 + $0x240] ss:$8 sps:$4 sm:$0xff]   ;;  %v1607_v21 = vld [vmem:[%s2403_s1 + $0x254] ss:$8 sps:$4 sm:$0xff]   ;;  %v1610_v23 = vld [vmem:[%s2403_s1 + $0x250] ss:$8 sps:$4 sm:$0xff]  }
   0x9   :  { %1113 = vmatprep.subr.bf16.mxu0 %v1589_v9  ;;  %v1611_v24 = vld [vmem:[%s2403_s1 + $0x64] ss:$8 sps:$4 sm:$0xff]   ;;  %v1615_v26 = vld [vmem:[%s2403_s1 + $0x60] ss:$8 sps:$4 sm:$0xff]   ;;  %v1617_v28 = vld [vmem:[%s2403_s1 + $0x74] ss:$8 sps:$4 sm:$0xff]  }
   0xa   :  { %v1613_v25 = vld [vmem:[%s2403_s1 + $0x264] ss:$8 sps:$4 sm:$0xff]   ;;  %v1616_v27 = vld [vmem:[%s2403_s1 + $0x260] ss:$8 sps:$4 sm:$0xff]   ;;  %v1619_v29 = vld [vmem:[%s2403_s1 + $0x274] ss:$8 sps:$4 sm:$0xff]  }
   0xb   :  { %1008 = vmatpush1.bf16.msra.mxu1 %v1591_v10  ;;  %v1621_v30 = vld [vmem:[%s2403_s1 + $0x70] ss:$8 sps:$4 sm:$0xff]   ;;  %v1623_v32 = vld [vmem:[%s2403_s1 + $0x84] ss:$8 sps:$4 sm:$0xff]   ;;  %v1627_v34 = vld [vmem:[%s2403_s1 + $0x80] ss:$8 sps:$4 sm:$0xff]  }
   0xc   :  { %1114 = vmatpush1.bf16.msra.mxu0 %v1592_v11  ;;  %1009 = vmatprep.subr.bf16.mxu1 %v1593_v12  ;;  %v1622_v31 = vld [vmem:[%s2403_s1 + $0x270] ss:$8 sps:$4 sm:$0xff]   ;;  %v1625_v33 = vld [vmem:[%s2403_s1 + $0x284] ss:$8 sps:$4 sm:$0xff]   ;;  %v1628_v35 = vld [vmem:[%s2403_s1 + $0x280] ss:$8 sps:$4 sm:$0xff]  }
   0xd   :  { %1115 = vmatprep.subr.bf16.mxu0 %v1595_v13  ;;  %v1629_v36 = vld [vmem:[%s2403_s1 + $0x94] ss:$8 sps:$4 sm:$0xff]   ;;  %v1633_v38 = vld [vmem:[%s2403_s1 + $0x90] ss:$8 sps:$4 sm:$0xff]   ;;  %v1635_v40 = vld [vmem:[%s2403_s1 + $0xa4] ss:$8 sps:$4 sm:$0xff]  }
   0xe   :  { %v1631_v37 = vld [vmem:[%s2403_s1 + $0x294] ss:$8 sps:$4 sm:$0xff]   ;;  %v1634_v39 = vld [vmem:[%s2403_s1 + $0x290] ss:$8 sps:$4 sm:$0xff]   ;;  %v1637_v41 = vld [vmem:[%s2403_s1 + $0x2a4] ss:$8 sps:$4 sm:$0xff]  }
   0xf   :  { %1010 = vmatpush1.bf16.msra.mxu1 %v1597_v14  ;;  %v1639_v42 = vld [vmem:[%s2403_s1 + $0xa0] ss:$8 sps:$4 sm:$0xff]   ;;  %v1641_v44 = vld [vmem:[%s2403_s1 + $0xb4] ss:$8 sps:$4 sm:$0xff]   ;;  %v1645_v46 = vld [vmem:[%s2403_s1 + $0xb0] ss:$8 sps:$4 sm:$0xff]  }
  0x10   :  { %1116 = vmatpush1.bf16.msra.mxu0 %v1598_v15  ;;  %1011 = vmatprep.subr.bf16.mxu1 %v1599_v16  ;;  %v1640_v43 = vld [vmem:[%s2403_s1 + $0x2a0] ss:$8 sps:$4 sm:$0xff]   ;;  %v1643_v45 = vld [vmem:[%s2403_s1 + $0x2b4] ss:$8 sps:$4 sm:$0xff]   ;;  %v1646_v47 = vld [vmem:[%s2403_s1 + $0x2b0] ss:$8 sps:$4 sm:$0xff]  }
  0x11   :  { %1117 = vmatprep.subr.bf16.mxu0 %v1601_v17  ;;  %v1673_v48 = vld [vmem:[%s2404_s0 + $0x4] ss:$36 sps:$4 sm:$0xff]   ;;  %v1679_v51 = vld [vmem:[%s2404_s0 + $0x14] ss:$36 sps:$4 sm:$0xff]  }
  0x12   :  { %v1647_v49 = vld [vmem:[%s2403_s1 + $0xc4] ss:$8 sps:$4 sm:$0xff]   ;;  %1035 = vmatprep.mubr.bf16.mxu1 %v1673_v48  ;;  %v1651_v52 = vld [vmem:[%s2403_s1 + $0xc0] ss:$8 sps:$4 sm:$0xff]   ;;  %v1653_v54 = vld [vmem:[%s2403_s1 + $0xd4] ss:$8 sps:$4 sm:$0xff]   ;;  %1141 = vmatprep.mubr.bf16.mxu0 %v1679_v51 }
  0x13   :  { %1012 = vmatpush1.bf16.msra.mxu1 %v1603_v18  ;;  %v1649_v50 = vld [vmem:[%s2403_s1 + $0x2c4] ss:$8 sps:$4 sm:$0xff]   ;;  %v1652_v53 = vld [vmem:[%s2403_s1 + $0x2c0] ss:$8 sps:$4 sm:$0xff]   ;;  %v1655_v55 = vld [vmem:[%s2403_s1 + $0x2d4] ss:$8 sps:$4 sm:$0xff]  }
  0x14   :  { %1118 = vmatpush1.bf16.msra.mxu0 %v1604_v19  ;;  %1013 = vmatprep.subr.bf16.mxu1 %v1605_v20  ;;  %v1657_v56 = vld [vmem:[%s2403_s1 + $0xd0] ss:$8 sps:$4 sm:$0xff]   ;;  %v1659_v58 = vld [vmem:[%s2403_s1 + $0xe4] ss:$8 sps:$4 sm:$0xff]   ;;  %v1663_v60 = vld [vmem:[%s2403_s1 + $0xe0] ss:$8 sps:$4 sm:$0xff]  }
  0x15   :  { %1119 = vmatprep.subr.bf16.mxu0 %v1607_v21  ;;  %v1658_v57 = vld [vmem:[%s2403_s1 + $0x2d0] ss:$8 sps:$4 sm:$0xff]   ;;  %v1661_v59 = vld [vmem:[%s2403_s1 + $0x2e4] ss:$8 sps:$4 sm:$0xff]   ;;  %v1664_v61 = vld [vmem:[%s2403_s1 + $0x2e0] ss:$8 sps:$4 sm:$0xff]  }
  0x16   :  { %v1665_v62 = vld [vmem:[%s2403_s1 + $0xf4] ss:$8 sps:$4 sm:$0xff]   ;;  %v1669_v0 = vld [vmem:[%s2403_s1 + $0xf0] ss:$8 sps:$4 sm:$0xff]   ;;  %v1676_v2 = vld [vmem:[%s2403_s1 + $0x104] ss:$8 sps:$4 sm:$0xff]  }
  0x17   :  { %1014 = vmatpush1.bf16.msra.mxu1 %v1609_v22  ;;  %v1667_v63 = vld [vmem:[%s2403_s1 + $0x2f4] ss:$8 sps:$4 sm:$0xff]   ;;  %v1670_v1 = vld [vmem:[%s2403_s1 + $0x2f0] ss:$8 sps:$4 sm:$0xff]   ;;  %v1682_v3 = vld [vmem:[%s2403_s1 + $0x304] ss:$8 sps:$4 sm:$0xff]  }
  0x18   :  { %1120 = vmatpush1.bf16.msra.mxu0 %v1610_v23  ;;  %1015 = vmatprep.subr.bf16.mxu1 %v1611_v24  ;;  %v1671_v4 = vld [vmem:[%s2404_s0] ss:$36 sps:$4 sm:$0xff]   ;;  %v1677_v6 = vld [vmem:[%s2404_s0 + $0x10] ss:$36 sps:$4 sm:$0xff]  }
  0x19   :  { %1121 = vmatprep.subr.bf16.mxu0 %v1613_v25  ;;  %v1674_v5 = vld [vmem:[%s2403_s1 + $0x100] ss:$8 sps:$4 sm:$0xff]   ;;  %v1685_v8 = vld [vmem:[%s2403_s1 + $0x114] ss:$8 sps:$4 sm:$0xff]   ;;  %v1683_v10 = vld [vmem:[%s2403_s1 + $0x110] ss:$8 sps:$4 sm:$0xff]  }
  0x1a   :  { %v1680_v7 = vld [vmem:[%s2403_s1 + $0x300] ss:$8 sps:$4 sm:$0xff]   ;;  %v1688_v9 = vld [vmem:[%s2403_s1 + $0x314] ss:$8 sps:$4 sm:$0xff]   ;;  %v1686_v11 = vld [vmem:[%s2403_s1 + $0x310] ss:$8 sps:$4 sm:$0xff]  }
  0x1b   :  { %1016 = vmatpush1.bf16.msra.mxu1 %v1615_v26  ;;  %v1691_v12 = vld [vmem:[%s2403_s1 + $0x124] ss:$8 sps:$4 sm:$0xff]   ;;  %v1689_v14 = vld [vmem:[%s2403_s1 + $0x120] ss:$8 sps:$4 sm:$0xff]   ;;  %v1697_v16 = vld [vmem:[%s2403_s1 + $0x134] ss:$8 sps:$4 sm:$0xff]  }
  0x1c   :  { %1122 = vmatpush1.bf16.msra.mxu0 %v1616_v27  ;;  %1017 = vmatprep.subr.bf16.mxu1 %v1617_v28  ;;  %v1694_v13 = vld [vmem:[%s2403_s1 + $0x324] ss:$8 sps:$4 sm:$0xff]   ;;  %v1692_v15 = vld [vmem:[%s2403_s1 + $0x320] ss:$8 sps:$4 sm:$0xff]   ;;  %v1700_v17 = vld [vmem:[%s2403_s1 + $0x334] ss:$8 sps:$4 sm:$0xff]  }
  0x1d   :  { %1123 = vmatprep.subr.bf16.mxu0 %v1619_v29  ;;  %v1695_v18 = vld [vmem:[%s2403_s1 + $0x130] ss:$8 sps:$4 sm:$0xff]   ;;  %v1703_v20 = vld [vmem:[%s2403_s1 + $0x144] ss:$8 sps:$4 sm:$0xff]   ;;  %v1701_v22 = vld [vmem:[%s2403_s1 + $0x140] ss:$8 sps:$4 sm:$0xff]  }
  0x1e   :  { %v1698_v19 = vld [vmem:[%s2403_s1 + $0x330] ss:$8 sps:$4 sm:$0xff]   ;;  %v1706_v21 = vld [vmem:[%s2403_s1 + $0x344] ss:$8 sps:$4 sm:$0xff]   ;;  %v1704_v23 = vld [vmem:[%s2403_s1 + $0x340] ss:$8 sps:$4 sm:$0xff]  }
  0x1f   :  { %1018 = vmatpush1.bf16.msra.mxu1 %v1621_v30  ;;  %v1709_v24 = vld [vmem:[%s2403_s1 + $0x154] ss:$8 sps:$4 sm:$0xff]   ;;  %v1707_v26 = vld [vmem:[%s2403_s1 + $0x150] ss:$8 sps:$4 sm:$0xff]   ;;  %v1715_v28 = vld [vmem:[%s2403_s1 + $0x164] ss:$8 sps:$4 sm:$0xff]  }
  0x20   :  { %1124 = vmatpush1.bf16.msra.mxu0 %v1622_v31  ;;  %1019 = vmatprep.subr.bf16.mxu1 %v1623_v32  ;;  %v1712_v25 = vld [vmem:[%s2403_s1 + $0x354] ss:$8 sps:$4 sm:$0xff]   ;;  %v1710_v27 = vld [vmem:[%s2403_s1 + $0x350] ss:$8 sps:$4 sm:$0xff]   ;;  %v1765_v31 = vld [vmem:[%s2404_s0 + $0x48] ss:$36 sps:$4 sm:$0xff]  }
  0x21   :  { %1125 = vmatprep.subr.bf16.mxu0 %v1625_v33  ;;  %v1761_v29 = vld [vmem:[%s2404_s0 + $0x4c] ss:$36 sps:$4 sm:$0xff]   ;;  %v1763_v30 = vld [vmem:[%s2404_s0 + $0x5c] ss:$36 sps:$4 sm:$0xff]  }
  0x22   :  { %v1718_v32 = vld [vmem:[%s2403_s1 + $0x364] ss:$8 sps:$4 sm:$0xff]   ;;  %v1769_v33 = vld [vmem:[%s2404_s0 + $0x58] ss:$36 sps:$4 sm:$0xff]  }
  0x23   :  { %1020 = vmatpush1.bf16.msra.mxu1 %v1627_v34  ;;  %v1713_v34 = vld [vmem:[%s2403_s1 + $0x160] ss:$8 sps:$4 sm:$0xff]   ;;  %v1731_v48 = vld [vmem:[%s2403_s1 + $0x190] ss:$8 sps:$4 sm:$0xff]   ;;  %v1742_v51 = vld [vmem:[%s2403_s1 + $0x3a4] ss:$8 sps:$4 sm:$0xff]  }
  0x24   :  { %1126 = vmatpush1.bf16.msra.mxu0 %v1628_v35  ;;  %1021 = vmatprep.subr.bf16.mxu1 %v1629_v36  ;;  %v1716_v35 = vld [vmem:[%s2403_s1 + $0x360] ss:$8 sps:$4 sm:$0xff]   ;;  %v1721_v36 = vld [vmem:[%s2403_s1 + $0x174] ss:$8 sps:$4 sm:$0xff]  }
  0x25   :  { %1127 = vmatprep.subr.bf16.mxu0 %v1631_v37  ;;  %v1724_v37 = vld [vmem:[%s2403_s1 + $0x374] ss:$8 sps:$4 sm:$0xff]  }
  0x27   :  { %1022 = vmatpush1.bf16.msra.mxu1 %v1633_v38  ;;  %v1719_v38 = vld [vmem:[%s2403_s1 + $0x170] ss:$8 sps:$4 sm:$0xff]  }
  0x28   :  { %1128 = vmatpush1.bf16.msra.mxu0 %v1634_v39  ;;  %1023 = vmatprep.subr.bf16.mxu1 %v1635_v40  ;;  %v1722_v39 = vld [vmem:[%s2403_s1 + $0x370] ss:$8 sps:$4 sm:$0xff]   ;;  %v1727_v40 = vld [vmem:[%s2403_s1 + $0x184] ss:$8 sps:$4 sm:$0xff]  }
  0x29   :  { %1129 = vmatprep.subr.bf16.mxu0 %v1637_v41  ;;  %v1781_v41 = vld [vmem:[%s2404_s0 + $0xc] ss:$36 sps:$4 sm:$0xff]  }
  0x2b   :  { %1024 = vmatpush1.bf16.msra.mxu1 %v1639_v42  ;;  %v1730_v42 = vld [vmem:[%s2403_s1 + $0x384] ss:$8 sps:$4 sm:$0xff]  }
  0x2c   :  { %1130 = vmatpush1.bf16.msra.mxu0 %v1640_v43  ;;  %1025 = vmatprep.subr.bf16.mxu1 %v1641_v44  ;;  %v1784_v43 = vld [vmem:[%s2404_s0 + $0x1c] ss:$36 sps:$4 sm:$0xff]  }
  0x2d   :  { %1131 = vmatprep.subr.bf16.mxu0 %v1643_v45  ;;  %v1725_v44 = vld [vmem:[%s2403_s1 + $0x180] ss:$8 sps:$4 sm:$0xff]  }
  0x2e   :  { %v1728_v45 = vld [vmem:[%s2403_s1 + $0x380] ss:$8 sps:$4 sm:$0xff]  }
  0x2f   :  { %1026 = vmatpush1.bf16.msra.mxu1 %v1645_v46  ;;  %v1733_v46 = vld [vmem:[%s2403_s1 + $0x194] ss:$8 sps:$4 sm:$0xff]  }
  0x30   :  { %1132 = vmatpush1.bf16.msra.mxu0 %v1646_v47  ;;  %1027 = vmatprep.subr.bf16.mxu1 %v1647_v49  ;;  %v1736_v47 = vld [vmem:[%s2403_s1 + $0x394] ss:$8 sps:$4 sm:$0xff]   ;;  %v1734_v49 = vld [vmem:[%s2403_s1 + $0x390] ss:$8 sps:$4 sm:$0xff]  }
  0x31   :  { %1133 = vmatprep.subr.bf16.mxu0 %v1649_v50  ;;  %v1739_v50 = vld [vmem:[%s2403_s1 + $0x1a4] ss:$8 sps:$4 sm:$0xff]  }
  0x33   :  { %1028 = vmatpush1.bf16.msra.mxu1 %v1651_v52  ;;  %v1737_v52 = vld [vmem:[%s2403_s1 + $0x1a0] ss:$8 sps:$4 sm:$0xff]  }
  0x34   :  { %1134 = vmatpush1.bf16.msra.mxu0 %v1652_v53  ;;  %1029 = vmatprep.subr.bf16.mxu1 %v1653_v54  ;;  %v1740_v53 = vld [vmem:[%s2403_s1 + $0x3a0] ss:$8 sps:$4 sm:$0xff]   ;;  %v1745_v54 = vld [vmem:[%s2403_s1 + $0x1b4] ss:$8 sps:$4 sm:$0xff]  }
  0x35   :  { %1135 = vmatprep.subr.bf16.mxu0 %v1655_v55  ;;  %v1748_v55 = vld [vmem:[%s2403_s1 + $0x3b4] ss:$8 sps:$4 sm:$0xff]  }
  0x37   :  { %1030 = vmatpush1.bf16.msra.mxu1 %v1657_v56  ;;  %v1743_v56 = vld [vmem:[%s2403_s1 + $0x1b0] ss:$8 sps:$4 sm:$0xff]  }
  0x38   :  { %1136 = vmatpush1.bf16.msra.mxu0 %v1658_v57  ;;  %1031 = vmatprep.subr.bf16.mxu1 %v1659_v58  ;;  %v1746_v57 = vld [vmem:[%s2403_s1 + $0x3b0] ss:$8 sps:$4 sm:$0xff]   ;;  %v1751_v58 = vld [vmem:[%s2403_s1 + $0x1c4] ss:$8 sps:$4 sm:$0xff]  }
  0x39   :  { %1137 = vmatprep.subr.bf16.mxu0 %v1661_v59  ;;  %v1754_v59 = vld [vmem:[%s2403_s1 + $0x3c4] ss:$8 sps:$4 sm:$0xff]  }
  0x3b   :  { %1032 = vmatpush1.bf16.msra.mxu1 %v1663_v60  ;;  %v1749_v60 = vld [vmem:[%s2403_s1 + $0x1c0] ss:$8 sps:$4 sm:$0xff]  }
  0x3c   :  { %1138 = vmatpush1.bf16.msra.mxu0 %v1664_v61  ;;  %1033 = vmatprep.subr.bf16.mxu1 %v1665_v62  ;;  %v1752_v61 = vld [vmem:[%s2403_s1 + $0x3c0] ss:$8 sps:$4 sm:$0xff]   ;;  %v1757_v62 = vld [vmem:[%s2403_s1 + $0x1d4] ss:$8 sps:$4 sm:$0xff]  }
  0x3d   :  { %1139 = vmatprep.subr.bf16.mxu0 %v1667_v63  ;;  %v1760_v63 = vld [vmem:[%s2403_s1 + $0x3d4] ss:$8 sps:$4 sm:$0xff]  }
  0x3f   :  { %1034 = vmatpush1.bf16.msra.mxu1 %v1669_v0  ;;  %v1755_v0 = vld [vmem:[%s2403_s1 + $0x1d0] ss:$8 sps:$4 sm:$0xff]  }
  0x40   :  { %1140 = vmatpush1.bf16.msra.mxu0 %v1670_v1  ;;  %1056 = vmatprep.subr.bf16.mxu1 %v1676_v2  ;;  %v1758_v1 = vld [vmem:[%s2403_s1 + $0x3d0] ss:$8 sps:$4 sm:$0xff]   ;;  %v1768_v2 = vld [vmem:[%s2403_s1 + $0x1e4] ss:$8 sps:$4 sm:$0xff]  }
  0x41   :  { %1162 = vmatprep.subr.bf16.mxu0 %v1682_v3  ;;  %v1772_v3 = vld [vmem:[%s2403_s1 + $0x3e4] ss:$8 sps:$4 sm:$0xff]  }
  0x42   :  { %1036 = vmatmul.mubr.bf16.vlgmr.msra.gmra.mrb[0].mxu1 %v1671_v4  ;;  %v1766_v4 = vld [vmem:[%s2403_s1 + $0x1e0] ss:$8 sps:$4 sm:$0xff]  }
  0x43   :  { %1142 = vmatmul.mubr.bf16.vlgmr.msra.gmra.mrb[0].mxu0 %v1677_v6  ;;  %1057 = vmatpush1.bf16.msra.mxu1 %v1674_v5  ;;  %v1770_v5 = vld [vmem:[%s2403_s1 + $0x3e0] ss:$8 sps:$4 sm:$0xff]   ;;  %v1775_v6 = vld [vmem:[%s2403_s1 + $0x1f4] ss:$8 sps:$4 sm:$0xff]  }
  0x44   :  { %1163 = vmatpush1.bf16.msra.mxu0 %v1680_v7  ;;  %1058 = vmatprep.subr.bf16.mxu1 %v1685_v8  ;;  %v1778_v7 = vld [vmem:[%s2403_s1 + $0x3f4] ss:$8 sps:$4 sm:$0xff]   ;;  %v1773_v8 = vld [vmem:[%s2403_s1 + $0x1f0] ss:$8 sps:$4 sm:$0xff]  }
  0x45   :  { %1164 = vmatprep.subr.bf16.mxu0 %v1688_v9  ;;  %1045 = vmatprep.mubr.bf16.mxu1 %v1761_v29  ;;  %v1776_v9 = vld [vmem:[%s2403_s1 + $0x3f0] ss:$8 sps:$4 sm:$0xff]   ;;  %v1811_v29 = vld [vmem:[%s2403_s1 + $0x464] ss:$8 sps:$4 sm:$0xff]  }
  0x46   :  { %1151 = vmatprep.mubr.bf16.mxu0 %v1763_v30  ;;  %v1809_v30 = vld [vmem:[%s2403_s1 + $0x460] ss:$8 sps:$4 sm:$0xff]  }
  0x47   :  { %1059 = vmatpush1.bf16.msra.mxu1 %v1683_v10  ;;  %v1787_v10 = vld [vmem:[%s2403_s1 + $0x404] ss:$8 sps:$4 sm:$0xff]  }
  0x48   :  { %1165 = vmatpush1.bf16.msra.mxu0 %v1686_v11  ;;  %1060 = vmatprep.subr.bf16.mxu1 %v1691_v12  ;;  %v1779_v11 = vld [vmem:[%s2404_s0 + $0x8] ss:$36 sps:$4 sm:$0xff]   ;;  %v1782_v12 = vld [vmem:[%s2404_s0 + $0x18] ss:$36 sps:$4 sm:$0xff]  }
  0x49   :  { %1166 = vmatprep.subr.bf16.mxu0 %v1694_v13  ;;  %v1785_v13 = vld [vmem:[%s2403_s1 + $0x400] ss:$8 sps:$4 sm:$0xff]  }
  0x4a   :  { %1046 = vmatmul.mubr.bf16.gmra.mrb[4].mxu1 %v1765_v31  ;;  %v1814_v31 = vld [vmem:[%s2403_s1 + $0x474] ss:$8 sps:$4 sm:$0xff]  }
  0x4b   :  { %1061 = vmatpush1.bf16.msra.mxu1 %v1689_v14  ;;  %1152 = vmatmul.mubr.bf16.gmra.mrb[4].mxu0 %v1769_v33  ;;  %v1790_v14 = vld [vmem:[%s2403_s1 + $0x414] ss:$8 sps:$4 sm:$0xff]   ;;  %v1815_v33 = vld [vmem:[%s2404_s0 + $0x20] ss:$36 sps:$4 sm:$0xff]  }
  0x4c   :  { %1167 = vmatpush1.bf16.msra.mxu0 %v1692_v15  ;;  %1062 = vmatprep.subr.bf16.mxu1 %v1697_v16  ;;  %v1791_v15 = vld [vmem:[%s2404_s0 + $0x54] ss:$36 sps:$4 sm:$0xff]   ;;  %v1793_v16 = vld [vmem:[%s2404_s0 + $0x64] ss:$36 sps:$4 sm:$0xff]  }
  0x4d   :  { %1168 = vmatprep.subr.bf16.mxu0 %v1700_v17  ;;  %1088 = vmatprep.mubr.bf16.mxu1 %v1781_v41  ;;  %v1788_v17 = vld [vmem:[%s2403_s1 + $0x410] ss:$8 sps:$4 sm:$0xff]  }
  0x4e   :  { %1194 = vmatprep.mubr.bf16.mxu0 %v1784_v43 }
  0x4f   :  { %1063 = vmatpush1.bf16.msra.mxu1 %v1695_v18  ;;  %v1799_v18 = vld [vmem:[%s2403_s1 + $0x424] ss:$8 sps:$4 sm:$0xff]  }
  0x50   :  { %1169 = vmatpush1.bf16.msra.mxu0 %v1698_v19  ;;  %1064 = vmatprep.subr.bf16.mxu1 %v1703_v20  ;;  %v1795_v19 = vld [vmem:[%s2404_s0 + $0x50] ss:$36 sps:$4 sm:$0xff]   ;;  %v1796_v20 = vld [vmem:[%s2404_s0 + $0x60] ss:$36 sps:$4 sm:$0xff]  }
  0x51   :  { %1170 = vmatprep.subr.bf16.mxu0 %v1706_v21  ;;  %v1797_v21 = vld [vmem:[%s2403_s1 + $0x420] ss:$8 sps:$4 sm:$0xff]  }
  0x53   :  { %1065 = vmatpush1.bf16.msra.mxu1 %v1701_v22  ;;  %v1802_v22 = vld [vmem:[%s2403_s1 + $0x434] ss:$8 sps:$4 sm:$0xff]  }
  0x54   :  { %1171 = vmatpush1.bf16.msra.mxu0 %v1704_v23  ;;  %1066 = vmatprep.subr.bf16.mxu1 %v1709_v24  ;;  %v1800_v23 = vld [vmem:[%s2403_s1 + $0x430] ss:$8 sps:$4 sm:$0xff]   ;;  %v1805_v24 = vld [vmem:[%s2403_s1 + $0x444] ss:$8 sps:$4 sm:$0xff]  }
  0x55   :  { %1172 = vmatprep.subr.bf16.mxu0 %v1712_v25  ;;  %v1849_v25 = vmov 0  }
  0x57   :  { %1067 = vmatpush1.bf16.msra.mxu1 %v1707_v26  ;;  %v1803_v26 = vld [vmem:[%s2403_s1 + $0x440] ss:$8 sps:$4 sm:$0xff]  }
  0x58   :  { %1173 = vmatpush1.bf16.msra.mxu0 %v1710_v27  ;;  %1068 = vmatprep.subr.bf16.mxu1 %v1715_v28  ;;  %v1808_v27 = vld [vmem:[%s2403_s1 + $0x454] ss:$8 sps:$4 sm:$0xff]   ;;  %v1806_v28 = vld [vmem:[%s2403_s1 + $0x450] ss:$8 sps:$4 sm:$0xff]  }
  0x59   :  { %1174 = vmatprep.subr.bf16.mxu0 %v1718_v32  ;;  %v1812_v32 = vld [vmem:[%s2403_s1 + $0x470] ss:$8 sps:$4 sm:$0xff]  }
  0x5b   :  { %1069 = vmatpush1.bf16.msra.mxu1 %v1713_v34  ;;  %v1816_v34 = vld [vmem:[%s2404_s0 + $0x68] ss:$36 sps:$4 sm:$0xff]  }
  0x5c   :  { %1175 = vmatpush1.bf16.msra.mxu0 %v1716_v35  ;;  %1070 = vmatprep.subr.bf16.mxu1 %v1721_v36  ;;  %v181_v35 = vlaneseq }
  0x5d   :  { %1176 = vmatprep.subr.bf16.mxu0 %v1724_v37 }
  0x5e   :  { %v182_v36 = vshrl.u32 %v181_v35, 7 }
  0x5f   :  { %1071 = vmatpush1.bf16.msra.mxu1 %v1719_v38 }
  0x60   :  { %1177 = vmatpush1.bf16.msra.mxu0 %v1722_v39  ;;  %1072 = vmatprep.subr.bf16.mxu1 %v1727_v40  ;;  %v183_v40 = vsub.s32 0, %v182_v36  ;;  %v187_v43 = vsub.s32 1, %v182_v36 }
  0x61   :  { %1178 = vmatprep.subr.bf16.mxu0 %v1730_v42  ;;  %v179_v42 = vld [vmem:[%s2405_s2] sm:$0x3] }
  0x63   :  { %1073 = vmatpush1.bf16.msra.mxu1 %v1725_v44  ;;  %v184_v44 = vrot.slane %v179_v42, %v183_v40 }
  0x64   :  { %1179 = vmatpush1.bf16.msra.mxu0 %v1728_v45  ;;  %1074 = vmatprep.subr.bf16.mxu1 %v1733_v46  ;;  %v188_v45 = vrot.slane %v179_v42, %v187_v43 }
  0x65   :  { %1180 = vmatprep.subr.bf16.mxu0 %v1736_v47 }
  0x67   :  { %1075 = vmatpush1.bf16.msra.mxu1 %v1731_v48 }
  0x68   :  { %1181 = vmatpush1.bf16.msra.mxu0 %v1734_v49  ;;  %1076 = vmatprep.subr.bf16.mxu1 %v1739_v50 }
  0x69   :  { %1182 = vmatprep.subr.bf16.mxu0 %v1742_v51 }
  0x6b   :  { %1077 = vmatpush1.bf16.msra.mxu1 %v1737_v52 }
  0x6c   :  { %1183 = vmatpush1.bf16.msra.mxu0 %v1740_v53  ;;  %1078 = vmatprep.subr.bf16.mxu1 %v1745_v54 }
  0x6d   :  { %1184 = vmatprep.subr.bf16.mxu0 %v1748_v55 }
  0x6f   :  { %1079 = vmatpush1.bf16.msra.mxu1 %v1743_v56 }
  0x70   :  { %1185 = vmatpush1.bf16.msra.mxu0 %v1746_v57  ;;  %1080 = vmatprep.subr.bf16.mxu1 %v1751_v58 }
  0x71   :  { %1186 = vmatprep.subr.bf16.mxu0 %v1754_v59 }
  0x73   :  { %1081 = vmatpush1.bf16.msra.mxu1 %v1749_v60 }
  0x74   :  { %1187 = vmatpush1.bf16.msra.mxu0 %v1752_v61  ;;  %1082 = vmatprep.subr.bf16.mxu1 %v1757_v62 }
  0x75   :  { %1188 = vmatprep.subr.bf16.mxu0 %v1760_v63 }
  0x77   :  { %1083 = vmatpush1.bf16.msra.mxu1 %v1755_v0 }
  0x78   :  { %1189 = vmatpush1.bf16.msra.mxu0 %v1758_v1  ;;  %1084 = vmatprep.subr.bf16.mxu1 %v1768_v2 }
  0x79   :  { %1190 = vmatprep.subr.bf16.mxu0 %v1772_v3 }
  0x7b   :  { %1085 = vmatpush1.bf16.msra.mxu1 %v1766_v4 }
  0x7c   :  { %1191 = vmatpush1.bf16.msra.mxu0 %v1770_v5  ;;  %1086 = vmatprep.subr.bf16.mxu1 %v1775_v6 }
  0x7d   :  { %1192 = vmatprep.subr.bf16.mxu0 %v1778_v7 }
  0x7f   :  { %1087 = vmatpush1.bf16.msra.mxu1 %v1773_v8 }
  0x80   :  { %1193 = vmatpush1.bf16.msra.mxu0 %v1776_v9  ;;  %1518 = vmatprep.subr.bf16.mxu1 %v1787_v10 }
  0x81   :  { %1215 = vmatprep.subr.bf16.mxu0 %v1787_v10 }
  0x82   :  { %1089 = vmatmul.mubr.bf16.vlgmr.msra.gmra.mrb[0].mxu1 %v1779_v11 }
  0x83   :  { %1195 = vmatmul.mubr.bf16.vlgmr.msra.gmra.mrb[0].mxu0 %v1782_v12  ;;  %1526 = vmatpush1.bf16.msra.mxu1 %v1785_v13 }
  0x84   :  { %1216 = vmatpush1.bf16.msra.mxu0 %v1785_v13  ;;  %1519 = vmatprep.subr.bf16.mxu1 %v1790_v14 }
  0x85   :  { %1217 = vmatprep.subr.bf16.mxu0 %v1790_v14  ;;  %1098 = vmatprep.mubr.bf16.mxu1 %v1791_v15 }
  0x86   :  { %1204 = vmatprep.mubr.bf16.mxu0 %v1793_v16 }
  0x87   :  { %1527 = vmatpush1.bf16.msra.mxu1 %v1788_v17 }
  0x88   :  { %1218 = vmatpush1.bf16.msra.mxu0 %v1788_v17  ;;  %1520 = vmatprep.subr.bf16.mxu1 %v1799_v18 }
  0x89   :  { %1219 = vmatprep.subr.bf16.mxu0 %v1799_v18 }
  0x8a   :  { %1099 = vmatmul.mubr.bf16.gmra.mrb[4].mxu1 %v1795_v19 }
  0x8b   :  { %1205 = vmatmul.mubr.bf16.gmra.mrb[4].mxu0 %v1796_v20  ;;  %1528 = vmatpush1.bf16.msra.mxu1 %v1797_v21 }
  0x8c   :  { %1220 = vmatpush1.bf16.msra.mxu0 %v1797_v21  ;;  %1521 = vmatprep.subr.bf16.mxu1 %v1802_v22 }
  0x8d   :  { %1221 = vmatprep.subr.bf16.mxu0 %v1802_v22  ;;  %1247 = vmatprep.mubr.bf16.mxu0 %v1849_v25 }
  0x8e   :  { %1257 = vmatprep.mubr.bf16.mxu1 %v1849_v25 }
  0x8f   :  { %1529 = vmatpush1.bf16.msra.mxu1 %v1800_v23 }
  0x90   :  { %1222 = vmatpush1.bf16.msra.mxu0 %v1800_v23  ;;  %1522 = vmatprep.subr.bf16.mxu1 %v1805_v24 }
  0x91   :  { %1223 = vmatprep.subr.bf16.mxu0 %v1805_v24 }
  0x93   :  { %1530 = vmatpush1.bf16.msra.mxu1 %v1803_v26 }
  0x94   :  { %1224 = vmatpush1.bf16.msra.mxu0 %v1803_v26  ;;  %1523 = vmatprep.subr.bf16.mxu1 %v1808_v27 }
  0x95   :  { %1225 = vmatprep.subr.bf16.mxu0 %v1808_v27 }
  0x97   :  { %1531 = vmatpush1.bf16.msra.mxu1 %v1806_v28 }
  0x98   :  { %1226 = vmatpush1.bf16.msra.mxu0 %v1806_v28  ;;  %1524 = vmatprep.subr.bf16.mxu1 %v1811_v29 }
  0x99   :  { %1227 = vmatprep.subr.bf16.mxu0 %v1811_v29 }
  0x9b   :  { %1532 = vmatpush1.bf16.msra.mxu1 %v1809_v30 }
  0x9c   :  { %1228 = vmatpush1.bf16.msra.mxu0 %v1809_v30  ;;  %1525 = vmatprep.subr.bf16.mxu1 %v1814_v31 }
  0x9d   :  { %1229 = vmatprep.subr.bf16.mxu0 %v1814_v31 }
  0x9f   :  { %1533 = vmatpush1.bf16.msra.mxu1 %v1812_v32 }
  0xa0   :  { %1230 = vmatpush1.bf16.msra.mxu0 %v1812_v32 }
  0xa2   :  { %1258 = vmatmul.mubr.bf16.vlgmr.msra.gmra.mrb[8].mxu1 %v1816_v34 }
  0xa3   :  { %1248 = vmatmul.mubr.bf16.vlgmr.msra.gmra.mrb[0].mxu0 %v1815_v33 }
 0x155   :  { %v1090_v37 = vpop.f32.mrb[0].mxu1 }
 0x156   :  { %v1092_v38 = vpop.f32.mrb[1].mxu1  ;;  %v1534_v62 = vadd.f32 %v1090_v37, %v184_v44 }
 0x157   :  { %v1094_v39 = vpop.f32.mrb[2].mxu1  ;;  %v1536_v63 = vadd.f32 %v1092_v38, %v188_v45 }
 0x158   :  { %v1096_v41 = vpop.f32.mrb[3].mxu1  ;;  %v1538_v2 = vadd.f32 %v1094_v39, %v184_v44 }
 0x159   :  { %v1540_v7 = vadd.f32 %v1096_v41, %v188_v45 }
 0x15d   :  { %v1100_v46 = vpop.f32.mrb[4].mxu1 }
 0x15e   :  { %v1206_v47 = vpop.f32.mrb[4].mxu0  ;;  %v1542_v48 = vadd.f32 %v1100_v46, %v184_v44  ;;  %v1102_v49 = vpop.f32.mrb[5].mxu1 }
 0x15f   :  { %v1208_v50 = vpop.f32.mrb[5].mxu0  ;;  %v1545_v51 = vadd.f32 %v1102_v49, %v188_v45  ;;  %v1104_v52 = vpop.f32.mrb[6].mxu1 }
 0x160   :  { %v1210_v53 = vpop.f32.mrb[6].mxu0  ;;  %v1543_v54 = vadd.f32 %v1542_v48, %v1206_v47  ;;  %v1548_v55 = vadd.f32 %v1104_v52, %v184_v44  ;;  %v1106_v56 = vpop.f32.mrb[7].mxu1 }
 0x161   :  { %v1212_v57 = vpop.f32.mrb[7].mxu0  ;;  %v1546_v58 = vadd.f32 %v1545_v51, %v1208_v50  ;;  %v1551_v59 = vadd.f32 %v1106_v56, %v188_v45 }
 0x162   :  { %v1549_v60 = vadd.f32 %v1548_v55, %v1210_v53 }
 0x163   :  { %v1552_v61 = vadd.f32 %v1551_v59, %v1212_v57 }
 0x175   :  { %v1259_v1 = vpop.f32.mrb[8].mxu1 }
 0x176   :  { %v1249_v0 = vpop.f32.mrb[0].mxu0  ;;  %v2361_v4 = vadd.f32 %v1543_v54, %v1259_v1  ;;  %v1261_v6 = vpop.f32.mrb[9].mxu1 }
 0x177   :  { %v2359_v3 = vadd.f32 %v1534_v62, %v1249_v0  ;;  %v1251_v5 = vpop.f32.mrb[1].mxu0  ;;  %v2365_v9 = vadd.f32 %v1546_v58, %v1261_v6  ;;  %v1263_v11 = vpop.f32.mrb[10].mxu1 }
 0x178   :  { %v2363_v8 = vadd.f32 %v1536_v63, %v1251_v5  ;;  %v1253_v10 = vpop.f32.mrb[2].mxu0  ;;  %v1272_v13 = vsub.f32 0.0, %v2361_v4  ;;  %v2371_v15 = vadd.f32 %v1549_v60, %v1263_v11  ;;  %v1265_v17 = vpop.f32.mrb[11].mxu1 }
 0x179   :  { %v1268_v12 = vsub.f32 0.0, %v2359_v3  ;;  %v2369_v14 = vadd.f32 %v1538_v2, %v1253_v10  ;;  %v1255_v16 = vpop.f32.mrb[3].mxu0  ;;  %v1273_v19 = vsub.f32 0.0, %v2365_v9  ;;  %v2377_v21 = vadd.f32 %v1552_v61, %v1265_v17 }
 0x17a   :  { %v1269_v18 = vsub.f32 0.0, %v2363_v8  ;;  %v2375_v20 = vadd.f32 %v1540_v7, %v1255_v16  ;;  %v1284_v23 = vmul.f32 1.442695, %v1272_v13  ;;  %v1274_v25 = vsub.f32 0.0, %v2371_v15 }
 0x17b   :  { %v1276_v22 = vmul.f32 1.442695, %v1268_v12  ;;  %v1270_v24 = vsub.f32 0.0, %v2369_v14  ;;  %v1286_v27 = vmul.f32 1.442695, %v1273_v19  ;;  %v1275_v29 = vsub.f32 0.0, %v2377_v21 }
 0x17c   :  { %v1278_v26 = vmul.f32 1.442695, %v1269_v18  ;;  %v1271_v28 = vsub.f32 0.0, %v2375_v20  ;;  %v1288_v31 = vmul.f32 1.442695, %v1274_v25 }
 0x17d   :  { %1817 = vpow2.f32 %v1276_v22  ;;  %v1280_v30 = vmul.f32 1.442695, %v1270_v24  ;;  %v1290_v33 = vmul.f32 1.442695, %v1275_v29 }
 0x17e   :  { %1819 = vpow2.f32 %v1284_v23  ;;  %v1282_v32 = vmul.f32 1.442695, %v1271_v28 }
 0x17f   :  { %1821 = vpow2.f32 %v1278_v26 }
 0x180   :  { %1823 = vpow2.f32 %v1286_v27 }
 0x181   :  { %1825 = vpow2.f32 %v1280_v30 }
 0x182   :  { %1827 = vpow2.f32 %v1288_v31 }
 0x183   :  { %1829 = vpow2.f32 %v1282_v32 }
 0x184   :  { %1831 = vpow2.f32 %v1290_v33 }
 0x187   :  { %v1818_v34 = vpop.eup %1817 }
 0x188   :  { %v1820_v35 = vpop.eup %1819  ;;  %v1292_v36 = vadd.f32 1.0, %v1818_v34 }
 0x189   :  { %v1822_v37 = vpop.eup %1821  ;;  %v1296_v38 = vadd.f32 1.0, %v1820_v35 }
 0x18a   :  { %v1824_v39 = vpop.eup %1823  ;;  %1833 = vrcp.f32 %v1292_v36  ;;  %v1293_v40 = vadd.f32 1.0, %v1822_v37 }
 0x18b   :  { %v1826_v41 = vpop.eup %1825  ;;  %1835 = vrcp.f32 %v1296_v38  ;;  %v1297_v42 = vadd.f32 1.0, %v1824_v39 }
 0x18c   :  { %v1828_v43 = vpop.eup %1827  ;;  %1837 = vrcp.f32 %v1293_v40  ;;  %v1294_v44 = vadd.f32 1.0, %v1826_v41 }
 0x18d   :  { %v1830_v45 = vpop.eup %1829  ;;  %1839 = vrcp.f32 %v1297_v42  ;;  %v1298_v46 = vadd.f32 1.0, %v1828_v43 }
 0x18e   :  { %v1832_v47 = vpop.eup %1831  ;;  %1841 = vrcp.f32 %v1294_v44  ;;  %v1295_v48 = vadd.f32 1.0, %v1830_v45 }
 0x18f   :  { %1843 = vrcp.f32 %v1298_v46  ;;  %v1299_v49 = vadd.f32 1.0, %v1832_v47 }
 0x190   :  { %1845 = vrcp.f32 %v1295_v48 }
 0x191   :  { %1847 = vrcp.f32 %v1299_v49 }
 0x194   :  { %v1834_v50 = vpop.eup %1833 }
 0x195   :  { %v1836_v51 = vpop.eup %1835  ;;  %v1308_v52 = vmul.f32 %v1834_v50, %v2359_v3 }
 0x196   :  { %v1838_v53 = vpop.eup %1837  ;;  %v1312_v54 = vmul.f32 %v1836_v51, %v2361_v4 }
 0x197   :  { %v1840_v55 = vpop.eup %1839  ;;  %v1309_v56 = vmul.f32 %v1838_v53, %v2363_v8 }
 0x198   :  { %v1842_v57 = vpop.eup %1841  ;;  %v1313_v58 = vmul.f32 %v1840_v55, %v2365_v9 }
 0x199   :  { %v1844_v59 = vpop.eup %1843  ;;  %v1514_v60 = vpack.c.bf16 %v1309_v56, %v1308_v52  ;;  %v1310_v61 = vmul.f32 %v1842_v57, %v2369_v14 }
 0x19a   :  { %v1846_v62 = vpop.eup %1845  ;;  %v1516_v63 = vpack.c.bf16 %v1313_v58, %v1312_v54  ;;  %v1314_v0 = vmul.f32 %v1844_v59, %v2371_v15 }
 0x19b   :  { %v1848_v1 = vpop.eup %1847  ;;  %1340 = vst [vmem:[%s2406_s3] sm:$0xff] %v1514_v60  ;;  %v1311_v2 = vmul.f32 %v1846_v62, %v2375_v20 }
 0x19c   :  { %1342 = vst [vmem:[%s2406_s3 + $0x10] sm:$0xff] %v1516_v63  ;;  %v1315_v3 = vmul.f32 %v1848_v1, %v2377_v21 }
 0x19d   :  { %v1515_v4 = vpack.c.bf16 %v1311_v2, %v1310_v61 }
 0x19e   :  { %v1517_v5 = vpack.c.bf16 %v1315_v3, %v1314_v0 }
 0x19f   :  { %1341 = vst [vmem:[%s2406_s3 + $0x8] sm:$0xff] %v1515_v4 }
 0x1a0   :  { %1343 = vst [vmem:[%s2406_s3 + $0x18] sm:$0xff] %v1517_v5 }

// kernel: _lambda_.28
= control target key start
LH: loop header
LB: loop body
LE: loop exit
PB: predicated region body
PF: predicated region fallthrough
CT: control target
= control target key end

     0   :  { %s4235_s1 = inlined_call_operand.vmem [shape: bf16[1152,256], index: 1, kind: input, shape index: {}]   ;;  %s4236_s0 = inlined_call_operand.vmem [shape: bf16[128,1152], index: 0, kind: input, shape index: {}]   ;;  %s4237_s2 = inlined_call_operand.vmem [shape: f32[1,256], index: 2, kind: input, shape index: {}]   ;;  %s4238_s3 = inlined_call_operand.vmem [shape: bf16[128,256], index: 3, kind: output, shape index: {}]  }
   0x1   :  { %v2653_v0 = vld [vmem:[%s4235_s1 + $0x4] ss:$8 sps:$4 sm:$0xff]   ;;  %v2657_v2 = vld [vmem:[%s4235_s1] ss:$8 sps:$4 sm:$0xff]   ;;  %v2659_v4 = vld [vmem:[%s4235_s1 + $0x14] ss:$8 sps:$4 sm:$0xff]  }
   0x2   :  { %v2655_v1 = vld [vmem:[%s4235_s1 + $0x204] ss:$8 sps:$4 sm:$0xff]   ;;  %1339 = vmatprep.subr.bf16.mxu1 %v2653_v0  ;;  %v2658_v3 = vld [vmem:[%s4235_s1 + $0x200] ss:$8 sps:$4 sm:$0xff]   ;;  %v2661_v5 = vld [vmem:[%s4235_s1 + $0x214] ss:$8 sps:$4 sm:$0xff]  }
   0x3   :  { %1565 = vmatprep.subr.bf16.mxu0 %v2655_v1  ;;  %1340 = vmatpush1.bf16.msra.mxu1 %v2657_v2  ;;  %v2663_v6 = vld [vmem:[%s4235_s1 + $0x10] ss:$8 sps:$4 sm:$0xff]   ;;  %v2665_v8 = vld [vmem:[%s4235_s1 + $0x24] ss:$8 sps:$4 sm:$0xff]   ;;  %v2669_v10 = vld [vmem:[%s4235_s1 + $0x20] ss:$8 sps:$4 sm:$0xff]  }
   0x4   :  { %1566 = vmatpush1.bf16.msra.mxu0 %v2658_v3  ;;  %1341 = vmatprep.subr.bf16.mxu1 %v2659_v4  ;;  %v2664_v7 = vld [vmem:[%s4235_s1 + $0x210] ss:$8 sps:$4 sm:$0xff]   ;;  %v2667_v9 = vld [vmem:[%s4235_s1 + $0x224] ss:$8 sps:$4 sm:$0xff]   ;;  %v2670_v11 = vld [vmem:[%s4235_s1 + $0x220] ss:$8 sps:$4 sm:$0xff]  }
   0x5   :  { %1567 = vmatprep.subr.bf16.mxu0 %v2661_v5  ;;  %v2671_v12 = vld [vmem:[%s4235_s1 + $0x34] ss:$8 sps:$4 sm:$0xff]   ;;  %v2675_v14 = vld [vmem:[%s4235_s1 + $0x30] ss:$8 sps:$4 sm:$0xff]   ;;  %v2677_v16 = vld [vmem:[%s4235_s1 + $0x44] ss:$8 sps:$4 sm:$0xff]  }
   0x6   :  { %v2673_v13 = vld [vmem:[%s4235_s1 + $0x234] ss:$8 sps:$4 sm:$0xff]   ;;  %v2676_v15 = vld [vmem:[%s4235_s1 + $0x230] ss:$8 sps:$4 sm:$0xff]   ;;  %v2679_v17 = vld [vmem:[%s4235_s1 + $0x244] ss:$8 sps:$4 sm:$0xff]  }
   0x7   :  { %1342 = vmatpush1.bf16.msra.mxu1 %v2663_v6  ;;  %v2681_v18 = vld [vmem:[%s4235_s1 + $0x40] ss:$8 sps:$4 sm:$0xff]   ;;  %v2683_v20 = vld [vmem:[%s4235_s1 + $0x54] ss:$8 sps:$4 sm:$0xff]   ;;  %v2687_v22 = vld [vmem:[%s4235_s1 + $0x50] ss:$8 sps:$4 sm:$0xff]  }
   0x8   :  { %1568 = vmatpush1.bf16.msra.mxu0 %v2664_v7  ;;  %1343 = vmatprep.subr.bf16.mxu1 %v2665_v8  ;;  %v2682_v19 = vld [vmem:[%s4235_s1 + $0x240] ss:$8 sps:$4 sm:$0xff]   ;;  %v2685_v21 = vld [vmem:[%s4235_s1 + $0x254] ss:$8 sps:$4 sm:$0xff]   ;;  %v2688_v23 = vld [vmem:[%s4235_s1 + $0x250] ss:$8 sps:$4 sm:$0xff]  }
   0x9   :  { %1569 = vmatprep.subr.bf16.mxu0 %v2667_v9  ;;  %v2689_v24 = vld [vmem:[%s4235_s1 + $0x64] ss:$8 sps:$4 sm:$0xff]   ;;  %v2693_v26 = vld [vmem:[%s4235_s1 + $0x60] ss:$8 sps:$4 sm:$0xff]   ;;  %v2695_v28 = vld [vmem:[%s4235_s1 + $0x74] ss:$8 sps:$4 sm:$0xff]  }
   0xa   :  { %v2691_v25 = vld [vmem:[%s4235_s1 + $0x264] ss:$8 sps:$4 sm:$0xff]   ;;  %v2694_v27 = vld [vmem:[%s4235_s1 + $0x260] ss:$8 sps:$4 sm:$0xff]   ;;  %v2697_v29 = vld [vmem:[%s4235_s1 + $0x274] ss:$8 sps:$4 sm:$0xff]  }
   0xb   :  { %1344 = vmatpush1.bf16.msra.mxu1 %v2669_v10  ;;  %v2699_v30 = vld [vmem:[%s4235_s1 + $0x70] ss:$8 sps:$4 sm:$0xff]   ;;  %v2701_v32 = vld [vmem:[%s4235_s1 + $0x84] ss:$8 sps:$4 sm:$0xff]   ;;  %v2705_v34 = vld [vmem:[%s4235_s1 + $0x80] ss:$8 sps:$4 sm:$0xff]  }
   0xc   :  { %1570 = vmatpush1.bf16.msra.mxu0 %v2670_v11  ;;  %1345 = vmatprep.subr.bf16.mxu1 %v2671_v12  ;;  %v2700_v31 = vld [vmem:[%s4235_s1 + $0x270] ss:$8 sps:$4 sm:$0xff]   ;;  %v2703_v33 = vld [vmem:[%s4235_s1 + $0x284] ss:$8 sps:$4 sm:$0xff]   ;;  %v2706_v35 = vld [vmem:[%s4235_s1 + $0x280] ss:$8 sps:$4 sm:$0xff]  }
   0xd   :  { %1571 = vmatprep.subr.bf16.mxu0 %v2673_v13  ;;  %v2707_v36 = vld [vmem:[%s4235_s1 + $0x94] ss:$8 sps:$4 sm:$0xff]   ;;  %v2711_v38 = vld [vmem:[%s4235_s1 + $0x90] ss:$8 sps:$4 sm:$0xff]   ;;  %v2713_v40 = vld [vmem:[%s4235_s1 + $0xa4] ss:$8 sps:$4 sm:$0xff]  }
   0xe   :  { %v2709_v37 = vld [vmem:[%s4235_s1 + $0x294] ss:$8 sps:$4 sm:$0xff]   ;;  %v2712_v39 = vld [vmem:[%s4235_s1 + $0x290] ss:$8 sps:$4 sm:$0xff]   ;;  %v2715_v41 = vld [vmem:[%s4235_s1 + $0x2a4] ss:$8 sps:$4 sm:$0xff]  }
   0xf   :  { %1346 = vmatpush1.bf16.msra.mxu1 %v2675_v14  ;;  %v2717_v42 = vld [vmem:[%s4235_s1 + $0xa0] ss:$8 sps:$4 sm:$0xff]   ;;  %v2719_v44 = vld [vmem:[%s4235_s1 + $0xb4] ss:$8 sps:$4 sm:$0xff]   ;;  %v2723_v46 = vld [vmem:[%s4235_s1 + $0xb0] ss:$8 sps:$4 sm:$0xff]  }
  0x10   :  { %1572 = vmatpush1.bf16.msra.mxu0 %v2676_v15  ;;  %1347 = vmatprep.subr.bf16.mxu1 %v2677_v16  ;;  %v2718_v43 = vld [vmem:[%s4235_s1 + $0x2a0] ss:$8 sps:$4 sm:$0xff]   ;;  %v2721_v45 = vld [vmem:[%s4235_s1 + $0x2b4] ss:$8 sps:$4 sm:$0xff]   ;;  %v2724_v47 = vld [vmem:[%s4235_s1 + $0x2b0] ss:$8 sps:$4 sm:$0xff]  }
  0x11   :  { %1573 = vmatprep.subr.bf16.mxu0 %v2679_v17  ;;  %v2725_v48 = vld [vmem:[%s4235_s1 + $0xc4] ss:$8 sps:$4 sm:$0xff]   ;;  %v2754_v51 = vld [vmem:[%s4236_s0 + $0x14] ss:$36 sps:$4 sm:$0xff]   ;;  %v2729_v52 = vld [vmem:[%s4235_s1 + $0xc0] ss:$8 sps:$4 sm:$0xff]  }
  0x12   :  { %v2751_v49 = vld [vmem:[%s4236_s0 + $0x4] ss:$36 sps:$4 sm:$0xff]   ;;  %1597 = vmatprep.mubr.bf16.mxu0 %v2754_v51  ;;  %v2731_v54 = vld [vmem:[%s4235_s1 + $0xd4] ss:$8 sps:$4 sm:$0xff]   ;;  %v2735_v56 = vld [vmem:[%s4235_s1 + $0xd0] ss:$8 sps:$4 sm:$0xff]  }
  0x13   :  { %1348 = vmatpush1.bf16.msra.mxu1 %v2681_v18  ;;  %v2727_v50 = vld [vmem:[%s4235_s1 + $0x2c4] ss:$8 sps:$4 sm:$0xff]   ;;  %1371 = vmatprep.mubr.bf16.mxu1 %v2751_v49  ;;  %v2730_v53 = vld [vmem:[%s4235_s1 + $0x2c0] ss:$8 sps:$4 sm:$0xff]   ;;  %v2733_v55 = vld [vmem:[%s4235_s1 + $0x2d4] ss:$8 sps:$4 sm:$0xff]  }
  0x14   :  { %1574 = vmatpush1.bf16.msra.mxu0 %v2682_v19  ;;  %1349 = vmatprep.subr.bf16.mxu1 %v2683_v20  ;;  %v2736_v57 = vld [vmem:[%s4235_s1 + $0x2d0] ss:$8 sps:$4 sm:$0xff]   ;;  %v2737_v58 = vld [vmem:[%s4235_s1 + $0xe4] ss:$8 sps:$4 sm:$0xff]   ;;  %v2741_v60 = vld [vmem:[%s4235_s1 + $0xe0] ss:$8 sps:$4 sm:$0xff]  }
  0x15   :  { %1575 = vmatprep.subr.bf16.mxu0 %v2685_v21  ;;  %v2739_v59 = vld [vmem:[%s4235_s1 + $0x2e4] ss:$8 sps:$4 sm:$0xff]   ;;  %v2742_v61 = vld [vmem:[%s4235_s1 + $0x2e0] ss:$8 sps:$4 sm:$0xff]   ;;  %v2743_v62 = vld [vmem:[%s4235_s1 + $0xf4] ss:$8 sps:$4 sm:$0xff]  }
  0x16   :  { %v2745_v63 = vld [vmem:[%s4235_s1 + $0x2f4] ss:$8 sps:$4 sm:$0xff]   ;;  %v2747_v0 = vld [vmem:[%s4235_s1 + $0xf0] ss:$8 sps:$4 sm:$0xff]   ;;  %v2757_v2 = vld [vmem:[%s4235_s1 + $0x104] ss:$8 sps:$4 sm:$0xff]  }
  0x17   :  { %1350 = vmatpush1.bf16.msra.mxu1 %v2687_v22  ;;  %v2748_v1 = vld [vmem:[%s4235_s1 + $0x2f0] ss:$8 sps:$4 sm:$0xff]   ;;  %v3326_v3 = vld [vmem:[%s4235_s1 + $0x304] ss:$8 sps:$4 sm:$0xff]   ;;  %v2755_v6 = vld [vmem:[%s4235_s1 + $0x100] ss:$8 sps:$4 sm:$0xff]  }
  0x18   :  { %1576 = vmatpush1.bf16.msra.mxu0 %v2688_v23  ;;  %1351 = vmatprep.subr.bf16.mxu1 %v2689_v24  ;;  %v2749_v4 = vld [vmem:[%s4236_s0] ss:$36 sps:$4 sm:$0xff]   ;;  %v2752_v5 = vld [vmem:[%s4236_s0 + $0x10] ss:$36 sps:$4 sm:$0xff]   ;;  %v2771_v16 = vld [vmem:[%s4236_s0 + $0x48] ss:$36 sps:$4 sm:$0xff]  }
  0x19   :  { %1577 = vmatprep.subr.bf16.mxu0 %v2691_v25  ;;  %v3340_v7 = vld [vmem:[%s4235_s1 + $0x300] ss:$8 sps:$4 sm:$0xff]   ;;  %v2763_v8 = vld [vmem:[%s4235_s1 + $0x114] ss:$8 sps:$4 sm:$0xff]   ;;  %v2767_v10 = vld [vmem:[%s4236_s0 + $0x4c] ss:$36 sps:$4 sm:$0xff]  }
  0x1a   :  { %v3349_v9 = vld [vmem:[%s4235_s1 + $0x314] ss:$8 sps:$4 sm:$0xff]   ;;  %v2761_v12 = vld [vmem:[%s4235_s1 + $0x110] ss:$8 sps:$4 sm:$0xff]   ;;  %v2774_v14 = vld [vmem:[%s4235_s1 + $0x124] ss:$8 sps:$4 sm:$0xff]  }
  0x1b   :  { %1352 = vmatpush1.bf16.msra.mxu1 %v2693_v26  ;;  %v2769_v11 = vld [vmem:[%s4236_s0 + $0x5c] ss:$36 sps:$4 sm:$0xff]   ;;  %v3364_v13 = vld [vmem:[%s4235_s1 + $0x310] ss:$8 sps:$4 sm:$0xff]   ;;  %v3373_v15 = vld [vmem:[%s4235_s1 + $0x324] ss:$8 sps:$4 sm:$0xff]  }
  0x1c   :  { %1578 = vmatpush1.bf16.msra.mxu0 %v2694_v27  ;;  %1353 = vmatprep.subr.bf16.mxu1 %v2695_v28  ;;  %v2772_v17 = vld [vmem:[%s4235_s1 + $0x120] ss:$8 sps:$4 sm:$0xff]   ;;  %v2775_v18 = vld [vmem:[%s4236_s0 + $0x58] ss:$36 sps:$4 sm:$0xff]   ;;  %v2792_v26 = vld [vmem:[%s4235_s1 + $0x144] ss:$8 sps:$4 sm:$0xff]  }
  0x1d   :  { %1579 = vmatprep.subr.bf16.mxu0 %v2697_v29  ;;  %v3387_v19 = vld [vmem:[%s4235_s1 + $0x320] ss:$8 sps:$4 sm:$0xff]   ;;  %v2781_v20 = vld [vmem:[%s4235_s1 + $0x134] ss:$8 sps:$4 sm:$0xff]   ;;  %v2779_v24 = vld [vmem:[%s4235_s1 + $0x130] ss:$8 sps:$4 sm:$0xff]  }
  0x1e   :  { %v3397_v21 = vld [vmem:[%s4235_s1 + $0x334] ss:$8 sps:$4 sm:$0xff]   ;;  %v2787_v23 = vld [vmem:[%s4236_s0 + $0xa4] ss:$36 sps:$4 sm:$0xff]   ;;  %v3412_v25 = vld [vmem:[%s4235_s1 + $0x330] ss:$8 sps:$4 sm:$0xff]  }
  0x1f   :  { %1354 = vmatpush1.bf16.msra.mxu1 %v2699_v30  ;;  %v2785_v22 = vld [vmem:[%s4236_s0 + $0x94] ss:$36 sps:$4 sm:$0xff]   ;;  %v3421_v27 = vld [vmem:[%s4235_s1 + $0x344] ss:$8 sps:$4 sm:$0xff]   ;;  %v2790_v29 = vld [vmem:[%s4235_s1 + $0x140] ss:$8 sps:$4 sm:$0xff]  }
  0x20   :  { %1580 = vmatpush1.bf16.msra.mxu0 %v2700_v31  ;;  %1355 = vmatprep.subr.bf16.mxu1 %v2701_v32  ;;  %v2789_v28 = vld [vmem:[%s4236_s0 + $0x90] ss:$36 sps:$4 sm:$0xff]   ;;  %v2793_v30 = vld [vmem:[%s4236_s0 + $0xa0] ss:$36 sps:$4 sm:$0xff]  }
  0x21   :  { %1581 = vmatprep.subr.bf16.mxu0 %v2703_v33  ;;  %v3435_v31 = vld [vmem:[%s4235_s1 + $0x340] ss:$8 sps:$4 sm:$0xff]   ;;  %v2799_v32 = vld [vmem:[%s4235_s1 + $0x154] ss:$8 sps:$4 sm:$0xff]   ;;  %v3508_v49 = vld [vmem:[%s4235_s1 + $0x370] ss:$8 sps:$4 sm:$0xff]  }
  0x22   :  { %v3445_v33 = vld [vmem:[%s4235_s1 + $0x354] ss:$8 sps:$4 sm:$0xff]   ;;  %v3517_v51 = vld [vmem:[%s4235_s1 + $0x384] ss:$8 sps:$4 sm:$0xff]  }
  0x23   :  { %1356 = vmatpush1.bf16.msra.mxu1 %v2705_v34  ;;  %v2803_v34 = vld [vmem:[%s4236_s0 + $0xdc] ss:$36 sps:$4 sm:$0xff]  }
  0x24   :  { %1582 = vmatpush1.bf16.msra.mxu0 %v2706_v35  ;;  %1357 = vmatprep.subr.bf16.mxu1 %v2707_v36  ;;  %v2805_v35 = vld [vmem:[%s4236_s0 + $0xec] ss:$36 sps:$4 sm:$0xff]  }
  0x25   :  { %1583 = vmatprep.subr.bf16.mxu0 %v2709_v37  ;;  %v2797_v36 = vld [vmem:[%s4235_s1 + $0x150] ss:$8 sps:$4 sm:$0xff]  }
  0x26   :  { %v3460_v37 = vld [vmem:[%s4235_s1 + $0x350] ss:$8 sps:$4 sm:$0xff]  }
  0x27   :  { %1358 = vmatpush1.bf16.msra.mxu1 %v2711_v38  ;;  %v2810_v38 = vld [vmem:[%s4235_s1 + $0x164] ss:$8 sps:$4 sm:$0xff]  }
  0x28   :  { %1584 = vmatpush1.bf16.msra.mxu0 %v2712_v39  ;;  %1359 = vmatprep.subr.bf16.mxu1 %v2713_v40  ;;  %v3469_v39 = vld [vmem:[%s4235_s1 + $0x364] ss:$8 sps:$4 sm:$0xff]   ;;  %v2807_v40 = vld [vmem:[%s4236_s0 + $0xd8] ss:$36 sps:$4 sm:$0xff]  }
  0x29   :  { %1585 = vmatprep.subr.bf16.mxu0 %v2715_v41  ;;  %v2808_v41 = vld [vmem:[%s4235_s1 + $0x160] ss:$8 sps:$4 sm:$0xff]  }
  0x2b   :  { %1360 = vmatpush1.bf16.msra.mxu1 %v2717_v42  ;;  %v2811_v42 = vld [vmem:[%s4236_s0 + $0xe8] ss:$36 sps:$4 sm:$0xff]  }
  0x2c   :  { %1586 = vmatpush1.bf16.msra.mxu0 %v2718_v43  ;;  %1361 = vmatprep.subr.bf16.mxu1 %v2719_v44  ;;  %v3483_v43 = vld [vmem:[%s4235_s1 + $0x360] ss:$8 sps:$4 sm:$0xff]   ;;  %v2817_v44 = vld [vmem:[%s4235_s1 + $0x174] ss:$8 sps:$4 sm:$0xff]  }
  0x2d   :  { %1587 = vmatprep.subr.bf16.mxu0 %v2721_v45  ;;  %v3493_v45 = vld [vmem:[%s4235_s1 + $0x374] ss:$8 sps:$4 sm:$0xff]  }
  0x2f   :  { %1362 = vmatpush1.bf16.msra.mxu1 %v2723_v46  ;;  %v2821_v46 = vld [vmem:[%s4236_s0 + $0x124] ss:$36 sps:$4 sm:$0xff]  }
  0x30   :  { %1588 = vmatpush1.bf16.msra.mxu0 %v2724_v47  ;;  %1363 = vmatprep.subr.bf16.mxu1 %v2725_v48  ;;  %v2823_v47 = vld [vmem:[%s4236_s0 + $0x134] ss:$36 sps:$4 sm:$0xff]  }
  0x31   :  { %1589 = vmatprep.subr.bf16.mxu0 %v2727_v50  ;;  %v2815_v48 = vld [vmem:[%s4235_s1 + $0x170] ss:$8 sps:$4 sm:$0xff]   ;;  %v2828_v50 = vld [vmem:[%s4235_s1 + $0x184] ss:$8 sps:$4 sm:$0xff]  }
  0x33   :  { %1364 = vmatpush1.bf16.msra.mxu1 %v2729_v52  ;;  %v2825_v52 = vld [vmem:[%s4236_s0 + $0x120] ss:$36 sps:$4 sm:$0xff]  }
  0x34   :  { %1590 = vmatpush1.bf16.msra.mxu0 %v2730_v53  ;;  %1365 = vmatprep.subr.bf16.mxu1 %v2731_v54  ;;  %v2826_v53 = vld [vmem:[%s4235_s1 + $0x180] ss:$8 sps:$4 sm:$0xff]   ;;  %v2829_v54 = vld [vmem:[%s4236_s0 + $0x130] ss:$36 sps:$4 sm:$0xff]  }
  0x35   :  { %1591 = vmatprep.subr.bf16.mxu0 %v2733_v55  ;;  %v3531_v55 = vld [vmem:[%s4235_s1 + $0x380] ss:$8 sps:$4 sm:$0xff]  }
  0x37   :  { %1366 = vmatpush1.bf16.msra.mxu1 %v2735_v56  ;;  %v2835_v56 = vld [vmem:[%s4235_s1 + $0x194] ss:$8 sps:$4 sm:$0xff]  }
  0x38   :  { %1592 = vmatpush1.bf16.msra.mxu0 %v2736_v57  ;;  %1367 = vmatprep.subr.bf16.mxu1 %v2737_v58  ;;  %v3541_v57 = vld [vmem:[%s4235_s1 + $0x394] ss:$8 sps:$4 sm:$0xff]   ;;  %v2839_v58 = vld [vmem:[%s4236_s0 + $0x16c] ss:$36 sps:$4 sm:$0xff]  }
  0x39   :  { %1593 = vmatprep.subr.bf16.mxu0 %v2739_v59  ;;  %v2841_v59 = vld [vmem:[%s4236_s0 + $0x17c] ss:$36 sps:$4 sm:$0xff]  }
  0x3b   :  { %1368 = vmatpush1.bf16.msra.mxu1 %v2741_v60  ;;  %v2833_v60 = vld [vmem:[%s4235_s1 + $0x190] ss:$8 sps:$4 sm:$0xff]  }
  0x3c   :  { %1594 = vmatpush1.bf16.msra.mxu0 %v2742_v61  ;;  %1369 = vmatprep.subr.bf16.mxu1 %v2743_v62  ;;  %v3556_v61 = vld [vmem:[%s4235_s1 + $0x390] ss:$8 sps:$4 sm:$0xff]   ;;  %v2846_v62 = vld [vmem:[%s4235_s1 + $0x1a4] ss:$8 sps:$4 sm:$0xff]  }
  0x3d   :  { %1595 = vmatprep.subr.bf16.mxu0 %v2745_v63  ;;  %v3565_v63 = vld [vmem:[%s4235_s1 + $0x3a4] ss:$8 sps:$4 sm:$0xff]  }
  0x3f   :  { %1370 = vmatpush1.bf16.msra.mxu1 %v2747_v0  ;;  %v2843_v0 = vld [vmem:[%s4236_s0 + $0x168] ss:$36 sps:$4 sm:$0xff]  }
  0x40   :  { %1596 = vmatpush1.bf16.msra.mxu0 %v2748_v1  ;;  %1452 = vmatprep.subr.bf16.mxu1 %v2757_v2  ;;  %v2844_v1 = vld [vmem:[%s4235_s1 + $0x1a0] ss:$8 sps:$4 sm:$0xff]   ;;  %v2847_v2 = vld [vmem:[%s4236_s0 + $0x178] ss:$36 sps:$4 sm:$0xff]  }
  0x41   :  { %1678 = vmatprep.subr.bf16.mxu0 %v3326_v3 }
  0x42   :  { %1372 = vmatmul.mubr.bf16.vlgmr.msra.gmra.mrb[0].mxu1 %v2749_v4  ;;  %v3579_v4 = vld [vmem:[%s4235_s1 + $0x3a0] ss:$8 sps:$4 sm:$0xff]  }
  0x43   :  { %1598 = vmatmul.mubr.bf16.vlgmr.msra.gmra.mrb[0].mxu0 %v2752_v5  ;;  %1453 = vmatpush1.bf16.msra.mxu1 %v2755_v6  ;;  %v2853_v5 = vld [vmem:[%s4235_s1 + $0x1b4] ss:$8 sps:$4 sm:$0xff]  }
  0x44   :  { %1679 = vmatpush1.bf16.msra.mxu0 %v3340_v7  ;;  %1454 = vmatprep.subr.bf16.mxu1 %v2763_v8  ;;  %v3589_v6 = vld [vmem:[%s4235_s1 + $0x3b4] ss:$8 sps:$4 sm:$0xff]  }
  0x45   :  { %1680 = vmatprep.subr.bf16.mxu0 %v3349_v9  ;;  %1381 = vmatprep.mubr.bf16.mxu1 %v2767_v10  ;;  %v2857_v8 = vld [vmem:[%s4236_s0 + $0x1b4] ss:$36 sps:$4 sm:$0xff]   ;;  %v2859_v10 = vld [vmem:[%s4236_s0 + $0x1c4] ss:$36 sps:$4 sm:$0xff]  }
  0x46   :  { %1607 = vmatprep.mubr.bf16.mxu0 %v2769_v11  ;;  %v2851_v11 = vld [vmem:[%s4235_s1 + $0x1b0] ss:$8 sps:$4 sm:$0xff]  }
  0x47   :  { %1455 = vmatpush1.bf16.msra.mxu1 %v2761_v12  ;;  %v3603_v12 = vld [vmem:[%s4235_s1 + $0x3b0] ss:$8 sps:$4 sm:$0xff]  }
  0x48   :  { %1681 = vmatpush1.bf16.msra.mxu0 %v3364_v13  ;;  %1456 = vmatprep.subr.bf16.mxu1 %v2774_v14  ;;  %v2864_v14 = vld [vmem:[%s4235_s1 + $0x1c4] ss:$8 sps:$4 sm:$0xff]  }
  0x49   :  { %1682 = vmatprep.subr.bf16.mxu0 %v3373_v15 }
  0x4a   :  { %1382 = vmatmul.mubr.bf16.gmra.mrb[4].mxu1 %v2771_v16  ;;  %v3613_v16 = vld [vmem:[%s4235_s1 + $0x3c4] ss:$8 sps:$4 sm:$0xff]  }
  0x4b   :  { %1608 = vmatmul.mubr.bf16.gmra.mrb[4].mxu0 %v2775_v18  ;;  %1457 = vmatpush1.bf16.msra.mxu1 %v2772_v17  ;;  %v2861_v17 = vld [vmem:[%s4236_s0 + $0x1b0] ss:$36 sps:$4 sm:$0xff]   ;;  %v2862_v18 = vld [vmem:[%s4235_s1 + $0x1c0] ss:$8 sps:$4 sm:$0xff]  }
  0x4c   :  { %1683 = vmatpush1.bf16.msra.mxu0 %v3387_v19  ;;  %1458 = vmatprep.subr.bf16.mxu1 %v2781_v20  ;;  %v2865_v20 = vld [vmem:[%s4236_s0 + $0x1c0] ss:$36 sps:$4 sm:$0xff]  }
  0x4d   :  { %1684 = vmatprep.subr.bf16.mxu0 %v3397_v21  ;;  %1391 = vmatprep.mubr.bf16.mxu1 %v2785_v22  ;;  %v3627_v22 = vld [vmem:[%s4235_s1 + $0x3c0] ss:$8 sps:$4 sm:$0xff]  }
  0x4e   :  { %1617 = vmatprep.mubr.bf16.mxu0 %v2787_v23  ;;  %v2871_v23 = vld [vmem:[%s4235_s1 + $0x1d4] ss:$8 sps:$4 sm:$0xff]  }
  0x4f   :  { %1459 = vmatpush1.bf16.msra.mxu1 %v2779_v24  ;;  %v3637_v24 = vld [vmem:[%s4235_s1 + $0x3d4] ss:$8 sps:$4 sm:$0xff]  }
  0x50   :  { %1685 = vmatpush1.bf16.msra.mxu0 %v3412_v25  ;;  %1460 = vmatprep.subr.bf16.mxu1 %v2792_v26  ;;  %v2875_v26 = vld [vmem:[%s4236_s0 + $0x1fc] ss:$36 sps:$4 sm:$0xff]  }
  0x51   :  { %1686 = vmatprep.subr.bf16.mxu0 %v3421_v27 }
  0x52   :  { %1392 = vmatmul.mubr.bf16.gmra.mrb[8].mxu1 %v2789_v28  ;;  %v2877_v28 = vld [vmem:[%s4236_s0 + $0x20c] ss:$36 sps:$4 sm:$0xff]  }
  0x53   :  { %1618 = vmatmul.mubr.bf16.gmra.mrb[8].mxu0 %v2793_v30  ;;  %1461 = vmatpush1.bf16.msra.mxu1 %v2790_v29  ;;  %v2869_v29 = vld [vmem:[%s4235_s1 + $0x1d0] ss:$8 sps:$4 sm:$0xff]  }
  0x54   :  { %1687 = vmatpush1.bf16.msra.mxu0 %v3435_v31  ;;  %1462 = vmatprep.subr.bf16.mxu1 %v2799_v32  ;;  %v3651_v30 = vld [vmem:[%s4235_s1 + $0x3d0] ss:$8 sps:$4 sm:$0xff]   ;;  %v2882_v32 = vld [vmem:[%s4235_s1 + $0x1e4] ss:$8 sps:$4 sm:$0xff]  }
  0x55   :  { %1688 = vmatprep.subr.bf16.mxu0 %v3445_v33  ;;  %1401 = vmatprep.mubr.bf16.mxu1 %v2803_v34  ;;  %v3661_v34 = vld [vmem:[%s4235_s1 + $0x3e4] ss:$8 sps:$4 sm:$0xff]  }
  0x56   :  { %1627 = vmatprep.mubr.bf16.mxu0 %v2805_v35  ;;  %v2879_v35 = vld [vmem:[%s4236_s0 + $0x1f8] ss:$36 sps:$4 sm:$0xff]  }
  0x57   :  { %1463 = vmatpush1.bf16.msra.mxu1 %v2797_v36  ;;  %v2880_v36 = vld [vmem:[%s4235_s1 + $0x1e0] ss:$8 sps:$4 sm:$0xff]  }
  0x58   :  { %1689 = vmatpush1.bf16.msra.mxu0 %v3460_v37  ;;  %1464 = vmatprep.subr.bf16.mxu1 %v2810_v38  ;;  %v2883_v38 = vld [vmem:[%s4236_s0 + $0x208] ss:$36 sps:$4 sm:$0xff]  }
  0x59   :  { %1690 = vmatprep.subr.bf16.mxu0 %v3469_v39 }
  0x5a   :  { %1402 = vmatmul.mubr.bf16.gmra.mrb[12].mxu1 %v2807_v40  ;;  %v3675_v40 = vld [vmem:[%s4235_s1 + $0x3e0] ss:$8 sps:$4 sm:$0xff]  }
  0x5b   :  { %1628 = vmatmul.mubr.bf16.gmra.mrb[12].mxu0 %v2811_v42  ;;  %1465 = vmatpush1.bf16.msra.mxu1 %v2808_v41  ;;  %v2889_v41 = vld [vmem:[%s4235_s1 + $0x1f4] ss:$8 sps:$4 sm:$0xff]  }
  0x5c   :  { %1691 = vmatpush1.bf16.msra.mxu0 %v3483_v43  ;;  %1466 = vmatprep.subr.bf16.mxu1 %v2817_v44  ;;  %v3685_v42 = vld [vmem:[%s4235_s1 + $0x3f4] ss:$8 sps:$4 sm:$0xff]   ;;  %v2895_v44 = vld [vmem:[%s4236_s0 + $0xc] ss:$36 sps:$4 sm:$0xff]  }
  0x5d   :  { %1692 = vmatprep.subr.bf16.mxu0 %v3493_v45  ;;  %1411 = vmatprep.mubr.bf16.mxu1 %v2821_v46  ;;  %v2898_v46 = vld [vmem:[%s4236_s0 + $0x1c] ss:$36 sps:$4 sm:$0xff]  }
  0x5e   :  { %1637 = vmatprep.mubr.bf16.mxu0 %v2823_v47  ;;  %v2887_v47 = vld [vmem:[%s4235_s1 + $0x1f0] ss:$8 sps:$4 sm:$0xff]  }
  0x5f   :  { %1467 = vmatpush1.bf16.msra.mxu1 %v2815_v48  ;;  %v3700_v48 = vld [vmem:[%s4235_s1 + $0x3f0] ss:$8 sps:$4 sm:$0xff]  }
  0x60   :  { %1693 = vmatpush1.bf16.msra.mxu0 %v3508_v49  ;;  %1468 = vmatprep.subr.bf16.mxu1 %v2828_v50  ;;  %v2901_v50 = vld [vmem:[%s4235_s1 + $0x404] ss:$8 sps:$4 sm:$0xff]  }
  0x61   :  { %1694 = vmatprep.subr.bf16.mxu0 %v3517_v51 }
  0x62   :  { %1412 = vmatmul.mubr.bf16.gmra.mrb[16].mxu1 %v2825_v52  ;;  %v2893_v52 = vld [vmem:[%s4236_s0 + $0x8] ss:$36 sps:$4 sm:$0xff]  }
  0x63   :  { %1638 = vmatmul.mubr.bf16.gmra.mrb[16].mxu0 %v2829_v54  ;;  %1469 = vmatpush1.bf16.msra.mxu1 %v2826_v53  ;;  %v2896_v53 = vld [vmem:[%s4236_s0 + $0x18] ss:$36 sps:$4 sm:$0xff]   ;;  %v2899_v54 = vld [vmem:[%s4235_s1 + $0x400] ss:$8 sps:$4 sm:$0xff]  }
  0x64   :  { %1695 = vmatpush1.bf16.msra.mxu0 %v3531_v55  ;;  %1470 = vmatprep.subr.bf16.mxu1 %v2835_v56  ;;  %v2904_v56 = vld [vmem:[%s4235_s1 + $0x414] ss:$8 sps:$4 sm:$0xff]  }
  0x65   :  { %1696 = vmatprep.subr.bf16.mxu0 %v3541_v57  ;;  %1421 = vmatprep.mubr.bf16.mxu1 %v2839_v58  ;;  %v2905_v58 = vld [vmem:[%s4236_s0 + $0x54] ss:$36 sps:$4 sm:$0xff]  }
  0x66   :  { %1647 = vmatprep.mubr.bf16.mxu0 %v2841_v59  ;;  %v2907_v59 = vld [vmem:[%s4236_s0 + $0x64] ss:$36 sps:$4 sm:$0xff]  }
  0x67   :  { %1471 = vmatpush1.bf16.msra.mxu1 %v2833_v60  ;;  %v2902_v60 = vld [vmem:[%s4235_s1 + $0x410] ss:$8 sps:$4 sm:$0xff]  }
  0x68   :  { %1697 = vmatpush1.bf16.msra.mxu0 %v3556_v61  ;;  %1472 = vmatprep.subr.bf16.mxu1 %v2846_v62  ;;  %v2909_v62 = vld [vmem:[%s4236_s0 + $0x50] ss:$36 sps:$4 sm:$0xff]  }
  0x69   :  { %1698 = vmatprep.subr.bf16.mxu0 %v3565_v63 }
  0x6a   :  { %1422 = vmatmul.mubr.bf16.gmra.mrb[20].mxu1 %v2843_v0  ;;  %v2916_v0 = vld [vmem:[%s4235_s1 + $0x434] ss:$8 sps:$4 sm:$0xff]  }
  0x6b   :  { %1648 = vmatmul.mubr.bf16.gmra.mrb[20].mxu0 %v2847_v2  ;;  %1473 = vmatpush1.bf16.msra.mxu1 %v2844_v1  ;;  %v2917_v1 = vld [vmem:[%s4236_s0 + $0x9c] ss:$36 sps:$4 sm:$0xff]   ;;  %v2925_v2 = vld [vmem:[%s4235_s1 + $0x444] ss:$8 sps:$4 sm:$0xff]  }
  0x6c   :  { %1699 = vmatpush1.bf16.msra.mxu0 %v3579_v4  ;;  %1474 = vmatprep.subr.bf16.mxu1 %v2853_v5  ;;  %v2921_v5 = vld [vmem:[%s4236_s0 + $0x98] ss:$36 sps:$4 sm:$0xff]  }
  0x6d   :  { %1700 = vmatprep.subr.bf16.mxu0 %v3589_v6  ;;  %1431 = vmatprep.mubr.bf16.mxu1 %v2857_v8  ;;  %v2928_v8 = vld [vmem:[%s4235_s1 + $0x454] ss:$8 sps:$4 sm:$0xff]  }
  0x6e   :  { %1657 = vmatprep.mubr.bf16.mxu0 %v2859_v10  ;;  %v2929_v10 = vld [vmem:[%s4236_s0 + $0xe4] ss:$36 sps:$4 sm:$0xff]  }
  0x6f   :  { %1475 = vmatpush1.bf16.msra.mxu1 %v2851_v11  ;;  %v2937_v11 = vld [vmem:[%s4235_s1 + $0x464] ss:$8 sps:$4 sm:$0xff]  }
  0x70   :  { %1701 = vmatpush1.bf16.msra.mxu0 %v3603_v12  ;;  %1476 = vmatprep.subr.bf16.mxu1 %v2864_v14  ;;  %v2933_v14 = vld [vmem:[%s4236_s0 + $0xe0] ss:$36 sps:$4 sm:$0xff]  }
  0x71   :  { %1702 = vmatprep.subr.bf16.mxu0 %v3613_v16 }
  0x72   :  { %1432 = vmatmul.mubr.bf16.gmra.mrb[24].mxu1 %v2861_v17  ;;  %v2940_v17 = vld [vmem:[%s4235_s1 + $0x474] ss:$8 sps:$4 sm:$0xff]  }
  0x73   :  { %1658 = vmatmul.mubr.bf16.gmra.mrb[24].mxu0 %v2865_v20  ;;  %1477 = vmatpush1.bf16.msra.mxu1 %v2862_v18  ;;  %v2941_v18 = vld [vmem:[%s4236_s0 + $0x12c] ss:$36 sps:$4 sm:$0xff]  }
  0x74   :  { %1703 = vmatpush1.bf16.msra.mxu0 %v3627_v22  ;;  %1478 = vmatprep.subr.bf16.mxu1 %v2871_v23  ;;  %v2943_v20 = vld [vmem:[%s4236_s0 + $0x128] ss:$36 sps:$4 sm:$0xff]  }
  0x75   :  { %1704 = vmatprep.subr.bf16.mxu0 %v3637_v24  ;;  %1441 = vmatprep.mubr.bf16.mxu1 %v2875_v26  ;;  %v2948_v23 = vld [vmem:[%s4236_s0 + $0x68] ss:$36 sps:$4 sm:$0xff]  }
  0x76   :  { %1667 = vmatprep.mubr.bf16.mxu0 %v2877_v28  ;;  %v2964_v26 = vld [vmem:[%s4236_s0 + $0x188] ss:$36 sps:$4 sm:$0xff]  }
  0x77   :  { %1479 = vmatpush1.bf16.msra.mxu1 %v2869_v29  ;;  %v2965_v28 = vld [vmem:[%s4236_s0 + $0x1cc] ss:$36 sps:$4 sm:$0xff]  }
  0x78   :  { %1705 = vmatpush1.bf16.msra.mxu0 %v3651_v30  ;;  %1480 = vmatprep.subr.bf16.mxu1 %v2882_v32  ;;  %v2967_v29 = vld [vmem:[%s4236_s0 + $0x1c8] ss:$36 sps:$4 sm:$0xff]   ;;  %v2969_v32 = vld [vmem:[%s4236_s0 + $0x214] ss:$36 sps:$4 sm:$0xff]  }
  0x79   :  { %1706 = vmatprep.subr.bf16.mxu0 %v3661_v34 }
  0x7a   :  { %1442 = vmatmul.mubr.bf16.gmra.mrb[28].mxu1 %v2879_v35  ;;  %v2972_v35 = vld [vmem:[%s4236_s0 + $0x218] ss:$36 sps:$4 sm:$0xff]  }
  0x7b   :  { %1668 = vmatmul.mubr.bf16.gmra.mrb[28].mxu0 %v2883_v38  ;;  %1481 = vmatpush1.bf16.msra.mxu1 %v2880_v36 }
  0x7c   :  { %1707 = vmatpush1.bf16.msra.mxu0 %v3675_v40  ;;  %1482 = vmatprep.subr.bf16.mxu1 %v2889_v41 }
  0x7d   :  { %1708 = vmatprep.subr.bf16.mxu0 %v3685_v42  ;;  %1484 = vmatprep.mubr.bf16.mxu1 %v2895_v44 }
  0x7e   :  { %1710 = vmatprep.mubr.bf16.mxu0 %v2898_v46 }
  0x7f   :  { %1483 = vmatpush1.bf16.msra.mxu1 %v2887_v47 }
  0x80   :  { %1709 = vmatpush1.bf16.msra.mxu0 %v3700_v48  ;;  %2460 = vmatprep.subr.bf16.mxu1 %v3326_v3  ;;  %v2913_v3 = vld [vmem:[%s4235_s1 + $0x424] ss:$8 sps:$4 sm:$0xff]  }
  0x81   :  { %1791 = vmatprep.subr.bf16.mxu0 %v2901_v50 }
  0x82   :  { %1485 = vmatmul.mubr.bf16.vlgmr.msra.gmra.mrb[0].mxu1 %v2893_v52 }
  0x83   :  { %1711 = vmatmul.mubr.bf16.vlgmr.msra.gmra.mrb[0].mxu0 %v2896_v53  ;;  %2476 = vmatpush1.bf16.msra.mxu1 %v3340_v7  ;;  %v2910_v7 = vld [vmem:[%s4236_s0 + $0x60] ss:$36 sps:$4 sm:$0xff]  }
  0x84   :  { %1792 = vmatpush1.bf16.msra.mxu0 %v2899_v54  ;;  %2461 = vmatprep.subr.bf16.mxu1 %v3349_v9  ;;  %v2911_v9 = vld [vmem:[%s4235_s1 + $0x420] ss:$8 sps:$4 sm:$0xff]  }
  0x85   :  { %1793 = vmatprep.subr.bf16.mxu0 %v2904_v56  ;;  %1494 = vmatprep.mubr.bf16.mxu1 %v2905_v58 }
  0x86   :  { %1720 = vmatprep.mubr.bf16.mxu0 %v2907_v59 }
  0x87   :  { %2477 = vmatpush1.bf16.msra.mxu1 %v3364_v13  ;;  %v2919_v13 = vld [vmem:[%s4236_s0 + $0xac] ss:$36 sps:$4 sm:$0xff]  }
  0x88   :  { %1794 = vmatpush1.bf16.msra.mxu0 %v2902_v60  ;;  %2462 = vmatprep.subr.bf16.mxu1 %v3373_v15  ;;  %v2914_v15 = vld [vmem:[%s4235_s1 + $0x430] ss:$8 sps:$4 sm:$0xff]  }
  0x89   :  { %1795 = vmatprep.subr.bf16.mxu0 %v2913_v3 }
  0x8a   :  { %1495 = vmatmul.mubr.bf16.gmra.mrb[4].mxu1 %v2909_v62 }
  0x8b   :  { %1721 = vmatmul.mubr.bf16.gmra.mrb[4].mxu0 %v2910_v7  ;;  %2478 = vmatpush1.bf16.msra.mxu1 %v3387_v19  ;;  %v2922_v19 = vld [vmem:[%s4236_s0 + $0xa8] ss:$36 sps:$4 sm:$0xff]  }
  0x8c   :  { %1796 = vmatpush1.bf16.msra.mxu0 %v2911_v9  ;;  %2463 = vmatprep.subr.bf16.mxu1 %v3397_v21  ;;  %v2923_v21 = vld [vmem:[%s4235_s1 + $0x440] ss:$8 sps:$4 sm:$0xff]  }
  0x8d   :  { %1797 = vmatprep.subr.bf16.mxu0 %v2916_v0  ;;  %1504 = vmatprep.mubr.bf16.mxu1 %v2917_v1 }
  0x8e   :  { %1730 = vmatprep.mubr.bf16.mxu0 %v2919_v13 }
  0x8f   :  { %2479 = vmatpush1.bf16.msra.mxu1 %v3412_v25  ;;  %v2931_v25 = vld [vmem:[%s4236_s0 + $0xf4] ss:$36 sps:$4 sm:$0xff]  }
  0x90   :  { %1798 = vmatpush1.bf16.msra.mxu0 %v2914_v15  ;;  %2464 = vmatprep.subr.bf16.mxu1 %v3421_v27  ;;  %v2926_v27 = vld [vmem:[%s4235_s1 + $0x450] ss:$8 sps:$4 sm:$0xff]   ;;  %v241_v15 = vlaneseq }
  0x91   :  { %1799 = vmatprep.subr.bf16.mxu0 %v2925_v2 }
  0x92   :  { %1505 = vmatmul.mubr.bf16.gmra.mrb[8].mxu1 %v2921_v5 }
  0x93   :  { %1731 = vmatmul.mubr.bf16.gmra.mrb[8].mxu0 %v2922_v19  ;;  %2480 = vmatpush1.bf16.msra.mxu1 %v3435_v31  ;;  %v2934_v31 = vld [vmem:[%s4236_s0 + $0xf0] ss:$36 sps:$4 sm:$0xff]  }
  0x94   :  { %1800 = vmatpush1.bf16.msra.mxu0 %v2923_v21  ;;  %2465 = vmatprep.subr.bf16.mxu1 %v3445_v33  ;;  %v2935_v33 = vld [vmem:[%s4235_s1 + $0x460] ss:$8 sps:$4 sm:$0xff]   ;;  %v242_v21 = vshrl.u32 %v241_v15, 7 }
  0x95   :  { %1801 = vmatprep.subr.bf16.mxu0 %v2928_v8  ;;  %1514 = vmatprep.mubr.bf16.mxu1 %v2929_v10 }
  0x96   :  { %1740 = vmatprep.mubr.bf16.mxu0 %v2931_v25  ;;  %v243_v10 = vsub.s32 0, %v242_v21  ;;  %v239_v25 = vld [vmem:[%s4237_s2] sm:$0x3] }
  0x97   :  { %2481 = vmatpush1.bf16.msra.mxu1 %v3460_v37  ;;  %v2938_v37 = vld [vmem:[%s4235_s1 + $0x470] ss:$8 sps:$4 sm:$0xff]  }
  0x98   :  { %1802 = vmatpush1.bf16.msra.mxu0 %v2926_v27  ;;  %2466 = vmatprep.subr.bf16.mxu1 %v3469_v39  ;;  %v3101_v39 = vmov 0   ;;  %v247_v27 = vsub.s32 1, %v242_v21 }
  0x99   :  { %1803 = vmatprep.subr.bf16.mxu0 %v2937_v11 }
  0x9a   :  { %1515 = vmatmul.mubr.bf16.gmra.mrb[12].mxu1 %v2933_v14 }
  0x9b   :  { %1741 = vmatmul.mubr.bf16.gmra.mrb[12].mxu0 %v2934_v31  ;;  %2482 = vmatpush1.bf16.msra.mxu1 %v3483_v43  ;;  %v2944_v43 = vld [vmem:[%s4236_s0 + $0x20] ss:$36 sps:$4 sm:$0xff]  }
  0x9c   :  { %1804 = vmatpush1.bf16.msra.mxu0 %v2935_v33  ;;  %2467 = vmatprep.subr.bf16.mxu1 %v3493_v45  ;;  %v2945_v45 = vld [vmem:[%s4236_s0 + $0x174] ss:$36 sps:$4 sm:$0xff]   ;;  %v3951_v33 = vrot.slane %v239_v25, %v243_v10 }
  0x9d   :  { %1805 = vmatprep.subr.bf16.mxu0 %v2940_v17  ;;  %1524 = vmatprep.mubr.bf16.mxu1 %v2941_v18  ;;  %v3955_v18 = vrot.slane %v239_v25, %v247_v27 }
  0x9e   :  { %1823 = vmatprep.mubr.bf16.mxu0 %v3101_v39 }
  0x9f   :  { %2483 = vmatpush1.bf16.msra.mxu1 %v3508_v49  ;;  %v2947_v49 = vld [vmem:[%s4236_s0 + $0x170] ss:$36 sps:$4 sm:$0xff]  }
  0xa0   :  { %1806 = vmatpush1.bf16.msra.mxu0 %v2938_v37  ;;  %2468 = vmatprep.subr.bf16.mxu1 %v3517_v51  ;;  %v2949_v51 = vld [vmem:[%s4236_s0 + $0x1bc] ss:$36 sps:$4 sm:$0xff]  }
  0xa2   :  { %1525 = vmatmul.mubr.bf16.gmra.mrb[16].mxu1 %v2943_v20 }
  0xa3   :  { %1824 = vmatmul.mubr.bf16.vlgmr.msra.gmra.mrb[0].mxu0 %v2944_v43  ;;  %2484 = vmatpush1.bf16.msra.mxu1 %v3531_v55  ;;  %v2951_v55 = vld [vmem:[%s4236_s0 + $0x1b8] ss:$36 sps:$4 sm:$0xff]  }
  0xa4   :  { %1534 = vmatprep.mubr.bf16.mxu1 %v2945_v45  ;;  %2469 = vmatprep.subr.bf16.mxu1 %v3541_v57  ;;  %v2952_v57 = vld [vmem:[%s4236_s0 + $0xb0] ss:$36 sps:$4 sm:$0xff]  }
  0xa5   :  { %1833 = vmatprep.mubr.bf16.mxu0 %v3101_v39 }
  0xa7   :  { %2485 = vmatpush1.bf16.msra.mxu1 %v3556_v61  ;;  %v2953_v61 = vld [vmem:[%s4236_s0 + $0x204] ss:$36 sps:$4 sm:$0xff]  }
  0xa8   :  { %2470 = vmatprep.subr.bf16.mxu1 %v3565_v63  ;;  %v2955_v63 = vld [vmem:[%s4236_s0 + $0x200] ss:$36 sps:$4 sm:$0xff]  }
  0xaa   :  { %1535 = vmatmul.mubr.bf16.gmra.mrb[20].mxu1 %v2947_v49 }
  0xab   :  { %1834 = vmatmul.mubr.bf16.gmra.mrb[4].mxu0 %v2948_v23  ;;  %2486 = vmatpush1.bf16.msra.mxu1 %v3579_v4  ;;  %v2956_v4 = vld [vmem:[%s4236_s0 + $0xf8] ss:$36 sps:$4 sm:$0xff]  }
  0xac   :  { %1544 = vmatprep.mubr.bf16.mxu1 %v2949_v51  ;;  %2471 = vmatprep.subr.bf16.mxu1 %v3589_v6  ;;  %v2959_v6 = vld [vmem:[%s4236_s0 + $0x13c] ss:$36 sps:$4 sm:$0xff]  }
  0xad   :  { %1843 = vmatprep.mubr.bf16.mxu0 %v3101_v39 }
  0xaf   :  { %2487 = vmatpush1.bf16.msra.mxu1 %v3603_v12  ;;  %v2957_v12 = vld [vmem:[%s4236_s0 + $0x138] ss:$36 sps:$4 sm:$0xff]  }
  0xb0   :  { %2472 = vmatprep.subr.bf16.mxu1 %v3613_v16  ;;  %v2960_v16 = vld [vmem:[%s4236_s0 + $0x140] ss:$36 sps:$4 sm:$0xff]  }
  0xb2   :  { %1545 = vmatmul.mubr.bf16.gmra.mrb[24].mxu1 %v2951_v55 }
  0xb3   :  { %1844 = vmatmul.mubr.bf16.gmra.mrb[8].mxu0 %v2952_v57  ;;  %2488 = vmatpush1.bf16.msra.mxu1 %v3627_v22  ;;  %v2961_v22 = vld [vmem:[%s4236_s0 + $0x184] ss:$36 sps:$4 sm:$0xff]  }
  0xb4   :  { %1554 = vmatprep.mubr.bf16.mxu1 %v2953_v61  ;;  %2473 = vmatprep.subr.bf16.mxu1 %v3637_v24  ;;  %v2963_v24 = vld [vmem:[%s4236_s0 + $0x180] ss:$36 sps:$4 sm:$0xff]  }
  0xb5   :  { %1853 = vmatprep.mubr.bf16.mxu0 %v3101_v39 }
  0xb7   :  { %2489 = vmatpush1.bf16.msra.mxu1 %v3651_v30  ;;  %v2968_v30 = vld [vmem:[%s4236_s0 + $0x1d0] ss:$36 sps:$4 sm:$0xff]  }
  0xb8   :  { %2474 = vmatprep.subr.bf16.mxu1 %v3661_v34  ;;  %v2971_v34 = vld [vmem:[%s4236_s0 + $0x210] ss:$36 sps:$4 sm:$0xff]  }
  0xba   :  { %1555 = vmatmul.mubr.bf16.gmra.mrb[28].mxu1 %v2955_v63 }
  0xbb   :  { %1854 = vmatmul.mubr.bf16.gmra.mrb[12].mxu0 %v2956_v4  ;;  %2490 = vmatpush1.bf16.msra.mxu1 %v3675_v40 }
  0xbc   :  { %1750 = vmatprep.mubr.bf16.mxu1 %v2959_v6  ;;  %2475 = vmatprep.subr.bf16.mxu1 %v3685_v42 }
  0xbd   :  { %1863 = vmatprep.mubr.bf16.mxu0 %v3101_v39 }
  0xbf   :  { %2491 = vmatpush1.bf16.msra.mxu1 %v3700_v48 }
  0xc2   :  { %1751 = vmatmul.mubr.bf16.vlgmr.msra.gmra.mrb[32].mxu1 %v2957_v12 }
  0xc3   :  { %1864 = vmatmul.mubr.bf16.gmra.mrb[32].mxu0 %v2960_v16  ;;  %1760 = vmatprep.mubr.bf16.mxu1 %v2961_v22 }
  0xc4   :  { %1873 = vmatprep.mubr.bf16.mxu0 %v3101_v39 }
  0xca   :  { %1761 = vmatmul.mubr.bf16.gmra.mrb[36].mxu1 %v2963_v24 }
  0xcb   :  { %1874 = vmatmul.mubr.bf16.gmra.mrb[36].mxu0 %v2964_v26  ;;  %1770 = vmatprep.mubr.bf16.mxu1 %v2965_v28 }
  0xcc   :  { %1883 = vmatprep.mubr.bf16.mxu0 %v3101_v39 }
  0xd2   :  { %1771 = vmatmul.mubr.bf16.gmra.mrb[40].mxu1 %v2967_v29 }
  0xd3   :  { %1884 = vmatmul.mubr.bf16.gmra.mrb[40].mxu0 %v2968_v30  ;;  %1780 = vmatprep.mubr.bf16.mxu1 %v2969_v32 }
  0xd4   :  { %1893 = vmatprep.mubr.bf16.mxu0 %v3101_v39 }
  0xda   :  { %1781 = vmatmul.mubr.bf16.gmra.mrb[44].mxu1 %v2971_v34 }
  0xdb   :  { %1894 = vmatmul.mubr.bf16.gmra.mrb[44].mxu0 %v2972_v35 }
 0x136   :  { %v1639_v36 = vpop.f32.mrb[16].mxu0 }
 0x137   :  { %v1641_v38 = vpop.f32.mrb[17].mxu0 }
 0x138   :  { %v3906_v40 = vpop.f32.mrb[18].mxu0 }
 0x139   :  { %v3908_v41 = vpop.f32.mrb[19].mxu0 }
 0x13e   :  { %v3910_v42 = vpop.f32.mrb[20].mxu0 }
 0x13f   :  { %v3912_v44 = vpop.f32.mrb[21].mxu0 }
 0x140   :  { %v3914_v46 = vpop.f32.mrb[22].mxu0 }
 0x141   :  { %v3916_v47 = vpop.f32.mrb[23].mxu0 }
 0x146   :  { %v3918_v48 = vpop.f32.mrb[24].mxu0 }
 0x147   :  { %v3920_v50 = vpop.f32.mrb[25].mxu0 }
 0x148   :  { %v3922_v52 = vpop.f32.mrb[26].mxu0 }
 0x149   :  { %v3924_v53 = vpop.f32.mrb[27].mxu0 }
 0x14e   :  { %v3926_v54 = vpop.f32.mrb[28].mxu0 }
 0x14f   :  { %v3928_v56 = vpop.f32.mrb[29].mxu0 }
 0x150   :  { %v3930_v58 = vpop.f32.mrb[30].mxu0 }
 0x151   :  { %v3932_v59 = vpop.f32.mrb[31].mxu0 }
 0x155   :  { %v1486_v60 = vpop.f32.mrb[0].mxu1 }
 0x156   :  { %v1488_v3 = vpop.f32.mrb[1].mxu1  ;;  %v2492_v37 = vadd.f32 %v1486_v60, %v3951_v33 }
 0x157   :  { %v1490_v62 = vpop.f32.mrb[2].mxu1  ;;  %v2494_v39 = vadd.f32 %v1488_v3, %v3955_v18 }
 0x158   :  { %v1492_v7 = vpop.f32.mrb[3].mxu1  ;;  %v2496_v45 = vadd.f32 %v1490_v62, %v3951_v33 }
 0x159   :  { %v2498_v57 = vadd.f32 %v1492_v7, %v3955_v18 }
 0x15d   :  { %v1496_v9 = vpop.f32.mrb[4].mxu1 }
 0x15e   :  { %v1498_v0 = vpop.f32.mrb[5].mxu1  ;;  %v2500_v15 = vadd.f32 %v1496_v9, %v3951_v33 }
 0x15f   :  { %v1500_v1 = vpop.f32.mrb[6].mxu1  ;;  %v2502_v10 = vadd.f32 %v1498_v0, %v3955_v18 }
 0x160   :  { %v1502_v13 = vpop.f32.mrb[7].mxu1 }
 0x165   :  { %v3934_v2 = vpop.f32.mrb[8].mxu1 }
 0x166   :  { %v3936_v5 = vpop.f32.mrb[9].mxu1 }
 0x167   :  { %v3938_v19 = vpop.f32.mrb[10].mxu1 }
 0x168   :  { %v3940_v8 = vpop.f32.mrb[11].mxu1 }
 0x16d   :  { %v3945_v11 = vpop.f32.mrb[12].mxu1 }
 0x16e   :  { %v3947_v14 = vpop.f32.mrb[13].mxu1 }
 0x16f   :  { %v3949_v31 = vpop.f32.mrb[14].mxu1 }
 0x170   :  { %v3953_v17 = vpop.f32.mrb[15].mxu1 }
 0x175   :  { %v1526_v20 = vpop.f32.mrb[16].mxu1 }
 0x176   :  { %v1825_v43 = vpop.f32.mrb[0].mxu0  ;;  %v2524_v49 = vadd.f32 %v1526_v20, %v3951_v33  ;;  %v1528_v51 = vpop.f32.mrb[17].mxu1 }
 0x177   :  { %v3961_v23 = vadd.f32 %v2492_v37, %v1825_v43  ;;  %v1827_v55 = vpop.f32.mrb[1].mxu0  ;;  %v2528_v61 = vadd.f32 %v1528_v51, %v3955_v18  ;;  %v1530_v4 = vpop.f32.mrb[18].mxu1  ;;  %v2504_v37 = vadd.f32 %v1500_v1, %v3951_v33  ;;  %v2506_v43 = vadd.f32 %v1502_v13, %v3955_v18 }
 0x178   :  { %v3965_v63 = vadd.f32 %v2494_v39, %v1827_v55  ;;  %v1829_v6 = vpop.f32.mrb[2].mxu0  ;;  %v2532_v16 = vadd.f32 %v1530_v4, %v3951_v33  ;;  %v1532_v24 = vpop.f32.mrb[19].mxu1  ;;  %v3971_v28 = vadd.f32 %v2524_v49, %v1639_v36 }
 0x179   :  { %v1904_v12 = vsub.f32 0.0, %v3961_v23  ;;  %v3969_v22 = vadd.f32 %v2496_v45, %v1829_v6  ;;  %v1831_v26 = vpop.f32.mrb[3].mxu0  ;;  %v2536_v30 = vadd.f32 %v1532_v24, %v3955_v18  ;;  %v3977_v34 = vadd.f32 %v2528_v61, %v1641_v38 }
 0x17a   :  { %v1905_v29 = vsub.f32 0.0, %v3965_v63  ;;  %v3975_v32 = vadd.f32 %v2498_v57, %v1831_v26  ;;  %v3981_v3 = vadd.f32 %v2532_v16, %v3906_v40 }
 0x17b   :  { %v1936_v35 = vmul.f32 1.442695, %v1904_v12  ;;  %v1906_v60 = vsub.f32 0.0, %v3969_v22  ;;  %v3985_v36 = vadd.f32 %v2536_v30, %v3908_v41  ;;  %v2508_v30 = vadd.f32 %v3934_v2, %v3951_v33 }
 0x17c   :  { %v1938_v62 = vmul.f32 1.442695, %v1905_v29  ;;  %v1907_v7 = vsub.f32 0.0, %v3975_v32  ;;  %v2516_v2 = vadd.f32 %v3945_v11, %v3951_v33 }
 0x17d   :  { %2973 = vpow2.f32 %v1936_v35  ;;  %v1940_v21 = vmul.f32 1.442695, %v1906_v60  ;;  %v1536_v25 = vpop.f32.mrb[20].mxu1 }
 0x17e   :  { %2975 = vpow2.f32 %v1938_v62  ;;  %v1942_v38 = vmul.f32 1.442695, %v1907_v7  ;;  %v1835_v27 = vpop.f32.mrb[4].mxu0  ;;  %v2540_v40 = vadd.f32 %v1536_v25, %v3951_v33  ;;  %v1538_v20 = vpop.f32.mrb[21].mxu1  ;;  %v2510_v62 = vadd.f32 %v3936_v5, %v3955_v18 }
 0x17f   :  { %2977 = vpow2.f32 %v1940_v21  ;;  %v3991_v39 = vadd.f32 %v2500_v15, %v1835_v27  ;;  %v1837_v41 = vpop.f32.mrb[5].mxu0  ;;  %v2544_v9 = vadd.f32 %v1538_v20, %v3955_v18  ;;  %v1540_v0 = vpop.f32.mrb[22].mxu1 }
 0x180   :  { %2979 = vpow2.f32 %v1942_v38  ;;  %v3995_v45 = vadd.f32 %v2502_v10, %v1837_v41  ;;  %v1839_v49 = vpop.f32.mrb[6].mxu0  ;;  %v2548_v1 = vadd.f32 %v1540_v0, %v3951_v33  ;;  %v1542_v57 = vpop.f32.mrb[23].mxu1  ;;  %v4002_v4 = vadd.f32 %v2540_v40, %v3910_v42 }
 0x181   :  { %v1908_v51 = vsub.f32 0.0, %v3991_v39  ;;  %v3999_v55 = vadd.f32 %v2504_v37, %v1839_v49  ;;  %v1841_v61 = vpop.f32.mrb[7].mxu0  ;;  %v2552_v6 = vadd.f32 %v1542_v57, %v3955_v18  ;;  %v4009_v16 = vadd.f32 %v2544_v9, %v3912_v44 }
 0x182   :  { %v1909_v13 = vsub.f32 0.0, %v3995_v45  ;;  %v4006_v12 = vadd.f32 %v2506_v43, %v1841_v61  ;;  %v4013_v29 = vadd.f32 %v2548_v1, %v3914_v46  ;;  %v2512_v44 = vadd.f32 %v3938_v19, %v3951_v33 }
 0x183   :  { %v1944_v24 = vmul.f32 1.442695, %v1908_v51  ;;  %v1910_v26 = vsub.f32 0.0, %v3999_v55  ;;  %v4019_v60 = vadd.f32 %v2552_v6, %v3916_v47  ;;  %v2514_v46 = vadd.f32 %v3940_v8, %v3955_v18 }
 0x184   :  { %v1946_v42 = vmul.f32 1.442695, %v1909_v13  ;;  %v1911_v35 = vsub.f32 0.0, %v4006_v12  ;;  %v2518_v38 = vadd.f32 %v3947_v14, %v3955_v18 }
 0x185   :  { %2981 = vpow2.f32 %v1944_v24  ;;  %v1948_v7 = vmul.f32 1.442695, %v1910_v26  ;;  %v1546_v21 = vpop.f32.mrb[24].mxu1 }
 0x186   :  { %2983 = vpow2.f32 %v1946_v42  ;;  %v1950_v15 = vmul.f32 1.442695, %v1911_v35  ;;  %v1845_v10 = vpop.f32.mrb[8].mxu0  ;;  %v2556_v5 = vadd.f32 %v1546_v21, %v3951_v33  ;;  %v1548_v25 = vpop.f32.mrb[25].mxu1  ;;  %v2520_v21 = vadd.f32 %v3949_v31, %v3951_v33 }
 0x187   :  { %v2974_v47 = vpop.eup %2973  ;;  %2985 = vpow2.f32 %v1948_v7  ;;  %v4032_v19 = vadd.f32 %v2508_v30, %v1845_v10  ;;  %v1847_v27 = vpop.f32.mrb[9].mxu0  ;;  %v2560_v11 = vadd.f32 %v1548_v25, %v3955_v18 }
 0x188   :  { %v2976_v37 = vpop.eup %2975  ;;  %v2000_v8 = vadd.f32 1.0, %v2974_v47  ;;  %2987 = vpow2.f32 %v1950_v15  ;;  %v4035_v40 = vadd.f32 %v2510_v62, %v1847_v27  ;;  %v1550_v20 = vpop.f32.mrb[26].mxu1  ;;  %v4047_v62 = vadd.f32 %v2556_v5, %v3918_v48 }
 0x189   :  { %v1849_v41 = vpop.f32.mrb[10].mxu0  ;;  %v2978_v43 = vpop.eup %2977  ;;  %v2001_v9 = vadd.f32 1.0, %v2976_v37  ;;  %v1912_v14 = vsub.f32 0.0, %v4032_v19  ;;  %v2564_v0 = vadd.f32 %v1550_v20, %v3951_v33  ;;  %v4050_v7 = vadd.f32 %v2560_v11, %v3920_v50 }
 0x18a   :  { %v4039_v49 = vadd.f32 %v2512_v44, %v1849_v41  ;;  %v1552_v51 = vpop.f32.mrb[27].mxu1  ;;  %v1851_v1 = vpop.f32.mrb[11].mxu0  ;;  %2989 = vrcp.f32 %v2000_v8  ;;  %v2002_v61 = vadd.f32 1.0, %v2978_v43  ;;  %v1913_v13 = vsub.f32 0.0, %v4035_v40 }
 0x18b   :  { %v2980_v57 = vpop.eup %2979  ;;  %v2568_v6 = vadd.f32 %v1552_v51, %v3955_v18  ;;  %2991 = vrcp.f32 %v2001_v9  ;;  %v1952_v26 = vmul.f32 1.442695, %v1912_v14  ;;  %v4044_v35 = vadd.f32 %v2514_v46, %v1851_v1 }
 0x18c   :  { %v2003_v24 = vadd.f32 1.0, %v2980_v57  ;;  %v1914_v30 = vsub.f32 0.0, %v4039_v49  ;;  %2993 = vrcp.f32 %v2002_v61  ;;  %v1954_v42 = vmul.f32 1.442695, %v1913_v13 }
 0x18d   :  { %v4053_v15 = vadd.f32 %v2564_v0, %v3922_v52  ;;  %v1915_v10 = vsub.f32 0.0, %v4044_v35  ;;  %v1556_v47 = vpop.f32.mrb[28].mxu1  ;;  %v4059_v25 = vadd.f32 %v2568_v6, %v3924_v53  ;;  %v2522_v5 = vadd.f32 %v3953_v17, %v3955_v18 }
 0x18e   :  { %2995 = vrcp.f32 %v2003_v24  ;;  %v1956_v44 = vmul.f32 1.442695, %v1914_v30  ;;  %v1855_v46 = vpop.f32.mrb[12].mxu0  ;;  %v2572_v50 = vadd.f32 %v1556_v47, %v3951_v33  ;;  %v1558_v27 = vpop.f32.mrb[29].mxu1 }
 0x18f   :  { %2997 = vpow2.f32 %v1952_v26  ;;  %v2982_v48 = vpop.eup %2981  ;;  %v4064_v52 = vadd.f32 %v2516_v2, %v1855_v46  ;;  %v1857_v37 = vpop.f32.mrb[13].mxu0  ;;  %v1958_v11 = vmul.f32 1.442695, %v1915_v10  ;;  %v2576_v20 = vadd.f32 %v1558_v27, %v3955_v18 }
 0x190   :  { %2999 = vpow2.f32 %v1954_v42  ;;  %v2984_v31 = vpop.eup %2983  ;;  %v2004_v8 = vadd.f32 1.0, %v2982_v48  ;;  %v1560_v41 = vpop.f32.mrb[30].mxu1  ;;  %v4068_v17 = vadd.f32 %v2518_v38, %v1857_v37 }
 0x191   :  { %3001 = vpow2.f32 %v1956_v44  ;;  %v1859_v53 = vpop.f32.mrb[14].mxu0  ;;  %v2986_v43 = vpop.eup %2985  ;;  %v2005_v9 = vadd.f32 1.0, %v2984_v31  ;;  %v1916_v14 = vsub.f32 0.0, %v4064_v52  ;;  %v2580_v0 = vadd.f32 %v1560_v41, %v3951_v33 }
 0x192   :  { %v1562_v2 = vpop.f32.mrb[31].mxu1  ;;  %v1861_v51 = vpop.f32.mrb[15].mxu0  ;;  %3003 = vrcp.f32 %v2004_v8  ;;  %v2006_v57 = vadd.f32 1.0, %v2986_v43  ;;  %v4071_v61 = vadd.f32 %v2520_v21, %v1859_v53  ;;  %v1917_v26 = vsub.f32 0.0, %v4068_v17 }
 0x193   :  { %v2988_v1 = vpop.eup %2987  ;;  %v2584_v13 = vadd.f32 %v1562_v2, %v3955_v18  ;;  %3005 = vrcp.f32 %v2005_v9  ;;  %v1960_v24 = vmul.f32 1.442695, %v1916_v14  ;;  %v4076_v42 = vadd.f32 %v2522_v5, %v1861_v51 }
 0x194   :  { %v2007_v6 = vadd.f32 1.0, %v2988_v1  ;;  %v2990_v30 = vpop.eup %2989  ;;  %3007 = vrcp.f32 %v2006_v57  ;;  %v1918_v38 = vsub.f32 0.0, %v4071_v61  ;;  %v4079_v33 = vadd.f32 %v2572_v50, %v3926_v54 }
 0x195   :  { %v2992_v44 = vpop.eup %2991  ;;  %v2064_v21 = vmul.f32 %v2990_v30, %v3961_v23  ;;  %v1962_v10 = vmul.f32 1.442695, %v1917_v26  ;;  %v4083_v18 = vadd.f32 %v2576_v20, %v3928_v56  ;;  %v1919_v27 = vsub.f32 0.0, %v4076_v42  ;;  %v1752_v5 = vpop.f32.mrb[32].mxu1 }
 0x196   :  { %3009 = vrcp.f32 %v2007_v6  ;;  %v2994_v47 = vpop.eup %2993  ;;  %v2065_v46 = vmul.f32 %v2992_v44, %v3965_v63  ;;  %v1964_v48 = vmul.f32 1.442695, %v1918_v38  ;;  %v1865_v37 = vpop.f32.mrb[32].mxu0  ;;  %v2526_v23 = vadd.f32 %v3971_v28, %v1752_v5 }
 0x197   :  { %3011 = vpow2.f32 %v1958_v11  ;;  %v2066_v54 = vmul.f32 %v2994_v47, %v3969_v22  ;;  %v1754_v50 = vpop.f32.mrb[33].mxu1  ;;  %v1867_v8 = vpop.f32.mrb[33].mxu0  ;;  %v4090_v56 = vadd.f32 %v2580_v0, %v3930_v58  ;;  %v1966_v11 = vmul.f32 1.442695, %v1919_v27 }
 0x198   :  { %v2996_v31 = vpop.eup %2995  ;;  %3013 = vpow2.f32 %v1960_v24  ;;  %v2444_v41 = vpack.c.bf16 %v2065_v46, %v2064_v21  ;;  %v1756_v53 = vpop.f32.mrb[34].mxu1  ;;  %v4093_v22 = vadd.f32 %v2526_v23, %v1865_v37  ;;  %v2530_v28 = vadd.f32 %v3977_v34, %v1754_v50 }
 0x199   :  { %v2998_v20 = vpop.eup %2997  ;;  %v2067_v63 = vmul.f32 %v2996_v31, %v3975_v32  ;;  %3015 = vpow2.f32 %v1962_v10  ;;  %v1869_v43 = vpop.f32.mrb[34].mxu0  ;;  %v2534_v0 = vadd.f32 %v3981_v3, %v1756_v53  ;;  %v4110_v38 = vadd.f32 %v2584_v13, %v3932_v59 }
 0x19a   :  { %v3000_v9 = vpop.eup %2999  ;;  %v2008_v14 = vadd.f32 1.0, %v2998_v20  ;;  %3017 = vpow2.f32 %v1964_v48  ;;  %v1758_v2 = vpop.f32.mrb[35].mxu1  ;;  %2192 = vst [vmem:[%s4238_s3] sm:$0xff] %v2444_v41  ;;  %v1920_v6 = vsub.f32 0.0, %v4093_v22  ;;  %v4101_v24 = vadd.f32 %v2530_v28, %v1867_v8 }
 0x19b   :  { %v1871_v51 = vpop.f32.mrb[35].mxu0  ;;  %v3002_v1 = vpop.eup %3001  ;;  %v2445_v58 = vpack.c.bf16 %v2067_v63, %v2066_v54  ;;  %v2009_v32 = vadd.f32 1.0, %v3000_v9  ;;  %3019 = vpow2.f32 %v1966_v11  ;;  %v4106_v34 = vadd.f32 %v2534_v0, %v1869_v43 }
 0x19c   :  { %3021 = vrcp.f32 %v2008_v14  ;;  %v2010_v57 = vadd.f32 1.0, %v3002_v1  ;;  %v3004_v26 = vpop.eup %3003  ;;  %v2538_v30 = vadd.f32 %v3985_v36, %v1758_v2  ;;  %v1968_v21 = vmul.f32 1.442695, %v1920_v6 }
 0x19d   :  { %2193 = vst [vmem:[%s4238_s3 + $0x8] sm:$0xff] %v2445_v58  ;;  %3023 = vrcp.f32 %v2009_v32  ;;  %v3006_v3 = vpop.eup %3005  ;;  %v2068_v44 = vmul.f32 %v3004_v26, %v3991_v39  ;;  %v1921_v10 = vsub.f32 0.0, %v4101_v24  ;;  %v1922_v48 = vsub.f32 0.0, %v4106_v34  ;;  %v1762_v5 = vpop.f32.mrb[36].mxu1 }
 0x19e   :  { %v3008_v47 = vpop.eup %3007  ;;  %v2069_v46 = vmul.f32 %v3006_v3, %v3995_v45  ;;  %3025 = vrcp.f32 %v2010_v57  ;;  %v4116_v27 = vadd.f32 %v2538_v30, %v1871_v51  ;;  %v1875_v37 = vpop.f32.mrb[36].mxu0  ;;  %v2542_v39 = vadd.f32 %v4002_v4, %v1762_v5 }
 0x19f   :  { %v2070_v59 = vmul.f32 %v3008_v47, %v3999_v55  ;;  %3027 = vpow2.f32 %v1968_v21  ;;  %v1970_v13 = vmul.f32 1.442695, %v1921_v10  ;;  %v1764_v31 = vpop.f32.mrb[37].mxu1  ;;  %v1877_v54 = vpop.f32.mrb[37].mxu0  ;;  %v1972_v8 = vmul.f32 1.442695, %v1922_v48 }
 0x1a0   :  { %v3010_v36 = vpop.eup %3009  ;;  %v2446_v50 = vpack.c.bf16 %v2069_v46, %v2068_v44  ;;  %v1923_v20 = vsub.f32 0.0, %v4116_v27  ;;  %v1766_v41 = vpop.f32.mrb[38].mxu1  ;;  %v4122_v43 = vadd.f32 %v2542_v39, %v1875_v37  ;;  %v2546_v55 = vadd.f32 %v4009_v16, %v1764_v31 }
 0x1a1   :  { %v3012_v23 = vpop.eup %3011  ;;  %v2071_v45 = vmul.f32 %v3010_v36, %v4006_v12  ;;  %v1879_v63 = vpop.f32.mrb[38].mxu0  ;;  %3029 = vpow2.f32 %v1970_v13  ;;  %v2550_v57 = vadd.f32 %v4013_v29, %v1766_v41 }
 0x1a2   :  { %v3014_v11 = vpop.eup %3013  ;;  %v2011_v53 = vadd.f32 1.0, %v3012_v23  ;;  %v1768_v9 = vpop.f32.mrb[39].mxu1  ;;  %2194 = vst [vmem:[%s4238_s3 + $0x10] sm:$0xff] %v2446_v50  ;;  %3031 = vpow2.f32 %v1972_v8  ;;  %v1974_v2 = vmul.f32 1.442695, %v1923_v20  ;;  %v1924_v58 = vsub.f32 0.0, %v4122_v43 }
 0x1a3   :  { %v1881_v4 = vpop.f32.mrb[39].mxu0  ;;  %v3016_v14 = vpop.eup %3015  ;;  %v2447_v12 = vpack.c.bf16 %v2071_v45, %v2070_v59  ;;  %v2012_v28 = vadd.f32 1.0, %v3014_v11  ;;  %v4129_v32 = vadd.f32 %v2546_v55, %v1877_v54  ;;  %v2554_v6 = vadd.f32 %v4019_v60, %v1768_v9 }
 0x1a4   :  { %v3018_v51 = vpop.eup %3017  ;;  %3033 = vrcp.f32 %v2011_v53  ;;  %v2013_v1 = vadd.f32 1.0, %v3016_v14  ;;  %v1976_v3 = vmul.f32 1.442695, %v1924_v58  ;;  %v4138_v47 = vadd.f32 %v2550_v57, %v1879_v63 }
 0x1a5   :  { %v3020_v0 = vpop.eup %3019  ;;  %2195 = vst [vmem:[%s4238_s3 + $0x18] sm:$0xff] %v2447_v12  ;;  %3035 = vrcp.f32 %v2012_v28  ;;  %v2014_v16 = vadd.f32 1.0, %v3018_v51  ;;  %v1925_v44 = vsub.f32 0.0, %v4129_v32  ;;  %v4140_v46 = vadd.f32 %v2554_v6, %v1881_v4  ;;  %v1772_v48 = vpop.f32.mrb[40].mxu1 }
 0x1a6   :  { %v3022_v26 = vpop.eup %3021  ;;  %3037 = vrcp.f32 %v2013_v1  ;;  %v2015_v30 = vadd.f32 1.0, %v3020_v0  ;;  %v1885_v5 = vpop.f32.mrb[40].mxu0  ;;  %v2558_v37 = vadd.f32 %v4047_v62, %v1772_v48  ;;  %v1926_v39 = vsub.f32 0.0, %v4138_v47 }
 0x1a7   :  { %v3024_v21 = vpop.eup %3023  ;;  %v2072_v10 = vmul.f32 %v3022_v26, %v4032_v19  ;;  %3039 = vrcp.f32 %v2014_v16  ;;  %v1978_v60 = vmul.f32 1.442695, %v1925_v44  ;;  %v1774_v36 = vpop.f32.mrb[41].mxu1  ;;  %v1927_v19 = vsub.f32 0.0, %v4140_v46 }
 0x1a8   :  { %v2073_v29 = vmul.f32 %v3024_v21, %v4035_v40  ;;  %3041 = vrcp.f32 %v2015_v30  ;;  %v1887_v59 = vpop.f32.mrb[41].mxu0  ;;  %v3026_v13 = vpop.eup %3025  ;;  %v4146_v45 = vadd.f32 %v2558_v37, %v1885_v5  ;;  %v2562_v40 = vadd.f32 %v4050_v7, %v1774_v36 }
 0x1a9   :  { %3043 = vpow2.f32 %v1974_v2  ;;  %v1776_v31 = vpop.f32.mrb[42].mxu1  ;;  %v1889_v54 = vpop.f32.mrb[42].mxu0  ;;  %v1980_v41 = vmul.f32 1.442695, %v1926_v39  ;;  %v2074_v7 = vmul.f32 %v3026_v13, %v4039_v49  ;;  %v1982_v12 = vmul.f32 1.442695, %v1927_v19 }
 0x1aa   :  { %v3028_v23 = vpop.eup %3027  ;;  %v2448_v50 = vpack.c.bf16 %v2073_v29, %v2072_v10  ;;  %3045 = vpow2.f32 %v1976_v3  ;;  %v1778_v8 = vpop.f32.mrb[43].mxu1  ;;  %v1928_v11 = vsub.f32 0.0, %v4146_v45  ;;  %v4153_v53 = vadd.f32 %v2562_v40, %v1887_v59 }
 0x1ab   :  { %v1891_v20 = vpop.f32.mrb[43].mxu0  ;;  %v2016_v62 = vadd.f32 1.0, %v3028_v23  ;;  %3047 = vpow2.f32 %v1978_v60  ;;  %v3030_v63 = vpop.eup %3029  ;;  %v2566_v55 = vadd.f32 %v4053_v15, %v1776_v31  ;;  %v2570_v9 = vadd.f32 %v4059_v25, %v1778_v8 }
 0x1ac   :  { %2196 = vst [vmem:[%s4238_s3 + $0x20] sm:$0xff] %v2448_v50  ;;  %v3032_v4 = vpop.eup %3031  ;;  %v2017_v14 = vadd.f32 1.0, %v3030_v63  ;;  %v1984_v51 = vmul.f32 1.442695, %v1928_v11  ;;  %v1929_v1 = vsub.f32 0.0, %v4153_v53 }
 0x1ad   :  { %3049 = vrcp.f32 %v2016_v62  ;;  %v2018_v2 = vadd.f32 1.0, %v3032_v4  ;;  %v4160_v16 = vadd.f32 %v2566_v55, %v1889_v54  ;;  %v4162_v15 = vadd.f32 %v2570_v9, %v1891_v20  ;;  %v1782_v25 = vpop.f32.mrb[44].mxu1 }
 0x1ae   :  { %v3034_v28 = vpop.eup %3033  ;;  %3051 = vpow2.f32 %v1980_v41  ;;  %v1895_v57 = vpop.f32.mrb[44].mxu0  ;;  %v1986_v26 = vmul.f32 1.442695, %v1929_v1  ;;  %v2574_v30 = vadd.f32 %v4079_v33, %v1782_v25 }
 0x1af   :  { %v3036_v58 = vpop.eup %3035  ;;  %v2075_v0 = vmul.f32 %v3034_v28, %v4044_v35  ;;  %3053 = vrcp.f32 %v2017_v14  ;;  %v1784_v3 = vpop.f32.mrb[45].mxu1  ;;  %v1930_v48 = vsub.f32 0.0, %v4160_v16 }
 0x1b0   :  { %v3038_v49 = vpop.eup %3037  ;;  %v2076_v6 = vmul.f32 %v3036_v58, %v4064_v52  ;;  %3055 = vrcp.f32 %v2018_v2  ;;  %v1897_v44 = vpop.f32.mrb[45].mxu0  ;;  %v1931_v52 = vsub.f32 0.0, %v4162_v15  ;;  %v4170_v36 = vadd.f32 %v2574_v30, %v1895_v57 }
 0x1b1   :  { %v3040_v21 = vpop.eup %3039  ;;  %v2449_v10 = vpack.c.bf16 %v2075_v0, %v2074_v7  ;;  %v2077_v35 = vmul.f32 %v3038_v49, %v4068_v17  ;;  %3057 = vpow2.f32 %v1982_v12  ;;  %v1786_v5 = vpop.f32.mrb[46].mxu1  ;;  %v1988_v19 = vmul.f32 1.442695, %v1930_v48 }
 0x1b2   :  { %v1899_v29 = vpop.f32.mrb[46].mxu0  ;;  %v3042_v60 = vpop.eup %3041  ;;  %v2078_v37 = vmul.f32 %v3040_v21, %v4071_v61  ;;  %3059 = vpow2.f32 %v1984_v51  ;;  %v1990_v61 = vmul.f32 1.442695, %v1931_v52  ;;  %v1932_v23 = vsub.f32 0.0, %v4170_v36 }
 0x1b3   :  { %v1788_v33 = vpop.f32.mrb[47].mxu1  ;;  %v1901_v59 = vpop.f32.mrb[47].mxu0  ;;  %2197 = vst [vmem:[%s4238_s3 + $0x28] sm:$0xff] %v2449_v10  ;;  %v2450_v17 = vpack.c.bf16 %v2077_v35, %v2076_v6  ;;  %v2079_v39 = vmul.f32 %v3042_v60, %v4076_v42  ;;  %3061 = vpow2.f32 %v1986_v26  ;;  %v2578_v50 = vadd.f32 %v4083_v18, %v1784_v3 }
 0x1b4   :  { %v3044_v13 = vpop.eup %3043  ;;  %3063 = vpow2.f32 %v1988_v19  ;;  %v2582_v62 = vadd.f32 %v4090_v56, %v1786_v5  ;;  %v1992_v41 = vmul.f32 1.442695, %v1932_v23  ;;  %v2586_v55 = vadd.f32 %v4110_v38, %v1788_v33 }
 0x1b5   :  { %v3046_v31 = vpop.eup %3045  ;;  %v2019_v54 = vadd.f32 1.0, %v3044_v13  ;;  %2198 = vst [vmem:[%s4238_s3 + $0x30] sm:$0xff] %v2450_v17  ;;  %v2451_v8 = vpack.c.bf16 %v2079_v39, %v2078_v37  ;;  %v4182_v63 = vadd.f32 %v2578_v50, %v1897_v44 }
 0x1b6   :  { %v3048_v40 = vpop.eup %3047  ;;  %v2020_v20 = vadd.f32 1.0, %v3046_v31  ;;  %v4187_v18 = vadd.f32 %v2582_v62, %v1899_v29  ;;  %v4193_v28 = vadd.f32 %v2586_v55, %v1901_v59 }
 0x1b7   :  { %3065 = vrcp.f32 %v2019_v54  ;;  %v2021_v42 = vadd.f32 1.0, %v3048_v40  ;;  %v3050_v11 = vpop.eup %3049  ;;  %2199 = vst [vmem:[%s4238_s3 + $0x38] sm:$0xff] %v2451_v8  ;;  %v1933_v56 = vsub.f32 0.0, %v4182_v63 }
 0x1b8   :  { %3067 = vrcp.f32 %v2020_v20  ;;  %v3052_v9 = vpop.eup %3051  ;;  %v2080_v4 = vmul.f32 %v3050_v11, %v4093_v22  ;;  %v1934_v12 = vsub.f32 0.0, %v4187_v18  ;;  %v1935_v22 = vsub.f32 0.0, %v4193_v28 }
 0x1b9   :  { %3069 = vrcp.f32 %v2021_v42  ;;  %v3054_v7 = vpop.eup %3053  ;;  %v2022_v14 = vadd.f32 1.0, %v3052_v9  ;;  %v1994_v1 = vmul.f32 1.442695, %v1933_v56 }
 0x1ba   :  { %3071 = vpow2.f32 %v1990_v61  ;;  %v3056_v2 = vpop.eup %3055  ;;  %v2081_v51 = vmul.f32 %v3054_v7, %v4101_v24  ;;  %v1996_v38 = vmul.f32 1.442695, %v1934_v12  ;;  %v1998_v26 = vmul.f32 1.442695, %v1935_v22 }
 0x1bb   :  { %3073 = vpow2.f32 %v1992_v41  ;;  %v3058_v58 = vpop.eup %3057  ;;  %v2082_v3 = vmul.f32 %v3056_v2, %v4106_v34 }
 0x1bc   :  { %3075 = vrcp.f32 %v2022_v14  ;;  %v3060_v0 = vpop.eup %3059  ;;  %v2452_v25 = vpack.c.bf16 %v2081_v51, %v2080_v4  ;;  %v2023_v57 = vadd.f32 1.0, %v3058_v58 }
 0x1bd   :  { %3077 = vpow2.f32 %v1994_v1  ;;  %v3062_v49 = vpop.eup %3061  ;;  %v2024_v6 = vadd.f32 1.0, %v3060_v0 }
 0x1be   :  { %3079 = vpow2.f32 %v1996_v38  ;;  %2200 = vst [vmem:[%s4238_s3 + $0x40] sm:$0xff] %v2452_v25  ;;  %v2025_v24 = vadd.f32 1.0, %v3062_v49  ;;  %v3064_v30 = vpop.eup %3063 }
 0x1bf   :  { %3081 = vrcp.f32 %v2023_v57  ;;  %v2026_v21 = vadd.f32 1.0, %v3064_v30 }
 0x1c0   :  { %3083 = vrcp.f32 %v2024_v6 }
 0x1c1   :  { %v3066_v44 = vpop.eup %3065  ;;  %3085 = vrcp.f32 %v2025_v24 }
 0x1c2   :  { %v3068_v10 = vpop.eup %3067  ;;  %v2083_v35 = vmul.f32 %v3066_v44, %v4116_v27  ;;  %3087 = vpow2.f32 %v1998_v26 }
 0x1c3   :  { %v3070_v48 = vpop.eup %3069  ;;  %v2084_v5 = vmul.f32 %v3068_v10, %v4122_v43  ;;  %3089 = vrcp.f32 %v2026_v21 }
 0x1c4   :  { %v3072_v29 = vpop.eup %3071  ;;  %v2453_v60 = vpack.c.bf16 %v2083_v35, %v2082_v3  ;;  %v2085_v37 = vmul.f32 %v3070_v48, %v4129_v32 }
 0x1c5   :  { %v3074_v52 = vpop.eup %3073  ;;  %v2027_v33 = vadd.f32 1.0, %v3072_v29 }
 0x1c6   :  { %v3076_v59 = vpop.eup %3075  ;;  %2201 = vst [vmem:[%s4238_s3 + $0x48] sm:$0xff] %v2453_v60  ;;  %v2454_v34 = vpack.c.bf16 %v2085_v37, %v2084_v5  ;;  %v2028_v13 = vadd.f32 1.0, %v3074_v52 }
 0x1c7   :  { %v3078_v17 = vpop.eup %3077  ;;  %3091 = vrcp.f32 %v2027_v33  ;;  %v2086_v43 = vmul.f32 %v3076_v59, %v4138_v47 }
 0x1c8   :  { %v3080_v27 = vpop.eup %3079  ;;  %2202 = vst [vmem:[%s4238_s3 + $0x50] sm:$0xff] %v2454_v34  ;;  %3093 = vrcp.f32 %v2028_v13  ;;  %v2029_v32 = vadd.f32 1.0, %v3078_v17 }
 0x1c9   :  { %v3082_v39 = vpop.eup %3081  ;;  %v2030_v19 = vadd.f32 1.0, %v3080_v27 }
 0x1ca   :  { %v3084_v31 = vpop.eup %3083  ;;  %v2087_v54 = vmul.f32 %v3082_v39, %v4140_v46  ;;  %3095 = vrcp.f32 %v2029_v32 }
 0x1cb   :  { %v3086_v61 = vpop.eup %3085  ;;  %v2088_v23 = vmul.f32 %v3084_v31, %v4146_v45  ;;  %3097 = vrcp.f32 %v2030_v19 }
 0x1cc   :  { %v3088_v50 = vpop.eup %3087  ;;  %v2455_v40 = vpack.c.bf16 %v2087_v54, %v2086_v43  ;;  %v2089_v8 = vmul.f32 %v3086_v61, %v4153_v53 }
 0x1cd   :  { %v3090_v20 = vpop.eup %3089  ;;  %v2031_v62 = vadd.f32 1.0, %v3088_v50 }
 0x1ce   :  { %2203 = vst [vmem:[%s4238_s3 + $0x58] sm:$0xff] %v2455_v40  ;;  %v2456_v47 = vpack.c.bf16 %v2089_v8, %v2088_v23  ;;  %v2090_v46 = vmul.f32 %v3090_v20, %v4160_v16 }
 0x1cf   :  { %3099 = vrcp.f32 %v2031_v62 }
 0x1d0   :  { %2204 = vst [vmem:[%s4238_s3 + $0x60] sm:$0xff] %v2456_v47 }
 0x1d1   :  { %v3092_v45 = vpop.eup %3091 }
 0x1d2   :  { %v3094_v42 = vpop.eup %3093  ;;  %v2091_v41 = vmul.f32 %v3092_v45, %v4162_v15 }
 0x1d3   :  { %v2092_v53 = vmul.f32 %v3094_v42, %v4170_v36 }
 0x1d4   :  { %v3096_v11 = vpop.eup %3095  ;;  %v2457_v55 = vpack.c.bf16 %v2091_v41, %v2090_v46 }
 0x1d5   :  { %v3098_v9 = vpop.eup %3097  ;;  %v2093_v4 = vmul.f32 %v3096_v11, %v4182_v63 }
 0x1d6   :  { %2205 = vst [vmem:[%s4238_s3 + $0x68] sm:$0xff] %v2457_v55  ;;  %v2094_v7 = vmul.f32 %v3098_v9, %v4187_v18 }
 0x1d7   :  { %v2458_v56 = vpack.c.bf16 %v2093_v4, %v2092_v53 }
 0x1d9   :  { %v3100_v14 = vpop.eup %3099  ;;  %2206 = vst [vmem:[%s4238_s3 + $0x70] sm:$0xff] %v2458_v56 }
 0x1da   :  { %v2095_v16 = vmul.f32 %v3100_v14, %v4193_v28 }
 0x1dc   :  { %v2459_v15 = vpack.c.bf16 %v2095_v16, %v2094_v7 }
 0x1de   :  { %2207 = vst [vmem:[%s4238_s3 + $0x78] sm:$0xff] %v2459_v15 }

// kernel: _lambda_.35
= control target key start
LH: loop header
LB: loop body
LE: loop exit
PB: predicated region body
PF: predicated region fallthrough
CT: control target
= control target key end

     0   :  { %s340_s1 = inlined_call_operand.vmem [shape: bf16[256,128], index: 1, kind: input, shape index: {}]   ;;  %s341_s0 = inlined_call_operand.vmem [shape: bf16[8,256], index: 0, kind: input, shape index: {}]   ;;  %s342_s2 = inlined_call_operand.vmem [shape: f32[1,128], index: 2, kind: input, shape index: {}]   ;;  %s343_s3 = inlined_call_operand.vmem [shape: bf16[8,128], index: 3, kind: output, shape index: {}]  }
   0x1   :  { %v245_v0 = vld [vmem:[%s340_s1 + $0x40] sm:$0xff]   ;;  %v247_v2 = vld [vmem:[%s340_s1 + $0x48] sm:$0xff]   ;;  %v249_v4 = vld [vmem:[%s340_s1 + $0x50] sm:$0xff]  }
   0x2   :  { %v246_v1 = vld [vmem:[%s340_s1] sm:$0xff]   ;;  %223 = vmatprep.subr.bf16.mxu0 %v245_v0  ;;  %v248_v3 = vld [vmem:[%s340_s1 + $0x8] sm:$0xff]   ;;  %v250_v5 = vld [vmem:[%s340_s1 + $0x10] sm:$0xff]  }
   0x3   :  { %224 = vmatpush3.bf16.msra.mxu0 %v246_v1  ;;  %v251_v6 = vld [vmem:[%s340_s1 + $0x58] sm:$0xff]   ;;  %v253_v8 = vld [vmem:[%s340_s1 + $0x60] sm:$0xff]   ;;  %v255_v10 = vld [vmem:[%s340_s1 + $0x68] sm:$0xff]  }
   0x4   :  { %225 = vmatprep.subr.bf16.mxu0 %v247_v2  ;;  %v252_v7 = vld [vmem:[%s340_s1 + $0x18] sm:$0xff]   ;;  %v254_v9 = vld [vmem:[%s340_s1 + $0x20] sm:$0xff]   ;;  %v256_v13 = vld [vmem:[%s340_s1 + $0x28] sm:$0xff]  }
   0x5   :  { %v15_v11 = vld [vmem:[%s341_s0] sm:$0xff]  ;;  %v257_v14 = vld [vmem:[%s340_s1 + $0x70] sm:$0xff]   ;;  %v259_v16 = vld [vmem:[%s340_s1 + $0x78] sm:$0xff]  }
   0x6   :  { %v206_v12 = vcombine.high %v15_v11, %v15_v11  ;;  %v258_v15 = vld [vmem:[%s340_s1 + $0x30] sm:$0xff]   ;;  %v260_v17 = vld [vmem:[%s340_s1 + $0x38] sm:$0xff]   ;;  %v205_v18 = vcombine.low %v15_v11, %v15_v11  ;;  %v204_v20 = vld [vmem:[%s342_s2] ss:$0 sm:$0xff] }
   0x7   :  { %226 = vmatpush3.bf16.msra.mxu0 %v248_v3 }
   0x8   :  { %227 = vmatprep.subr.bf16.mxu0 %v249_v4  ;;  %190 = vmatprep.mubr.bf16.mxu0 %v206_v12 }
   0xb   :  { %228 = vmatpush3.bf16.msra.mxu0 %v250_v5 }
   0xc   :  { %229 = vmatprep.subr.bf16.mxu0 %v251_v6 }
   0xf   :  { %230 = vmatpush3.bf16.msra.mxu0 %v252_v7 }
  0x10   :  { %231 = vmatprep.subr.bf16.mxu0 %v253_v8 }
  0x13   :  { %232 = vmatpush3.bf16.msra.mxu0 %v254_v9 }
  0x14   :  { %233 = vmatprep.subr.bf16.mxu0 %v255_v10 }
  0x17   :  { %234 = vmatpush3.bf16.msra.mxu0 %v256_v13 }
  0x18   :  { %235 = vmatprep.subr.bf16.mxu0 %v257_v14 }
  0x1b   :  { %236 = vmatpush3.bf16.msra.mxu0 %v258_v15 }
  0x1c   :  { %237 = vmatprep.subr.bf16.mxu0 %v259_v16 }
  0x1f   :  { %238 = vmatpush3.bf16.msra.mxu0 %v260_v17 }
  0x22   :  { %191 = vmatmul.mubr.bf16.vlgmr.msra.gmra.mrb[0].mxu0 %v205_v18 }
  0xf5   :  { %v239_v19 = vpop.f32.mrb[0].mxu0 }
  0xf6   :  { %v240_v21 = vpop.f32.mrb[1].mxu0 }
  0xf7   :  { %v241_v22 = vadd.f32 %v240_v21, %v239_v19  ;;  %v242_v23 = vpop.f32.mrb[2].mxu0 }
  0xf8   :  { %v243_v24 = vpop.f32.mrb[3].mxu0 }
  0xf9   :  { %v193_v25 = vadd.f32 %v241_v22, %v204_v20 }
  0xfb   :  { %v198_v26 = vpack.c.bf16 %v193_v25, %v193_v25 }
  0xfd   :  { %199 = vst [vmem:[%s343_s3] sm:$0xf] %v198_v26 }

// kernel: _lambda_.34
= control target key start
LH: loop header
LB: loop body
LE: loop exit
PB: predicated region body
PF: predicated region fallthrough
CT: control target
= control target key end

     0   :  { %s2049_s1 = inlined_call_operand.vmem [shape: bf16[1152,256], index: 1, kind: input, shape index: {}]   ;;  %s2050_s0 = inlined_call_operand.vmem [shape: bf16[8,1152], index: 0, kind: input, shape index: {}]   ;;  %s2051_s2 = inlined_call_operand.vmem [shape: f32[1,256], index: 2, kind: input, shape index: {}]   ;;  %s2052_s3 = inlined_call_operand.vmem [shape: bf16[8,256], index: 3, kind: output, shape index: {}]  }
   0x1   :  { %v1330_v0 = vld [vmem:[%s2049_s1 + $0x4] ss:$8 sps:$4 sm:$0xff]   ;;  %v1334_v2 = vld [vmem:[%s2049_s1] ss:$8 sps:$4 sm:$0xff]   ;;  %v1336_v4 = vld [vmem:[%s2049_s1 + $0x14] ss:$8 sps:$4 sm:$0xff]  }
   0x2   :  { %v1332_v1 = vld [vmem:[%s2049_s1 + $0x204] ss:$8 sps:$4 sm:$0xff]   ;;  %928 = vmatprep.subr.bf16.mxu1 %v1330_v0  ;;  %v1335_v3 = vld [vmem:[%s2049_s1 + $0x200] ss:$8 sps:$4 sm:$0xff]   ;;  %v1338_v5 = vld [vmem:[%s2049_s1 + $0x214] ss:$8 sps:$4 sm:$0xff]  }
   0x3   :  { %1010 = vmatprep.subr.bf16.mxu0 %v1332_v1  ;;  %929 = vmatpush1.bf16.msra.mxu1 %v1334_v2  ;;  %v1340_v6 = vld [vmem:[%s2049_s1 + $0x10] ss:$8 sps:$4 sm:$0xff]   ;;  %v1342_v8 = vld [vmem:[%s2049_s1 + $0x24] ss:$8 sps:$4 sm:$0xff]   ;;  %v1346_v10 = vld [vmem:[%s2049_s1 + $0x20] ss:$8 sps:$4 sm:$0xff]  }
   0x4   :  { %1011 = vmatpush1.bf16.msra.mxu0 %v1335_v3  ;;  %930 = vmatprep.subr.bf16.mxu1 %v1336_v4  ;;  %v1341_v7 = vld [vmem:[%s2049_s1 + $0x210] ss:$8 sps:$4 sm:$0xff]   ;;  %v1344_v9 = vld [vmem:[%s2049_s1 + $0x224] ss:$8 sps:$4 sm:$0xff]   ;;  %v1347_v11 = vld [vmem:[%s2049_s1 + $0x220] ss:$8 sps:$4 sm:$0xff]  }
   0x5   :  { %1012 = vmatprep.subr.bf16.mxu0 %v1338_v5  ;;  %v1348_v12 = vld [vmem:[%s2049_s1 + $0x34] ss:$8 sps:$4 sm:$0xff]   ;;  %v1352_v14 = vld [vmem:[%s2049_s1 + $0x30] ss:$8 sps:$4 sm:$0xff]   ;;  %v1354_v16 = vld [vmem:[%s2049_s1 + $0x44] ss:$8 sps:$4 sm:$0xff]  }
   0x6   :  { %v1350_v13 = vld [vmem:[%s2049_s1 + $0x234] ss:$8 sps:$4 sm:$0xff]   ;;  %v1353_v15 = vld [vmem:[%s2049_s1 + $0x230] ss:$8 sps:$4 sm:$0xff]   ;;  %v1356_v17 = vld [vmem:[%s2049_s1 + $0x244] ss:$8 sps:$4 sm:$0xff]  }
   0x7   :  { %931 = vmatpush1.bf16.msra.mxu1 %v1340_v6  ;;  %v1358_v18 = vld [vmem:[%s2049_s1 + $0x40] ss:$8 sps:$4 sm:$0xff]   ;;  %v1360_v20 = vld [vmem:[%s2049_s1 + $0x54] ss:$8 sps:$4 sm:$0xff]   ;;  %v1364_v22 = vld [vmem:[%s2049_s1 + $0x50] ss:$8 sps:$4 sm:$0xff]  }
   0x8   :  { %1013 = vmatpush1.bf16.msra.mxu0 %v1341_v7  ;;  %932 = vmatprep.subr.bf16.mxu1 %v1342_v8  ;;  %v1359_v19 = vld [vmem:[%s2049_s1 + $0x240] ss:$8 sps:$4 sm:$0xff]   ;;  %v1362_v21 = vld [vmem:[%s2049_s1 + $0x254] ss:$8 sps:$4 sm:$0xff]   ;;  %v1365_v23 = vld [vmem:[%s2049_s1 + $0x250] ss:$8 sps:$4 sm:$0xff]  }
   0x9   :  { %1014 = vmatprep.subr.bf16.mxu0 %v1344_v9  ;;  %v1366_v24 = vld [vmem:[%s2049_s1 + $0x64] ss:$8 sps:$4 sm:$0xff]   ;;  %v1370_v26 = vld [vmem:[%s2049_s1 + $0x60] ss:$8 sps:$4 sm:$0xff]   ;;  %v1372_v28 = vld [vmem:[%s2049_s1 + $0x74] ss:$8 sps:$4 sm:$0xff]  }
   0xa   :  { %v1368_v25 = vld [vmem:[%s2049_s1 + $0x264] ss:$8 sps:$4 sm:$0xff]   ;;  %v1371_v27 = vld [vmem:[%s2049_s1 + $0x260] ss:$8 sps:$4 sm:$0xff]   ;;  %v1374_v29 = vld [vmem:[%s2049_s1 + $0x274] ss:$8 sps:$4 sm:$0xff]  }
   0xb   :  { %933 = vmatpush1.bf16.msra.mxu1 %v1346_v10  ;;  %v1376_v30 = vld [vmem:[%s2049_s1 + $0x70] ss:$8 sps:$4 sm:$0xff]   ;;  %v1378_v32 = vld [vmem:[%s2049_s1 + $0x84] ss:$8 sps:$4 sm:$0xff]   ;;  %v1382_v34 = vld [vmem:[%s2049_s1 + $0x80] ss:$8 sps:$4 sm:$0xff]  }
   0xc   :  { %1015 = vmatpush1.bf16.msra.mxu0 %v1347_v11  ;;  %934 = vmatprep.subr.bf16.mxu1 %v1348_v12  ;;  %v1377_v31 = vld [vmem:[%s2049_s1 + $0x270] ss:$8 sps:$4 sm:$0xff]   ;;  %v1380_v33 = vld [vmem:[%s2049_s1 + $0x284] ss:$8 sps:$4 sm:$0xff]   ;;  %v1383_v35 = vld [vmem:[%s2049_s1 + $0x280] ss:$8 sps:$4 sm:$0xff]  }
   0xd   :  { %1016 = vmatprep.subr.bf16.mxu0 %v1350_v13  ;;  %v1384_v36 = vld [vmem:[%s2049_s1 + $0x94] ss:$8 sps:$4 sm:$0xff]   ;;  %v1388_v38 = vld [vmem:[%s2049_s1 + $0x90] ss:$8 sps:$4 sm:$0xff]   ;;  %v1390_v40 = vld [vmem:[%s2049_s1 + $0xa4] ss:$8 sps:$4 sm:$0xff]  }
   0xe   :  { %v1386_v37 = vld [vmem:[%s2049_s1 + $0x294] ss:$8 sps:$4 sm:$0xff]   ;;  %v1389_v39 = vld [vmem:[%s2049_s1 + $0x290] ss:$8 sps:$4 sm:$0xff]   ;;  %v1392_v41 = vld [vmem:[%s2049_s1 + $0x2a4] ss:$8 sps:$4 sm:$0xff]  }
   0xf   :  { %935 = vmatpush1.bf16.msra.mxu1 %v1352_v14  ;;  %v1394_v42 = vld [vmem:[%s2049_s1 + $0xa0] ss:$8 sps:$4 sm:$0xff]   ;;  %v1396_v44 = vld [vmem:[%s2049_s1 + $0xb4] ss:$8 sps:$4 sm:$0xff]   ;;  %v1400_v47 = vld [vmem:[%s2049_s1 + $0xb0] ss:$8 sps:$4 sm:$0xff]  }
  0x10   :  { %1017 = vmatpush1.bf16.msra.mxu0 %v1353_v15  ;;  %936 = vmatprep.subr.bf16.mxu1 %v1354_v16  ;;  %v1395_v43 = vld [vmem:[%s2049_s1 + $0x2a0] ss:$8 sps:$4 sm:$0xff]   ;;  %v1398_v45 = vld [vmem:[%s2049_s1 + $0x2b4] ss:$8 sps:$4 sm:$0xff]   ;;  %v1401_v49 = vld [vmem:[%s2049_s1 + $0x2b0] ss:$8 sps:$4 sm:$0xff]  }
  0x11   :  { %1018 = vmatprep.subr.bf16.mxu0 %v1356_v17  ;;  %v15_v46 = vld [vmem:[%s2050_s0] sm:$0xff]  ;;  %v17_v50 = vld [vmem:[%s2050_s0 + $0x10] sm:$0xff] }
  0x12   :  { %v1159_v48 = vcombine.high %v15_v46, %v15_v46  ;;  %v1402_v51 = vld [vmem:[%s2049_s1 + $0xc4] ss:$8 sps:$4 sm:$0xff]   ;;  %v1163_v53 = vcombine.high %v17_v50, %v17_v50  ;;  %v1406_v54 = vld [vmem:[%s2049_s1 + $0xc0] ss:$8 sps:$4 sm:$0xff]   ;;  %v1408_v56 = vld [vmem:[%s2049_s1 + $0xd4] ss:$8 sps:$4 sm:$0xff]   ;;  %v1158_v6 = vcombine.low %v15_v46, %v15_v46  ;;  %v1162_v7 = vcombine.low %v17_v50, %v17_v50 }
  0x13   :  { %937 = vmatpush1.bf16.msra.mxu1 %v1358_v18  ;;  %v1404_v52 = vld [vmem:[%s2049_s1 + $0x2c4] ss:$8 sps:$4 sm:$0xff]   ;;  %v1407_v55 = vld [vmem:[%s2049_s1 + $0x2c0] ss:$8 sps:$4 sm:$0xff]   ;;  %v1410_v57 = vld [vmem:[%s2049_s1 + $0x2d4] ss:$8 sps:$4 sm:$0xff]  }
  0x14   :  { %1019 = vmatpush1.bf16.msra.mxu0 %v1359_v19  ;;  %938 = vmatprep.subr.bf16.mxu1 %v1360_v20  ;;  %v1412_v58 = vld [vmem:[%s2049_s1 + $0xd0] ss:$8 sps:$4 sm:$0xff]   ;;  %v1414_v60 = vld [vmem:[%s2049_s1 + $0xe4] ss:$8 sps:$4 sm:$0xff]   ;;  %v1418_v62 = vld [vmem:[%s2049_s1 + $0xe0] ss:$8 sps:$4 sm:$0xff]  }
  0x15   :  { %1020 = vmatprep.subr.bf16.mxu0 %v1362_v21  ;;  %960 = vmatprep.mubr.bf16.mxu1 %v1159_v48  ;;  %v1413_v59 = vld [vmem:[%s2049_s1 + $0x2d0] ss:$8 sps:$4 sm:$0xff]   ;;  %v1416_v61 = vld [vmem:[%s2049_s1 + $0x2e4] ss:$8 sps:$4 sm:$0xff]   ;;  %v1419_v63 = vld [vmem:[%s2049_s1 + $0x2e0] ss:$8 sps:$4 sm:$0xff]  }
  0x16   :  { %1042 = vmatprep.mubr.bf16.mxu0 %v1163_v53  ;;  %v1420_v0 = vld [vmem:[%s2049_s1 + $0xf4] ss:$8 sps:$4 sm:$0xff]   ;;  %v1424_v2 = vld [vmem:[%s2049_s1 + $0xf0] ss:$8 sps:$4 sm:$0xff]   ;;  %v1430_v4 = vld [vmem:[%s2049_s1 + $0x104] ss:$8 sps:$4 sm:$0xff]  }
  0x17   :  { %939 = vmatpush1.bf16.msra.mxu1 %v1364_v22  ;;  %v1422_v1 = vld [vmem:[%s2049_s1 + $0x2f4] ss:$8 sps:$4 sm:$0xff]   ;;  %v1425_v3 = vld [vmem:[%s2049_s1 + $0x2f0] ss:$8 sps:$4 sm:$0xff]   ;;  %v1435_v5 = vld [vmem:[%s2049_s1 + $0x304] ss:$8 sps:$4 sm:$0xff]  }
  0x18   :  { %1021 = vmatpush1.bf16.msra.mxu0 %v1365_v23  ;;  %940 = vmatprep.subr.bf16.mxu1 %v1366_v24  ;;  %v1428_v8 = vld [vmem:[%s2049_s1 + $0x100] ss:$8 sps:$4 sm:$0xff]   ;;  %v1438_v10 = vld [vmem:[%s2049_s1 + $0x114] ss:$8 sps:$4 sm:$0xff]   ;;  %v1436_v12 = vld [vmem:[%s2049_s1 + $0x110] ss:$8 sps:$4 sm:$0xff]  }
  0x19   :  { %1022 = vmatprep.subr.bf16.mxu0 %v1368_v25  ;;  %v1433_v9 = vld [vmem:[%s2049_s1 + $0x300] ss:$8 sps:$4 sm:$0xff]   ;;  %v1441_v11 = vld [vmem:[%s2049_s1 + $0x314] ss:$8 sps:$4 sm:$0xff]   ;;  %v1439_v13 = vld [vmem:[%s2049_s1 + $0x310] ss:$8 sps:$4 sm:$0xff]  }
  0x1a   :  { %v1444_v14 = vld [vmem:[%s2049_s1 + $0x124] ss:$8 sps:$4 sm:$0xff]   ;;  %v1442_v16 = vld [vmem:[%s2049_s1 + $0x120] ss:$8 sps:$4 sm:$0xff]   ;;  %v1450_v18 = vld [vmem:[%s2049_s1 + $0x134] ss:$8 sps:$4 sm:$0xff]  }
  0x1b   :  { %941 = vmatpush1.bf16.msra.mxu1 %v1370_v26  ;;  %v1447_v15 = vld [vmem:[%s2049_s1 + $0x324] ss:$8 sps:$4 sm:$0xff]   ;;  %v1445_v17 = vld [vmem:[%s2049_s1 + $0x320] ss:$8 sps:$4 sm:$0xff]   ;;  %v1453_v19 = vld [vmem:[%s2049_s1 + $0x334] ss:$8 sps:$4 sm:$0xff]  }
  0x1c   :  { %1023 = vmatpush1.bf16.msra.mxu0 %v1371_v27  ;;  %942 = vmatprep.subr.bf16.mxu1 %v1372_v28  ;;  %v1448_v20 = vld [vmem:[%s2049_s1 + $0x130] ss:$8 sps:$4 sm:$0xff]   ;;  %v1456_v22 = vld [vmem:[%s2049_s1 + $0x144] ss:$8 sps:$4 sm:$0xff]   ;;  %v1454_v24 = vld [vmem:[%s2049_s1 + $0x140] ss:$8 sps:$4 sm:$0xff]  }
  0x1d   :  { %1024 = vmatprep.subr.bf16.mxu0 %v1374_v29  ;;  %v1451_v21 = vld [vmem:[%s2049_s1 + $0x330] ss:$8 sps:$4 sm:$0xff]   ;;  %v1459_v23 = vld [vmem:[%s2049_s1 + $0x344] ss:$8 sps:$4 sm:$0xff]   ;;  %v1457_v25 = vld [vmem:[%s2049_s1 + $0x340] ss:$8 sps:$4 sm:$0xff]  }
  0x1e   :  { %v1462_v26 = vld [vmem:[%s2049_s1 + $0x154] ss:$8 sps:$4 sm:$0xff]   ;;  %v1460_v28 = vld [vmem:[%s2049_s1 + $0x150] ss:$8 sps:$4 sm:$0xff]   ;;  %v1492_v50 = vld [vmem:[%s2049_s1 + $0x1a4] ss:$8 sps:$4 sm:$0xff]  }
  0x1f   :  { %943 = vmatpush1.bf16.msra.mxu1 %v1376_v30  ;;  %v1465_v27 = vld [vmem:[%s2049_s1 + $0x354] ss:$8 sps:$4 sm:$0xff]   ;;  %v1463_v29 = vld [vmem:[%s2049_s1 + $0x350] ss:$8 sps:$4 sm:$0xff]   ;;  %v1468_v30 = vld [vmem:[%s2049_s1 + $0x164] ss:$8 sps:$4 sm:$0xff]  }
  0x20   :  { %1025 = vmatpush1.bf16.msra.mxu0 %v1377_v31  ;;  %944 = vmatprep.subr.bf16.mxu1 %v1378_v32  ;;  %v1471_v31 = vld [vmem:[%s2049_s1 + $0x364] ss:$8 sps:$4 sm:$0xff]   ;;  %v1486_v46 = vld [vmem:[%s2049_s1 + $0x194] ss:$8 sps:$4 sm:$0xff]   ;;  %v1484_v48 = vld [vmem:[%s2049_s1 + $0x190] ss:$8 sps:$4 sm:$0xff]  }
  0x21   :  { %1026 = vmatprep.subr.bf16.mxu0 %v1380_v33  ;;  %v1863_v32 = vld [vmem:[%s2050_s0 + $0x8] sm:$0xff]  ;;  %v1868_v33 = vld [vmem:[%s2050_s0 + $0x18] sm:$0xff] }
  0x22   :  { %v1493_v53 = vld [vmem:[%s2049_s1 + $0x3a0] ss:$8 sps:$4 sm:$0xff]  }
  0x23   :  { %945 = vmatpush1.bf16.msra.mxu1 %v1382_v34  ;;  %v1466_v34 = vld [vmem:[%s2049_s1 + $0x160] ss:$8 sps:$4 sm:$0xff]  }
  0x24   :  { %1027 = vmatpush1.bf16.msra.mxu0 %v1383_v35  ;;  %946 = vmatprep.subr.bf16.mxu1 %v1384_v36  ;;  %v1469_v35 = vld [vmem:[%s2049_s1 + $0x360] ss:$8 sps:$4 sm:$0xff]   ;;  %v1161_v36 = vcombine.high %v1863_v32, %v1863_v32 }
  0x25   :  { %1028 = vmatprep.subr.bf16.mxu0 %v1386_v37  ;;  %v1165_v37 = vcombine.high %v1868_v33, %v1868_v33 }
  0x27   :  { %947 = vmatpush1.bf16.msra.mxu1 %v1388_v38  ;;  %v1474_v38 = vld [vmem:[%s2049_s1 + $0x174] ss:$8 sps:$4 sm:$0xff]  }
  0x28   :  { %1029 = vmatpush1.bf16.msra.mxu0 %v1389_v39  ;;  %948 = vmatprep.subr.bf16.mxu1 %v1390_v40  ;;  %v1477_v39 = vld [vmem:[%s2049_s1 + $0x374] ss:$8 sps:$4 sm:$0xff]   ;;  %v1472_v40 = vld [vmem:[%s2049_s1 + $0x170] ss:$8 sps:$4 sm:$0xff]  }
  0x29   :  { %1030 = vmatprep.subr.bf16.mxu0 %v1392_v41  ;;  %v1475_v41 = vld [vmem:[%s2049_s1 + $0x370] ss:$8 sps:$4 sm:$0xff]  }
  0x2b   :  { %949 = vmatpush1.bf16.msra.mxu1 %v1394_v42  ;;  %v1480_v42 = vld [vmem:[%s2049_s1 + $0x184] ss:$8 sps:$4 sm:$0xff]  }
  0x2c   :  { %1031 = vmatpush1.bf16.msra.mxu0 %v1395_v43  ;;  %950 = vmatprep.subr.bf16.mxu1 %v1396_v44  ;;  %v1483_v43 = vld [vmem:[%s2049_s1 + $0x384] ss:$8 sps:$4 sm:$0xff]   ;;  %v1478_v44 = vld [vmem:[%s2049_s1 + $0x180] ss:$8 sps:$4 sm:$0xff]  }
  0x2d   :  { %1032 = vmatprep.subr.bf16.mxu0 %v1398_v45  ;;  %v1481_v45 = vld [vmem:[%s2049_s1 + $0x380] ss:$8 sps:$4 sm:$0xff]  }
  0x2f   :  { %951 = vmatpush1.bf16.msra.mxu1 %v1400_v47  ;;  %v1489_v47 = vld [vmem:[%s2049_s1 + $0x394] ss:$8 sps:$4 sm:$0xff]  }
  0x30   :  { %1033 = vmatpush1.bf16.msra.mxu0 %v1401_v49  ;;  %952 = vmatprep.subr.bf16.mxu1 %v1402_v51  ;;  %v1487_v49 = vld [vmem:[%s2049_s1 + $0x390] ss:$8 sps:$4 sm:$0xff]   ;;  %v1495_v51 = vld [vmem:[%s2049_s1 + $0x3a4] ss:$8 sps:$4 sm:$0xff]  }
  0x31   :  { %1034 = vmatprep.subr.bf16.mxu0 %v1404_v52  ;;  %v1490_v52 = vld [vmem:[%s2049_s1 + $0x1a0] ss:$8 sps:$4 sm:$0xff]  }
  0x33   :  { %953 = vmatpush1.bf16.msra.mxu1 %v1406_v54  ;;  %v1498_v54 = vld [vmem:[%s2049_s1 + $0x1b4] ss:$8 sps:$4 sm:$0xff]  }
  0x34   :  { %1035 = vmatpush1.bf16.msra.mxu0 %v1407_v55  ;;  %954 = vmatprep.subr.bf16.mxu1 %v1408_v56  ;;  %v1501_v55 = vld [vmem:[%s2049_s1 + $0x3b4] ss:$8 sps:$4 sm:$0xff]   ;;  %v1496_v56 = vld [vmem:[%s2049_s1 + $0x1b0] ss:$8 sps:$4 sm:$0xff]  }
  0x35   :  { %1036 = vmatprep.subr.bf16.mxu0 %v1410_v57  ;;  %v1499_v57 = vld [vmem:[%s2049_s1 + $0x3b0] ss:$8 sps:$4 sm:$0xff]  }
  0x37   :  { %955 = vmatpush1.bf16.msra.mxu1 %v1412_v58  ;;  %v1504_v58 = vld [vmem:[%s2049_s1 + $0x1c4] ss:$8 sps:$4 sm:$0xff]  }
  0x38   :  { %1037 = vmatpush1.bf16.msra.mxu0 %v1413_v59  ;;  %956 = vmatprep.subr.bf16.mxu1 %v1414_v60  ;;  %v1507_v59 = vld [vmem:[%s2049_s1 + $0x3c4] ss:$8 sps:$4 sm:$0xff]   ;;  %v1502_v60 = vld [vmem:[%s2049_s1 + $0x1c0] ss:$8 sps:$4 sm:$0xff]  }
  0x39   :  { %1038 = vmatprep.subr.bf16.mxu0 %v1416_v61  ;;  %v1505_v61 = vld [vmem:[%s2049_s1 + $0x3c0] ss:$8 sps:$4 sm:$0xff]  }
  0x3b   :  { %957 = vmatpush1.bf16.msra.mxu1 %v1418_v62  ;;  %v1510_v62 = vld [vmem:[%s2049_s1 + $0x1d4] ss:$8 sps:$4 sm:$0xff]  }
  0x3c   :  { %1039 = vmatpush1.bf16.msra.mxu0 %v1419_v63  ;;  %958 = vmatprep.subr.bf16.mxu1 %v1420_v0  ;;  %v1513_v63 = vld [vmem:[%s2049_s1 + $0x3d4] ss:$8 sps:$4 sm:$0xff]   ;;  %v1508_v0 = vld [vmem:[%s2049_s1 + $0x1d0] ss:$8 sps:$4 sm:$0xff]  }
  0x3d   :  { %1040 = vmatprep.subr.bf16.mxu0 %v1422_v1  ;;  %v1511_v1 = vld [vmem:[%s2049_s1 + $0x3d0] ss:$8 sps:$4 sm:$0xff]  }
  0x3f   :  { %959 = vmatpush1.bf16.msra.mxu1 %v1424_v2  ;;  %v1516_v2 = vld [vmem:[%s2049_s1 + $0x1e4] ss:$8 sps:$4 sm:$0xff]  }
  0x40   :  { %1041 = vmatpush1.bf16.msra.mxu0 %v1425_v3  ;;  %969 = vmatprep.subr.bf16.mxu1 %v1430_v4  ;;  %v1519_v3 = vld [vmem:[%s2049_s1 + $0x3e4] ss:$8 sps:$4 sm:$0xff]   ;;  %v1514_v4 = vld [vmem:[%s2049_s1 + $0x1e0] ss:$8 sps:$4 sm:$0xff]  }
  0x41   :  { %1051 = vmatprep.subr.bf16.mxu0 %v1435_v5  ;;  %v1517_v5 = vld [vmem:[%s2049_s1 + $0x3e0] ss:$8 sps:$4 sm:$0xff]  }
  0x42   :  { %961 = vmatmul.mubr.bf16.vlgmr.msra.gmra.mrb[0].mxu1 %v1158_v6  ;;  %v1522_v6 = vld [vmem:[%s2049_s1 + $0x1f4] ss:$8 sps:$4 sm:$0xff]  }
  0x43   :  { %1043 = vmatmul.mubr.bf16.vlgmr.msra.gmra.mrb[0].mxu0 %v1162_v7  ;;  %970 = vmatpush1.bf16.msra.mxu1 %v1428_v8  ;;  %v1525_v7 = vld [vmem:[%s2049_s1 + $0x3f4] ss:$8 sps:$4 sm:$0xff]   ;;  %v1520_v8 = vld [vmem:[%s2049_s1 + $0x1f0] ss:$8 sps:$4 sm:$0xff]  }
  0x44   :  { %1052 = vmatpush1.bf16.msra.mxu0 %v1433_v9  ;;  %971 = vmatprep.subr.bf16.mxu1 %v1438_v10  ;;  %v1523_v9 = vld [vmem:[%s2049_s1 + $0x3f0] ss:$8 sps:$4 sm:$0xff]   ;;  %v1532_v10 = vld [vmem:[%s2049_s1 + $0x404] ss:$8 sps:$4 sm:$0xff]  }
  0x45   :  { %1053 = vmatprep.subr.bf16.mxu0 %v1441_v11  ;;  %1001 = vmatprep.mubr.bf16.mxu1 %v1161_v36  ;;  %v1160_v11 = vcombine.low %v1863_v32, %v1863_v32 }
  0x46   :  { %1083 = vmatprep.mubr.bf16.mxu0 %v1165_v37  ;;  %v164_v37 = vld [vmem:[%s2051_s2] sm:$0x3] }
  0x47   :  { %972 = vmatpush1.bf16.msra.mxu1 %v1436_v12  ;;  %v1164_v12 = vcombine.low %v1868_v33, %v1868_v33 }
  0x48   :  { %1054 = vmatpush1.bf16.msra.mxu0 %v1439_v13  ;;  %973 = vmatprep.subr.bf16.mxu1 %v1444_v14  ;;  %v1530_v13 = vld [vmem:[%s2049_s1 + $0x400] ss:$8 sps:$4 sm:$0xff]   ;;  %v1535_v14 = vld [vmem:[%s2049_s1 + $0x414] ss:$8 sps:$4 sm:$0xff]  }
  0x49   :  { %1055 = vmatprep.subr.bf16.mxu0 %v1447_v15  ;;  %v1533_v15 = vld [vmem:[%s2049_s1 + $0x410] ss:$8 sps:$4 sm:$0xff]  }
  0x4b   :  { %974 = vmatpush1.bf16.msra.mxu1 %v1442_v16  ;;  %v1563_v16 = vmov 0  }
  0x4c   :  { %1056 = vmatpush1.bf16.msra.mxu0 %v1445_v17  ;;  %975 = vmatprep.subr.bf16.mxu1 %v1450_v18  ;;  %v1538_v17 = vld [vmem:[%s2049_s1 + $0x424] ss:$8 sps:$4 sm:$0xff]   ;;  %v1536_v18 = vld [vmem:[%s2049_s1 + $0x420] ss:$8 sps:$4 sm:$0xff]  }
  0x4d   :  { %1057 = vmatprep.subr.bf16.mxu0 %v1453_v19  ;;  %v1541_v19 = vld [vmem:[%s2049_s1 + $0x434] ss:$8 sps:$4 sm:$0xff]  }
  0x4f   :  { %976 = vmatpush1.bf16.msra.mxu1 %v1448_v20  ;;  %v1539_v20 = vld [vmem:[%s2049_s1 + $0x430] ss:$8 sps:$4 sm:$0xff]  }
  0x50   :  { %1058 = vmatpush1.bf16.msra.mxu0 %v1451_v21  ;;  %977 = vmatprep.subr.bf16.mxu1 %v1456_v22  ;;  %v1544_v21 = vld [vmem:[%s2049_s1 + $0x444] ss:$8 sps:$4 sm:$0xff]   ;;  %v1542_v22 = vld [vmem:[%s2049_s1 + $0x440] ss:$8 sps:$4 sm:$0xff]  }
  0x51   :  { %1059 = vmatprep.subr.bf16.mxu0 %v1459_v23  ;;  %v1547_v23 = vld [vmem:[%s2049_s1 + $0x454] ss:$8 sps:$4 sm:$0xff]  }
  0x53   :  { %978 = vmatpush1.bf16.msra.mxu1 %v1454_v24  ;;  %v1545_v24 = vld [vmem:[%s2049_s1 + $0x450] ss:$8 sps:$4 sm:$0xff]  }
  0x54   :  { %1060 = vmatpush1.bf16.msra.mxu0 %v1457_v25  ;;  %979 = vmatprep.subr.bf16.mxu1 %v1462_v26  ;;  %v1550_v25 = vld [vmem:[%s2049_s1 + $0x464] ss:$8 sps:$4 sm:$0xff]   ;;  %v1548_v26 = vld [vmem:[%s2049_s1 + $0x460] ss:$8 sps:$4 sm:$0xff]  }
  0x55   :  { %1061 = vmatprep.subr.bf16.mxu0 %v1465_v27  ;;  %v1553_v27 = vld [vmem:[%s2049_s1 + $0x474] ss:$8 sps:$4 sm:$0xff]  }
  0x57   :  { %980 = vmatpush1.bf16.msra.mxu1 %v1460_v28  ;;  %v1551_v28 = vld [vmem:[%s2049_s1 + $0x470] ss:$8 sps:$4 sm:$0xff]  }
  0x58   :  { %1062 = vmatpush1.bf16.msra.mxu0 %v1463_v29  ;;  %981 = vmatprep.subr.bf16.mxu1 %v1468_v30  ;;  %v1554_v29 = vld [vmem:[%s2050_s0 + $0x20] ss:$0 sps:$4 sm:$0xff]  }
  0x59   :  { %1063 = vmatprep.subr.bf16.mxu0 %v1471_v31 }
  0x5b   :  { %982 = vmatpush1.bf16.msra.mxu1 %v1466_v34  ;;  %v166_v34 = vlaneseq }
  0x5c   :  { %1064 = vmatpush1.bf16.msra.mxu0 %v1469_v35  ;;  %983 = vmatprep.subr.bf16.mxu1 %v1474_v38 }
  0x5d   :  { %1065 = vmatprep.subr.bf16.mxu0 %v1477_v39  ;;  %v167_v35 = vshrl.u32 %v166_v34, 7 }
  0x5f   :  { %984 = vmatpush1.bf16.msra.mxu1 %v1472_v40  ;;  %v168_v36 = vsub.s32 0, %v167_v35  ;;  %v172_v38 = vsub.s32 1, %v167_v35 }
  0x60   :  { %1066 = vmatpush1.bf16.msra.mxu0 %v1475_v41  ;;  %985 = vmatprep.subr.bf16.mxu1 %v1480_v42 }
  0x61   :  { %1067 = vmatprep.subr.bf16.mxu0 %v1483_v43  ;;  %v169_v39 = vrot.slane %v164_v37, %v168_v36  ;;  %v173_v40 = vrot.slane %v164_v37, %v172_v38 }
  0x63   :  { %986 = vmatpush1.bf16.msra.mxu1 %v1478_v44 }
  0x64   :  { %1068 = vmatpush1.bf16.msra.mxu0 %v1481_v45  ;;  %987 = vmatprep.subr.bf16.mxu1 %v1486_v46 }
  0x65   :  { %1069 = vmatprep.subr.bf16.mxu0 %v1489_v47 }
  0x67   :  { %988 = vmatpush1.bf16.msra.mxu1 %v1484_v48 }
  0x68   :  { %1070 = vmatpush1.bf16.msra.mxu0 %v1487_v49  ;;  %989 = vmatprep.subr.bf16.mxu1 %v1492_v50 }
  0x69   :  { %1071 = vmatprep.subr.bf16.mxu0 %v1495_v51 }
  0x6b   :  { %990 = vmatpush1.bf16.msra.mxu1 %v1490_v52 }
  0x6c   :  { %1072 = vmatpush1.bf16.msra.mxu0 %v1493_v53  ;;  %991 = vmatprep.subr.bf16.mxu1 %v1498_v54 }
  0x6d   :  { %1073 = vmatprep.subr.bf16.mxu0 %v1501_v55 }
  0x6f   :  { %992 = vmatpush1.bf16.msra.mxu1 %v1496_v56 }
  0x70   :  { %1074 = vmatpush1.bf16.msra.mxu0 %v1499_v57  ;;  %993 = vmatprep.subr.bf16.mxu1 %v1504_v58 }
  0x71   :  { %1075 = vmatprep.subr.bf16.mxu0 %v1507_v59 }
  0x73   :  { %994 = vmatpush1.bf16.msra.mxu1 %v1502_v60 }
  0x74   :  { %1076 = vmatpush1.bf16.msra.mxu0 %v1505_v61  ;;  %995 = vmatprep.subr.bf16.mxu1 %v1510_v62 }
  0x75   :  { %1077 = vmatprep.subr.bf16.mxu0 %v1513_v63 }
  0x77   :  { %996 = vmatpush1.bf16.msra.mxu1 %v1508_v0 }
  0x78   :  { %1078 = vmatpush1.bf16.msra.mxu0 %v1511_v1  ;;  %997 = vmatprep.subr.bf16.mxu1 %v1516_v2 }
  0x79   :  { %1079 = vmatprep.subr.bf16.mxu0 %v1519_v3 }
  0x7b   :  { %998 = vmatpush1.bf16.msra.mxu1 %v1514_v4 }
  0x7c   :  { %1080 = vmatpush1.bf16.msra.mxu0 %v1517_v5  ;;  %999 = vmatprep.subr.bf16.mxu1 %v1522_v6 }
  0x7d   :  { %1081 = vmatprep.subr.bf16.mxu0 %v1525_v7 }
  0x7f   :  { %1000 = vmatpush1.bf16.msra.mxu1 %v1520_v8 }
  0x80   :  { %1082 = vmatpush1.bf16.msra.mxu0 %v1523_v9 }
  0x81   :  { %1092 = vmatprep.subr.bf16.mxu0 %v1532_v10 }
  0x82   :  { %1002 = vmatmul.mubr.bf16.vlgmr.msra.gmra.mrb[0].mxu1 %v1160_v11 }
  0x83   :  { %1084 = vmatmul.mubr.bf16.vlgmr.msra.gmra.mrb[0].mxu0 %v1164_v12 }
  0x84   :  { %1093 = vmatpush1.bf16.msra.mxu0 %v1530_v13  ;;  %1124 = vmatprep.mubr.bf16.mxu0 %v1563_v16 }
  0x85   :  { %1094 = vmatprep.subr.bf16.mxu0 %v1535_v14 }
  0x88   :  { %1095 = vmatpush1.bf16.msra.mxu0 %v1533_v15 }
  0x89   :  { %1096 = vmatprep.subr.bf16.mxu0 %v1538_v17 }
  0x8c   :  { %1097 = vmatpush1.bf16.msra.mxu0 %v1536_v18 }
  0x8d   :  { %1098 = vmatprep.subr.bf16.mxu0 %v1541_v19 }
  0x90   :  { %1099 = vmatpush1.bf16.msra.mxu0 %v1539_v20 }
  0x91   :  { %1100 = vmatprep.subr.bf16.mxu0 %v1544_v21 }
  0x94   :  { %1101 = vmatpush1.bf16.msra.mxu0 %v1542_v22 }
  0x95   :  { %1102 = vmatprep.subr.bf16.mxu0 %v1547_v23 }
  0x98   :  { %1103 = vmatpush1.bf16.msra.mxu0 %v1545_v24 }
  0x99   :  { %1104 = vmatprep.subr.bf16.mxu0 %v1550_v25 }
  0x9c   :  { %1105 = vmatpush1.bf16.msra.mxu0 %v1548_v26 }
  0x9d   :  { %1106 = vmatprep.subr.bf16.mxu0 %v1553_v27 }
  0xa0   :  { %1107 = vmatpush1.bf16.msra.mxu0 %v1551_v28 }
  0xa3   :  { %1125 = vmatmul.mubr.bf16.vlgmr.msra.gmra.mrb[0].mxu0 %v1554_v29 }
 0x155   :  { %v1003_v30 = vpop.f32.mrb[0].mxu1 }
 0x156   :  { %v1005_v31 = vpop.f32.mrb[1].mxu1  ;;  %v1313_v41 = vadd.f32 %v1003_v30, %v169_v39 }
 0x157   :  { %v1007_v32 = vpop.f32.mrb[2].mxu1  ;;  %v1315_v42 = vadd.f32 %v1005_v31, %v173_v40 }
 0x158   :  { %v1008_v33 = vpop.f32.mrb[3].mxu1 }
 0x176   :  { %v1126_v43 = vpop.f32.mrb[0].mxu0 }
 0x177   :  { %v1314_v44 = vadd.f32 %v1313_v41, %v1126_v43  ;;  %v1128_v45 = vpop.f32.mrb[1].mxu0 }
 0x178   :  { %v1316_v46 = vadd.f32 %v1315_v42, %v1128_v45  ;;  %v1130_v47 = vpop.f32.mrb[2].mxu0 }
 0x179   :  { %v1133_v48 = vsub.f32 0.0, %v1314_v44  ;;  %v1131_v49 = vpop.f32.mrb[3].mxu0 }
 0x17a   :  { %v1134_v50 = vsub.f32 0.0, %v1316_v46 }
 0x17b   :  { %v1135_v51 = vmul.f32 1.442695, %v1133_v48 }
 0x17c   :  { %v1137_v52 = vmul.f32 1.442695, %v1134_v50 }
 0x17d   :  { %1555 = vpow2.f32 %v1135_v51 }
 0x17e   :  { %1557 = vpow2.f32 %v1137_v52 }
 0x187   :  { %v1556_v53 = vpop.eup %1555 }
 0x188   :  { %v1558_v54 = vpop.eup %1557  ;;  %v1139_v55 = vadd.f32 1.0, %v1556_v53 }
 0x189   :  { %v1140_v56 = vadd.f32 1.0, %v1558_v54 }
 0x18a   :  { %1559 = vrcp.f32 %v1139_v55 }
 0x18b   :  { %1561 = vrcp.f32 %v1140_v56 }
 0x194   :  { %v1560_v57 = vpop.eup %1559 }
 0x195   :  { %v1562_v58 = vpop.eup %1561  ;;  %v1143_v59 = vmul.f32 %v1560_v57, %v1314_v44 }
 0x196   :  { %v1144_v60 = vmul.f32 %v1562_v58, %v1316_v46 }
 0x198   :  { %v1312_v61 = vpack.c.bf16 %v1144_v60, %v1143_v59 }
 0x19a   :  { %1153 = vst [vmem:[%s2052_s3] sm:$0xff] %v1312_v61 }

</bundles_post_ra>
